<compile_context>
chip_gen: v5e
topology: v5e:2x2
jax: 0.10.0
libtpu: 0.0.40
codegen_flags: <defaults>
</compile_context>

<pallas_src>
import functools

import jax
import jax.numpy as jnp
from jax.experimental import pallas as pl
from jax.experimental.pallas import tpu as pltpu


def _round_up(x, m):
    return ((x + m - 1) // m) * m


# ---------------------------------------------------------------------------
# Fused per-(batch, block) kernel
# ---------------------------------------------------------------------------
def _layer_kernel(x_ref, rc_ref,
                  vw_ref, vb_ref, dww_ref, dwb_ref, pw_ref, pb_ref,
                  f1w_ref, f1b_ref, f2w_ref, f2b_ref,
                  o_ref, state_ref, *, Hp, Wp):
    """One (batch element, transformer block) grid step.

    Shapes (C = dim, Ch = hidden, Sp = lane-padded Hp*Wp):
      x_ref   (C, Sp)    flat zero-halo input image (fetched once per batch)
      rc_ref  (2, Sp)    int32 [row_id; col_id] of every flat position
      vw/pw   (C, C), f1w (Ch, C), f2w (C, Ch)   1x1 conv weights
      vb/pb/dwb/f2b (C, 1), f1b (Ch, 1)          biases (f32)
      dww     (25, C, 1) depthwise 5x5 taps, tap k = i*5 + j (f32)
      o_ref   (C, Sp)    output (valid at interior positions only)
      state_ref          VMEM scratch carrying the activation across blocks
    """
    d = pl.program_id(1)
    sp = state_ref.shape[-1]

    @pl.when(d == 0)
    def _():
        state_ref[...] = x_ref[...].astype(jnp.float32)

    x = state_ref[...]                               # (C, Sp) f32
    row = rc_ref[0:1, :]
    col = rc_ref[1:2, :]
    mm_dtype = vw_ref.dtype

    def mm(w_ref, act, b_ref):                       # W @ act + b, f32 acc
        return jnp.dot(w_ref[...], act.astype(mm_dtype),
                       preferred_element_type=jnp.float32) + b_ref[...]

    # ---- attention branch: x + proj(dwconv5x5_reflect(V(x))) ----
    v = mm(vw_ref, x, vb_ref)

    # Rebuild the 2-pixel reflect halo of v from its interior: columns first,
    # then rows (row fixes copy whole, already column-fixed, interior rows).
    # Each fix = one static lane rotation (XLU) + one masked select.
    def reflect_fix(val, ids, dst, src, stride):
        shift = ((dst - src) * stride) % sp
        return jnp.where(ids == dst, pltpu.roll(val, shift, axis=1), val)

    for dst, src in ((0, 4), (1, 3), (Wp - 2, Wp - 4), (Wp - 1, Wp - 5)):
        v = reflect_fix(v, col, dst, src, 1)
    for dst, src in ((0, 4), (1, 3), (Hp - 2, Hp - 4), (Hp - 1, Hp - 5)):
        v = reflect_fix(v, row, dst, src, Wp)

    # 25-tap depthwise 5x5: each tap is a lane rotation of the flat image
    # (exact for all interior outputs) times a per-channel scalar.  f32 taps.
    acc = jnp.zeros_like(v)
    for i in range(5):
        for j in range(5):
            off = (i - 2) * Wp + (j - 2)
            tap = v if off == 0 else pltpu.roll(v, (-off) % sp, axis=1)
            acc = acc + tap * dww_ref[i * 5 + j]
    c = acc + dwb_ref[...]

    x = x + mm(pw_ref, c, pb_ref)

    # ---- MLP branch: x + fc2(relu(fc1(x))); hidden never leaves VMEM ----
    h = jnp.maximum(mm(f1w_ref, x, f1b_ref), 0.0)
    x = x + mm(f2w_ref, h, f2b_ref)

    state_ref[...] = x
    o_ref[...] = x.astype(o_ref.dtype)


# ---------------------------------------------------------------------------
# BasicLayer forward wrapper
# ---------------------------------------------------------------------------
def basic_layer_apply(x, params, *, compute_dtype=jnp.bfloat16):
    """x: (B, C, H, W) NCHW; params: list (len=depth) of per-block dicts."""
    B, C, H, W = x.shape
    assert H >= 3 and W >= 3, "reflect padding of 2 needs H, W >= 3"
    depth = len(params)
    Ch = params[0]["fc1_w"].shape[0]
    Hp, Wp = H + 4, W + 4
    Sp = Hp * Wp
    Spl = _round_up(Sp, 128)                 # lane-padded flat spatial extent
    out_dtype = x.dtype
    mm_dtype = compute_dtype if compute_dtype is not None else x.dtype

    # One-time layout change for the whole layer (never pad/slice per conv):
    # zero halo + flatten + lane pad.  Halo values are recomputed in-kernel by
    # reflection, so zeros are fine here.
    xp = jnp.pad(x, ((0, 0), (0, 0), (2, 2), (2, 2)))
    xp = xp.reshape(B, C, Sp)
    if Spl != Sp:
        xp = jnp.pad(xp, ((0, 0), (0, 0), (0, Spl - Sp)))

    # Row / column ids of each flat position (tiny, VMEM resident).
    pos = jnp.arange(Spl, dtype=jnp.int32)
    rc = jnp.stack([pos // Wp, pos % Wp]).astype(jnp.int32)

    # Stack per-block weights along a leading depth axis (indexed by the
    # sequential depth grid dimension).
    def stack(name, dt):
        return jnp.stack([p[name] for p in params]).astype(dt)

    vw = stack("v_w", mm_dtype)                          # (d, C, C)
    pw = stack("proj_w", mm_dtype)                       # (d, C, C)
    f1w = stack("fc1_w", mm_dtype)                       # (d, Ch, C)
    f2w = stack("fc2_w", mm_dtype)                       # (d, C, Ch)
    vb = stack("v_b", jnp.float32).reshape(depth, C, 1)
    pb = stack("proj_b", jnp.float32).reshape(depth, C, 1)
    f1b = stack("fc1_b", jnp.float32).reshape(depth, Ch, 1)
    f2b = stack("fc2_b", jnp.float32).reshape(depth, C, 1)
    dwb = stack("dw_b", jnp.float32).reshape(depth, C, 1)
    dww = stack("dw_w", jnp.float32).reshape(depth, C, 25)
    dww = dww.transpose(0, 2, 1).reshape(depth, 25, C, 1)  # tap-major

    def w_spec(shape):     # per-block weight: VMEM resident for a whole block
        zeros = (0,) * len(shape)
        return pl.BlockSpec((None,) + shape, lambda b, d: (d,) + zeros)

    x_spec = pl.BlockSpec((None, C, Spl), lambda b, d: (b, 0, 0))
    rc_spec = pl.BlockSpec((2, Spl), lambda b, d: (0, 0))
    o_spec = pl.BlockSpec((None, C, Spl), lambda b, d: (b, 0, 0))

    kernel = functools.partial(_layer_kernel, Hp=Hp, Wp=Wp)

    out = pl.pallas_call(
        kernel,
        out_shape=jax.ShapeDtypeStruct((B, C, Spl), out_dtype),
        grid=(B, depth),
        in_specs=[
            x_spec, rc_spec,
            w_spec((C, C)), w_spec((C, 1)),            # V
            w_spec((25, C, 1)), w_spec((C, 1)),        # dwconv 5x5
            w_spec((C, C)), w_spec((C, 1)),            # proj
            w_spec((Ch, C)), w_spec((Ch, 1)),          # fc1
            w_spec((C, Ch)), w_spec((C, 1)),           # fc2
        ],
        out_specs=o_spec,
        scratch_shapes=[pltpu.VMEM((C, Spl), jnp.float32)],
        compiler_params=pltpu.CompilerParams(
            dimension_semantics=("parallel", "arbitrary"),
            vmem_limit_bytes=32 * 1024 * 1024),   # deliberate budget, << 64MiB
    )(xp, rc, vw, vb, dww, dwb, pw, pb, f1w, f1b, f2w, f2b)

    out = out[:, :, :Sp].reshape(B, C, Hp, Wp)
    return out[:, :, 2:H + 2, 2:W + 2]


# ---------------------------------------------------------------------------
# Pure-JAX reference (independent implementation)
# ---------------------------------------------------------------------------
def _conv1x1_ref(x, w, b):
    y = jnp.einsum("nk,bkhw->bnhw", w, x, precision=jax.lax.Precision.HIGHEST)
    return y + b[None, :, None, None]


def _dwconv_ref(x, w, b):
    C = x.shape[1]
    xp = jnp.pad(x, ((0, 0), (0, 0), (2, 2), (2, 2)), mode="reflect")
    y = jax.lax.conv_general_dilated(
        xp, w[:, None, :, :], window_strides=(1, 1), padding="VALID",
        dimension_numbers=("NCHW", "OIHW", "NCHW"),
        feature_group_count=C, precision=jax.lax.Precision.HIGHEST)
    return y + b[None, :, None, None]


def _block_ref(x, p):
    attn = _conv1x1_ref(
        _dwconv_ref(_conv1x1_ref(x, p["v_w"], p["v_b"]), p["dw_w"], p["dw_b"]),
        p["proj_w"], p["proj_b"])
    x = x + attn
    mlp = _conv1x1_ref(
        jax.nn.relu(_conv1x1_ref(x, p["fc1_w"], p["fc1_b"])),
        p["fc2_w"], p["fc2_b"])
    return x + mlp


def basic_layer_ref(x, params):
    for p in params:
        x = _block_ref(x, p)
    return x


# ---------------------------------------------------------------------------
def _init_block(key, dim, hidden):
    ks = jax.random.split(key, 10)
    s = 0.05
    return {
        "v_w":    jax.random.normal(ks[0], (dim, dim), jnp.float32) * s,
        "v_b":    jax.random.normal(ks[1], (dim,), jnp.float32) * s,
        "dw_w":   jax.random.normal(ks[2], (dim, 5, 5), jnp.float32) * s,
        "dw_b":   jax.random.normal(ks[3], (dim,), jnp.float32) * s,
        "proj_w": jax.random.normal(ks[4], (dim, dim), jnp.float32) * s,
        "proj_b": jax.random.normal(ks[5], (dim,), jnp.float32) * s,
        "fc1_w":  jax.random.normal(ks[6], (hidden, dim), jnp.float32) * s,
        "fc1_b":  jax.random.normal(ks[7], (hidden,), jnp.float32) * s,
        "fc2_w":  jax.random.normal(ks[8], (dim, hidden), jnp.float32) * s,
        "fc2_b":  jax.random.normal(ks[9], (dim,), jnp.float32) * s,
    }


if __name__ == "__main__":
    # BasicLayer(dim=32, depth=2, mlp_ratio=4.0, attn_ratio=0.0, conv_type='DWConv')
    dim, depth, mlp_ratio = 32, 2, 4.0
    B, H, W = 2, 16, 16

    key = jax.random.PRNGKey(0)
    kx, *bkeys = jax.random.split(key, depth + 1)
    x = jax.random.normal(kx, (B, dim, H, W), dtype=jnp.float32)
    params = [_init_block(k, dim, int(dim * mlp_ratio)) for k in bkeys]

    ref = basic_layer_ref(x, params)

    # f32 matmul operands: tight structural check of the fused kernel.
    run_f32 = jax.jit(functools.partial(basic_layer_apply,
                                        compute_dtype=jnp.float32))
    out = jax.block_until_ready(run_f32(x, params))
    assert out.shape == (B, dim, H, W)
    err = float(jnp.max(jnp.abs(out - ref)))
    assert jnp.allclose(out, ref, atol=5e-3, rtol=5e-3), f"f32 mismatch: {err}"

    # bf16 matmul operands (recommended on v6e/v7x), f32 accumulate/residuals.
    run_bf16 = jax.jit(functools.partial(basic_layer_apply,
                                         compute_dtype=jnp.bfloat16))
    out_bf = jax.block_until_ready(run_bf16(x, params))
    err_bf = float(jnp.max(jnp.abs(out_bf - ref)))
    assert jnp.allclose(out_bf, ref, atol=4e-2, rtol=4e-2), \
        f"bf16 mismatch: {err_bf}"

    print("KERNEL_OK")
</pallas_src>

<mosaic_0001>
module attributes {stable_mosaic.version = 11 : i64} {
  func.func @_layer_kernel(%arg0: i32, %arg1: i32, %arg2: memref<1x32x512xf32, #tpu.memory_space<vmem>>, %arg3: memref<2x512xi32, #tpu.memory_space<vmem>>, %arg4: memref<1x32x32xf32, #tpu.memory_space<vmem>>, %arg5: memref<1x32x1xf32, #tpu.memory_space<vmem>>, %arg6: memref<1x25x32x1xf32, #tpu.memory_space<vmem>>, %arg7: memref<1x32x1xf32, #tpu.memory_space<vmem>>, %arg8: memref<1x32x32xf32, #tpu.memory_space<vmem>>, %arg9: memref<1x32x1xf32, #tpu.memory_space<vmem>>, %arg10: memref<1x128x32xf32, #tpu.memory_space<vmem>>, %arg11: memref<1x128x1xf32, #tpu.memory_space<vmem>>, %arg12: memref<1x32x128xf32, #tpu.memory_space<vmem>>, %arg13: memref<1x32x1xf32, #tpu.memory_space<vmem>>, %arg14: memref<1x32x512xf32, #tpu.memory_space<vmem>>, %arg15: memref<32x512xf32, #tpu.memory_space<vmem>>) attributes {dimension_semantics = [#tpu.dimension_semantics<parallel>, #tpu.dimension_semantics<arbitrary>], iteration_bounds = array<i64: 2, 2>, scalar_prefetch = 0 : i64, scratch_operands = 1 : i64, tpu.core_type = #tpu.core_type<tc>, window_params = [{transform_indices = @transform_0, window_bounds = array<i64: 1, 32, 512>}, {pipeline_mode = #tpu.pipeline_mode<synchronous>, transform_indices = @transform_1, window_bounds = array<i64: 2, 512>}, {transform_indices = @transform_2, window_bounds = array<i64: 1, 32, 32>}, {transform_indices = @transform_3, window_bounds = array<i64: 1, 32, 1>}, {transform_indices = @transform_4, window_bounds = array<i64: 1, 25, 32, 1>}, {transform_indices = @transform_5, window_bounds = array<i64: 1, 32, 1>}, {transform_indices = @transform_6, window_bounds = array<i64: 1, 32, 32>}, {transform_indices = @transform_7, window_bounds = array<i64: 1, 32, 1>}, {transform_indices = @transform_8, window_bounds = array<i64: 1, 128, 32>}, {transform_indices = @transform_9, window_bounds = array<i64: 1, 128, 1>}, {transform_indices = @transform_10, window_bounds = array<i64: 1, 32, 128>}, {transform_indices = @transform_11, window_bounds = array<i64: 1, 32, 1>}, {transform_indices = @transform_12, window_bounds = array<i64: 1, 32, 512>}]} {
    %c0_i32 = arith.constant 0 : i32
    %0 = arith.cmpi eq, %arg1, %c0_i32 : i32
    %1 = arith.extui %0 : i1 to i32
    %c0_i32_0 = arith.constant 0 : i32
    %2 = arith.cmpi ne, %1, %c0_i32_0 : i32
    scf.if %2 {
      %c0_131 = arith.constant 0 : index
      %c0_132 = arith.constant 0 : index
      %c0_133 = arith.constant 0 : index
      %244 = vector.load %arg2[%c0_131, %c0_132, %c0_133] : memref<1x32x512xf32, #tpu.memory_space<vmem>>, vector<1x32x512xf32>
      %245 = vector.shape_cast %244 : vector<1x32x512xf32> to vector<32x512xf32>
      %c0_134 = arith.constant 0 : index
      %c0_135 = arith.constant 0 : index
      %246 = vector.load %arg15[%c0_134, %c0_135] : memref<32x512xf32, #tpu.memory_space<vmem>>, vector<32x512xf32>
      tpu.vector_store %arg15[%c0_134, %c0_135], %245 {strides = array<i32>} : memref<32x512xf32, #tpu.memory_space<vmem>>, vector<32x512xf32>,
    } else {
    }
    %c0 = arith.constant 0 : index
    %c0_1 = arith.constant 0 : index
    %3 = vector.load %arg15[%c0, %c0_1] : memref<32x512xf32, #tpu.memory_space<vmem>>, vector<32x512xf32>
    %c0_2 = arith.constant 0 : index
    %c0_3 = arith.constant 0 : index
    %4 = vector.load %arg3[%c0_2, %c0_3] : memref<2x512xi32, #tpu.memory_space<vmem>>, vector<1x512xi32>
    %c1 = arith.constant 1 : index
    %c0_4 = arith.constant 0 : index
    %5 = vector.load %arg3[%c1, %c0_4] : memref<2x512xi32, #tpu.memory_space<vmem>>, vector<1x512xi32>
    %c0_5 = arith.constant 0 : index
    %c0_6 = arith.constant 0 : index
    %c0_7 = arith.constant 0 : index
    %6 = vector.load %arg4[%c0_5, %c0_6, %c0_7] : memref<1x32x32xf32, #tpu.memory_space<vmem>>, vector<1x32x32xf32>
    %7 = vector.shape_cast %6 : vector<1x32x32xf32> to vector<32x32xf32>
    %cst = arith.constant dense<0.000000e+00> : vector<32x512xf32>
    %8 = tpu.matmul %7, %3, %cst {dimension_numbers = #tpu.dot_dimension_numbers<[1], [0], [0], [1], [0, 0, 1, 1], [], []>} : vector<32x32xf32>, vector<32x512xf32>, vector<32x512xf32> -> vector<32x512xf32>
    %c0_8 = arith.constant 0 : index
    %c0_9 = arith.constant 0 : index
    %c0_10 = arith.constant 0 : index
    %9 = vector.load %arg5[%c0_8, %c0_9, %c0_10] : memref<1x32x1xf32, #tpu.memory_space<vmem>>, vector<1x32x1xf32>
    %10 = vector.shape_cast %9 : vector<1x32x1xf32> to vector<32x1xf32>
    %11 = vector.broadcast %10 : vector<32x1xf32> to vector<32x512xf32>
    %12 = arith.addf %8, %11 : vector<32x512xf32>
    %c0_i32_11 = arith.constant 0 : i32
    %13 = vector.broadcast %c0_i32_11 : i32 to vector<1x512xi32>
    %14 = arith.cmpi eq, %5, %13 : vector<1x512xi32>
    %c508_i32 = arith.constant 508 : i32
    %15 = tpu.dynamic_rotate %12 by %c508_i32 dim 1 : vector<32x512xf32>, i32 -> vector<32x512xf32>
    %16 = vector.shape_cast %14 : vector<1x512xi1> to vector<1x512xi1>
    %17 = vector.broadcast %16 : vector<1x512xi1> to vector<32x512xi1>
    %18 = arith.select %17, %15, %12 : vector<32x512xi1>, vector<32x512xf32>
    %c1_i32 = arith.constant 1 : i32
    %19 = vector.broadcast %c1_i32 : i32 to vector<1x512xi32>
    %20 = arith.cmpi eq, %5, %19 : vector<1x512xi32>
    %c510_i32 = arith.constant 510 : i32
    %21 = tpu.dynamic_rotate %18 by %c510_i32 dim 1 : vector<32x512xf32>, i32 -> vector<32x512xf32>
    %22 = vector.shape_cast %20 : vector<1x512xi1> to vector<1x512xi1>
    %23 = vector.broadcast %22 : vector<1x512xi1> to vector<32x512xi1>
    %24 = arith.select %23, %21, %18 : vector<32x512xi1>, vector<32x512xf32>
    %c18_i32 = arith.constant 18 : i32
    %25 = vector.broadcast %c18_i32 : i32 to vector<1x512xi32>
    %26 = arith.cmpi eq, %5, %25 : vector<1x512xi32>
    %c2_i32 = arith.constant 2 : i32
    %27 = tpu.dynamic_rotate %24 by %c2_i32 dim 1 : vector<32x512xf32>, i32 -> vector<32x512xf32>
    %28 = vector.shape_cast %26 : vector<1x512xi1> to vector<1x512xi1>
    %29 = vector.broadcast %28 : vector<1x512xi1> to vector<32x512xi1>
    %30 = arith.select %29, %27, %24 : vector<32x512xi1>, vector<32x512xf32>
    %c19_i32 = arith.constant 19 : i32
    %31 = vector.broadcast %c19_i32 : i32 to vector<1x512xi32>
    %32 = arith.cmpi eq, %5, %31 : vector<1x512xi32>
    %c4_i32 = arith.constant 4 : i32
    %33 = tpu.dynamic_rotate %30 by %c4_i32 dim 1 : vector<32x512xf32>, i32 -> vector<32x512xf32>
    %34 = vector.shape_cast %32 : vector<1x512xi1> to vector<1x512xi1>
    %35 = vector.broadcast %34 : vector<1x512xi1> to vector<32x512xi1>
    %36 = arith.select %35, %33, %30 : vector<32x512xi1>, vector<32x512xf32>
    %c0_i32_12 = arith.constant 0 : i32
    %37 = vector.broadcast %c0_i32_12 : i32 to vector<1x512xi32>
    %38 = arith.cmpi eq, %4, %37 : vector<1x512xi32>
    %c432_i32 = arith.constant 432 : i32
    %39 = tpu.dynamic_rotate %36 by %c432_i32 dim 1 : vector<32x512xf32>, i32 -> vector<32x512xf32>
    %40 = vector.shape_cast %38 : vector<1x512xi1> to vector<1x512xi1>
    %41 = vector.broadcast %40 : vector<1x512xi1> to vector<32x512xi1>
    %42 = arith.select %41, %39, %36 : vector<32x512xi1>, vector<32x512xf32>
    %c1_i32_13 = arith.constant 1 : i32
    %43 = vector.broadcast %c1_i32_13 : i32 to vector<1x512xi32>
    %44 = arith.cmpi eq, %4, %43 : vector<1x512xi32>
    %c472_i32 = arith.constant 472 : i32
    %45 = tpu.dynamic_rotate %42 by %c472_i32 dim 1 : vector<32x512xf32>, i32 -> vector<32x512xf32>
    %46 = vector.shape_cast %44 : vector<1x512xi1> to vector<1x512xi1>
    %47 = vector.broadcast %46 : vector<1x512xi1> to vector<32x512xi1>
    %48 = arith.select %47, %45, %42 : vector<32x512xi1>, vector<32x512xf32>
    %c18_i32_14 = arith.constant 18 : i32
    %49 = vector.broadcast %c18_i32_14 : i32 to vector<1x512xi32>
    %50 = arith.cmpi eq, %4, %49 : vector<1x512xi32>
    %c40_i32 = arith.constant 40 : i32
    %51 = tpu.dynamic_rotate %48 by %c40_i32 dim 1 : vector<32x512xf32>, i32 -> vector<32x512xf32>
    %52 = vector.shape_cast %50 : vector<1x512xi1> to vector<1x512xi1>
    %53 = vector.broadcast %52 : vector<1x512xi1> to vector<32x512xi1>
    %54 = arith.select %53, %51, %48 : vector<32x512xi1>, vector<32x512xf32>
    %c19_i32_15 = arith.constant 19 : i32
    %55 = vector.broadcast %c19_i32_15 : i32 to vector<1x512xi32>
    %56 = arith.cmpi eq, %4, %55 : vector<1x512xi32>
    %c80_i32 = arith.constant 80 : i32
    %57 = tpu.dynamic_rotate %54 by %c80_i32 dim 1 : vector<32x512xf32>, i32 -> vector<32x512xf32>
    %58 = vector.shape_cast %56 : vector<1x512xi1> to vector<1x512xi1>
    %59 = vector.broadcast %58 : vector<1x512xi1> to vector<32x512xi1>
    %60 = arith.select %59, %57, %54 : vector<32x512xi1>, vector<32x512xf32>
    %cst_16 = arith.constant 0.000000e+00 : f32
    %61 = vector.broadcast %cst_16 : f32 to vector<32x512xf32>
    %c42_i32 = arith.constant 42 : i32
    %62 = tpu.dynamic_rotate %60 by %c42_i32 dim 1 : vector<32x512xf32>, i32 -> vector<32x512xf32>
    %c0_17 = arith.constant 0 : index
    %c0_18 = arith.constant 0 : index
    %c0_19 = arith.constant 0 : index
    %c0_20 = arith.constant 0 : index
    %63 = vector.load %arg6[%c0_17, %c0_18, %c0_19, %c0_20] : memref<1x25x32x1xf32, #tpu.memory_space<vmem>>, vector<1x1x32x1xf32>
    %64 = vector.shape_cast %63 : vector<1x1x32x1xf32> to vector<32x1xf32>
    %65 = vector.broadcast %64 : vector<32x1xf32> to vector<32x512xf32>
    %66 = arith.mulf %62, %65 : vector<32x512xf32>
    %67 = arith.addf %61, %66 : vector<32x512xf32>
    %c41_i32 = arith.constant 41 : i32
    %68 = tpu.dynamic_rotate %60 by %c41_i32 dim 1 : vector<32x512xf32>, i32 -> vector<32x512xf32>
    %c0_21 = arith.constant 0 : index
    %c1_22 = arith.constant 1 : index
    %c0_23 = arith.constant 0 : index
    %c0_24 = arith.constant 0 : index
    %69 = vector.load %arg6[%c0_21, %c1_22, %c0_23, %c0_24] : memref<1x25x32x1xf32, #tpu.memory_space<vmem>>, vector<1x1x32x1xf32>
    %70 = vector.shape_cast %69 : vector<1x1x32x1xf32> to vector<32x1xf32>
    %71 = vector.broadcast %70 : vector<32x1xf32> to vector<32x512xf32>
    %72 = arith.mulf %68, %71 : vector<32x512xf32>
    %73 = arith.addf %67, %72 : vector<32x512xf32>
    %c40_i32_25 = arith.constant 40 : i32
    %74 = tpu.dynamic_rotate %60 by %c40_i32_25 dim 1 : vector<32x512xf32>, i32 -> vector<32x512xf32>
    %c0_26 = arith.constant 0 : index
    %c2 = arith.constant 2 : index
    %c0_27 = arith.constant 0 : index
    %c0_28 = arith.constant 0 : index
    %75 = vector.load %arg6[%c0_26, %c2, %c0_27, %c0_28] : memref<1x25x32x1xf32, #tpu.memory_space<vmem>>, vector<1x1x32x1xf32>
    %76 = vector.shape_cast %75 : vector<1x1x32x1xf32> to vector<32x1xf32>
    %77 = vector.broadcast %76 : vector<32x1xf32> to vector<32x512xf32>
    %78 = arith.mulf %74, %77 : vector<32x512xf32>
    %79 = arith.addf %73, %78 : vector<32x512xf32>
    %c39_i32 = arith.constant 39 : i32
    %80 = tpu.dynamic_rotate %60 by %c39_i32 dim 1 : vector<32x512xf32>, i32 -> vector<32x512xf32>
    %c0_29 = arith.constant 0 : index
    %c3 = arith.constant 3 : index
    %c0_30 = arith.constant 0 : index
    %c0_31 = arith.constant 0 : index
    %81 = vector.load %arg6[%c0_29, %c3, %c0_30, %c0_31] : memref<1x25x32x1xf32, #tpu.memory_space<vmem>>, vector<1x1x32x1xf32>
    %82 = vector.shape_cast %81 : vector<1x1x32x1xf32> to vector<32x1xf32>
    %83 = vector.broadcast %82 : vector<32x1xf32> to vector<32x512xf32>
    %84 = arith.mulf %80, %83 : vector<32x512xf32>
    %85 = arith.addf %79, %84 : vector<32x512xf32>
    %c38_i32 = arith.constant 38 : i32
    %86 = tpu.dynamic_rotate %60 by %c38_i32 dim 1 : vector<32x512xf32>, i32 -> vector<32x512xf32>
    %c0_32 = arith.constant 0 : index
    %c4 = arith.constant 4 : index
    %c0_33 = arith.constant 0 : index
    %c0_34 = arith.constant 0 : index
    %87 = vector.load %arg6[%c0_32, %c4, %c0_33, %c0_34] : memref<1x25x32x1xf32, #tpu.memory_space<vmem>>, vector<1x1x32x1xf32>
    %88 = vector.shape_cast %87 : vector<1x1x32x1xf32> to vector<32x1xf32>
    %89 = vector.broadcast %88 : vector<32x1xf32> to vector<32x512xf32>
    %90 = arith.mulf %86, %89 : vector<32x512xf32>
    %91 = arith.addf %85, %90 : vector<32x512xf32>
    %c22_i32 = arith.constant 22 : i32
    %92 = tpu.dynamic_rotate %60 by %c22_i32 dim 1 : vector<32x512xf32>, i32 -> vector<32x512xf32>
    %c0_35 = arith.constant 0 : index
    %c5 = arith.constant 5 : index
    %c0_36 = arith.constant 0 : index
    %c0_37 = arith.constant 0 : index
    %93 = vector.load %arg6[%c0_35, %c5, %c0_36, %c0_37] : memref<1x25x32x1xf32, #tpu.memory_space<vmem>>, vector<1x1x32x1xf32>
    %94 = vector.shape_cast %93 : vector<1x1x32x1xf32> to vector<32x1xf32>
    %95 = vector.broadcast %94 : vector<32x1xf32> to vector<32x512xf32>
    %96 = arith.mulf %92, %95 : vector<32x512xf32>
    %97 = arith.addf %91, %96 : vector<32x512xf32>
    %c21_i32 = arith.constant 21 : i32
    %98 = tpu.dynamic_rotate %60 by %c21_i32 dim 1 : vector<32x512xf32>, i32 -> vector<32x512xf32>
    %c0_38 = arith.constant 0 : index
    %c6 = arith.constant 6 : index
    %c0_39 = arith.constant 0 : index
    %c0_40 = arith.constant 0 : index
    %99 = vector.load %arg6[%c0_38, %c6, %c0_39, %c0_40] : memref<1x25x32x1xf32, #tpu.memory_space<vmem>>, vector<1x1x32x1xf32>
    %100 = vector.shape_cast %99 : vector<1x1x32x1xf32> to vector<32x1xf32>
    %101 = vector.broadcast %100 : vector<32x1xf32> to vector<32x512xf32>
    %102 = arith.mulf %98, %101 : vector<32x512xf32>
    %103 = arith.addf %97, %102 : vector<32x512xf32>
    %c20_i32 = arith.constant 20 : i32
    %104 = tpu.dynamic_rotate %60 by %c20_i32 dim 1 : vector<32x512xf32>, i32 -> vector<32x512xf32>
    %c0_41 = arith.constant 0 : index
    %c7 = arith.constant 7 : index
    %c0_42 = arith.constant 0 : index
    %c0_43 = arith.constant 0 : index
    %105 = vector.load %arg6[%c0_41, %c7, %c0_42, %c0_43] : memref<1x25x32x1xf32, #tpu.memory_space<vmem>>, vector<1x1x32x1xf32>
    %106 = vector.shape_cast %105 : vector<1x1x32x1xf32> to vector<32x1xf32>
    %107 = vector.broadcast %106 : vector<32x1xf32> to vector<32x512xf32>
    %108 = arith.mulf %104, %107 : vector<32x512xf32>
    %109 = arith.addf %103, %108 : vector<32x512xf32>
    %c19_i32_44 = arith.constant 19 : i32
    %110 = tpu.dynamic_rotate %60 by %c19_i32_44 dim 1 : vector<32x512xf32>, i32 -> vector<32x512xf32>
    %c0_45 = arith.constant 0 : index
    %c8 = arith.constant 8 : index
    %c0_46 = arith.constant 0 : index
    %c0_47 = arith.constant 0 : index
    %111 = vector.load %arg6[%c0_45, %c8, %c0_46, %c0_47] : memref<1x25x32x1xf32, #tpu.memory_space<vmem>>, vector<1x1x32x1xf32>
    %112 = vector.shape_cast %111 : vector<1x1x32x1xf32> to vector<32x1xf32>
    %113 = vector.broadcast %112 : vector<32x1xf32> to vector<32x512xf32>
    %114 = arith.mulf %110, %113 : vector<32x512xf32>
    %115 = arith.addf %109, %114 : vector<32x512xf32>
    %c18_i32_48 = arith.constant 18 : i32
    %116 = tpu.dynamic_rotate %60 by %c18_i32_48 dim 1 : vector<32x512xf32>, i32 -> vector<32x512xf32>
    %c0_49 = arith.constant 0 : index
    %c9 = arith.constant 9 : index
    %c0_50 = arith.constant 0 : index
    %c0_51 = arith.constant 0 : index
    %117 = vector.load %arg6[%c0_49, %c9, %c0_50, %c0_51] : memref<1x25x32x1xf32, #tpu.memory_space<vmem>>, vector<1x1x32x1xf32>
    %118 = vector.shape_cast %117 : vector<1x1x32x1xf32> to vector<32x1xf32>
    %119 = vector.broadcast %118 : vector<32x1xf32> to vector<32x512xf32>
    %120 = arith.mulf %116, %119 : vector<32x512xf32>
    %121 = arith.addf %115, %120 : vector<32x512xf32>
    %c2_i32_52 = arith.constant 2 : i32
    %122 = tpu.dynamic_rotate %60 by %c2_i32_52 dim 1 : vector<32x512xf32>, i32 -> vector<32x512xf32>
    %c0_53 = arith.constant 0 : index
    %c10 = arith.constant 10 : index
    %c0_54 = arith.constant 0 : index
    %c0_55 = arith.constant 0 : index
    %123 = vector.load %arg6[%c0_53, %c10, %c0_54, %c0_55] : memref<1x25x32x1xf32, #tpu.memory_space<vmem>>, vector<1x1x32x1xf32>
    %124 = vector.shape_cast %123 : vector<1x1x32x1xf32> to vector<32x1xf32>
    %125 = vector.broadcast %124 : vector<32x1xf32> to vector<32x512xf32>
    %126 = arith.mulf %122, %125 : vector<32x512xf32>
    %127 = arith.addf %121, %126 : vector<32x512xf32>
    %c1_i32_56 = arith.constant 1 : i32
    %128 = tpu.dynamic_rotate %60 by %c1_i32_56 dim 1 : vector<32x512xf32>, i32 -> vector<32x512xf32>
    %c0_57 = arith.constant 0 : index
    %c11 = arith.constant 11 : index
    %c0_58 = arith.constant 0 : index
    %c0_59 = arith.constant 0 : index
    %129 = vector.load %arg6[%c0_57, %c11, %c0_58, %c0_59] : memref<1x25x32x1xf32, #tpu.memory_space<vmem>>, vector<1x1x32x1xf32>
    %130 = vector.shape_cast %129 : vector<1x1x32x1xf32> to vector<32x1xf32>
    %131 = vector.broadcast %130 : vector<32x1xf32> to vector<32x512xf32>
    %132 = arith.mulf %128, %131 : vector<32x512xf32>
    %133 = arith.addf %127, %132 : vector<32x512xf32>
    %c0_60 = arith.constant 0 : index
    %c12 = arith.constant 12 : index
    %c0_61 = arith.constant 0 : index
    %c0_62 = arith.constant 0 : index
    %134 = vector.load %arg6[%c0_60, %c12, %c0_61, %c0_62] : memref<1x25x32x1xf32, #tpu.memory_space<vmem>>, vector<1x1x32x1xf32>
    %135 = vector.shape_cast %134 : vector<1x1x32x1xf32> to vector<32x1xf32>
    %136 = vector.broadcast %135 : vector<32x1xf32> to vector<32x512xf32>
    %137 = arith.mulf %60, %136 : vector<32x512xf32>
    %138 = arith.addf %133, %137 : vector<32x512xf32>
    %c511_i32 = arith.constant 511 : i32
    %139 = tpu.dynamic_rotate %60 by %c511_i32 dim 1 : vector<32x512xf32>, i32 -> vector<32x512xf32>
    %c0_63 = arith.constant 0 : index
    %c13 = arith.constant 13 : index
    %c0_64 = arith.constant 0 : index
    %c0_65 = arith.constant 0 : index
    %140 = vector.load %arg6[%c0_63, %c13, %c0_64, %c0_65] : memref<1x25x32x1xf32, #tpu.memory_space<vmem>>, vector<1x1x32x1xf32>
    %141 = vector.shape_cast %140 : vector<1x1x32x1xf32> to vector<32x1xf32>
    %142 = vector.broadcast %141 : vector<32x1xf32> to vector<32x512xf32>
    %143 = arith.mulf %139, %142 : vector<32x512xf32>
    %144 = arith.addf %138, %143 : vector<32x512xf32>
    %c510_i32_66 = arith.constant 510 : i32
    %145 = tpu.dynamic_rotate %60 by %c510_i32_66 dim 1 : vector<32x512xf32>, i32 -> vector<32x512xf32>
    %c0_67 = arith.constant 0 : index
    %c14 = arith.constant 14 : index
    %c0_68 = arith.constant 0 : index
    %c0_69 = arith.constant 0 : index
    %146 = vector.load %arg6[%c0_67, %c14, %c0_68, %c0_69] : memref<1x25x32x1xf32, #tpu.memory_space<vmem>>, vector<1x1x32x1xf32>
    %147 = vector.shape_cast %146 : vector<1x1x32x1xf32> to vector<32x1xf32>
    %148 = vector.broadcast %147 : vector<32x1xf32> to vector<32x512xf32>
    %149 = arith.mulf %145, %148 : vector<32x512xf32>
    %150 = arith.addf %144, %149 : vector<32x512xf32>
    %c494_i32 = arith.constant 494 : i32
    %151 = tpu.dynamic_rotate %60 by %c494_i32 dim 1 : vector<32x512xf32>, i32 -> vector<32x512xf32>
    %c0_70 = arith.constant 0 : index
    %c15 = arith.constant 15 : index
    %c0_71 = arith.constant 0 : index
    %c0_72 = arith.constant 0 : index
    %152 = vector.load %arg6[%c0_70, %c15, %c0_71, %c0_72] : memref<1x25x32x1xf32, #tpu.memory_space<vmem>>, vector<1x1x32x1xf32>
    %153 = vector.shape_cast %152 : vector<1x1x32x1xf32> to vector<32x1xf32>
    %154 = vector.broadcast %153 : vector<32x1xf32> to vector<32x512xf32>
    %155 = arith.mulf %151, %154 : vector<32x512xf32>
    %156 = arith.addf %150, %155 : vector<32x512xf32>
    %c493_i32 = arith.constant 493 : i32
    %157 = tpu.dynamic_rotate %60 by %c493_i32 dim 1 : vector<32x512xf32>, i32 -> vector<32x512xf32>
    %c0_73 = arith.constant 0 : index
    %c16 = arith.constant 16 : index
    %c0_74 = arith.constant 0 : index
    %c0_75 = arith.constant 0 : index
    %158 = vector.load %arg6[%c0_73, %c16, %c0_74, %c0_75] : memref<1x25x32x1xf32, #tpu.memory_space<vmem>>, vector<1x1x32x1xf32>
    %159 = vector.shape_cast %158 : vector<1x1x32x1xf32> to vector<32x1xf32>
    %160 = vector.broadcast %159 : vector<32x1xf32> to vector<32x512xf32>
    %161 = arith.mulf %157, %160 : vector<32x512xf32>
    %162 = arith.addf %156, %161 : vector<32x512xf32>
    %c492_i32 = arith.constant 492 : i32
    %163 = tpu.dynamic_rotate %60 by %c492_i32 dim 1 : vector<32x512xf32>, i32 -> vector<32x512xf32>
    %c0_76 = arith.constant 0 : index
    %c17 = arith.constant 17 : index
    %c0_77 = arith.constant 0 : index
    %c0_78 = arith.constant 0 : index
    %164 = vector.load %arg6[%c0_76, %c17, %c0_77, %c0_78] : memref<1x25x32x1xf32, #tpu.memory_space<vmem>>, vector<1x1x32x1xf32>
    %165 = vector.shape_cast %164 : vector<1x1x32x1xf32> to vector<32x1xf32>
    %166 = vector.broadcast %165 : vector<32x1xf32> to vector<32x512xf32>
    %167 = arith.mulf %163, %166 : vector<32x512xf32>
    %168 = arith.addf %162, %167 : vector<32x512xf32>
    %c491_i32 = arith.constant 491 : i32
    %169 = tpu.dynamic_rotate %60 by %c491_i32 dim 1 : vector<32x512xf32>, i32 -> vector<32x512xf32>
    %c0_79 = arith.constant 0 : index
    %c18 = arith.constant 18 : index
    %c0_80 = arith.constant 0 : index
    %c0_81 = arith.constant 0 : index
    %170 = vector.load %arg6[%c0_79, %c18, %c0_80, %c0_81] : memref<1x25x32x1xf32, #tpu.memory_space<vmem>>, vector<1x1x32x1xf32>
    %171 = vector.shape_cast %170 : vector<1x1x32x1xf32> to vector<32x1xf32>
    %172 = vector.broadcast %171 : vector<32x1xf32> to vector<32x512xf32>
    %173 = arith.mulf %169, %172 : vector<32x512xf32>
    %174 = arith.addf %168, %173 : vector<32x512xf32>
    %c490_i32 = arith.constant 490 : i32
    %175 = tpu.dynamic_rotate %60 by %c490_i32 dim 1 : vector<32x512xf32>, i32 -> vector<32x512xf32>
    %c0_82 = arith.constant 0 : index
    %c19 = arith.constant 19 : index
    %c0_83 = arith.constant 0 : index
    %c0_84 = arith.constant 0 : index
    %176 = vector.load %arg6[%c0_82, %c19, %c0_83, %c0_84] : memref<1x25x32x1xf32, #tpu.memory_space<vmem>>, vector<1x1x32x1xf32>
    %177 = vector.shape_cast %176 : vector<1x1x32x1xf32> to vector<32x1xf32>
    %178 = vector.broadcast %177 : vector<32x1xf32> to vector<32x512xf32>
    %179 = arith.mulf %175, %178 : vector<32x512xf32>
    %180 = arith.addf %174, %179 : vector<32x512xf32>
    %c474_i32 = arith.constant 474 : i32
    %181 = tpu.dynamic_rotate %60 by %c474_i32 dim 1 : vector<32x512xf32>, i32 -> vector<32x512xf32>
    %c0_85 = arith.constant 0 : index
    %c20 = arith.constant 20 : index
    %c0_86 = arith.constant 0 : index
    %c0_87 = arith.constant 0 : index
    %182 = vector.load %arg6[%c0_85, %c20, %c0_86, %c0_87] : memref<1x25x32x1xf32, #tpu.memory_space<vmem>>, vector<1x1x32x1xf32>
    %183 = vector.shape_cast %182 : vector<1x1x32x1xf32> to vector<32x1xf32>
    %184 = vector.broadcast %183 : vector<32x1xf32> to vector<32x512xf32>
    %185 = arith.mulf %181, %184 : vector<32x512xf32>
    %186 = arith.addf %180, %185 : vector<32x512xf32>
    %c473_i32 = arith.constant 473 : i32
    %187 = tpu.dynamic_rotate %60 by %c473_i32 dim 1 : vector<32x512xf32>, i32 -> vector<32x512xf32>
    %c0_88 = arith.constant 0 : index
    %c21 = arith.constant 21 : index
    %c0_89 = arith.constant 0 : index
    %c0_90 = arith.constant 0 : index
    %188 = vector.load %arg6[%c0_88, %c21, %c0_89, %c0_90] : memref<1x25x32x1xf32, #tpu.memory_space<vmem>>, vector<1x1x32x1xf32>
    %189 = vector.shape_cast %188 : vector<1x1x32x1xf32> to vector<32x1xf32>
    %190 = vector.broadcast %189 : vector<32x1xf32> to vector<32x512xf32>
    %191 = arith.mulf %187, %190 : vector<32x512xf32>
    %192 = arith.addf %186, %191 : vector<32x512xf32>
    %c472_i32_91 = arith.constant 472 : i32
    %193 = tpu.dynamic_rotate %60 by %c472_i32_91 dim 1 : vector<32x512xf32>, i32 -> vector<32x512xf32>
    %c0_92 = arith.constant 0 : index
    %c22 = arith.constant 22 : index
    %c0_93 = arith.constant 0 : index
    %c0_94 = arith.constant 0 : index
    %194 = vector.load %arg6[%c0_92, %c22, %c0_93, %c0_94] : memref<1x25x32x1xf32, #tpu.memory_space<vmem>>, vector<1x1x32x1xf32>
    %195 = vector.shape_cast %194 : vector<1x1x32x1xf32> to vector<32x1xf32>
    %196 = vector.broadcast %195 : vector<32x1xf32> to vector<32x512xf32>
    %197 = arith.mulf %193, %196 : vector<32x512xf32>
    %198 = arith.addf %192, %197 : vector<32x512xf32>
    %c471_i32 = arith.constant 471 : i32
    %199 = tpu.dynamic_rotate %60 by %c471_i32 dim 1 : vector<32x512xf32>, i32 -> vector<32x512xf32>
    %c0_95 = arith.constant 0 : index
    %c23 = arith.constant 23 : index
    %c0_96 = arith.constant 0 : index
    %c0_97 = arith.constant 0 : index
    %200 = vector.load %arg6[%c0_95, %c23, %c0_96, %c0_97] : memref<1x25x32x1xf32, #tpu.memory_space<vmem>>, vector<1x1x32x1xf32>
    %201 = vector.shape_cast %200 : vector<1x1x32x1xf32> to vector<32x1xf32>
    %202 = vector.broadcast %201 : vector<32x1xf32> to vector<32x512xf32>
    %203 = arith.mulf %199, %202 : vector<32x512xf32>
    %204 = arith.addf %198, %203 : vector<32x512xf32>
    %c470_i32 = arith.constant 470 : i32
    %205 = tpu.dynamic_rotate %60 by %c470_i32 dim 1 : vector<32x512xf32>, i32 -> vector<32x512xf32>
    %c0_98 = arith.constant 0 : index
    %c24 = arith.constant 24 : index
    %c0_99 = arith.constant 0 : index
    %c0_100 = arith.constant 0 : index
    %206 = vector.load %arg6[%c0_98, %c24, %c0_99, %c0_100] : memref<1x25x32x1xf32, #tpu.memory_space<vmem>>, vector<1x1x32x1xf32>
    %207 = vector.shape_cast %206 : vector<1x1x32x1xf32> to vector<32x1xf32>
    %208 = vector.broadcast %207 : vector<32x1xf32> to vector<32x512xf32>
    %209 = arith.mulf %205, %208 : vector<32x512xf32>
    %210 = arith.addf %204, %209 : vector<32x512xf32>
    %c0_101 = arith.constant 0 : index
    %c0_102 = arith.constant 0 : index
    %c0_103 = arith.constant 0 : index
    %211 = vector.load %arg7[%c0_101, %c0_102, %c0_103] : memref<1x32x1xf32, #tpu.memory_space<vmem>>, vector<1x32x1xf32>
    %212 = vector.shape_cast %211 : vector<1x32x1xf32> to vector<32x1xf32>
    %213 = vector.broadcast %212 : vector<32x1xf32> to vector<32x512xf32>
    %214 = arith.addf %210, %213 : vector<32x512xf32>
    %c0_104 = arith.constant 0 : index
    %c0_105 = arith.constant 0 : index
    %c0_106 = arith.constant 0 : index
    %215 = vector.load %arg8[%c0_104, %c0_105, %c0_106] : memref<1x32x32xf32, #tpu.memory_space<vmem>>, vector<1x32x32xf32>
    %216 = vector.shape_cast %215 : vector<1x32x32xf32> to vector<32x32xf32>
    %cst_107 = arith.constant dense<0.000000e+00> : vector<32x512xf32>
    %217 = tpu.matmul %216, %214, %cst_107 {dimension_numbers = #tpu.dot_dimension_numbers<[1], [0], [0], [1], [0, 0, 1, 1], [], []>} : vector<32x32xf32>, vector<32x512xf32>, vector<32x512xf32> -> vector<32x512xf32>
    %c0_108 = arith.constant 0 : index
    %c0_109 = arith.constant 0 : index
    %c0_110 = arith.constant 0 : index
    %218 = vector.load %arg9[%c0_108, %c0_109, %c0_110] : memref<1x32x1xf32, #tpu.memory_space<vmem>>, vector<1x32x1xf32>
    %219 = vector.shape_cast %218 : vector<1x32x1xf32> to vector<32x1xf32>
    %220 = vector.broadcast %219 : vector<32x1xf32> to vector<32x512xf32>
    %221 = arith.addf %217, %220 : vector<32x512xf32>
    %222 = arith.addf %3, %221 : vector<32x512xf32>
    %c0_111 = arith.constant 0 : index
    %c0_112 = arith.constant 0 : index
    %c0_113 = arith.constant 0 : index
    %223 = vector.load %arg10[%c0_111, %c0_112, %c0_113] : memref<1x128x32xf32, #tpu.memory_space<vmem>>, vector<1x128x32xf32>
    %224 = vector.shape_cast %223 : vector<1x128x32xf32> to vector<128x32xf32>
    %cst_114 = arith.constant dense<0.000000e+00> : vector<128x512xf32>
    %225 = tpu.matmul %224, %222, %cst_114 {dimension_numbers = #tpu.dot_dimension_numbers<[1], [0], [0], [1], [0, 0, 1, 1], [], []>} : vector<128x32xf32>, vector<32x512xf32>, vector<128x512xf32> -> vector<128x512xf32>
    %c0_115 = arith.constant 0 : index
    %c0_116 = arith.constant 0 : index
    %c0_117 = arith.constant 0 : index
    %226 = vector.load %arg11[%c0_115, %c0_116, %c0_117] : memref<1x128x1xf32, #tpu.memory_space<vmem>>, vector<1x128x1xf32>
    %227 = vector.shape_cast %226 : vector<1x128x1xf32> to vector<128x1xf32>
    %228 = vector.broadcast %227 : vector<128x1xf32> to vector<128x512xf32>
    %229 = arith.addf %225, %228 : vector<128x512xf32>
    %cst_118 = arith.constant 0.000000e+00 : f32
    %230 = vector.broadcast %cst_118 : f32 to vector<128x512xf32>
    %231 = arith.maximumf %229, %230 : vector<128x512xf32>
    %c0_119 = arith.constant 0 : index
    %c0_120 = arith.constant 0 : index
    %c0_121 = arith.constant 0 : index
    %232 = vector.load %arg12[%c0_119, %c0_120, %c0_121] : memref<1x32x128xf32, #tpu.memory_space<vmem>>, vector<1x32x128xf32>
    %233 = vector.shape_cast %232 : vector<1x32x128xf32> to vector<32x128xf32>
    %cst_122 = arith.constant dense<0.000000e+00> : vector<32x512xf32>
    %234 = tpu.matmul %233, %231, %cst_122 {dimension_numbers = #tpu.dot_dimension_numbers<[1], [0], [0], [1], [0, 0, 1, 1], [], []>} : vector<32x128xf32>, vector<128x512xf32>, vector<32x512xf32> -> vector<32x512xf32>
    %c0_123 = arith.constant 0 : index
    %c0_124 = arith.constant 0 : index
    %c0_125 = arith.constant 0 : index
    %235 = vector.load %arg13[%c0_123, %c0_124, %c0_125] : memref<1x32x1xf32, #tpu.memory_space<vmem>>, vector<1x32x1xf32>
    %236 = vector.shape_cast %235 : vector<1x32x1xf32> to vector<32x1xf32>
    %237 = vector.broadcast %236 : vector<32x1xf32> to vector<32x512xf32>
    %238 = arith.addf %234, %237 : vector<32x512xf32>
    %239 = arith.addf %222, %238 : vector<32x512xf32>
    %c0_126 = arith.constant 0 : index
    %c0_127 = arith.constant 0 : index
    %240 = vector.load %arg15[%c0_126, %c0_127] : memref<32x512xf32, #tpu.memory_space<vmem>>, vector<32x512xf32>
    tpu.vector_store %arg15[%c0_126, %c0_127], %239 {strides = array<i32>} : memref<32x512xf32, #tpu.memory_space<vmem>>, vector<32x512xf32>,
    %c0_128 = arith.constant 0 : index
    %c0_129 = arith.constant 0 : index
    %c0_130 = arith.constant 0 : index
    %241 = vector.load %arg14[%c0_128, %c0_129, %c0_130] : memref<1x32x512xf32, #tpu.memory_space<vmem>>, vector<1x32x512xf32>
    %242 = vector.shape_cast %241 : vector<1x32x512xf32> to vector<32x512xf32>
    %243 = vector.shape_cast %239 : vector<32x512xf32> to vector<1x32x512xf32>
    tpu.vector_store %arg14[%c0_128, %c0_129, %c0_130], %243 {strides = array<i32>} : memref<1x32x512xf32, #tpu.memory_space<vmem>>, vector<1x32x512xf32>,
    return
  }
  func.func @transform_0(%arg0: i32, %arg1: i32) -> (i32, i32, i32) {
    %c0_i32 = arith.constant 0 : i32
    %c0_i32_0 = arith.constant 0 : i32
    %c0_i32_1 = arith.constant 0 : i32
    return %arg0, %c0_i32, %c0_i32_0 : i32, i32, i32
  }
  func.func @transform_1(%arg0: i32, %arg1: i32) -> (i32, i32) {
    %c0_i32 = arith.constant 0 : i32
    %c0_i32_0 = arith.constant 0 : i32
    %c0_i32_1 = arith.constant 0 : i32
    return %c0_i32, %c0_i32_0 : i32, i32
  }
  func.func @transform_2(%arg0: i32, %arg1: i32) -> (i32, i32, i32) {
    %c0_i32 = arith.constant 0 : i32
    %c0_i32_0 = arith.constant 0 : i32
    %c0_i32_1 = arith.constant 0 : i32
    return %arg1, %c0_i32, %c0_i32_0 : i32, i32, i32
  }
  func.func @transform_3(%arg0: i32, %arg1: i32) -> (i32, i32, i32) {
    %c0_i32 = arith.constant 0 : i32
    %c0_i32_0 = arith.constant 0 : i32
    %c0_i32_1 = arith.constant 0 : i32
    return %arg1, %c0_i32, %c0_i32_0 : i32, i32, i32
  }
  func.func @transform_4(%arg0: i32, %arg1: i32) -> (i32, i32, i32, i32) {
    %c0_i32 = arith.constant 0 : i32
    %c0_i32_0 = arith.constant 0 : i32
    %c0_i32_1 = arith.constant 0 : i32
    %c0_i32_2 = arith.constant 0 : i32
    return %arg1, %c0_i32, %c0_i32_0, %c0_i32_1 : i32, i32, i32, i32
  }
  func.func @transform_5(%arg0: i32, %arg1: i32) -> (i32, i32, i32) {
    %c0_i32 = arith.constant 0 : i32
    %c0_i32_0 = arith.constant 0 : i32
    %c0_i32_1 = arith.constant 0 : i32
    return %arg1, %c0_i32, %c0_i32_0 : i32, i32, i32
  }
  func.func @transform_6(%arg0: i32, %arg1: i32) -> (i32, i32, i32) {
    %c0_i32 = arith.constant 0 : i32
    %c0_i32_0 = arith.constant 0 : i32
    %c0_i32_1 = arith.constant 0 : i32
    return %arg1, %c0_i32, %c0_i32_0 : i32, i32, i32
  }
  func.func @transform_7(%arg0: i32, %arg1: i32) -> (i32, i32, i32) {
    %c0_i32 = arith.constant 0 : i32
    %c0_i32_0 = arith.constant 0 : i32
    %c0_i32_1 = arith.constant 0 : i32
    return %arg1, %c0_i32, %c0_i32_0 : i32, i32, i32
  }
  func.func @transform_8(%arg0: i32, %arg1: i32) -> (i32, i32, i32) {
    %c0_i32 = arith.constant 0 : i32
    %c0_i32_0 = arith.constant 0 : i32
    %c0_i32_1 = arith.constant 0 : i32
    return %arg1, %c0_i32, %c0_i32_0 : i32, i32, i32
  }
  func.func @transform_9(%arg0: i32, %arg1: i32) -> (i32, i32, i32) {
    %c0_i32 = arith.constant 0 : i32
    %c0_i32_0 = arith.constant 0 : i32
    %c0_i32_1 = arith.constant 0 : i32
    return %arg1, %c0_i32, %c0_i32_0 : i32, i32, i32
  }
  func.func @transform_10(%arg0: i32, %arg1: i32) -> (i32, i32, i32) {
    %c0_i32 = arith.constant 0 : i32
    %c0_i32_0 = arith.constant 0 : i32
    %c0_i32_1 = arith.constant 0 : i32
    return %arg1, %c0_i32, %c0_i32_0 : i32, i32, i32
  }
  func.func @transform_11(%arg0: i32, %arg1: i32) -> (i32, i32, i32) {
    %c0_i32 = arith.constant 0 : i32
    %c0_i32_0 = arith.constant 0 : i32
    %c0_i32_1 = arith.constant 0 : i32
    return %arg1, %c0_i32, %c0_i32_0 : i32, i32, i32
  }
  func.func @transform_12(%arg0: i32, %arg1: i32) -> (i32, i32, i32) {
    %c0_i32 = arith.constant 0 : i32
    %c0_i32_0 = arith.constant 0 : i32
    %c0_i32_1 = arith.constant 0 : i32
    return %arg0, %c0_i32, %c0_i32_0 : i32, i32, i32
  }
}

</mosaic_0001>

<bundles_post_ra>
// kernel: basic_layer_apply.1
= control target key start
LH: loop header
LB: loop body
LE: loop exit
PB: predicated region body
PF: predicated region fallthrough
CT: control target
= control target key end

     0   :  { %s5568_s21 = smov 0   ;;  %s5570_s22 = smov 0   ;;  %s11513_s0 = inlined_call_operand.vmem [shape: f32[2,32,512], index: 0, kind: input, shape index: {}]   ;;  %s11514_s1 = inlined_call_operand.vmem [shape: s32[2,512], index: 1, kind: input, shape index: {}]   ;;  %s11515_s2 = inlined_call_operand.vmem [shape: f32[2,32,32], index: 2, kind: input, shape index: {}]   ;;  %s11516_s3 = inlined_call_operand.vmem [shape: f32[2,32,1], index: 3, kind: input, shape index: {}]   ;;  %s11517_s4 = inlined_call_operand.vmem [shape: f32[2,25,32,1], index: 4, kind: input, shape index: {}]   ;;  %s11518_s5 = inlined_call_operand.vmem [shape: f32[2,32,1], index: 5, kind: input, shape index: {}]   ;;  %s11519_s6 = inlined_call_operand.vmem [shape: f32[2,32,32], index: 6, kind: input, shape index: {}]   ;;  %s11520_s7 = inlined_call_operand.vmem [shape: f32[2,32,1], index: 7, kind: input, shape index: {}]   ;;  %s11521_s8 = inlined_call_operand.vmem [shape: f32[2,128,32], index: 8, kind: input, shape index: {}]   ;;  %s11522_s9 = inlined_call_operand.vmem [shape: f32[2,128,1], index: 9, kind: input, shape index: {}]   ;;  %s11523_s10 = inlined_call_operand.vmem [shape: f32[2,32,128], index: 10, kind: input, shape index: {}]   ;;  %s11524_s11 = inlined_call_operand.vmem [shape: f32[2,32,1], index: 11, kind: input, shape index: {}]   ;;  %s11525_s12 = inlined_call_operand.vmem [shape: f32[2,32,512], index: 12, kind: output, shape index: {}]  }
   0x1   :  { %11997 = sst [smem:[#allocation264_spill]] %s11513_s0  ;;  %s5572_s23 = smov 0  }
   0x2   :  { %11998 = sst [smem:[#allocation265_spill]] %s11514_s1  ;;  %s5574_s24 = smov 0  }
   0x3   :  { %11999 = sst [smem:[#allocation266_spill]] %s11515_s2  ;;  %s5576_s25 = smov 0  }
   0x4   :  { %12000 = sst [smem:[#allocation267_spill]] %s11516_s3 }
   0x5   :  { %12001 = sst [smem:[#allocation268_spill]] %s11518_s5 }
   0x6   :  { %12002 = sst [smem:[#allocation269_spill]] %s11519_s6 }
   0x7   :  { %12003 = sst [smem:[#allocation270_spill]] %s11520_s7 }
   0x8 LB: > { %12004 = sst [smem:[#allocation3_spill]] %s5464_s23  ;;  %s31_s26 = sadd.s32 1, %s5464_s23  ;;  %s5472_s25 = sphi %s5576_s25, %s22_s25   ;;  %s5468_s24 = sphi %s5574_s24, %s13131_s24   ;;  %s5464_s23 = sphi %s5572_s23, %s13130_s23   ;;  %s5460_s22 = sphi %s5570_s22, %s13129_s22   ;;  %s5456_s21 = sphi %s5568_s21, %s13128_s21  }
   0x9   : > { %12005 = sst [smem:[#allocation4_spill]] %s5468_s24  ;;  %s34_s27 = sadd.s32 1, %s5468_s24 }
   0xa   : > { %12006 = sst [smem:[#allocation5_spill]] %s5472_s25  ;;  %p32_p0 = scmp.ge.s32.totalorder %s31_s26, 2 }
   0xb   : > { %p5114_p1 = scmp.ge.s32.totalorder %s5472_s25, 1  ;;  %p474_p2 = scmp.lt.s32.totalorder %s5472_s25, 5 }
   0xc   : > { %s13133_s26 = smov (%p32_p0, %s31_s26), 0  ;;  %s13135_s27 = smov (!%p32_p0, %s34_s27), %s5468_s24 }
   0xd   : > { %12007 = sst [smem:[#allocation6_spill]] %s13133_s26  ;;  %p475_p3 = pnand %p5114_p1, %p474_p2 }
   0xe   : > { %p36_p4 = scmp.ge.s32.totalorder %s13135_s27, 2 }
   0xf   : > { %478 = sbr.rel (%p475_p3) target bundleno = 3019 (0xbcb), region = 68 }
  0x10   : > { %s13137_s27 = smov (%p36_p4, %s13135_s27), 0 }
  0x11   : > { %12008 = sst [smem:[#allocation7_spill]] %s13137_s27 }
  0x14   : > { %p566_p5 = scmp.lt.s32.totalorder %s5460_s22, 1  ;;  %p571_p6 = scmp.lt.s32.totalorder %s5456_s21, 1 }
  0x15   : > { %s12009_s0 = sld [smem:[#allocation264_spill]]  ;;  %p5138_p7 = scmp.ne.s32.totalorder %s5456_s21, 0 }
  0x16   : > { %s13139_s22 = smov (!%p566_p5, %s5460_s22), 1  ;;  %s12010_s2 = sld [smem:[#allocation266_spill]] }
  0x17   : > { %s572_s28 = scalar_select %p571_p6, %s5456_s21, 1 }
  0x18   : > { %s5334_s29 = sshll.u32 %s13139_s22, 7  ;;  %s12011_s3 = sld [smem:[#allocation267_spill]] }
  0x19   : > { %s5335_s15 = sshll.u32 %s572_s28, 5  ;;  %s5345_s26 = smul.u32 800, %s572_s28 }
  0x1a   : > { %s12012_s5 = sld [smem:[#allocation268_spill]]  ;;  %s5650_s16 = scalar_lea.vmem %s11523_s10, %s5335_s15 }
  0x1b   : > { %s5605_s14 = scalar_lea.vmem %s12009_s0, %s5334_s29  ;;  %s12013_s6 = sld [smem:[#allocation269_spill]] }
  0x1c   : > { %s5610_s18 = scalar_lea.vmem %s12010_s2, %s5335_s15  ;;  %s12014_s7 = sld [smem:[#allocation270_spill]] }
  0x1d   : > { %s5635_s20 = scalar_lea.vmem %s11517_s4, %s5345_s26  ;;  %s5655_s26 = scalar_lea.vmem %s11524_s11, %s5335_s15 }
  0x1e   : > { %s5615_s27 = scalar_lea.vmem %s12011_s3, %s5335_s15  ;;  %s5340_s3 = sshll.u32 %s572_s28, 7 }
  0x1f   : > { %s5640_s24 = scalar_lea.vmem %s11521_s8, %s5340_s3  ;;  %s5645_s13 = scalar_lea.vmem %s11522_s9, %s5340_s3 }
  0x20   : > { %s5620_s22 = scalar_lea.vmem %s12012_s5, %s5335_s15  ;;  %s5660_s1 = scalar_lea.vmem %s11525_s12, %s5334_s29 }
  0x21   : > { %s5625_s0 = scalar_lea.vmem %s12013_s6, %s5335_s15  ;;  %629 = sbr.rel (%p5138_p7) target bundleno = 55 (0x37), region = 72 }
  0x22   : > { %s5630_s17 = scalar_lea.vmem %s12014_s7, %s5335_s15 }
  0x26   : > { %v630_v0 = vld [vmem:[%s5605_s14] sm:$0xff]  ;;  %v631_v1 = vld [vmem:[%s5605_s14 + $0x8] sm:$0xff]  ;;  %v632_v2 = vld [vmem:[%s5605_s14 + $0x10] sm:$0xff] }
  0x27   : > { %646 = vst [vmem:[#allocation2 + $0x30] sm:$0xff] %v630_v0  ;;  %v633_v3 = vld [vmem:[%s5605_s14 + $0x18] sm:$0xff]  ;;  %v634_v4 = vld [vmem:[%s5605_s14 + $0x20] sm:$0xff]  ;;  %v635_v5 = vld [vmem:[%s5605_s14 + $0x28] sm:$0xff] }
  0x28   : > { %647 = vst [vmem:[#allocation2] sm:$0xff] %v631_v1  ;;  %v636_v6 = vld [vmem:[%s5605_s14 + $0x30] sm:$0xff]  ;;  %v637_v7 = vld [vmem:[%s5605_s14 + $0x38] sm:$0xff]  ;;  %v638_v8 = vld [vmem:[%s5605_s14 + $0x40] sm:$0xff] }
  0x29   : > { %648 = vst [vmem:[#allocation2 + $0x58] sm:$0xff] %v632_v2  ;;  %v639_v9 = vld [vmem:[%s5605_s14 + $0x48] sm:$0xff]  ;;  %v640_v10 = vld [vmem:[%s5605_s14 + $0x50] sm:$0xff]  ;;  %v641_v11 = vld [vmem:[%s5605_s14 + $0x58] sm:$0xff] }
  0x2a   : > { %649 = vst [vmem:[#allocation2 + $0x18] sm:$0xff] %v633_v3  ;;  %v642_v12 = vld [vmem:[%s5605_s14 + $0x60] sm:$0xff]  ;;  %v643_v13 = vld [vmem:[%s5605_s14 + $0x68] sm:$0xff]  ;;  %v644_v14 = vld [vmem:[%s5605_s14 + $0x70] sm:$0xff] }
  0x2b   : > { %650 = vst [vmem:[#allocation2 + $0x50] sm:$0xff] %v634_v4  ;;  %v645_v15 = vld [vmem:[%s5605_s14 + $0x78] sm:$0xff] }
  0x2c   : > { %651 = vst [vmem:[#allocation2 + $0x68] sm:$0xff] %v635_v5 }
  0x2d   : > { %652 = vst [vmem:[#allocation2 + $0x8] sm:$0xff] %v636_v6 }
  0x2e   : > { %653 = vst [vmem:[#allocation2 + $0x48] sm:$0xff] %v637_v7 }
  0x2f   : > { %654 = vst [vmem:[#allocation2 + $0x40] sm:$0xff] %v638_v8 }
  0x30   : > { %655 = vst [vmem:[#allocation2 + $0x20] sm:$0xff] %v639_v9 }
  0x31   : > { %656 = vst [vmem:[#allocation2 + $0x10] sm:$0xff] %v640_v10 }
  0x32   : > { %657 = vst [vmem:[#allocation2 + $0x38] sm:$0xff] %v641_v11 }
  0x33   : > { %658 = vst [vmem:[#allocation2 + $0x60] sm:$0xff] %v642_v12 }
  0x34   : > { %659 = vst [vmem:[#allocation2 + $0x70] sm:$0xff] %v643_v13 }
  0x35   : > { %660 = vst [vmem:[#allocation2 + $0x78] sm:$0xff] %v644_v14 }
  0x36   : > { %661 = vst [vmem:[#allocation2 + $0x28] sm:$0xff] %v645_v15 }
  0x37 PF: > { %v11532_v19 = vmov 0   ;;  %v1490_v21 = vld [vmem:[%s5635_s20 + $0x8] sm:$0xff]  ;;  %v687_v22 = vld [vmem:[%s5615_s27 + $0x10] sm:$0xff]  ;;  %v685_v23 = vld [vmem:[%s5615_s27] sm:$0xff]  ;;  %vm11838_vm0 = vcmask 261120   ;;  %s5475_s3 = smov 124  }
  0x38   : > { %5417 = vset.pattern.permute.xlu2 %v11532_v19  ;;  %5416 = vset.pattern.permute.xlu1 %v11532_v19  ;;  %v670_v24 = vld [vmem:[#allocation2 + $0x40] sm:$0xff]  ;;  %v672_v26 = vld [vmem:[#allocation2 + $0x10] sm:$0xff]  ;;  %v667_v29 = vld [vmem:[#allocation2 + $0x68] sm:$0xff]  ;;  %s12043_s7 = sld [smem:[#allocation265_spill]]  ;;  %s5476_s21 = smov 126  }
  0x39   : > { %5415 = vset.pattern.permute.xlu0 %v11532_v19  ;;  %v671_v25 = vld [vmem:[#allocation2 + $0x20] sm:$0xff]  ;;  %1500 = vperm.xlu2 %5417, %v1490_v21   ;;  %v673_v27 = vld [vmem:[#allocation2 + $0x38] sm:$0xff]  ;;  %v666_v28 = vld [vmem:[#allocation2 + $0x50] sm:$0xff]  ;;  %s5478_s29 = smov 4   ;;  %s5479_s14 = smov 48  }
  0x3a   : > { %v674_v16 = vld [vmem:[#allocation2 + $0x60] sm:$0xff]  ;;  %701 = vperm.xlu1 %5416, %v687_v22   ;;  %691 = vperm.xlu0 %5415, %v685_v23   ;;  %v668_v30 = vld [vmem:[#allocation2 + $0x8] sm:$0xff]  ;;  %v662_v32 = vld [vmem:[#allocation2 + $0x30] sm:$0xff]  ;;  %s5480_s23 = smov 88   ;;  %s5481_s30 = smov 40  }
  0x3b   : > { %v675_v17 = vld [vmem:[#allocation2 + $0x70] sm:$0xff]  ;;  %734 = vmatpush.msra.mxu0 %v674_v16  ;;  %v669_v31 = vld [vmem:[#allocation2 + $0x48] sm:$0xff]  ;;  %v663_v33 = vld [vmem:[#allocation2] sm:$0xff]  ;;  %s5482_s25 = smov 80   ;;  %s5483_s2 = smov 42  }
  0x3c   : > { %v676_v18 = vld [vmem:[#allocation2 + $0x78] sm:$0xff]  ;;  %763 = vmatpush.msra.mxu1 %v675_v17  ;;  %v681_v36 = vld [vmem:[%s5610_s18] sm:$0xff]  ;;  %v5158_v37 = vld [vmem:[%s5635_s20 + $0x30] sm:$0xff]  ;;  %s5484_s28 = smov 41   ;;  %s5485_s19 = smov 39  }
  0x3d   : > { %v677_v20 = vld [vmem:[#allocation2 + $0x28] sm:$0xff]  ;;  %792 = vmatpush.msra.mxu2 %v676_v18  ;;  %735 = vmatpush.msra.mxu0 %v670_v24  ;;  %v664_v34 = vld [vmem:[#allocation2 + $0x58] sm:$0xff]  ;;  %v5160_v41 = vld [vmem:[%s5635_s20 + $0x40] sm:$0xff]  ;;  %s5487_s5 = smov 22   ;;  %s5488_s6 = smov 21  }
  0x3e   : > { %821 = vmatpush.msra.mxu3 %v677_v20  ;;  %764 = vmatpush.msra.mxu1 %v671_v25  ;;  %v665_v35 = vld [vmem:[#allocation2 + $0x18] sm:$0xff]  ;;  %v686_v39 = vld [vmem:[%s5615_s27 + $0x8] sm:$0xff]  ;;  %v1489_v42 = vld [vmem:[%s5635_s20] sm:$0xff]  ;;  %s5491_s15 = smov 18  }
  0x3f   : > { %793 = vmatpush.msra.mxu2 %v672_v26  ;;  %736 = vmatpush.msra.mxu0 %v666_v28  ;;  %v688_v38 = vld [vmem:[%s5615_s27 + $0x18] sm:$0xff]  ;;  %v682_v40 = vld [vmem:[%s5610_s18 + $0x8] sm:$0xff]  ;;  %v1491_v43 = vld [vmem:[%s5635_s20 + $0x10] sm:$0xff]  ;;  %s5477_s27 = smov 2  }
  0x40   : > { %822 = vmatpush.msra.mxu3 %v673_v27  ;;  %765 = vmatpush.msra.mxu1 %v667_v29  ;;  %v683_v44 = vld [vmem:[%s5610_s18 + $0x10] sm:$0xff]  ;;  %v5163_v45 = vld [vmem:[%s5635_s20 + $0x58] sm:$0xff]  ;;  %v5156_v47 = vld [vmem:[%s5635_s20 + $0x20] sm:$0xff] }
  0x41   : > { %794 = vmatpush.msra.mxu2 %v668_v30  ;;  %737 = vmatpush.msra.mxu0 %v662_v32  ;;  %v1492_v46 = vld [vmem:[%s5635_s20 + $0x18] sm:$0xff]  ;;  %v5165_v49 = vld [vmem:[%s5635_s20 + $0x68] sm:$0xff]  ;;  %v5170_v52 = vld [vmem:[%s5635_s20 + $0x90] sm:$0xff] }
  0x42   : > { %823 = vmatpush.msra.mxu3 %v669_v31  ;;  %766 = vmatpush.msra.mxu1 %v663_v33  ;;  %v684_v48 = vld [vmem:[%s5610_s18 + $0x18] sm:$0xff]  ;;  %v5157_v50 = vld [vmem:[%s5635_s20 + $0x28] sm:$0xff]  ;;  %v5162_v53 = vld [vmem:[%s5635_s20 + $0x50] sm:$0xff]  ;;  %s5492_s18 = smov 1  }
  0x43   : > { %795 = vmatpush.msra.mxu2 %v664_v34  ;;  %5140 = vmatmul.msk.f32.vlgmr.msra.gmra.mxu0 %vm11838_vm0, %v681_v36  ;;  %v5159_v51 = vld [vmem:[%s5635_s20 + $0x38] sm:$0xff]  ;;  %v5161_v54 = vld [vmem:[%s5635_s20 + $0x48] sm:$0xff]  ;;  %v5172_v55 = vld [vmem:[%s5635_s20 + $0xa0] sm:$0xff] }
  0x44   : > { %824 = vmatpush.msra.mxu3 %v665_v35  ;;  %5144 = vmatmul.msk.f32.vlgmr.msra.gmra.mxu1 %vm11838_vm0, %v681_v36  ;;  %v5164_v56 = vld [vmem:[%s5635_s20 + $0x60] sm:$0xff]  ;;  %v5166_v57 = vld [vmem:[%s5635_s20 + $0x70] sm:$0xff]  ;;  %v5175_v58 = vld [vmem:[%s5635_s20 + $0xb8] sm:$0xff] }
  0x45   : > { %5148 = vmatmul.msk.f32.vlgmr.msra.gmra.mxu2 %vm11838_vm0, %v681_v36  ;;  %5152 = vmatmul.msk.f32.vlgmr.msra.gmra.mxu3 %vm11838_vm0, %v681_v36  ;;  %v5167_v59 = vld [vmem:[%s5635_s20 + $0x78] sm:$0xff]  ;;  %v5168_v60 = vld [vmem:[%s5635_s20 + $0x80] sm:$0xff]  ;;  %v5177_v61 = vld [vmem:[%s5635_s20 + $0xc8] sm:$0xff] }
  0x46   : > { %1611 = vperm.xlu2 %5417, %v5158_v37   ;;  %706 = vperm.xlu1 %5416, %v688_v38   ;;  %v5169_v62 = vld [vmem:[%s5635_s20 + $0x88] sm:$0xff]  ;;  %v5171_v63 = vld [vmem:[%s5635_s20 + $0x98] sm:$0xff]  ;;  %v5182_v0 = vld [vmem:[%s5635_s20 + $0xf0] sm:$0xff] }
  0x47   : > { %696 = vperm.xlu0 %5415, %v686_v39   ;;  %v5174_v1 = vld [vmem:[%s5635_s20 + $0xb0] sm:$0xff]  ;;  %v5173_v2 = vld [vmem:[%s5635_s20 + $0xa8] sm:$0xff]  ;;  %v5184_v3 = vld [vmem:[%s5635_s20 + $0x100] sm:$0xff] }
  0x48   : > { %v5176_v4 = vld [vmem:[%s5635_s20 + $0xc0] sm:$0xff]  ;;  %v5178_v5 = vld [vmem:[%s5635_s20 + $0xd0] sm:$0xff]  ;;  %v5187_v6 = vld [vmem:[%s5635_s20 + $0x118] sm:$0xff] }
  0x49   : > { %v5179_v7 = vld [vmem:[%s5635_s20 + $0xd8] sm:$0xff]  ;;  %v5180_v8 = vld [vmem:[%s5635_s20 + $0xe0] sm:$0xff]  ;;  %v5189_v9 = vld [vmem:[%s5635_s20 + $0x128] sm:$0xff] }
  0x4a   : > { %v5181_v10 = vld [vmem:[%s5635_s20 + $0xe8] sm:$0xff]  ;;  %v5183_v11 = vld [vmem:[%s5635_s20 + $0xf8] sm:$0xff]  ;;  %v5186_v13 = vld [vmem:[%s5635_s20 + $0x110] sm:$0xff] }
  0x4b   : > { %5141 = vmatmul.msk.f32.gmra.mxu0 %vm11838_vm0, %v682_v40  ;;  %v5185_v14 = vld [vmem:[%s5635_s20 + $0x108] sm:$0xff]  ;;  %v5188_v16 = vld [vmem:[%s5635_s20 + $0x120] sm:$0xff]  ;;  %v5190_v17 = vld [vmem:[%s5635_s20 + $0x130] sm:$0xff] }
  0x4c   : > { %5145 = vmatmul.msk.f32.gmra.mxu1 %vm11838_vm0, %v682_v40  ;;  %v5191_v22 = vld [vmem:[%s5635_s20 + $0x138] sm:$0xff]  ;;  %v5192_v23 = vld [vmem:[%s5635_s20 + $0x140] sm:$0xff] }
  0x4d   : > { %5149 = vmatmul.msk.f32.gmra.mxu2 %vm11838_vm0, %v682_v40  ;;  %5153 = vmatmul.msk.f32.gmra.mxu3 %vm11838_vm0, %v682_v40 }
  0x4e   : > { %1706 = vperm.xlu2 %5417, %v5160_v41   ;;  %1495 = vperm.xlu1 %5416, %v1489_v42  }
  0x4f   : > { %1505 = vperm.xlu0 %5415, %v1491_v43  }
  0x53   : > { %5142 = vmatmul.msk.f32.gmra.mxu0 %vm11838_vm0, %v683_v44 }
  0x54   : > { %5146 = vmatmul.msk.f32.gmra.mxu1 %vm11838_vm0, %v683_v44 }
  0x55   : > { %5150 = vmatmul.msk.f32.gmra.mxu2 %vm11838_vm0, %v683_v44  ;;  %5154 = vmatmul.msk.f32.gmra.mxu3 %vm11838_vm0, %v683_v44 }
  0x56   : > { %1721 = vperm.xlu2 %5417, %v5163_v45   ;;  %1510 = vperm.xlu1 %5416, %v1492_v46  }
  0x57   : > { %1601 = vperm.xlu0 %5415, %v5156_v47  }
  0x5b   : > { %5143 = vmatmul.msk.f32.gmra.mxu0 %vm11838_vm0, %v684_v48 }
  0x5c   : > { %5147 = vmatmul.msk.f32.gmra.mxu1 %vm11838_vm0, %v684_v48 }
  0x5d   : > { %5151 = vmatmul.msk.f32.gmra.mxu2 %vm11838_vm0, %v684_v48  ;;  %5155 = vmatmul.msk.f32.gmra.mxu3 %vm11838_vm0, %v684_v48 }
  0x5e   : > { %1817 = vperm.xlu2 %5417, %v5165_v49   ;;  %1606 = vperm.xlu1 %5416, %v5157_v50  }
  0x5f   : > { %1616 = vperm.xlu0 %5415, %v5159_v51  }
  0x66   : > { %1928 = vperm.xlu2 %5417, %v5170_v52   ;;  %1716 = vperm.xlu1 %5416, %v5162_v53  }
  0x67   : > { %1711 = vperm.xlu0 %5415, %v5161_v54  }
  0x6e   : > { %2024 = vperm.xlu2 %5417, %v5172_v55   ;;  %1812 = vperm.xlu1 %5416, %v5164_v56  }
  0x6f   : > { %1822 = vperm.xlu0 %5415, %v5166_v57  }
  0x76   : > { %2039 = vperm.xlu2 %5417, %v5175_v58   ;;  %1827 = vperm.xlu1 %5416, %v5167_v59  }
  0x77   : > { %1918 = vperm.xlu0 %5415, %v5168_v60  }
  0x7e   : > { %2135 = vperm.xlu2 %5417, %v5177_v61   ;;  %1923 = vperm.xlu1 %5416, %v5169_v62  }
  0x7f   : > { %1933 = vperm.xlu0 %5415, %v5171_v63  }
  0x86   : > { %2246 = vperm.xlu2 %5417, %v5182_v0   ;;  %2034 = vperm.xlu1 %5416, %v5174_v1  }
  0x87   : > { %2029 = vperm.xlu0 %5415, %v5173_v2  }
  0x8e   : > { %2342 = vperm.xlu2 %5417, %v5184_v3   ;;  %2130 = vperm.xlu1 %5416, %v5176_v4  }
  0x8f   : > { %2140 = vperm.xlu0 %5415, %v5178_v5  }
  0x93   : > { %v5741_v12 = vpop.permute.xlu2 %1500 }
  0x94   : > { %12015 = vst [vmem:[#allocation8_spill] sm:$0xff] %v5741_v12 }
  0x96   : > { %2357 = vperm.xlu2 %5417, %v5187_v6   ;;  %2145 = vperm.xlu1 %5416, %v5179_v7  }
  0x97   : > { %2236 = vperm.xlu0 %5415, %v5180_v8  }
  0x9e   : > { %2453 = vperm.xlu2 %5417, %v5189_v9   ;;  %2241 = vperm.xlu1 %5416, %v5181_v10  }
  0x9f   : > { %2251 = vperm.xlu0 %5415, %v5183_v11  }
  0xa0   : > { %v5745_v15 = vpop.permute.xlu2 %1611 }
  0xa1   : > { %12016 = vst [vmem:[#allocation9_spill] sm:$0xff] %v5745_v15 }
  0xa6   : > { %2352 = vperm.xlu1 %5416, %v5186_v13   ;;  %v5193_v13 = vld [vmem:[%s5635_s20 + $0x148] sm:$0xff] }
  0xa7   : > { %2347 = vperm.xlu0 %5415, %v5185_v14   ;;  %v5195_v14 = vld [vmem:[%s5635_s20 + $0x158] sm:$0xff] }
  0xa8   : > { %v5749_v21 = vpop.permute.xlu2 %1706 }
  0xac   : > { %v702_v18 = vpop.permute.xlu1 %701  ;;  %v692_v20 = vpop.permute.xlu0 %691 }
  0xae   : > { %2448 = vperm.xlu1 %5416, %v5188_v16  }
  0xaf   : > { %2458 = vperm.xlu0 %5415, %v5190_v17   ;;  %v5194_v17 = vld [vmem:[%s5635_s20 + $0x150] sm:$0xff] }
  0xb0   : > { %v5755_v26 = vpop.permute.xlu2 %1721 }
  0xb1   : > { %12017 = vst [vmem:[#allocation10_spill] sm:$0xff] %v5755_v26 }
  0xb6   : > { %2463 = vperm.xlu1 %5416, %v5191_v22   ;;  %v5198_v22 = vld [vmem:[%s5635_s20 + $0x170] sm:$0xff] }
  0xb7   : > { %2553 = vperm.xlu0 %5415, %v5192_v23   ;;  %v5197_v23 = vld [vmem:[%s5635_s20 + $0x168] sm:$0xff] }
  0xb8   : > { %v5753_v24 = vpop.permute.xlu1 %706  ;;  %v5765_v32 = vpop.permute.xlu2 %1817 }
  0xb9   : > { %v697_v25 = vpop.permute.xlu0 %696  ;;  %12019 = vst [vmem:[#allocation12_spill] sm:$0xff] %v5765_v32 }
  0xc0   : > { %v5757_v27 = vpop.permute.xlu1 %1495  ;;  %v739_v29 = vpop.f32.mrf.mxu0 }
  0xc1   : > { %v5759_v28 = vpop.permute.xlu0 %1505  ;;  %v5761_v30 = vadd.f32 %v739_v29, %v692_v20  ;;  %v768_v31 = vpop.f32.mrf.mxu1 }
  0xc2   : > { %12018 = vst [vmem:[#allocation11_spill] sm:$0xff] %v5759_v28  ;;  %v5773_v38 = vadd.f32 %v768_v31, %v692_v20  ;;  %v5783_v42 = vpop.permute.xlu2 %1928  ;;  %v5201_v31 = vld [vmem:[%s5635_s20 + $0x188] sm:$0xff] }
  0xc3   : > { %839 = vrot.lane.b32.xlu2 %v5761_v30, %s5475_s3  ;;  %12021 = vst [vmem:[#allocation14_spill] sm:$0xff] %v5783_v42 }
  0xc8   : > { %v797_v33 = vpop.f32.mrf.mxu2  ;;  %v826_v34 = vpop.f32.mrf.mxu3 }
  0xc9   : > { %v5767_v35 = vadd.f32 %v797_v33, %v692_v20  ;;  %v5769_v36 = vadd.f32 %v826_v34, %v692_v20  ;;  %v5771_v37 = vpop.permute.xlu1 %1510  ;;  %v5775_v39 = vpop.permute.xlu0 %1601  ;;  %v5200_v33 = vld [vmem:[%s5635_s20 + $0x180] sm:$0xff]  ;;  %v5199_v34 = vld [vmem:[%s5635_s20 + $0x178] sm:$0xff] }
  0xca   : > { %12020 = vst [vmem:[#allocation13_spill] sm:$0xff] %v5771_v37  ;;  %v742_v40 = vpop.f32.mrf.mxu0  ;;  %v771_v41 = vpop.f32.mrf.mxu1 }
  0xcb   : > { %863 = vrot.lane.b32.xlu1 %v5769_v36, %s5475_s3  ;;  %855 = vrot.lane.b32.xlu0 %v5767_v35, %s5475_s3  ;;  %v5785_v44 = vadd.f32 %v771_v41, %v697_v25  ;;  %v5791_v47 = vadd.f32 %v742_v40, %v697_v25  ;;  %v5807_v55 = vpop.permute.xlu2 %2024 }
  0xcc   : > { %847 = vrot.lane.b32.xlu2 %v5773_v38, %s5475_s3 }
  0xd0   : > { %v800_v43 = vpop.f32.mrf.mxu2  ;;  %v829_v48 = vpop.f32.mrf.mxu3 }
  0xd1   : > { %v5787_v45 = vadd.f32 %v800_v43, %v697_v25  ;;  %v5789_v46 = vpop.permute.xlu1 %1606  ;;  %v5793_v49 = vpop.permute.xlu0 %1616  ;;  %v5809_v56 = vadd.f32 %v829_v48, %v697_v25  ;;  %v5196_v25 = vld [vmem:[%s5635_s20 + $0x160] sm:$0xff]  ;;  %v5206_v48 = vld [vmem:[%s5635_s20 + $0x1b0] sm:$0xff] }
  0xd2   : > { %12022 = vst [vmem:[#allocation15_spill] sm:$0xff] %v5789_v46  ;;  %v745_v50 = vpop.f32.mrf.mxu0  ;;  %v774_v51 = vpop.f32.mrf.mxu1 }
  0xd3   : > { %12023 = vst [vmem:[#allocation16_spill] sm:$0xff] %v5793_v49  ;;  %857 = vrot.lane.b32.xlu1 %v5787_v45, %s5475_s3  ;;  %849 = vrot.lane.b32.xlu0 %v5785_v44, %s5475_s3  ;;  %v5801_v52 = vadd.f32 %v745_v50, %v702_v18  ;;  %v5803_v53 = vadd.f32 %v774_v51, %v702_v18  ;;  %v5834_v2 = vpop.permute.xlu2 %2039  ;;  %v5203_v50 = vld [vmem:[%s5635_s20 + $0x198] sm:$0xff]  ;;  %v5202_v51 = vld [vmem:[%s5635_s20 + $0x190] sm:$0xff] }
  0xd4   : > { %841 = vrot.lane.b32.xlu2 %v5791_v47, %s5475_s3  ;;  %12027 = vst [vmem:[#allocation20_spill] sm:$0xff] %v5834_v2 }
  0xd8   : > { %v803_v58 = vpop.f32.mrf.mxu2  ;;  %v832_v59 = vpop.f32.mrf.mxu3 }
  0xd9   : > { %v5805_v54 = vpop.permute.xlu1 %1716  ;;  %v5811_v57 = vpop.permute.xlu0 %1711  ;;  %v5819_v61 = vadd.f32 %v832_v59, %v702_v18  ;;  %v5826_v0 = vadd.f32 %v803_v58, %v702_v18 }
  0xda   : > { %12024 = vst [vmem:[#allocation17_spill] sm:$0xff] %v5805_v54  ;;  %v748_v60 = vpop.f32.mrf.mxu0  ;;  %v777_v5 = vpop.f32.mrf.mxu1 }
  0xdb   : > { %12025 = vst [vmem:[#allocation18_spill] sm:$0xff] %v5811_v57  ;;  %851 = vrot.lane.b32.xlu1 %v5803_v53, %s5475_s3  ;;  %843 = vrot.lane.b32.xlu0 %v5801_v52, %s5475_s3  ;;  %v5822_v62 = vadd.f32 %v748_v60, %v5753_v24  ;;  %v5847_v9 = vadd.f32 %v777_v5, %v5753_v24  ;;  %v5857_v11 = vpop.permute.xlu2 %2135  ;;  %v5204_v5 = vld [vmem:[%s5635_s20 + $0x1a0] sm:$0xff] }
  0xdc   : > { %865 = vrot.lane.b32.xlu2 %v5809_v56, %s5475_s3  ;;  %12029 = vst [vmem:[#allocation22_spill] sm:$0xff] %v5857_v11 }
  0xe0   : > { %v806_v3 = vpop.f32.mrf.mxu2  ;;  %v835_v4 = vpop.f32.mrf.mxu3 }
  0xe1   : > { %v5824_v63 = vpop.permute.xlu1 %1812  ;;  %v5828_v1 = vpop.permute.xlu0 %1822  ;;  %v5839_v6 = vadd.f32 %v806_v3, %v5753_v24  ;;  %v5842_v7 = vadd.f32 %v835_v4, %v5753_v24  ;;  %v5208_v3 = vld [vmem:[%s5635_s20 + $0x1c0] sm:$0xff]  ;;  %v5205_v4 = vld [vmem:[%s5635_s20 + $0x1a8] sm:$0xff] }
  0xe2   : > { %12026 = vst [vmem:[#allocation19_spill] sm:$0xff] %v5828_v1 }
  0xe3   : > { %845 = vrot.lane.b32.xlu1 %v5822_v62, %s5475_s3  ;;  %867 = vrot.lane.b32.xlu0 %v5819_v61, %s5475_s3  ;;  %v5866_v20 = vpop.permute.xlu2 %2246 }
  0xe4   : > { %859 = vrot.lane.b32.xlu2 %v5826_v0, %s5475_s3  ;;  %12032 = vst [vmem:[#allocation25_spill] sm:$0xff] %v5866_v20 }
  0xe9   : > { %v5844_v8 = vpop.permute.xlu1 %1827  ;;  %v5849_v10 = vpop.permute.xlu0 %1918 }
  0xea   : > { %12028 = vst [vmem:[#allocation21_spill] sm:$0xff] %v5844_v8 }
  0xeb   : > { %869 = vrot.lane.b32.xlu1 %v5842_v7, %s5475_s3  ;;  %861 = vrot.lane.b32.xlu0 %v5839_v6, %s5475_s3  ;;  %v5878_v40 = vpop.permute.xlu2 %2342 }
  0xec   : > { %853 = vrot.lane.b32.xlu2 %v5847_v9, %s5475_s3  ;;  %12035 = vst [vmem:[#allocation28_spill] sm:$0xff] %v5878_v40  ;;  %s5486_s3 = smov 38  }
  0xf1   : > { %v5861_v16 = vpop.permute.xlu1 %1923  ;;  %v5864_v18 = vpop.permute.xlu0 %1933 }
  0xf2   : > { %12030 = vst [vmem:[#allocation23_spill] sm:$0xff] %v5861_v16 }
  0xf3   : > { %12031 = vst [vmem:[#allocation24_spill] sm:$0xff] %v5864_v18  ;;  %2558 = vperm.xlu1 %5416, %v5193_v13   ;;  %2568 = vperm.xlu0 %5415, %v5195_v14   ;;  %v5887_v58 = vpop.permute.xlu2 %2357 }
  0xf4   : > { %2563 = vperm.xlu2 %5417, %v5194_v17   ;;  %12037 = vst [vmem:[#allocation30_spill] sm:$0xff] %v5887_v58 }
  0xf9   : > { %v5870_v24 = vpop.permute.xlu1 %2034  ;;  %v5873_v29 = vpop.permute.xlu0 %2029 }
  0xfa   : > { %12033 = vst [vmem:[#allocation26_spill] sm:$0xff] %v5870_v24 }
  0xfb   : > { %12034 = vst [vmem:[#allocation27_spill] sm:$0xff] %v5873_v29  ;;  %2669 = vperm.xlu1 %5416, %v5198_v22   ;;  %2664 = vperm.xlu0 %5415, %v5197_v23   ;;  %v5896_v13 = vpop.permute.xlu2 %2453  ;;  %v5207_v22 = vld [vmem:[%s5635_s20 + $0x1b8] sm:$0xff]  ;;  %v5906_v23 = vld [vmem:[%s12043_s7 + $0x1] ss:$2 sm:$0xf] }
  0xfc   : > { %2659 = vperm.xlu2 %5417, %v5196_v25   ;;  %12040 = vst [vmem:[#allocation33_spill] sm:$0xff] %v5896_v13  ;;  %v871_v25 = vlaneseq  ;;  %vm838_vm1 = vcmp.eq.s32.totalorder %v5906_v23, 0  ;;  %vm915_vm7 = vcmp.eq.s32.totalorder %v5906_v23, 1  ;;  %vm990_vm13 = vcmp.eq.s32.totalorder %v5906_v23, 18 }
 0x101   : > { %v5880_v41 = vpop.permute.xlu1 %2130  ;;  %v5882_v43 = vpop.permute.xlu0 %2140 }
 0x102   : > { %12036 = vst [vmem:[#allocation29_spill] sm:$0xff] %v5882_v43 }
 0x103   : > { %2721 = vperm.xlu1 %5416, %v5201_v31   ;;  %2716 = vperm.xlu0 %5415, %v5200_v33  }
 0x104   : > { %2674 = vperm.xlu2 %5417, %v5199_v34  }
 0x109   : > { %v5889_v59 = vpop.permute.xlu1 %2145  ;;  %v5891_v60 = vpop.permute.xlu0 %2236 }
 0x10a   : > { %12038 = vst [vmem:[#allocation31_spill] sm:$0xff] %v5889_v59 }
 0x10b   : > { %2832 = vperm.xlu1 %5416, %v5206_v48   ;;  %2731 = vperm.xlu0 %5415, %v5203_v50   ;;  %12039 = vst [vmem:[#allocation32_spill] sm:$0xff] %v5891_v60  ;;  %v5209_v48 = vld [vmem:[%s5635_s20 + $0x1c8] sm:$0xff]  ;;  %v5914_v50 = vand.u32 127, %v871_v25  ;;  %v5215_v60 = vld [vmem:[%s5635_s20 + $0x1f8] sm:$0xff] }
 0x10c   : > { %2726 = vperm.xlu2 %5417, %v5202_v51   ;;  %v890_v51 = vsel %vm838_vm1, 1, %v11532_v19 }
 0x10d   : > { %vm873_vm2 = vcmp.lt.s32.totalorder %v5914_v50, 124  ;;  %v893_v43 = vperm.slane %v890_v51, 2  ;;  %v892_v24 = vperm.slane %v890_v51, 1  ;;  %v894_v58 = vperm.slane %v890_v51, 3 }
 0x10e   : > { %vm948_vm9 = vcmp.lt.s32.totalorder %v5914_v50, 126  ;;  %vm1023_vm14 = vcmp.lt.s32.totalorder %v5914_v50, 2  ;;  %vm3009_vm0 = vcmp.lt.s32.totalorder %v5914_v50, 110 }
 0x10f   : > { %vm5939_vm4 = vcmp.eq.s32.totalorder %v893_v43, 1  ;;  %vm5943_vm5 = vcmp.eq.s32.totalorder %v892_v24, 1  ;;  %vm5953_vm6 = vcmp.eq.s32.totalorder %v894_v58, 1 }
 0x111   : > { %v5898_v14 = vpop.permute.xlu1 %2241  ;;  %v5900_v17 = vpop.permute.xlu0 %2251 }
 0x112   : > { %12041 = vst [vmem:[#allocation34_spill] sm:$0xff] %v5898_v14 }
 0x113   : > { %2927 = vperm.xlu1 %5416, %v5208_v3   ;;  %2827 = vperm.xlu0 %5415, %v5205_v4   ;;  %12042 = vst [vmem:[#allocation35_spill] sm:$0xff] %v5900_v17  ;;  %v891_v3 = vperm.slane %v890_v51, 0 }
 0x114   : > { %2822 = vperm.xlu2 %5417, %v5204_v5  }
 0x115   : > { %vm5920_vm3 = vcmp.eq.s32.totalorder %v891_v3, 1 }
 0x119   : > { %v5909_v33 = vpop.permute.xlu1 %2352  ;;  %v5911_v34 = vpop.permute.xlu0 %2347 }
 0x11a   : > { %12044 = vst [vmem:[#allocation36_spill] sm:$0xff] %v5909_v33 }
 0x11b   : > { %12045 = vst [vmem:[#allocation37_spill] sm:$0xff] %v5911_v34 }
 0x11c   : > { %2837 = vperm.xlu2 %5417, %v5207_v22  }
 0x11d   : > { %v840_v31 = vpop.permute.xlu2 %839 }
 0x121   : > { %v5924_v33 = vpop.permute.xlu1 %2448  ;;  %v5926_v20 = vpop.permute.xlu0 %2458 }
 0x122   : > { %12048 = vst [vmem:[#allocation38_spill] sm:$0xff] %v5924_v33 }
 0x123   : > { %12049 = vst [vmem:[#allocation39_spill] sm:$0xff] %v5926_v20 }
 0x124   : > { %2932 = vperm.xlu2 %5417, %v5209_v48  }
 0x126   : > { %v848_v4 = vpop.permute.xlu2 %847 }
 0x127   : > { %v882_v5 = vsel %vm873_vm2, %v840_v31, %v848_v4 }
 0x128   : > { %v5931_v25 = vsel %vm5920_vm3, %v882_v5, %v5761_v30 }
 0x129   : > { %v5935_v19 = vpop.permute.xlu1 %2463  ;;  %v5937_v3 = vpop.permute.xlu0 %2553 }
 0x12a   : > { %12050 = vst [vmem:[#allocation40_spill] sm:$0xff] %v5935_v19 }
 0x12b   : > { %12051 = vst [vmem:[#allocation41_spill] sm:$0xff] %v5937_v3 }
 0x12c   : > { %916 = vrot.lane.b32.xlu2 %v5931_v25, %s5476_s21 }
 0x12e   : > { %v842_v48 = vpop.permute.xlu2 %841 }
 0x136   : > { %v866_v42 = vpop.permute.xlu2 %865 }
 0x13d   : > { %v864_v30 = vpop.permute.xlu1 %863  ;;  %v856_v5 = vpop.permute.xlu0 %855 }
 0x13e   : > { %v886_v1 = vsel %vm873_vm2, %v864_v30, %v840_v31  ;;  %v874_v19 = vsel %vm873_vm2, %v856_v5, %v864_v30  ;;  %v878_v51 = vsel %vm873_vm2, %v848_v4, %v856_v5  ;;  %v860_v5 = vpop.permute.xlu2 %859 }
 0x13f   : > { %v5960_v24 = vsel %vm5939_vm4, %v874_v19, %v5767_v35  ;;  %v5965_v59 = vsel %vm5953_vm6, %v886_v1, %v5769_v36  ;;  %v5970_v31 = vsel %vm5943_vm5, %v878_v51, %v5773_v38 }
 0x140   : > { %932 = vrot.lane.b32.xlu1 %v5960_v24, %s5476_s21  ;;  %940 = vrot.lane.b32.xlu2 %v5965_v59, %s5476_s21 }
 0x141   : > { %924 = vrot.lane.b32.xlu0 %v5970_v31, %s5476_s21 }
 0x145   : > { %v858_v19 = vpop.permute.xlu1 %857  ;;  %v850_v35 = vpop.permute.xlu0 %849 }
 0x146   : > { %v875_v36 = vsel %vm873_vm2, %v858_v19, %v866_v42  ;;  %v879_v1 = vsel %vm873_vm2, %v850_v35, %v858_v19  ;;  %v883_v38 = vsel %vm873_vm2, %v842_v48, %v850_v35 }
 0x147   : > { %v5987_v58 = vsel %vm5943_vm5, %v879_v1, %v5785_v44  ;;  %v5992_v4 = vsel %vm5920_vm3, %v883_v38, %v5791_v47  ;;  %v5997_v30 = vsel %vm5939_vm4, %v875_v36, %v5787_v45  ;;  %v887_v44 = vsel %vm873_vm2, %v866_v42, %v842_v48 }
 0x148   : > { %926 = vrot.lane.b32.xlu1 %v5987_v58, %s5476_s21  ;;  %934 = vrot.lane.b32.xlu2 %v5997_v30, %s5476_s21  ;;  %v6026_v42 = vsel %vm5953_vm6, %v887_v44, %v5809_v56 }
 0x149   : > { %918 = vrot.lane.b32.xlu0 %v5992_v4, %s5476_s21 }
 0x14d   : > { %v852_v47 = vpop.permute.xlu1 %851  ;;  %v844_v51 = vpop.permute.xlu0 %843 }
 0x14e   : > { %v880_v19 = vsel %vm873_vm2, %v852_v47, %v860_v5  ;;  %v884_v45 = vsel %vm873_vm2, %v844_v51, %v852_v47 }
 0x14f   : > { %v6014_v35 = vsel %vm5920_vm3, %v884_v45, %v5801_v52  ;;  %v6019_v36 = vsel %vm5943_vm5, %v880_v19, %v5803_v53  ;;  %v854_v52 = vpop.permute.xlu2 %853 }
 0x150   : > { %920 = vrot.lane.b32.xlu1 %v6014_v35, %s5476_s21  ;;  %928 = vrot.lane.b32.xlu2 %v6019_v36, %s5476_s21 }
 0x151   : > { %942 = vrot.lane.b32.xlu0 %v6026_v42, %s5476_s21 }
 0x155   : > { %v846_v48 = vpop.permute.xlu1 %845  ;;  %v868_v1 = vpop.permute.xlu0 %867 }
 0x156   : > { %v885_v53 = vsel %vm873_vm2, %v846_v48, %v854_v52  ;;  %v876_v38 = vsel %vm873_vm2, %v860_v5, %v868_v1  ;;  %v888_v47 = vsel %vm873_vm2, %v868_v1, %v844_v51 }
 0x157   : > { %v6041_v56 = vsel %vm5953_vm6, %v888_v47, %v5819_v61  ;;  %v6046_v44 = vsel %vm5939_vm4, %v876_v38, %v5826_v0  ;;  %v6051_v19 = vsel %vm5920_vm3, %v885_v53, %v5822_v62  ;;  %v6059_v61 = vpop.permute.xlu2 %2563 }
 0x158   : > { %944 = vrot.lane.b32.xlu1 %v6041_v56, %s5476_s21  ;;  %922 = vrot.lane.b32.xlu2 %v6051_v19, %s5476_s21  ;;  %12058 = vst [vmem:[#allocation42_spill] sm:$0xff] %v6059_v61 }
 0x159   : > { %936 = vrot.lane.b32.xlu0 %v6046_v44, %s5476_s21 }
 0x15d   : > { %v870_v5 = vpop.permute.xlu1 %869  ;;  %v862_v51 = vpop.permute.xlu0 %861 }
 0x15e   : > { %v889_v0 = vsel %vm873_vm2, %v870_v5, %v846_v48  ;;  %v877_v62 = vsel %vm873_vm2, %v862_v51, %v870_v5  ;;  %v881_v22 = vsel %vm873_vm2, %v854_v52, %v862_v51 }
 0x15f   : > { %v6070_v45 = vsel %vm5939_vm4, %v877_v62, %v5839_v6  ;;  %v6075_v1 = vsel %vm5953_vm6, %v889_v0, %v5842_v7  ;;  %v6080_v48 = vsel %vm5943_vm5, %v881_v22, %v5847_v9  ;;  %v6088_v6 = vpop.permute.xlu2 %2659  ;;  %vm1065_vm4 = vcmp.eq.s32.totalorder %v5906_v23, 19 }
 0x160   : > { %938 = vrot.lane.b32.xlu1 %v6070_v45, %s5476_s21  ;;  %946 = vrot.lane.b32.xlu2 %v6075_v1, %s5476_s21  ;;  %12059 = vst [vmem:[#allocation43_spill] sm:$0xff] %v6088_v6  ;;  %vm1098_vm5 = vcmp.lt.s32.totalorder %v5914_v50, 4 }
 0x161   : > { %930 = vrot.lane.b32.xlu0 %v6080_v48, %s5476_s21 }
 0x165   : > { %v6094_v43 = vpop.permute.xlu1 %2558  ;;  %v6096_v20 = vpop.permute.xlu0 %2568 }
 0x166   : > { %12062 = vst [vmem:[#allocation46_spill] sm:$0xff] %v6094_v43 }
 0x167   : > { %v6090_v17 = vpop.permute.xlu2 %2674  ;;  %12063 = vst [vmem:[#allocation47_spill] sm:$0xff] %v6096_v20 }
 0x168   : > { %12060 = vst [vmem:[#allocation44_spill] sm:$0xff] %v6090_v17  ;;  %v12075_v17 = vmov 0  }
 0x16d   : > { %v6100_v52 = vpop.permute.xlu1 %2669  ;;  %v6102_v53 = vpop.permute.xlu0 %2664 }
 0x16e   : > { %12065 = vst [vmem:[#allocation49_spill] sm:$0xff] %v6100_v52 }
 0x16f   : > { %v6092_v7 = vpop.permute.xlu2 %2726  ;;  %12066 = vst [vmem:[#allocation50_spill] sm:$0xff] %v6102_v53 }
 0x170   : > { %12061 = vst [vmem:[#allocation45_spill] sm:$0xff] %v6092_v7 }
 0x175   : > { %v6106_v47 = vpop.permute.xlu1 %2721  ;;  %v6108_v5 = vpop.permute.xlu0 %2716 }
 0x176   : > { %12068 = vst [vmem:[#allocation52_spill] sm:$0xff] %v6106_v47 }
 0x177   : > { %v6098_v9 = vpop.permute.xlu2 %2822  ;;  %12069 = vst [vmem:[#allocation53_spill] sm:$0xff] %v6108_v5 }
 0x178   : > { %12064 = vst [vmem:[#allocation48_spill] sm:$0xff] %v6098_v9 }
 0x17d   : > { %v6112_v0 = vpop.permute.xlu1 %2832  ;;  %v6114_v62 = vpop.permute.xlu0 %2731 }
 0x17e   : > { %12071 = vst [vmem:[#allocation55_spill] sm:$0xff] %v6112_v0 }
 0x17f   : > { %v6104_v38 = vpop.permute.xlu2 %2837  ;;  %12072 = vst [vmem:[#allocation56_spill] sm:$0xff] %v6114_v62 }
 0x180   : > { %12067 = vst [vmem:[#allocation51_spill] sm:$0xff] %v6104_v38  ;;  %v965_v38 = vsel %vm915_vm7, 1, %v12075_v17 }
 0x181   : > { %v968_v20 = vperm.slane %v965_v38, 2  ;;  %v967_v2 = vperm.slane %v965_v38, 1  ;;  %v966_v18 = vperm.slane %v965_v38, 0 }
 0x183   : > { %vm6122_vm8 = vcmp.eq.s32.totalorder %v968_v20, 1  ;;  %vm6127_vm10 = vcmp.eq.s32.totalorder %v967_v2, 1  ;;  %vm6131_vm11 = vcmp.eq.s32.totalorder %v966_v18, 1 }
 0x185   : > { %v6117_v7 = vpop.permute.xlu1 %2927  ;;  %v6119_v61 = vpop.permute.xlu0 %2827 }
 0x186   : > { %12073 = vst [vmem:[#allocation57_spill] sm:$0xff] %v6117_v7 }
 0x187   : > { %v6110_v51 = vpop.permute.xlu2 %2932  ;;  %12074 = vst [vmem:[#allocation58_spill] sm:$0xff] %v6119_v61 }
 0x188   : > { %12070 = vst [vmem:[#allocation54_spill] sm:$0xff] %v6110_v51 }
 0x18f   : > { %v917_v22 = vpop.permute.xlu2 %916 }
 0x19a   : > { %v941_v52 = vpop.permute.xlu2 %940 }
 0x1a2   : > { %v935_v15 = vpop.permute.xlu2 %934 }
 0x1b2   : > { %v933_v51 = vpop.permute.xlu1 %932 }
 0x1b3   : > { %v949_v61 = vsel %vm948_vm9, %v933_v51, %v941_v52  ;;  %v925_v8 = vpop.permute.xlu0 %924 }
 0x1b4   : > { %v953_v20 = vsel %vm948_vm9, %v925_v8, %v933_v51  ;;  %v957_v43 = vsel %vm948_vm9, %v917_v22, %v925_v8  ;;  %v6144_v2 = vsel %vm6122_vm8, %v949_v61, %v5960_v24  ;;  %v969_v8 = vperm.slane %v965_v38, 3 }
 0x1b5   : > { %v6149_v18 = vsel %vm6127_vm10, %v953_v20, %v5970_v31  ;;  %v6154_v26 = vsel %vm6131_vm11, %v957_v43, %v5931_v25  ;;  %1007 = vrot.lane.b32.xlu2 %v6144_v2, %s5477_s27  ;;  %v961_v24 = vsel %vm948_vm9, %v941_v52, %v917_v22  ;;  %v929_v22 = vpop.permute.xlu2 %928 }
 0x1b6   : > { %999 = vrot.lane.b32.xlu1 %v6149_v18, %s5477_s27  ;;  %991 = vrot.lane.b32.xlu0 %v6154_v26, %s5477_s27  ;;  %vm6164_vm12 = vcmp.eq.s32.totalorder %v969_v8, 1 }
 0x1b7   : > { %v6185_v38 = vsel %vm6164_vm12, %v961_v24, %v5965_v59 }
 0x1ba   : > { %v927_v31 = vpop.permute.xlu1 %926 }
 0x1bb   : > { %v954_v25 = vsel %vm948_vm9, %v927_v31, %v935_v15  ;;  %v919_v43 = vpop.permute.xlu0 %918 }
 0x1bc   : > { %v958_v51 = vsel %vm948_vm9, %v919_v43, %v927_v31  ;;  %v6175_v20 = vsel %vm6127_vm10, %v954_v25, %v5987_v58 }
 0x1bd   : > { %v6180_v52 = vsel %vm6131_vm11, %v958_v51, %v5992_v4  ;;  %1001 = vrot.lane.b32.xlu2 %v6175_v20, %s5477_s27 }
 0x1be   : > { %993 = vrot.lane.b32.xlu1 %v6180_v52, %s5477_s27  ;;  %1015 = vrot.lane.b32.xlu0 %v6185_v38, %s5477_s27 }
 0x1c2   : > { %v921_v58 = vpop.permute.xlu1 %920 }
 0x1c3   : > { %v959_v4 = vsel %vm948_vm9, %v921_v58, %v929_v22  ;;  %v943_v8 = vpop.permute.xlu0 %942 }
 0x1c4   : > { %v950_v31 = vsel %vm948_vm9, %v935_v15, %v943_v8  ;;  %v962_v59 = vsel %vm948_vm9, %v943_v8, %v919_v43  ;;  %v6202_v24 = vsel %vm6131_vm11, %v959_v4, %v6014_v35  ;;  %v923_v15 = vpop.permute.xlu2 %922 }
 0x1c5   : > { %v6207_v25 = vsel %vm6164_vm12, %v962_v59, %v6026_v42  ;;  %v6212_v51 = vsel %vm6122_vm8, %v950_v31, %v5997_v30  ;;  %995 = vrot.lane.b32.xlu2 %v6202_v24, %s5477_s27 }
 0x1c6   : > { %1017 = vrot.lane.b32.xlu1 %v6207_v25, %s5477_s27  ;;  %1009 = vrot.lane.b32.xlu0 %v6212_v51, %s5477_s27 }
 0x1ca   : > { %v945_v35 = vpop.permute.xlu1 %944 }
 0x1cb   : > { %v963_v42 = vsel %vm948_vm9, %v945_v35, %v921_v58  ;;  %v937_v43 = vpop.permute.xlu0 %936 }
 0x1cc   : > { %v951_v4 = vsel %vm948_vm9, %v937_v43, %v945_v35  ;;  %v955_v30 = vsel %vm948_vm9, %v929_v22, %v937_v43  ;;  %v6229_v8 = vsel %vm6164_vm12, %v963_v42, %v6041_v56  ;;  %v947_v56 = vpop.permute.xlu2 %946 }
 0x1cd   : > { %v6234_v31 = vsel %vm6122_vm8, %v951_v4, %v6046_v44  ;;  %1019 = vrot.lane.b32.xlu2 %v6229_v8, %s5477_s27  ;;  %v6241_v58 = vsel %vm6127_vm10, %v955_v30, %v6019_v36  ;;  %v964_v54 = vsel %vm948_vm9, %v947_v56, %v923_v15 }
 0x1ce   : > { %1011 = vrot.lane.b32.xlu1 %v6234_v31, %s5477_s27  ;;  %1003 = vrot.lane.b32.xlu0 %v6241_v58, %s5477_s27 }
 0x1d2   : > { %v939_v22 = vpop.permute.xlu1 %938 }
 0x1d3   : > { %v952_v44 = vsel %vm948_vm9, %v939_v22, %v947_v56  ;;  %v931_v59 = vpop.permute.xlu0 %930 }
 0x1d4   : > { %v956_v35 = vsel %vm948_vm9, %v931_v59, %v939_v22  ;;  %v960_v42 = vsel %vm948_vm9, %v923_v15, %v931_v59  ;;  %v6256_v36 = vsel %vm6122_vm8, %v952_v44, %v6070_v45  ;;  %v6279_v45 = vsel %vm6164_vm12, %v964_v54, %v6075_v1 }
 0x1d5   : > { %v6261_v43 = vsel %vm6127_vm10, %v956_v35, %v6080_v48  ;;  %v6266_v4 = vsel %vm6131_vm11, %v960_v42, %v6051_v19  ;;  %1013 = vrot.lane.b32.xlu2 %v6256_v36, %s5477_s27  ;;  %v1040_v19 = vsel %vm990_vm13, 1, %v12075_v17  ;;  %vm1173_vm12 = vcmp.lt.s32.totalorder %v5914_v50, 48 }
 0x1d6   : > { %1005 = vrot.lane.b32.xlu1 %v6261_v43, %s5477_s27  ;;  %997 = vrot.lane.b32.xlu0 %v6266_v4, %s5477_s27  ;;  %v1042_v0 = vperm.slane %v1040_v19, 1  ;;  %v1043_v30 = vperm.slane %v1040_v19, 2  ;;  %v1041_v54 = vperm.slane %v1040_v19, 0 }
 0x1d8   : > { %vm6286_vm15 = vcmp.eq.s32.totalorder %v1042_v0, 1  ;;  %vm6290_vm1 = vcmp.eq.s32.totalorder %v1043_v30, 1  ;;  %vm6316_vm2 = vcmp.eq.s32.totalorder %v1041_v54, 1 }
 0x1de   : > { %1021 = vrot.lane.b32.xlu0 %v6279_v45, %s5477_s27 }
 0x20f   : > { %v1008_v28 = vpop.permute.xlu2 %1007 }
 0x217   : > { %v1002_v48 = vpop.permute.xlu2 %1001 }
 0x21f   : > { %v996_v42 = vpop.permute.xlu2 %995 }
 0x227   : > { %v1020_v54 = vpop.permute.xlu2 %1019 }
 0x228   : > { %v1000_v61 = vpop.permute.xlu1 %999  ;;  %v992_v56 = vpop.permute.xlu0 %991 }
 0x229   : > { %v1028_v22 = vsel %vm1023_vm14, %v1000_v61, %v1008_v28  ;;  %v1032_v44 = vsel %vm1023_vm14, %v992_v56, %v1000_v61 }
 0x22a   : > { %v6301_v59 = vsel %vm6286_vm15, %v1032_v44, %v6149_v18  ;;  %v6306_v35 = vsel %vm6290_vm1, %v1028_v22, %v6144_v2 }
 0x22b   : > { %1074 = vrot.lane.b32.xlu2 %v6301_v59, %s5478_s29  ;;  %1082 = vrot.lane.b32.xlu0 %v6306_v35, %s5478_s29 }
 0x230   : > { %v994_v0 = vpop.permute.xlu1 %993  ;;  %v1016_v30 = vpop.permute.xlu0 %1015 }
 0x231   : > { %v1033_v18 = vsel %vm1023_vm14, %v994_v0, %v1002_v48  ;;  %v1036_v61 = vsel %vm1023_vm14, %v1016_v30, %v992_v56  ;;  %v1044_v56 = vperm.slane %v1040_v19, 3  ;;  %v1024_v49 = vsel %vm1023_vm14, %v1008_v28, %v1016_v30 }
 0x232   : > { %v6323_v22 = vsel %vm6316_vm2, %v1036_v61, %v6154_v26  ;;  %v6328_v44 = vsel %vm6286_vm15, %v1033_v18, %v6175_v20  ;;  %v1038_v26 = vsel %vm1023_vm14, %v1020_v54, %v996_v42 }
 0x233   : > { %1066 = vrot.lane.b32.xlu1 %v6323_v22, %s5478_s29  ;;  %1076 = vrot.lane.b32.xlu0 %v6328_v44, %s5478_s29  ;;  %vm6336_vm3 = vcmp.eq.s32.totalorder %v1044_v56, 1 }
 0x234   : > { %v6352_v28 = vsel %vm6336_vm3, %v1024_v49, %v6185_v38 }
 0x238   : > { %v1018_v20 = vpop.permute.xlu1 %1017  ;;  %v1010_v18 = vpop.permute.xlu0 %1009 }
 0x239   : > { %v1037_v61 = vsel %vm1023_vm14, %v1018_v20, %v994_v0  ;;  %v6361_v0 = vsel %vm6316_vm2, %v1038_v26, %v6202_v24  ;;  %v1029_v49 = vsel %vm1023_vm14, %v1002_v48, %v1010_v18 }
 0x23a   : > { %v6347_v19 = vsel %vm6316_vm2, %v1037_v61, %v6180_v52  ;;  %v1025_v52 = vsel %vm1023_vm14, %v1010_v18, %v1018_v20  ;;  %v6379_v24 = vsel %vm6290_vm1, %v1029_v49, %v6212_v51 }
 0x23b   : > { %1068 = vrot.lane.b32.xlu2 %v6347_v19, %s5478_s29  ;;  %1090 = vrot.lane.b32.xlu1 %v6352_v28, %s5478_s29  ;;  %v6374_v61 = vsel %vm6336_vm3, %v1025_v52, %v6207_v25  ;;  %v1014_v25 = vpop.permute.xlu2 %1013 }
 0x23c   : > { %1070 = vrot.lane.b32.xlu0 %v6361_v0, %s5478_s29 }
 0x240   : > { %v1012_v38 = vpop.permute.xlu1 %1011  ;;  %v1004_v30 = vpop.permute.xlu0 %1003 }
 0x241   : > { %v1026_v56 = vsel %vm1023_vm14, %v1012_v38, %v1020_v54  ;;  %v1030_v48 = vsel %vm1023_vm14, %v1004_v30, %v1012_v38  ;;  %v1034_v51 = vsel %vm1023_vm14, %v996_v42, %v1004_v30 }
 0x242   : > { %v6384_v26 = vsel %vm6336_vm3, %v1026_v56, %v6229_v8  ;;  %v6401_v18 = vsel %vm6290_vm1, %v1030_v48, %v6234_v31  ;;  %v6406_v52 = vsel %vm6286_vm15, %v1034_v51, %v6241_v58 }
 0x243   : > { %1092 = vrot.lane.b32.xlu2 %v6374_v61, %s5478_s29  ;;  %1084 = vrot.lane.b32.xlu1 %v6379_v24, %s5478_s29 }
 0x244   : > { %1094 = vrot.lane.b32.xlu0 %v6384_v26, %s5478_s29 }
 0x248   : > { %v1006_v54 = vpop.permute.xlu1 %1005  ;;  %v998_v20 = vpop.permute.xlu0 %997 }
 0x249   : > { %v1031_v8 = vsel %vm1023_vm14, %v1006_v54, %v1014_v25  ;;  %v1035_v31 = vsel %vm1023_vm14, %v998_v20, %v1006_v54 }
 0x24a   : > { %v6411_v49 = vsel %vm6290_vm1, %v1031_v8, %v6256_v36  ;;  %v6426_v36 = vsel %vm6286_vm15, %v1035_v31, %v6261_v43  ;;  %v1115_v43 = vsel %vm1065_vm4, 1, %v12075_v17  ;;  %vm11839_vm4 = vcmp.lt.s32.totalorder %v5914_v50, 88 }
 0x24b   : > { %1086 = vrot.lane.b32.xlu2 %v6401_v18, %s5478_s29  ;;  %1078 = vrot.lane.b32.xlu1 %v6406_v52, %s5478_s29  ;;  %v1118_v2 = vperm.slane %v1115_v43, 2  ;;  %v1117_v23 = vperm.slane %v1115_v43, 1 }
 0x24c   : > { %1088 = vrot.lane.b32.xlu0 %v6411_v49, %s5478_s29 }
 0x24d   : > { %vm6449_vm6 = vcmp.eq.s32.totalorder %v1118_v2, 1  ;;  %vm6462_vm7 = vcmp.eq.s32.totalorder %v1117_v23, 1 }
 0x250   : > { %v1022_v42 = vpop.permute.xlu0 %1021 }
 0x251   : > { %v1039_v58 = vsel %vm1023_vm14, %v1022_v42, %v998_v20  ;;  %v1027_v38 = vsel %vm1023_vm14, %v1014_v25, %v1022_v42  ;;  %v1116_v42 = vperm.slane %v1115_v43, 0 }
 0x252   : > { %v6431_v1 = vsel %vm6316_vm2, %v1039_v58, %v6266_v4  ;;  %v6442_v15 = vsel %vm6336_vm3, %v1027_v38, %v6279_v45 }
 0x253   : > { %1080 = vrot.lane.b32.xlu2 %v6426_v36, %s5478_s29  ;;  %1072 = vrot.lane.b32.xlu1 %v6431_v1, %s5478_s29  ;;  %vm6486_vm8 = vcmp.eq.s32.totalorder %v1116_v42, 1 }
 0x25b   : > { %1096 = vrot.lane.b32.xlu1 %v6442_v15, %s5478_s29  ;;  %s5489_s29 = smov 20  }
 0x285   : > { %v1075_v4 = vpop.permute.xlu2 %1074 }
 0x295   : > { %v1069_v45 = vpop.permute.xlu2 %1068 }
 0x29d   : > { %v1083_v56 = vpop.permute.xlu0 %1082  ;;  %v1093_v58 = vpop.permute.xlu2 %1092 }
 0x29e   : > { %v1103_v53 = vsel %vm1098_vm5, %v1075_v4, %v1083_v56  ;;  %v1112_v38 = vsel %vm1098_vm5, %v1093_v58, %v1069_v45 }
 0x29f   : > { %v6458_v25 = vsel %vm6449_vm6, %v1103_v53, %v6306_v35  ;;  %v6500_v23 = vsel %vm6486_vm8, %v1112_v38, %v6347_v19 }
 0x2a0   : > { %1157 = vrot.lane.b32.xlu1 %v6458_v25, %s5479_s14 }
 0x2a5   : > { %v1067_v51 = vpop.permute.xlu1 %1066  ;;  %v1077_v54 = vpop.permute.xlu0 %1076 }
 0x2a6   : > { %v1107_v20 = vsel %vm1098_vm5, %v1067_v51, %v1075_v4  ;;  %v1108_v8 = vsel %vm1098_vm5, %v1069_v45, %v1077_v54  ;;  %v1119_v45 = vperm.slane %v1115_v43, 3  ;;  %v6612_v4 = vld [vmem:[%s12043_s7] ss:$2 sm:$0xf] }
 0x2a7   : > { %v6473_v35 = vsel %vm6462_vm7, %v1107_v20, %v6301_v59  ;;  %v6478_v31 = vsel %vm6462_vm7, %v1108_v8, %v6328_v44  ;;  %vm1140_vm11 = vcmp.eq.s32.totalorder %v6612_v4, 0  ;;  %vm1215_vm3 = vcmp.eq.s32.totalorder %v6612_v4, 1 }
 0x2a8   : > { %1149 = vrot.lane.b32.xlu0 %v6473_v35, %s5479_s14  ;;  %1151 = vrot.lane.b32.xlu1 %v6478_v31, %s5479_s14  ;;  %vm6508_vm10 = vcmp.eq.s32.totalorder %v1119_v45, 1 }
 0x2ad   : > { %v1091_v59 = vpop.permute.xlu1 %1090 }
 0x2ae   : > { %v1111_v44 = vsel %vm1098_vm5, %v1091_v59, %v1067_v51  ;;  %v1071_v2 = vpop.permute.xlu0 %1070  ;;  %v1099_v51 = vsel %vm1098_vm5, %v1083_v56, %v1091_v59 }
 0x2af   : > { %v6495_v53 = vsel %vm6486_vm8, %v1111_v44, %v6323_v22  ;;  %v6519_v38 = vsel %vm6508_vm10, %v1099_v51, %v6352_v28  ;;  %v1087_v28 = vpop.permute.xlu2 %1086 }
 0x2b0   : > { %1141 = vrot.lane.b32.xlu2 %v6495_v53, %s5479_s14  ;;  %1143 = vrot.lane.b32.xlu0 %v6500_v23, %s5479_s14 }
 0x2b5   : > { %v1085_v22 = vpop.permute.xlu1 %1084 }
 0x2b6   : > { %v1100_v8 = vsel %vm1098_vm5, %v1085_v22, %v1093_v58  ;;  %v1095_v19 = vpop.permute.xlu0 %1094  ;;  %v1104_v58 = vsel %vm1098_vm5, %v1077_v54, %v1085_v22 }
 0x2b7   : > { %v1113_v42 = vsel %vm1098_vm5, %v1095_v19, %v1071_v2  ;;  %v6524_v43 = vsel %vm6508_vm10, %v1100_v8, %v6374_v61  ;;  %v1101_v61 = vsel %vm1098_vm5, %v1087_v28, %v1095_v19  ;;  %v1081_v51 = vpop.permute.xlu2 %1080 }
 0x2b8   : > { %1165 = vrot.lane.b32.xlu2 %v6519_v38, %s5479_s14  ;;  %v6531_v56 = vsel %vm6486_vm8, %v1113_v42, %v6361_v0  ;;  %1167 = vrot.lane.b32.xlu0 %v6524_v43, %s5479_s14  ;;  %v6546_v0 = vsel %vm6449_vm6, %v1104_v58, %v6379_v24  ;;  %v6560_v54 = vsel %vm6508_vm10, %v1101_v61, %v6384_v26 }
 0x2b9   : > { %1145 = vrot.lane.b32.xlu1 %v6531_v56, %s5479_s14 }
 0x2bd   : > { %v1079_v59 = vpop.permute.xlu1 %1078 }
 0x2be   : > { %v1105_v44 = vsel %vm1098_vm5, %v1079_v59, %v1087_v28  ;;  %v1089_v24 = vpop.permute.xlu0 %1088  ;;  %v1190_v28 = vsel %vm1140_vm11, 1, %v12075_v17 }
 0x2bf   : > { %v6551_v45 = vsel %vm6449_vm6, %v1105_v44, %v6401_v18  ;;  %v1109_v18 = vsel %vm1098_vm5, %v1071_v2, %v1079_v59  ;;  %v1106_v22 = vsel %vm1098_vm5, %v1081_v51, %v1089_v24  ;;  %v1193_v58 = vperm.slane %v1190_v28, 2 }
 0x2c0   : > { %1159 = vrot.lane.b32.xlu2 %v6546_v0, %s5479_s14  ;;  %1161 = vrot.lane.b32.xlu0 %v6551_v45, %s5479_s14  ;;  %v6573_v26 = vsel %vm6462_vm7, %v1109_v18, %v6406_v52  ;;  %v6587_v2 = vsel %vm6449_vm6, %v1106_v22, %v6411_v49 }
 0x2c1   : > { %1169 = vrot.lane.b32.xlu1 %v6560_v54, %s5479_s14  ;;  %vm6617_vm13 = vcmp.eq.s32.totalorder %v1193_v58, 1 }
 0x2c5   : > { %v1073_v8 = vpop.permute.xlu1 %1072 }
 0x2c6   : > { %v1110_v19 = vsel %vm1098_vm5, %v1073_v8, %v1081_v51  ;;  %v1191_v51 = vperm.slane %v1190_v28, 0 }
 0x2c7   : > { %v6578_v42 = vsel %vm6462_vm7, %v1110_v19, %v6426_v36 }
 0x2c8   : > { %1153 = vrot.lane.b32.xlu2 %v6573_v26, %s5479_s14  ;;  %1155 = vrot.lane.b32.xlu0 %v6578_v42, %s5479_s14  ;;  %vm6634_vm1 = vcmp.eq.s32.totalorder %v1191_v51, 1 }
 0x2c9   : > { %1163 = vrot.lane.b32.xlu1 %v6587_v2, %s5479_s14 }
 0x2cd   : > { %v1097_v52 = vpop.permute.xlu1 %1096 }
 0x2ce   : > { %v1114_v48 = vsel %vm1098_vm5, %v1097_v52, %v1073_v8  ;;  %v1102_v30 = vsel %vm1098_vm5, %v1089_v24, %v1097_v52  ;;  %v1192_v24 = vperm.slane %v1190_v28, 1 }
 0x2cf   : > { %v6596_v36 = vsel %vm6486_vm8, %v1114_v48, %v6431_v1  ;;  %v6605_v49 = vsel %vm6508_vm10, %v1102_v30, %v6442_v15  ;;  %vm1290_vm10 = vcmp.eq.s32.totalorder %v6612_v4, 18 }
 0x2d0   : > { %1147 = vrot.lane.b32.xlu2 %v6596_v36, %s5479_s14  ;;  %vm6630_vm15 = vcmp.eq.s32.totalorder %v1192_v24, 1  ;;  %v1194_v24 = vperm.slane %v1190_v28, 3 }
 0x2d2   : > { %vm6667_vm2 = vcmp.eq.s32.totalorder %v1194_v24, 1 }
 0x2d8   : > { %1171 = vrot.lane.b32.xlu2 %v6605_v49, %s5479_s14  ;;  %s5490_s14 = smov 19  }
 0x30a   : > { %v1142_v1 = vpop.permute.xlu2 %1141 }
 0x312   : > { %v1158_v15 = vpop.permute.xlu1 %1157  ;;  %v1166_v61 = vpop.permute.xlu2 %1165 }
 0x313   : > { %v1174_v59 = vsel %vm1173_vm12, %v1158_v15, %v1166_v61 }
 0x314   : > { %v6626_v44 = vsel %vm6617_vm13, %v1174_v59, %v6458_v25 }
 0x315   : > { %1232 = vrot.lane.b32.xlu2 %v6626_v44, %s5480_s23 }
 0x31a   : > { %v1150_v8 = vpop.permute.xlu0 %1149  ;;  %v1152_v19 = vpop.permute.xlu1 %1151 }
 0x31b   : > { %v1178_v25 = vsel %vm1173_vm12, %v1150_v8, %v1158_v15  ;;  %v1182_v52 = vsel %vm1173_vm12, %v1142_v1, %v1150_v8  ;;  %v1160_v48 = vpop.permute.xlu2 %1159 }
 0x31c   : > { %v1179_v30 = vsel %vm1173_vm12, %v1152_v19, %v1160_v48  ;;  %v6647_v58 = vsel %vm6630_vm15, %v1178_v25, %v6473_v35  ;;  %v6652_v59 = vsel %vm6634_vm1, %v1182_v52, %v6495_v53  ;;  %v1186_v35 = vsel %vm1173_vm12, %v1166_v61, %v1142_v1 }
 0x31d   : > { %1224 = vrot.lane.b32.xlu1 %v6647_v58, %s5480_s23  ;;  %1216 = vrot.lane.b32.xlu0 %v6652_v59, %s5480_s23  ;;  %v6661_v15 = vsel %vm6630_vm15, %v1179_v30, %v6478_v31  ;;  %v6681_v28 = vsel %vm6667_vm2, %v1186_v35, %v6519_v38 }
 0x31e   : > { %1226 = vrot.lane.b32.xlu2 %v6661_v15, %s5480_s23 }
 0x322   : > { %v1144_v51 = vpop.permute.xlu0 %1143 }
 0x323   : > { %v1183_v8 = vsel %vm1173_vm12, %v1144_v51, %v1152_v19  ;;  %v1154_v1 = vpop.permute.xlu2 %1153 }
 0x324   : > { %v6676_v31 = vsel %vm6634_vm1, %v1183_v8, %v6500_v23 }
 0x325   : > { %1218 = vrot.lane.b32.xlu1 %v6676_v31, %s5480_s23  ;;  %1240 = vrot.lane.b32.xlu0 %v6681_v28, %s5480_s23 }
 0x32a   : > { %v1168_v61 = vpop.permute.xlu0 %1167 }
 0x32b   : > { %v1146_v25 = vpop.permute.xlu1 %1145  ;;  %v1175_v19 = vsel %vm1173_vm12, %v1160_v48, %v1168_v61  ;;  %v1187_v23 = vsel %vm1173_vm12, %v1168_v61, %v1144_v51 }
 0x32c   : > { %v1184_v52 = vsel %vm1173_vm12, %v1146_v25, %v1154_v1  ;;  %v6696_v38 = vsel %vm6667_vm2, %v1187_v23, %v6524_v43  ;;  %v6701_v30 = vsel %vm6617_vm13, %v1175_v19, %v6546_v0  ;;  %v1148_v43 = vpop.permute.xlu2 %1147 }
 0x32d   : > { %1242 = vrot.lane.b32.xlu1 %v6696_v38, %s5480_s23  ;;  %1234 = vrot.lane.b32.xlu0 %v6701_v30, %s5480_s23  ;;  %v6710_v48 = vsel %vm6634_vm1, %v1184_v52, %v6531_v56 }
 0x32e   : > { %1220 = vrot.lane.b32.xlu2 %v6710_v48, %s5480_s23 }
 0x332   : > { %v1162_v24 = vpop.permute.xlu0 %1161 }
 0x333   : > { %v1180_v0 = vsel %vm1173_vm12, %v1154_v1, %v1162_v24  ;;  %v1170_v35 = vpop.permute.xlu1 %1169 }
 0x334   : > { %v1176_v51 = vsel %vm1173_vm12, %v1162_v24, %v1170_v35  ;;  %v1188_v8 = vsel %vm1173_vm12, %v1170_v35, %v1146_v25  ;;  %v6723_v56 = vsel %vm6630_vm15, %v1180_v0, %v6573_v26  ;;  %v1172_v25 = vpop.permute.xlu2 %1171 }
 0x335   : > { %v6728_v61 = vsel %vm6617_vm13, %v1176_v51, %v6551_v45  ;;  %v6733_v1 = vsel %vm6667_vm2, %v1188_v8, %v6560_v54  ;;  %1228 = vrot.lane.b32.xlu0 %v6723_v56, %s5480_s23 }
 0x336   : > { %1236 = vrot.lane.b32.xlu1 %v6728_v61, %s5480_s23  ;;  %1244 = vrot.lane.b32.xlu2 %v6733_v1, %s5480_s23 }
 0x33a   : > { %v1156_v26 = vpop.permute.xlu0 %1155 }
 0x33b   : > { %v1185_v45 = vsel %vm1173_vm12, %v1148_v43, %v1156_v26  ;;  %v1164_v19 = vpop.permute.xlu1 %1163 }
 0x33c   : > { %v1177_v23 = vsel %vm1173_vm12, %v1164_v19, %v1172_v25  ;;  %v1181_v54 = vsel %vm1173_vm12, %v1156_v26, %v1164_v19  ;;  %v6750_v52 = vsel %vm6634_vm1, %v1185_v45, %v6596_v36  ;;  %v1189_v36 = vsel %vm1173_vm12, %v1172_v25, %v1148_v43 }
 0x33d   : > { %v6755_v24 = vsel %vm6630_vm15, %v1181_v54, %v6578_v42  ;;  %1222 = vrot.lane.b32.xlu0 %v6750_v52, %s5480_s23  ;;  %v6762_v0 = vsel %vm6617_vm13, %v1177_v23, %v6587_v2  ;;  %v6773_v42 = vsel %vm6667_vm2, %v1189_v36, %v6605_v49  ;;  %v1265_v2 = vsel %vm1215_vm3, 1, %v12075_v17 }
 0x33e   : > { %1230 = vrot.lane.b32.xlu1 %v6755_v24, %s5480_s23  ;;  %1238 = vrot.lane.b32.xlu2 %v6762_v0, %s5480_s23  ;;  %v1266_v18 = vperm.slane %v1265_v2, 0  ;;  %v1267_v22 = vperm.slane %v1265_v2, 1  ;;  %v1268_v45 = vperm.slane %v1265_v2, 2  ;;  %v1269_v23 = vperm.slane %v1265_v2, 3 }
 0x33f   : > { %vm1323_vm12 = vcmp.lt.s32.totalorder %v5914_v50, 40  ;;  %vm1365_vm2 = vcmp.eq.s32.totalorder %v6612_v4, 19  ;;  %vm1398_vm3 = vcmp.lt.s32.totalorder %v5914_v50, 80 }
 0x340   : > { %vm6780_vm5 = vcmp.eq.s32.totalorder %v1266_v18, 1  ;;  %vm6784_vm6 = vcmp.eq.s32.totalorder %v1267_v22, 1  ;;  %vm6806_vm7 = vcmp.eq.s32.totalorder %v1268_v45, 1  ;;  %vm6816_vm8 = vcmp.eq.s32.totalorder %v1269_v23, 1 }
 0x345   : > { %1246 = vrot.lane.b32.xlu0 %v6773_v42, %s5480_s23 }
 0x36f   : > { %v1233_v20 = vpop.permute.xlu2 %1232 }
 0x378   : > { %v1227_v19 = vpop.permute.xlu2 %1226 }
 0x38f   : > { %v1225_v49 = vpop.permute.xlu1 %1224  ;;  %v1217_v43 = vpop.permute.xlu0 %1216 }
 0x390   : > { %v1253_v51 = vsel %vm11839_vm4, %v1225_v49, %v1233_v20  ;;  %v1257_v8 = vsel %vm11839_vm4, %v1217_v43, %v1225_v49 }
 0x391   : > { %v6795_v26 = vsel %vm6780_vm5, %v1257_v8, %v6652_v59  ;;  %v6800_v25 = vsel %vm6784_vm6, %v1253_v51, %v6647_v58 }
 0x392   : > { %1291 = vrot.lane.b32.xlu1 %v6795_v26, %s5481_s30  ;;  %1299 = vrot.lane.b32.xlu2 %v6800_v25, %s5481_s30 }
 0x397   : > { %v1219_v59 = vpop.permute.xlu1 %1218  ;;  %v1241_v36 = vpop.permute.xlu0 %1240 }
 0x398   : > { %v1258_v58 = vsel %vm11839_vm4, %v1219_v59, %v1227_v19  ;;  %v1249_v18 = vsel %vm11839_vm4, %v1233_v20, %v1241_v36  ;;  %v1261_v22 = vsel %vm11839_vm4, %v1241_v36, %v1217_v43 }
 0x399   : > { %v6823_v2 = vsel %vm6816_vm8, %v1261_v22, %v6681_v28  ;;  %v6828_v51 = vsel %vm6806_vm7, %v1249_v18, %v6626_v44  ;;  %v6833_v20 = vsel %vm6780_vm5, %v1258_v58, %v6676_v31  ;;  %v1221_v28 = vpop.permute.xlu2 %1220 }
 0x39a   : > { %1315 = vrot.lane.b32.xlu1 %v6823_v2, %s5481_s30  ;;  %1307 = vrot.lane.b32.xlu0 %v6828_v51, %s5481_s30 }
 0x39b   : > { %1293 = vrot.lane.b32.xlu2 %v6833_v20, %s5481_s30 }
 0x39f   : > { %v1243_v43 = vpop.permute.xlu1 %1242  ;;  %v1235_v8 = vpop.permute.xlu0 %1234 }
 0x3a0   : > { %v1262_v44 = vsel %vm11839_vm4, %v1243_v43, %v1219_v59  ;;  %v1250_v45 = vsel %vm11839_vm4, %v1235_v8, %v1243_v43  ;;  %v1254_v31 = vsel %vm11839_vm4, %v1227_v19, %v1235_v8 }
 0x3a1   : > { %v6850_v23 = vsel %vm6806_vm7, %v1250_v45, %v6701_v30  ;;  %v6855_v36 = vsel %vm6816_vm8, %v1262_v44, %v6696_v38  ;;  %v6860_v59 = vsel %vm6784_vm6, %v1254_v31, %v6661_v15  ;;  %v1245_v30 = vpop.permute.xlu2 %1244 }
 0x3a2   : > { %1309 = vrot.lane.b32.xlu1 %v6850_v23, %s5481_s30  ;;  %1301 = vrot.lane.b32.xlu0 %v6860_v59, %s5481_s30 }
 0x3a3   : > { %1317 = vrot.lane.b32.xlu2 %v6855_v36, %s5481_s30 }
 0x3a7   : > { %v1229_v19 = vpop.permute.xlu0 %1228 }
 0x3a8   : > { %v1237_v58 = vpop.permute.xlu1 %1236  ;;  %v1259_v38 = vsel %vm11839_vm4, %v1221_v28, %v1229_v19 }
 0x3a9   : > { %v1251_v18 = vsel %vm11839_vm4, %v1237_v58, %v1245_v30  ;;  %v1255_v15 = vsel %vm11839_vm4, %v1229_v19, %v1237_v58  ;;  %v6877_v22 = vsel %vm6780_vm5, %v1259_v38, %v6710_v48  ;;  %v1263_v48 = vsel %vm11839_vm4, %v1245_v30, %v1221_v28 }
 0x3aa   : > { %v6882_v43 = vsel %vm6784_vm6, %v1255_v15, %v6723_v56  ;;  %1295 = vrot.lane.b32.xlu0 %v6877_v22, %s5481_s30  ;;  %v6889_v8 = vsel %vm6806_vm7, %v1251_v18, %v6728_v61  ;;  %v1239_v56 = vpop.permute.xlu2 %1238  ;;  %v6904_v61 = vsel %vm6816_vm8, %v1263_v48, %v6733_v1  ;;  %v1340_v38 = vsel %vm1290_vm10, 1, %v12075_v17 }
 0x3ab   : > { %1303 = vrot.lane.b32.xlu1 %v6882_v43, %s5481_s30  ;;  %1311 = vrot.lane.b32.xlu2 %v6889_v8, %s5481_s30  ;;  %v1342_v49 = vperm.slane %v1340_v38, 1  ;;  %v1343_v48 = vperm.slane %v1340_v38, 2  ;;  %vm1472_vm10 = vcmp.lt.s32.totalorder %v5914_v50, 42 }
 0x3ad   : > { %vm6942_vm11 = vcmp.eq.s32.totalorder %v1342_v49, 1  ;;  %vm6956_vm13 = vcmp.eq.s32.totalorder %v1343_v48, 1 }
 0x3af   : > { %v1223_v44 = vpop.permute.xlu0 %1222 }
 0x3b0   : > { %v1231_v45 = vpop.permute.xlu1 %1230 }
 0x3b1   : > { %v1256_v31 = vsel %vm11839_vm4, %v1231_v45, %v1239_v56  ;;  %v1260_v19 = vsel %vm11839_vm4, %v1223_v44, %v1231_v45 }
 0x3b2   : > { %v6909_v58 = vsel %vm6780_vm5, %v1260_v19, %v6750_v52  ;;  %1319 = vrot.lane.b32.xlu0 %v6904_v61, %s5481_s30  ;;  %v6916_v28 = vsel %vm6784_vm6, %v1256_v31, %v6755_v24 }
 0x3b3   : > { %1297 = vrot.lane.b32.xlu1 %v6909_v58, %s5481_s30  ;;  %1305 = vrot.lane.b32.xlu2 %v6916_v28, %s5481_s30 }
 0x3b7   : > { %v1247_v1 = vpop.permute.xlu0 %1246 }
 0x3b8   : > { %v1252_v35 = vsel %vm11839_vm4, %v1239_v56, %v1247_v1  ;;  %v1264_v52 = vsel %vm11839_vm4, %v1247_v1, %v1223_v44  ;;  %v1341_v44 = vperm.slane %v1340_v38, 0  ;;  %vm11863_vm4 = vcmp.lt.s32.totalorder %v5914_v50, 109 }
 0x3b9   : > { %v6929_v30 = vsel %vm6816_vm8, %v1264_v52, %v6773_v42  ;;  %v6934_v24 = vsel %vm6806_vm7, %v1252_v35, %v6762_v0 }
 0x3ba   : > { %1313 = vrot.lane.b32.xlu0 %v6934_v24, %s5481_s30  ;;  %vm6962_vm15 = vcmp.eq.s32.totalorder %v1341_v44, 1 }
 0x3bb   : > { %1321 = vrot.lane.b32.xlu1 %v6929_v30, %s5481_s30 }
 0x3ec   : > { %v1300_v53 = vpop.permute.xlu2 %1299 }
 0x3f5   : > { %v1294_v18 = vpop.permute.xlu2 %1293 }
 0x3fd   : > { %v1318_v56 = vpop.permute.xlu2 %1317 }
 0x3fe   : > { %v1337_v31 = vsel %vm1323_vm12, %v1318_v56, %v1294_v18 }
 0x404   : > { %v1292_v0 = vpop.permute.xlu1 %1291 }
 0x405   : > { %v1332_v54 = vsel %vm1323_vm12, %v1292_v0, %v1300_v53 }
 0x406   : > { %v6952_v15 = vsel %vm6942_vm11, %v1332_v54, %v6800_v25 }
 0x407   : > { %1374 = vrot.lane.b32.xlu0 %v6952_v15, %s5482_s25 }
 0x40c   : > { %v1316_v19 = vpop.permute.xlu1 %1315  ;;  %v1308_v1 = vpop.permute.xlu0 %1307 }
 0x40d   : > { %v1336_v25 = vsel %vm1323_vm12, %v1316_v19, %v1292_v0  ;;  %v1328_v52 = vsel %vm1323_vm12, %v1300_v53, %v1308_v1  ;;  %v6987_v53 = vsel %vm6962_vm15, %v1337_v31, %v6833_v20  ;;  %v1344_v0 = vperm.slane %v1340_v38, 3 }
 0x40e   : > { %v6973_v49 = vsel %vm6962_vm15, %v1336_v25, %v6795_v26  ;;  %v6978_v54 = vsel %vm6956_vm13, %v1328_v52, %v6828_v51  ;;  %v1324_v26 = vsel %vm1323_vm12, %v1308_v1, %v1316_v19 }
 0x40f   : > { %1366 = vrot.lane.b32.xlu2 %v6973_v49, %s5482_s25  ;;  %1382 = vrot.lane.b32.xlu1 %v6978_v54, %s5482_s25  ;;  %vm6993_vm1 = vcmp.eq.s32.totalorder %v1344_v0, 1 }
 0x410   : > { %1368 = vrot.lane.b32.xlu0 %v6987_v53, %s5482_s25  ;;  %v7004_v38 = vsel %vm6993_vm1, %v1324_v26, %v6823_v2  ;;  %v1312_v2 = vpop.permute.xlu2 %1311 }
 0x414   : > { %v1310_v48 = vpop.permute.xlu1 %1309  ;;  %v1302_v44 = vpop.permute.xlu0 %1301 }
 0x415   : > { %v1325_v25 = vsel %vm1323_vm12, %v1310_v48, %v1318_v56  ;;  %v1333_v20 = vsel %vm1323_vm12, %v1294_v18, %v1302_v44  ;;  %v1329_v18 = vsel %vm1323_vm12, %v1302_v44, %v1310_v48 }
 0x416   : > { %v7009_v31 = vsel %vm6942_vm11, %v1333_v20, %v6860_v59  ;;  %v7014_v19 = vsel %vm6993_vm1, %v1325_v25, %v6855_v36  ;;  %v7029_v36 = vsel %vm6956_vm13, %v1329_v18, %v6850_v23 }
 0x417   : > { %1390 = vrot.lane.b32.xlu2 %v7004_v38, %s5482_s25  ;;  %1376 = vrot.lane.b32.xlu1 %v7009_v31, %s5482_s25 }
 0x418   : > { %1392 = vrot.lane.b32.xlu0 %v7014_v19, %s5482_s25  ;;  %v1306_v48 = vpop.permute.xlu2 %1305 }
 0x41c   : > { %v1296_v59 = vpop.permute.xlu0 %1295 }
 0x41d   : > { %v1304_v56 = vpop.permute.xlu1 %1303 }
 0x41e   : > { %v1330_v1 = vsel %vm1323_vm12, %v1304_v56, %v1312_v2  ;;  %v1334_v0 = vsel %vm1323_vm12, %v1296_v59, %v1304_v56 }
 0x41f   : > { %1384 = vrot.lane.b32.xlu2 %v7029_v36, %s5482_s25  ;;  %v7036_v52 = vsel %vm6956_vm13, %v1330_v1, %v6889_v8  ;;  %v7049_v8 = vsel %vm6942_vm11, %v1334_v0, %v6882_v43  ;;  %v1415_v0 = vsel %vm1365_vm2, 1, %v12075_v17  ;;  %vm2106_vm2 = vcmp.lt.s32.totalorder %v5914_v50, 21 }
 0x420   : > { %1386 = vrot.lane.b32.xlu0 %v7036_v52, %s5482_s25  ;;  %v1417_v17 = vperm.slane %v1415_v0, 1 }
 0x422   : > { %vm7119_vm6 = vcmp.eq.s32.totalorder %v1417_v17, 1 }
 0x424   : > { %v1320_v26 = vpop.permute.xlu0 %1319 }
 0x425   : > { %v1298_v44 = vpop.permute.xlu1 %1297  ;;  %v1338_v23 = vsel %vm1323_vm12, %v1320_v26, %v1296_v59  ;;  %v1326_v43 = vsel %vm1323_vm12, %v1312_v2, %v1320_v26  ;;  %v1416_v26 = vperm.slane %v1415_v0, 0 }
 0x426   : > { %v1335_v25 = vsel %vm1323_vm12, %v1298_v44, %v1306_v48  ;;  %v7054_v20 = vsel %vm6962_vm15, %v1338_v23, %v6877_v22  ;;  %v7074_v56 = vsel %vm6993_vm1, %v1326_v43, %v6904_v61  ;;  %v1419_v43 = vperm.slane %v1415_v0, 3 }
 0x427   : > { %1378 = vrot.lane.b32.xlu2 %v7049_v8, %s5482_s25  ;;  %1370 = vrot.lane.b32.xlu1 %v7054_v20, %s5482_s25  ;;  %v7063_v18 = vsel %vm6942_vm11, %v1335_v25, %v6916_v28  ;;  %vm7106_vm5 = vcmp.eq.s32.totalorder %v1416_v26, 1  ;;  %vm1577_vm11 = vcmp.lt.s32.totalorder %v5914_v50, 41 }
 0x428   : > { %1380 = vrot.lane.b32.xlu0 %v7063_v18, %s5482_s25  ;;  %vm7136_vm8 = vcmp.eq.s32.totalorder %v1419_v43, 1 }
 0x42c   : > { %v1314_v42 = vpop.permute.xlu0 %1313 }
 0x42d   : > { %v1322_v59 = vpop.permute.xlu1 %1321  ;;  %v1331_v2 = vsel %vm1323_vm12, %v1306_v48, %v1314_v42 }
 0x42e   : > { %v1339_v22 = vsel %vm1323_vm12, %v1322_v59, %v1298_v44  ;;  %v1327_v1 = vsel %vm1323_vm12, %v1314_v42, %v1322_v59  ;;  %v7092_v61 = vsel %vm6956_vm13, %v1331_v2, %v6934_v24  ;;  %vm1788_vm13 = vcmp.lt.s32.totalorder %v5914_v50, 39 }
 0x42f   : > { %v7079_v28 = vsel %vm6962_vm15, %v1339_v22, %v6909_v58  ;;  %1394 = vrot.lane.b32.xlu1 %v7074_v56, %s5482_s25  ;;  %v7097_v58 = vsel %vm6993_vm1, %v1327_v1, %v6929_v30  ;;  %vm1894_vm15 = vcmp.lt.s32.totalorder %v5914_v50, 38  ;;  %vm2000_vm1 = vcmp.lt.s32.totalorder %v5914_v50, 22 }
 0x430   : > { %1372 = vrot.lane.b32.xlu2 %v7079_v28, %s5482_s25 }
 0x437   : > { %1388 = vrot.lane.b32.xlu1 %v7092_v61, %s5482_s25 }
 0x438   : > { %1396 = vrot.lane.b32.xlu2 %v7097_v58, %s5482_s25  ;;  %s5493_s25 = smov 127  }
 0x469   : > { %v1367_v35 = vpop.permute.xlu2 %1366 }
 0x471   : > { %v1391_v30 = vpop.permute.xlu2 %1390 }
 0x472   : > { %v1411_v45 = vsel %vm1398_vm3, %v1391_v30, %v1367_v35 }
 0x473   : > { %v7115_v51 = vsel %vm7106_vm5, %v1411_v45, %v6973_v49  ;;  %v1418_v49 = vperm.slane %v1415_v0, 2 }
 0x474   : > { %12126 = vst [vmem:[#allocation59_spill] sm:$0xff] %v7115_v51  ;;  %1440 = vrot.lane.b32.xlu0 %v7115_v51, %s5483_s2 }
 0x475   : > { %vm7132_vm7 = vcmp.eq.s32.totalorder %v1418_v49, 1 }
 0x479   : > { %v1375_v48 = vpop.permute.xlu0 %1374  ;;  %v1385_v44 = vpop.permute.xlu2 %1384 }
 0x47a   : > { %v1407_v23 = vsel %vm1398_vm3, %v1367_v35, %v1375_v48 }
 0x47b   : > { %v7128_v25 = vsel %vm7119_vm6, %v1407_v23, %v6952_v15 }
 0x47c   : > { %12129 = vst [vmem:[#allocation60_spill] sm:$0xff] %v7128_v25  ;;  %1448 = vrot.lane.b32.xlu1 %v7128_v25, %s5483_s2 }
 0x481   : > { %v1383_v42 = vpop.permute.xlu1 %1382  ;;  %v1379_v2 = vpop.permute.xlu2 %1378 }
 0x482   : > { %v1399_v1 = vsel %vm1398_vm3, %v1383_v42, %v1391_v30  ;;  %v1403_v15 = vsel %vm1398_vm3, %v1375_v48, %v1383_v42  ;;  %v1369_v35 = vpop.permute.xlu0 %1368 }
 0x483   : > { %v7147_v0 = vsel %vm7132_vm7, %v1403_v15, %v6978_v54  ;;  %v7152_v26 = vsel %vm7136_vm8, %v1399_v1, %v7004_v38 }
 0x484   : > { %12134 = vst [vmem:[#allocation61_spill] sm:$0xff] %v7147_v0  ;;  %1456 = vrot.lane.b32.xlu2 %v7147_v0, %s5483_s2  ;;  %1561 = vrot.lane.b32.xlu1 %v7147_v0, %s5484_s28 }
 0x485   : > { %12135 = vst [vmem:[#allocation62_spill] sm:$0xff] %v7152_v26  ;;  %1464 = vrot.lane.b32.xlu0 %v7152_v26, %s5483_s2 }
 0x489   : > { %v1377_v30 = vpop.permute.xlu1 %1376 }
 0x48a   : > { %v1404_v54 = vsel %vm1398_vm3, %v1377_v30, %v1385_v44  ;;  %v1408_v45 = vsel %vm1398_vm3, %v1369_v35, %v1377_v30  ;;  %v1393_v17 = vpop.permute.xlu0 %1392  ;;  %v1373_v38 = vpop.permute.xlu2 %1372 }
 0x48b   : > { %v7167_v48 = vsel %vm7119_vm6, %v1408_v45, %v7009_v31  ;;  %v7172_v23 = vsel %vm7132_vm7, %v1404_v54, %v7029_v36  ;;  %v1400_v49 = vsel %vm1398_vm3, %v1385_v44, %v1393_v17  ;;  %v1412_v43 = vsel %vm1398_vm3, %v1393_v17, %v1369_v35 }
 0x48c   : > { %12136 = vst [vmem:[#allocation63_spill] sm:$0xff] %v7167_v48  ;;  %v7181_v42 = vsel %vm7106_vm5, %v1412_v43, %v6987_v53  ;;  %v7186_v31 = vsel %vm7136_vm8, %v1400_v49, %v7014_v19  ;;  %1651 = vrot.lane.b32.xlu1 %v7115_v51, %s5481_s30  ;;  %1545 = vrot.lane.b32.xlu2 %v7115_v51, %s5484_s28 }
 0x48d   : > { %12137 = vst [vmem:[#allocation64_spill] sm:$0xff] %v7172_v23  ;;  %1553 = vrot.lane.b32.xlu0 %v7128_v25, %s5484_s28 }
 0x48e   : > { %12138 = vst [vmem:[#allocation65_spill] sm:$0xff] %v7186_v31 }
 0x492   : > { %v1387_v36 = vpop.permute.xlu0 %1386  ;;  %v1397_v44 = vpop.permute.xlu2 %1396 }
 0x493   : > { %v1405_v53 = vsel %vm1398_vm3, %v1379_v2, %v1387_v36  ;;  %v1414_v1 = vsel %vm1398_vm3, %v1397_v44, %v1373_v38 }
 0x494   : > { %v7201_v19 = vsel %vm7132_vm7, %v1405_v53, %v7036_v52  ;;  %v7206_v15 = vsel %vm7106_vm5, %v1414_v1, %v7079_v28  ;;  %1675 = vrot.lane.b32.xlu1 %v7152_v26, %s5481_s30  ;;  %1569 = vrot.lane.b32.xlu2 %v7152_v26, %s5484_s28 }
 0x495   : > { %1667 = vrot.lane.b32.xlu0 %v7147_v0, %s5481_s30 }
 0x499   : > { %v1371_v35 = vpop.permute.xlu1 %1370 }
 0x49a   : > { %v1409_v30 = vsel %vm1398_vm3, %v1371_v35, %v1379_v2  ;;  %v1381_v52 = vpop.permute.xlu0 %1380 }
 0x49b   : > { %v7219_v54 = vsel %vm7119_vm6, %v1409_v30, %v7049_v8  ;;  %v1410_v28 = vsel %vm1398_vm3, %v1373_v38, %v1381_v52 }
 0x49c   : > { %12139 = vst [vmem:[#allocation66_spill] sm:$0xff] %v7219_v54  ;;  %v7226_v45 = vsel %vm7119_vm6, %v1410_v28, %v7063_v18  ;;  %1764 = vrot.lane.b32.xlu1 %v7128_v25, %s5485_s19  ;;  %1659 = vrot.lane.b32.xlu2 %v7128_v25, %s5481_s30  ;;  %vm2424_vm6 = vcmp.lt.s32.totalorder %v5914_v50, 18 }
 0x49d   : > { %12140 = vst [vmem:[#allocation67_spill] sm:$0xff] %v7226_v45  ;;  %1756 = vrot.lane.b32.xlu0 %v7115_v51, %s5485_s19 }
 0x4a1   : > { %v1395_v8 = vpop.permute.xlu1 %1394 }
 0x4a2   : > { %v1401_v2 = vsel %vm1398_vm3, %v1387_v36, %v1395_v8  ;;  %v1413_v17 = vsel %vm1398_vm3, %v1395_v8, %v1371_v35 }
 0x4a3   : > { %v7241_v18 = vsel %vm7106_vm5, %v1413_v17, %v7054_v20  ;;  %v7246_v4 = vsel %vm7136_vm8, %v1401_v2, %v7074_v56  ;;  %vm2318_vm5 = vcmp.lt.s32.totalorder %v5914_v50, 19 }
 0x4a4   : > { %1878 = vrot.lane.b32.xlu1 %v7147_v0, %s5486_s3  ;;  %1772 = vrot.lane.b32.xlu2 %v7147_v0, %s5485_s19 }
 0x4a5   : > { %1780 = vrot.lane.b32.xlu0 %v7152_v26, %s5485_s19 }
 0x4a9   : > { %v1389_v38 = vpop.permute.xlu1 %1388 }
 0x4aa   : > { %v1402_v20 = vsel %vm1398_vm3, %v1389_v38, %v1397_v44  ;;  %v1406_v24 = vsel %vm1398_vm3, %v1381_v52, %v1389_v38  ;;  %vm2212_vm3 = vcmp.lt.s32.totalorder %v5914_v50, 20 }
 0x4ab   : > { %v7261_v56 = vsel %vm7132_vm7, %v1406_v24, %v7092_v61  ;;  %v7266_v49 = vsel %vm7136_vm8, %v1402_v20, %v7097_v58  ;;  %vm2635_vm7 = vcmp.lt.s32.totalorder %v5914_v50, 1  ;;  %vm2798_vm8 = vcmp.lt.s32.totalorder %v5914_v50, 127 }
 0x4ac   : > { %1968 = vrot.lane.b32.xlu1 %v7115_v51, %s5487_s5  ;;  %1862 = vrot.lane.b32.xlu2 %v7115_v51, %s5486_s3 }
 0x4ad   : > { %1870 = vrot.lane.b32.xlu0 %v7128_v25, %s5486_s3 }
 0x4b4   : > { %1992 = vrot.lane.b32.xlu1 %v7152_v26, %s5487_s5  ;;  %1886 = vrot.lane.b32.xlu2 %v7152_v26, %s5486_s3 }
 0x4b5   : > { %1984 = vrot.lane.b32.xlu0 %v7147_v0, %s5487_s5 }
 0x4bc   : > { %2082 = vrot.lane.b32.xlu1 %v7128_v25, %s5488_s6  ;;  %1976 = vrot.lane.b32.xlu2 %v7128_v25, %s5487_s5 }
 0x4bd   : > { %2074 = vrot.lane.b32.xlu0 %v7115_v51, %s5488_s6 }
 0x4c4   : > { %2196 = vrot.lane.b32.xlu1 %v7147_v0, %s5489_s29  ;;  %2090 = vrot.lane.b32.xlu2 %v7147_v0, %s5488_s6 }
 0x4c5   : > { %2098 = vrot.lane.b32.xlu0 %v7152_v26, %s5488_s6 }
 0x4cc   : > { %2286 = vrot.lane.b32.xlu1 %v7115_v51, %s5490_s14  ;;  %2180 = vrot.lane.b32.xlu2 %v7115_v51, %s5489_s29 }
 0x4cd   : > { %2188 = vrot.lane.b32.xlu0 %v7128_v25, %s5489_s29 }
 0x4d4   : > { %2310 = vrot.lane.b32.xlu1 %v7152_v26, %s5490_s14  ;;  %2204 = vrot.lane.b32.xlu2 %v7152_v26, %s5489_s29 }
 0x4d5   : > { %2302 = vrot.lane.b32.xlu0 %v7147_v0, %s5490_s14 }
 0x4dc   : > { %2400 = vrot.lane.b32.xlu1 %v7128_v25, %s5491_s15  ;;  %2294 = vrot.lane.b32.xlu2 %v7128_v25, %s5490_s14 }
 0x4dd   : > { %2392 = vrot.lane.b32.xlu0 %v7115_v51, %s5491_s15 }
 0x4de   : > { %v7310_v61 = vpop.permute.xlu2 %1456 }
 0x4e4   : > { %2514 = vrot.lane.b32.xlu1 %v7147_v0, %s5477_s27  ;;  %2408 = vrot.lane.b32.xlu2 %v7147_v0, %s5491_s15 }
 0x4e5   : > { %2416 = vrot.lane.b32.xlu0 %v7152_v26, %s5491_s15 }
 0x4e6   : > { %v7318_v58 = vpop.permute.xlu2 %1545  ;;  %v7330_v43 = vpop.permute.xlu0 %1440 }
 0x4ec   : > { %2603 = vrot.lane.b32.xlu1 %v7115_v51, %s5492_s18  ;;  %2498 = vrot.lane.b32.xlu2 %v7115_v51, %s5477_s27 }
 0x4ed   : > { %2506 = vrot.lane.b32.xlu0 %v7128_v25, %s5477_s27 }
 0x4ee   : > { %v7326_v59 = vpop.permute.xlu1 %1448  ;;  %v7328_v22 = vpop.permute.xlu2 %1569 }
 0x4f4   : > { %2627 = vrot.lane.b32.xlu1 %v7152_v26, %s5492_s18  ;;  %2522 = vrot.lane.b32.xlu2 %v7152_v26, %s5477_s27 }
 0x4f5   : > { %2619 = vrot.lane.b32.xlu0 %v7147_v0, %s5492_s18 }
 0x4f6   : > { %v7338_v36 = vpop.permute.xlu1 %1561  ;;  %v7340_v44 = vpop.permute.xlu2 %1659 }
 0x4f7   : > { %v7342_v53 = vpop.permute.xlu0 %1464 }
 0x4fc   : > { %2766 = vrot.lane.b32.xlu1 %v7115_v51, %s5493_s25  ;;  %2611 = vrot.lane.b32.xlu2 %v7128_v25, %s5492_s18 }
 0x4fd   : > { %2782 = vrot.lane.b32.xlu0 %v7147_v0, %s5493_s25 }
 0x4fe   : > { %v7350_v1 = vpop.permute.xlu1 %1651  ;;  %v7352_v35 = vpop.permute.xlu2 %1772 }
 0x4ff   : > { %v7354_v30 = vpop.permute.xlu0 %1553 }
 0x504   : > { %2790 = vrot.lane.b32.xlu1 %v7152_v26, %s5493_s25  ;;  %2774 = vrot.lane.b32.xlu2 %v7128_v25, %s5493_s25 }
 0x505   : > { %2872 = vrot.lane.b32.xlu0 %v7115_v51, %s5476_s21 }
 0x506   : > { %v7362_v52 = vpop.permute.xlu1 %1675  ;;  %v7364_v28 = vpop.permute.xlu2 %1862 }
 0x507   : > { %v7366_v8 = vpop.permute.xlu0 %1667 }
 0x50c   : > { %2880 = vrot.lane.b32.xlu1 %v7128_v25, %s5476_s21  ;;  %2888 = vrot.lane.b32.xlu2 %v7147_v0, %s5476_s21 }
 0x50d   : > { %2896 = vrot.lane.b32.xlu0 %v7152_v26, %s5476_s21 }
 0x50e   : > { %v7374_v2 = vpop.permute.xlu1 %1764  ;;  %v7376_v17 = vpop.permute.xlu2 %1886 }
 0x50f   : > { %v7378_v38 = vpop.permute.xlu0 %1756 }
 0x514   : > { %1442 = vrot.lane.b32.xlu1 %v7181_v42, %s5483_s2  ;;  %1450 = vrot.lane.b32.xlu2 %v7167_v48, %s5483_s2 }
 0x515   : > { %1458 = vrot.lane.b32.xlu0 %v7172_v23, %s5483_s2 }
 0x516   : > { %v7386_v20 = vpop.permute.xlu1 %1878  ;;  %v7388_v24 = vpop.permute.xlu2 %1976 }
 0x517   : > { %v7390_v37 = vpop.permute.xlu0 %1780 }
 0x51c   : > { %1563 = vrot.lane.b32.xlu2 %v7172_v23, %s5484_s28  ;;  %1466 = vrot.lane.b32.xlu1 %v7186_v31, %s5483_s2 }
 0x51d   : > { %1547 = vrot.lane.b32.xlu0 %v7181_v42, %s5484_s28 }
 0x51e   : > { %v7398_v13 = vpop.permute.xlu1 %1968  ;;  %v7400_v34 = vpop.permute.xlu2 %2090 }
 0x51f   : > { %v7402_v14 = vpop.permute.xlu0 %1870 }
 0x524   : > { %1653 = vrot.lane.b32.xlu2 %v7181_v42, %s5481_s30  ;;  %1555 = vrot.lane.b32.xlu1 %v7167_v48, %s5484_s28 }
 0x525   : > { %1571 = vrot.lane.b32.xlu0 %v7186_v31, %s5484_s28 }
 0x526   : > { %v7410_v7 = vpop.permute.xlu1 %1992  ;;  %v7412_v11 = vpop.permute.xlu2 %2180 }
 0x527   : > { %v7414_v29 = vpop.permute.xlu0 %1984 }
 0x52c   : > { %1677 = vrot.lane.b32.xlu2 %v7186_v31, %s5481_s30  ;;  %1669 = vrot.lane.b32.xlu1 %v7172_v23, %s5481_s30 }
 0x52d   : > { %1661 = vrot.lane.b32.xlu0 %v7167_v48, %s5481_s30 }
 0x52e   : > { %v7422_v16 = vpop.permute.xlu1 %2082  ;;  %v7424_v32 = vpop.permute.xlu2 %2204 }
 0x52f   : > { %12141 = vst [vmem:[#allocation68_spill] sm:$0xff] %v7424_v32  ;;  %v7426_v57 = vpop.permute.xlu0 %2074 }
 0x534   : > { %1766 = vrot.lane.b32.xlu2 %v7167_v48, %s5485_s19  ;;  %1758 = vrot.lane.b32.xlu1 %v7181_v42, %s5485_s19 }
 0x535   : > { %1774 = vrot.lane.b32.xlu0 %v7172_v23, %s5485_s19 }
 0x536   : > { %v7434_v9 = vpop.permute.xlu1 %2196  ;;  %v7436_v12 = vpop.permute.xlu2 %2294 }
 0x537   : > { %12142 = vst [vmem:[#allocation69_spill] sm:$0xff] %v7434_v9  ;;  %v7438_v62 = vpop.permute.xlu0 %2098 }
 0x538   : > { %12143 = vst [vmem:[#allocation70_spill] sm:$0xff] %v7436_v12  ;;  %v5210_v12 = vld [vmem:[%s5635_s20 + $0x1d0] sm:$0xff] }
 0x53c   : > { %1880 = vrot.lane.b32.xlu2 %v7172_v23, %s5486_s3  ;;  %1782 = vrot.lane.b32.xlu1 %v7186_v31, %s5485_s19 }
 0x53d   : > { %1864 = vrot.lane.b32.xlu0 %v7181_v42, %s5486_s3 }
 0x53e   : > { %v7446_v47 = vpop.permute.xlu1 %2286  ;;  %v7448_v46 = vpop.permute.xlu2 %2408 }
 0x53f   : > { %12144 = vst [vmem:[#allocation71_spill] sm:$0xff] %v7446_v47  ;;  %v7450_v6 = vpop.permute.xlu0 %2188 }
 0x540   : > { %12145 = vst [vmem:[#allocation72_spill] sm:$0xff] %v7448_v46 }
 0x544   : > { %1970 = vrot.lane.b32.xlu2 %v7181_v42, %s5487_s5  ;;  %1872 = vrot.lane.b32.xlu1 %v7167_v48, %s5486_s3 }
 0x545   : > { %1888 = vrot.lane.b32.xlu0 %v7186_v31, %s5486_s3 }
 0x546   : > { %v7458_v3 = vpop.permute.xlu1 %2310  ;;  %v7460_v33 = vpop.permute.xlu2 %2498 }
 0x547   : > { %12146 = vst [vmem:[#allocation73_spill] sm:$0xff] %v7458_v3  ;;  %v7462_v40 = vpop.permute.xlu0 %2302 }
 0x548   : > { %12147 = vst [vmem:[#allocation74_spill] sm:$0xff] %v7460_v33 }
 0x549   : > { %12148 = vst [vmem:[#allocation75_spill] sm:$0xff] %v7462_v40 }
 0x54c   : > { %1994 = vrot.lane.b32.xlu2 %v7186_v31, %s5487_s5  ;;  %1986 = vrot.lane.b32.xlu1 %v7172_v23, %s5487_s5 }
 0x54d   : > { %1978 = vrot.lane.b32.xlu0 %v7167_v48, %s5487_s5 }
 0x54e   : > { %v7470_v46 = vpop.permute.xlu1 %2400  ;;  %v7472_v9 = vpop.permute.xlu2 %2522 }
 0x54f   : > { %12149 = vst [vmem:[#allocation76_spill] sm:$0xff] %v7470_v46  ;;  %v7474_v47 = vpop.permute.xlu0 %2392 }
 0x550   : > { %12150 = vst [vmem:[#allocation77_spill] sm:$0xff] %v7472_v9 }
 0x551   : > { %12151 = vst [vmem:[#allocation78_spill] sm:$0xff] %v7474_v47 }
 0x554   : > { %2084 = vrot.lane.b32.xlu2 %v7167_v48, %s5488_s6  ;;  %2076 = vrot.lane.b32.xlu1 %v7181_v42, %s5488_s6 }
 0x555   : > { %2092 = vrot.lane.b32.xlu0 %v7172_v23, %s5488_s6 }
 0x556   : > { %v7482_v33 = vpop.permute.xlu1 %2514  ;;  %v7484_v40 = vpop.permute.xlu2 %2611 }
 0x557   : > { %12152 = vst [vmem:[#allocation79_spill] sm:$0xff] %v7482_v33  ;;  %v7486_v3 = vpop.permute.xlu0 %2416 }
 0x558   : > { %12153 = vst [vmem:[#allocation80_spill] sm:$0xff] %v7484_v40 }
 0x559   : > { %12154 = vst [vmem:[#allocation81_spill] sm:$0xff] %v7486_v3 }
 0x55c   : > { %2198 = vrot.lane.b32.xlu2 %v7172_v23, %s5489_s29  ;;  %2100 = vrot.lane.b32.xlu1 %v7186_v31, %s5488_s6 }
 0x55d   : > { %2182 = vrot.lane.b32.xlu0 %v7181_v42, %s5489_s29 }
 0x55e   : > { %v7494_v9 = vpop.permute.xlu1 %2603  ;;  %v7496_v47 = vpop.permute.xlu2 %2774 }
 0x55f   : > { %12155 = vst [vmem:[#allocation82_spill] sm:$0xff] %v7494_v9  ;;  %v7498_v46 = vpop.permute.xlu0 %2506 }
 0x560   : > { %12156 = vst [vmem:[#allocation83_spill] sm:$0xff] %v7496_v47 }
 0x561   : > { %12157 = vst [vmem:[#allocation84_spill] sm:$0xff] %v7498_v46 }
 0x564   : > { %2288 = vrot.lane.b32.xlu2 %v7181_v42, %s5490_s14  ;;  %2190 = vrot.lane.b32.xlu1 %v7167_v48, %s5489_s29 }
 0x565   : > { %2206 = vrot.lane.b32.xlu0 %v7186_v31, %s5489_s29 }
 0x566   : > { %v7506_v33 = vpop.permute.xlu1 %2627  ;;  %v7508_v40 = vpop.permute.xlu2 %2888 }
 0x567   : > { %12158 = vst [vmem:[#allocation85_spill] sm:$0xff] %v7506_v33  ;;  %v7510_v3 = vpop.permute.xlu0 %2619 }
 0x568   : > { %12159 = vst [vmem:[#allocation86_spill] sm:$0xff] %v7508_v40 }
 0x569   : > { %12160 = vst [vmem:[#allocation87_spill] sm:$0xff] %v7510_v3 }
 0x56c   : > { %2312 = vrot.lane.b32.xlu2 %v7186_v31, %s5490_s14  ;;  %2304 = vrot.lane.b32.xlu1 %v7172_v23, %s5490_s14 }
 0x56d   : > { %2296 = vrot.lane.b32.xlu0 %v7167_v48, %s5490_s14 }
 0x56e   : > { %v7518_v47 = vpop.permute.xlu1 %2766  ;;  %v7520_v9 = vpop.permute.xlu2 %1450 }
 0x56f   : > { %12161 = vst [vmem:[#allocation88_spill] sm:$0xff] %v7518_v47  ;;  %v7522_v46 = vpop.permute.xlu0 %2782 }
 0x570   : > { %12162 = vst [vmem:[#allocation89_spill] sm:$0xff] %v7520_v9 }
 0x571   : > { %12163 = vst [vmem:[#allocation90_spill] sm:$0xff] %v7522_v46 }
 0x574   : > { %2402 = vrot.lane.b32.xlu2 %v7167_v48, %s5491_s15  ;;  %2394 = vrot.lane.b32.xlu1 %v7181_v42, %s5491_s15 }
 0x575   : > { %2410 = vrot.lane.b32.xlu0 %v7172_v23, %s5491_s15 }
 0x576   : > { %v7530_v40 = vpop.permute.xlu1 %2790  ;;  %v7532_v3 = vpop.permute.xlu2 %1563 }
 0x577   : > { %12164 = vst [vmem:[#allocation91_spill] sm:$0xff] %v7530_v40  ;;  %v7534_v33 = vpop.permute.xlu0 %2872 }
 0x578   : > { %12165 = vst [vmem:[#allocation92_spill] sm:$0xff] %v7532_v3 }
 0x579   : > { %12166 = vst [vmem:[#allocation93_spill] sm:$0xff] %v7534_v33 }
 0x57c   : > { %2516 = vrot.lane.b32.xlu2 %v7172_v23, %s5477_s27  ;;  %2418 = vrot.lane.b32.xlu1 %v7186_v31, %s5491_s15 }
 0x57d   : > { %2500 = vrot.lane.b32.xlu0 %v7181_v42, %s5477_s27 }
 0x57e   : > { %v7542_v9 = vpop.permute.xlu1 %2880  ;;  %v7544_v46 = vpop.permute.xlu2 %1653 }
 0x57f   : > { %12167 = vst [vmem:[#allocation94_spill] sm:$0xff] %v7542_v9  ;;  %v7546_v47 = vpop.permute.xlu0 %2896 }
 0x580   : > { %12168 = vst [vmem:[#allocation95_spill] sm:$0xff] %v7544_v46 }
 0x581   : > { %12169 = vst [vmem:[#allocation96_spill] sm:$0xff] %v7546_v47 }
 0x584   : > { %2605 = vrot.lane.b32.xlu2 %v7181_v42, %s5492_s18  ;;  %2508 = vrot.lane.b32.xlu1 %v7167_v48, %s5477_s27 }
 0x585   : > { %2524 = vrot.lane.b32.xlu0 %v7186_v31, %s5477_s27 }
 0x586   : > { %v7554_v3 = vpop.permute.xlu1 %1442  ;;  %v7556_v33 = vpop.permute.xlu2 %1677 }
 0x587   : > { %12170 = vst [vmem:[#allocation97_spill] sm:$0xff] %v7554_v3  ;;  %v7558_v40 = vpop.permute.xlu0 %1458 }
 0x588   : > { %12171 = vst [vmem:[#allocation98_spill] sm:$0xff] %v7556_v33 }
 0x589   : > { %12172 = vst [vmem:[#allocation99_spill] sm:$0xff] %v7558_v40 }
 0x58c   : > { %2629 = vrot.lane.b32.xlu2 %v7186_v31, %s5492_s18  ;;  %2621 = vrot.lane.b32.xlu1 %v7172_v23, %s5492_s18 }
 0x58d   : > { %2613 = vrot.lane.b32.xlu0 %v7167_v48, %s5492_s18 }
 0x58e   : > { %v7566_v47 = vpop.permute.xlu1 %1466  ;;  %v7568_v9 = vpop.permute.xlu2 %1766 }
 0x58f   : > { %12173 = vst [vmem:[#allocation100_spill] sm:$0xff] %v7566_v47  ;;  %v7570_v46 = vpop.permute.xlu0 %1547 }
 0x590   : > { %12174 = vst [vmem:[#allocation101_spill] sm:$0xff] %v7568_v9 }
 0x591   : > { %12175 = vst [vmem:[#allocation102_spill] sm:$0xff] %v7570_v46 }
 0x594   : > { %2768 = vrot.lane.b32.xlu2 %v7181_v42, %s5493_s25  ;;  %2784 = vrot.lane.b32.xlu1 %v7172_v23, %s5493_s25 }
 0x595   : > { %2776 = vrot.lane.b32.xlu0 %v7167_v48, %s5493_s25 }
 0x596   : > { %v7578_v40 = vpop.permute.xlu1 %1555  ;;  %v7580_v33 = vpop.permute.xlu2 %1880 }
 0x597   : > { %12176 = vst [vmem:[#allocation103_spill] sm:$0xff] %v7578_v40  ;;  %v7582_v3 = vpop.permute.xlu0 %1571 }
 0x598   : > { %12177 = vst [vmem:[#allocation104_spill] sm:$0xff] %v7580_v33 }
 0x599   : > { %12178 = vst [vmem:[#allocation105_spill] sm:$0xff] %v7582_v3 }
 0x59c   : > { %2792 = vrot.lane.b32.xlu2 %v7186_v31, %s5493_s25  ;;  %2874 = vrot.lane.b32.xlu1 %v7181_v42, %s5476_s21 }
 0x59d   : > { %2890 = vrot.lane.b32.xlu0 %v7172_v23, %s5476_s21 }
 0x59e   : > { %v7590_v9 = vpop.permute.xlu1 %1669  ;;  %v7592_v47 = vpop.permute.xlu2 %1970 }
 0x59f   : > { %12179 = vst [vmem:[#allocation106_spill] sm:$0xff] %v7590_v9  ;;  %v7594_v46 = vpop.permute.xlu0 %1661 }
 0x5a0   : > { %12180 = vst [vmem:[#allocation107_spill] sm:$0xff] %v7592_v47 }
 0x5a1   : > { %12181 = vst [vmem:[#allocation108_spill] sm:$0xff] %v7594_v46 }
 0x5a4   : > { %2882 = vrot.lane.b32.xlu2 %v7167_v48, %s5476_s21  ;;  %2898 = vrot.lane.b32.xlu1 %v7186_v31, %s5476_s21 }
 0x5a5   : > { %1452 = vrot.lane.b32.xlu0 %v7219_v54, %s5483_s2 }
 0x5a6   : > { %v7602_v33 = vpop.permute.xlu1 %1758  ;;  %v7604_v40 = vpop.permute.xlu2 %1994 }
 0x5a7   : > { %12182 = vst [vmem:[#allocation109_spill] sm:$0xff] %v7602_v33  ;;  %v7606_v3 = vpop.permute.xlu0 %1774 }
 0x5a8   : > { %12183 = vst [vmem:[#allocation110_spill] sm:$0xff] %v7604_v40 }
 0x5a9   : > { %12184 = vst [vmem:[#allocation111_spill] sm:$0xff] %v7606_v3 }
 0x5ac   : > { %1444 = vrot.lane.b32.xlu2 %v7241_v18, %s5483_s2  ;;  %1460 = vrot.lane.b32.xlu1 %v7201_v19, %s5483_s2 }
 0x5ad   : > { %1565 = vrot.lane.b32.xlu0 %v7201_v19, %s5484_s28 }
 0x5ae   : > { %v7614_v9 = vpop.permute.xlu1 %1782  ;;  %v7616_v47 = vpop.permute.xlu2 %2084 }
 0x5af   : > { %12185 = vst [vmem:[#allocation112_spill] sm:$0xff] %v7614_v9  ;;  %v7618_v46 = vpop.permute.xlu0 %1864 }
 0x5b0   : > { %12186 = vst [vmem:[#allocation113_spill] sm:$0xff] %v7616_v47 }
 0x5b1   : > { %12187 = vst [vmem:[#allocation114_spill] sm:$0xff] %v7618_v46 }
 0x5b4   : > { %1468 = vrot.lane.b32.xlu2 %v7246_v4, %s5483_s2  ;;  %1549 = vrot.lane.b32.xlu1 %v7241_v18, %s5484_s28 }
 0x5b5   : > { %1655 = vrot.lane.b32.xlu0 %v7241_v18, %s5481_s30 }
 0x5b6   : > { %v7626_v3 = vpop.permute.xlu1 %1872  ;;  %v7628_v40 = vpop.permute.xlu2 %2198 }
 0x5b7   : > { %12188 = vst [vmem:[#allocation115_spill] sm:$0xff] %v7626_v3  ;;  %v7630_v33 = vpop.permute.xlu0 %1888 }
 0x5b8   : > { %12189 = vst [vmem:[#allocation116_spill] sm:$0xff] %v7628_v40 }
 0x5b9   : > { %12190 = vst [vmem:[#allocation117_spill] sm:$0xff] %v7630_v33 }
 0x5bc   : > { %1557 = vrot.lane.b32.xlu2 %v7219_v54, %s5484_s28  ;;  %1573 = vrot.lane.b32.xlu1 %v7246_v4, %s5484_s28 }
 0x5bd   : > { %1679 = vrot.lane.b32.xlu0 %v7246_v4, %s5481_s30 }
 0x5be   : > { %v7638_v47 = vpop.permute.xlu1 %1986  ;;  %v7640_v46 = vpop.permute.xlu2 %2288 }
 0x5bf   : > { %12191 = vst [vmem:[#allocation118_spill] sm:$0xff] %v7638_v47  ;;  %v7642_v9 = vpop.permute.xlu0 %1978 }
 0x5c0   : > { %12192 = vst [vmem:[#allocation119_spill] sm:$0xff] %v7640_v46 }
 0x5c1   : > { %12193 = vst [vmem:[#allocation120_spill] sm:$0xff] %v7642_v9 }
 0x5c4   : > { %1671 = vrot.lane.b32.xlu2 %v7201_v19, %s5481_s30  ;;  %1663 = vrot.lane.b32.xlu1 %v7219_v54, %s5481_s30 }
 0x5c5   : > { %1768 = vrot.lane.b32.xlu0 %v7219_v54, %s5485_s19 }
 0x5c6   : > { %v7650_v40 = vpop.permute.xlu1 %2076  ;;  %v7652_v3 = vpop.permute.xlu2 %2312 }
 0x5c7   : > { %12194 = vst [vmem:[#allocation121_spill] sm:$0xff] %v7650_v40  ;;  %v7654_v33 = vpop.permute.xlu0 %2092 }
 0x5c8   : > { %12195 = vst [vmem:[#allocation122_spill] sm:$0xff] %v7652_v3 }
 0x5c9   : > { %12196 = vst [vmem:[#allocation123_spill] sm:$0xff] %v7654_v33 }
 0x5cc   : > { %1760 = vrot.lane.b32.xlu2 %v7241_v18, %s5485_s19  ;;  %1776 = vrot.lane.b32.xlu1 %v7201_v19, %s5485_s19 }
 0x5cd   : > { %1882 = vrot.lane.b32.xlu0 %v7201_v19, %s5486_s3 }
 0x5ce   : > { %v7662_v47 = vpop.permute.xlu1 %2100  ;;  %v7664_v46 = vpop.permute.xlu2 %2402 }
 0x5cf   : > { %12197 = vst [vmem:[#allocation124_spill] sm:$0xff] %v7662_v47  ;;  %v7666_v9 = vpop.permute.xlu0 %2182 }
 0x5d0   : > { %12198 = vst [vmem:[#allocation125_spill] sm:$0xff] %v7664_v46 }
 0x5d1   : > { %12199 = vst [vmem:[#allocation126_spill] sm:$0xff] %v7666_v9 }
 0x5d4   : > { %1784 = vrot.lane.b32.xlu2 %v7246_v4, %s5485_s19  ;;  %1866 = vrot.lane.b32.xlu1 %v7241_v18, %s5486_s3 }
 0x5d5   : > { %1972 = vrot.lane.b32.xlu0 %v7241_v18, %s5487_s5 }
 0x5d6   : > { %v7674_v33 = vpop.permute.xlu1 %2190  ;;  %v7676_v3 = vpop.permute.xlu2 %2516 }
 0x5d7   : > { %12200 = vst [vmem:[#allocation127_spill] sm:$0xff] %v7674_v33  ;;  %v7678_v40 = vpop.permute.xlu0 %2206 }
 0x5d8   : > { %12201 = vst [vmem:[#allocation128_spill] sm:$0xff] %v7676_v3 }
 0x5d9   : > { %12202 = vst [vmem:[#allocation129_spill] sm:$0xff] %v7678_v40 }
 0x5dc   : > { %1874 = vrot.lane.b32.xlu2 %v7219_v54, %s5486_s3  ;;  %1890 = vrot.lane.b32.xlu1 %v7246_v4, %s5486_s3 }
 0x5dd   : > { %1996 = vrot.lane.b32.xlu0 %v7246_v4, %s5487_s5 }
 0x5de   : > { %v7686_v46 = vpop.permute.xlu1 %2304  ;;  %v7688_v9 = vpop.permute.xlu2 %2605 }
 0x5df   : > { %12203 = vst [vmem:[#allocation130_spill] sm:$0xff] %v7686_v46  ;;  %v7690_v47 = vpop.permute.xlu0 %2296 }
 0x5e0   : > { %12204 = vst [vmem:[#allocation131_spill] sm:$0xff] %v7688_v9 }
 0x5e1   : > { %12205 = vst [vmem:[#allocation132_spill] sm:$0xff] %v7690_v47 }
 0x5e4   : > { %1988 = vrot.lane.b32.xlu2 %v7201_v19, %s5487_s5  ;;  %1980 = vrot.lane.b32.xlu1 %v7219_v54, %s5487_s5 }
 0x5e5   : > { %2086 = vrot.lane.b32.xlu0 %v7219_v54, %s5488_s6 }
 0x5e6   : > { %v7698_v3 = vpop.permute.xlu1 %2394  ;;  %v7700_v33 = vpop.permute.xlu2 %2629 }
 0x5e7   : > { %12206 = vst [vmem:[#allocation133_spill] sm:$0xff] %v7698_v3  ;;  %v7702_v40 = vpop.permute.xlu0 %2410 }
 0x5e8   : > { %12207 = vst [vmem:[#allocation134_spill] sm:$0xff] %v7700_v33 }
 0x5e9   : > { %12208 = vst [vmem:[#allocation135_spill] sm:$0xff] %v7702_v40 }
 0x5ec   : > { %2078 = vrot.lane.b32.xlu2 %v7241_v18, %s5488_s6  ;;  %2094 = vrot.lane.b32.xlu1 %v7201_v19, %s5488_s6 }
 0x5ed   : > { %2200 = vrot.lane.b32.xlu0 %v7201_v19, %s5489_s29 }
 0x5ee   : > { %v7710_v46 = vpop.permute.xlu1 %2418  ;;  %v7712_v9 = vpop.permute.xlu2 %2768 }
 0x5ef   : > { %12209 = vst [vmem:[#allocation136_spill] sm:$0xff] %v7710_v46  ;;  %v7714_v47 = vpop.permute.xlu0 %2500 }
 0x5f0   : > { %12210 = vst [vmem:[#allocation137_spill] sm:$0xff] %v7712_v9 }
 0x5f1   : > { %12211 = vst [vmem:[#allocation138_spill] sm:$0xff] %v7714_v47 }
 0x5f4   : > { %2102 = vrot.lane.b32.xlu2 %v7246_v4, %s5488_s6  ;;  %2184 = vrot.lane.b32.xlu1 %v7241_v18, %s5489_s29 }
 0x5f5   : > { %2290 = vrot.lane.b32.xlu0 %v7241_v18, %s5490_s14 }
 0x5f6   : > { %v7722_v40 = vpop.permute.xlu1 %2508  ;;  %v7724_v33 = vpop.permute.xlu2 %2792 }
 0x5f7   : > { %12212 = vst [vmem:[#allocation139_spill] sm:$0xff] %v7722_v40  ;;  %v7726_v3 = vpop.permute.xlu0 %2524 }
 0x5f8   : > { %12213 = vst [vmem:[#allocation140_spill] sm:$0xff] %v7724_v33 }
 0x5f9   : > { %12214 = vst [vmem:[#allocation141_spill] sm:$0xff] %v7726_v3 }
 0x5fc   : > { %2208 = vrot.lane.b32.xlu1 %v7246_v4, %s5489_s29  ;;  %2192 = vrot.lane.b32.xlu2 %v7219_v54, %s5489_s29 }
 0x5fd   : > { %2314 = vrot.lane.b32.xlu0 %v7246_v4, %s5490_s14 }
 0x5fe   : > { %v7734_v9 = vpop.permute.xlu1 %2621  ;;  %v7736_v47 = vpop.permute.xlu2 %2882 }
 0x5ff   : > { %12215 = vst [vmem:[#allocation142_spill] sm:$0xff] %v7734_v9  ;;  %v7738_v46 = vpop.permute.xlu0 %2613 }
 0x600   : > { %12216 = vst [vmem:[#allocation143_spill] sm:$0xff] %v7736_v47 }
 0x601   : > { %12217 = vst [vmem:[#allocation144_spill] sm:$0xff] %v7738_v46 }
 0x604   : > { %2298 = vrot.lane.b32.xlu1 %v7219_v54, %s5490_s14  ;;  %2306 = vrot.lane.b32.xlu2 %v7201_v19, %s5490_s14 }
 0x605   : > { %2404 = vrot.lane.b32.xlu0 %v7219_v54, %s5491_s15 }
 0x606   : > { %v7746_v33 = vpop.permute.xlu1 %2784  ;;  %v7748_v3 = vpop.permute.xlu2 %1444 }
 0x607   : > { %12218 = vst [vmem:[#allocation145_spill] sm:$0xff] %v7746_v33  ;;  %v7750_v40 = vpop.permute.xlu0 %2776 }
 0x608   : > { %12219 = vst [vmem:[#allocation146_spill] sm:$0xff] %v7748_v3 }
 0x609   : > { %12220 = vst [vmem:[#allocation147_spill] sm:$0xff] %v7750_v40 }
 0x60c   : > { %2412 = vrot.lane.b32.xlu1 %v7201_v19, %s5491_s15  ;;  %2396 = vrot.lane.b32.xlu2 %v7241_v18, %s5491_s15 }
 0x60d   : > { %2518 = vrot.lane.b32.xlu0 %v7201_v19, %s5477_s27 }
 0x60e   : > { %v7758_v9 = vpop.permute.xlu1 %2874  ;;  %v7760_v47 = vpop.permute.xlu2 %1468 }
 0x60f   : > { %12221 = vst [vmem:[#allocation148_spill] sm:$0xff] %v7758_v9  ;;  %v7762_v46 = vpop.permute.xlu0 %2890 }
 0x610   : > { %12222 = vst [vmem:[#allocation149_spill] sm:$0xff] %v7760_v47 }
 0x611   : > { %12223 = vst [vmem:[#allocation150_spill] sm:$0xff] %v7762_v46 }
 0x614   : > { %2502 = vrot.lane.b32.xlu1 %v7241_v18, %s5477_s27  ;;  %2420 = vrot.lane.b32.xlu2 %v7246_v4, %s5491_s15 }
 0x615   : > { %2607 = vrot.lane.b32.xlu0 %v7241_v18, %s5492_s18 }
 0x616   : > { %v7770_v33 = vpop.permute.xlu1 %2898  ;;  %v7772_v40 = vpop.permute.xlu2 %1557 }
 0x617   : > { %12224 = vst [vmem:[#allocation151_spill] sm:$0xff] %v7770_v33  ;;  %v7774_v3 = vpop.permute.xlu0 %1452 }
 0x618   : > { %12225 = vst [vmem:[#allocation152_spill] sm:$0xff] %v7772_v40 }
 0x619   : > { %12226 = vst [vmem:[#allocation153_spill] sm:$0xff] %v7774_v3 }
 0x61c   : > { %2526 = vrot.lane.b32.xlu1 %v7246_v4, %s5477_s27  ;;  %2510 = vrot.lane.b32.xlu2 %v7219_v54, %s5477_s27 }
 0x61d   : > { %2631 = vrot.lane.b32.xlu0 %v7246_v4, %s5492_s18 }
 0x61e   : > { %v7782_v9 = vpop.permute.xlu1 %1460  ;;  %v7784_v46 = vpop.permute.xlu2 %1671 }
 0x61f   : > { %12227 = vst [vmem:[#allocation154_spill] sm:$0xff] %v7782_v9  ;;  %v7786_v47 = vpop.permute.xlu0 %1565 }
 0x620   : > { %12228 = vst [vmem:[#allocation155_spill] sm:$0xff] %v7784_v46 }
 0x621   : > { %12229 = vst [vmem:[#allocation156_spill] sm:$0xff] %v7786_v47 }
 0x624   : > { %2615 = vrot.lane.b32.xlu1 %v7219_v54, %s5492_s18  ;;  %2623 = vrot.lane.b32.xlu2 %v7201_v19, %s5492_s18 }
 0x625   : > { %2770 = vrot.lane.b32.xlu0 %v7241_v18, %s5493_s25 }
 0x626   : > { %v7794_v33 = vpop.permute.xlu1 %1549  ;;  %v7796_v3 = vpop.permute.xlu2 %1760 }
 0x627   : > { %12230 = vst [vmem:[#allocation157_spill] sm:$0xff] %v7794_v33  ;;  %v7798_v40 = vpop.permute.xlu0 %1655 }
 0x628   : > { %12231 = vst [vmem:[#allocation158_spill] sm:$0xff] %v7796_v3 }
 0x629   : > { %12232 = vst [vmem:[#allocation159_spill] sm:$0xff] %v7798_v40 }
 0x62c   : > { %2778 = vrot.lane.b32.xlu1 %v7219_v54, %s5493_s25  ;;  %2786 = vrot.lane.b32.xlu2 %v7201_v19, %s5493_s25 }
 0x62d   : > { %2794 = vrot.lane.b32.xlu0 %v7246_v4, %s5493_s25 }
 0x62e   : > { %v7806_v46 = vpop.permute.xlu1 %1573  ;;  %v7808_v9 = vpop.permute.xlu2 %1784 }
 0x62f   : > { %12233 = vst [vmem:[#allocation160_spill] sm:$0xff] %v7806_v46  ;;  %v7810_v47 = vpop.permute.xlu0 %1679 }
 0x630   : > { %12234 = vst [vmem:[#allocation161_spill] sm:$0xff] %v7808_v9 }
 0x631   : > { %12235 = vst [vmem:[#allocation162_spill] sm:$0xff] %v7810_v47 }
 0x634   : > { %2892 = vrot.lane.b32.xlu1 %v7201_v19, %s5476_s21  ;;  %2876 = vrot.lane.b32.xlu2 %v7241_v18, %s5476_s21 }
 0x635   : > { %2884 = vrot.lane.b32.xlu0 %v7219_v54, %s5476_s21 }
 0x636   : > { %v7818_v3 = vpop.permute.xlu1 %1663  ;;  %v7820_v40 = vpop.permute.xlu2 %1874 }
 0x637   : > { %12236 = vst [vmem:[#allocation163_spill] sm:$0xff] %v7818_v3  ;;  %v7822_v33 = vpop.permute.xlu0 %1768 }
 0x638   : > { %12237 = vst [vmem:[#allocation164_spill] sm:$0xff] %v7820_v40 }
 0x639   : > { %12238 = vst [vmem:[#allocation165_spill] sm:$0xff] %v7822_v33 }
 0x63c   : > { %1454 = vrot.lane.b32.xlu1 %v7226_v45, %s5483_s2  ;;  %2900 = vrot.lane.b32.xlu2 %v7246_v4, %s5476_s21 }
 0x63d   : > { %1446 = vrot.lane.b32.xlu0 %v7206_v15, %s5483_s2 }
 0x63e   : > { %v7830_v9 = vpop.permute.xlu1 %1776  ;;  %v7832_v47 = vpop.permute.xlu2 %1988 }
 0x63f   : > { %12239 = vst [vmem:[#allocation166_spill] sm:$0xff] %v7830_v9  ;;  %v7834_v46 = vpop.permute.xlu0 %1882 }
 0x640   : > { %12240 = vst [vmem:[#allocation167_spill] sm:$0xff] %v7832_v47 }
 0x641   : > { %12241 = vst [vmem:[#allocation168_spill] sm:$0xff] %v7834_v46 }
 0x644   : > { %1567 = vrot.lane.b32.xlu1 %v7261_v56, %s5484_s28  ;;  %1462 = vrot.lane.b32.xlu2 %v7261_v56, %s5483_s2 }
 0x645   : > { %1470 = vrot.lane.b32.xlu0 %v7266_v49, %s5483_s2  ;;  %s5497_s2 = smov 107  }
 0x646   : > { %v7842_v40 = vpop.permute.xlu1 %1866  ;;  %v7844_v33 = vpop.permute.xlu2 %2078 }
 0x647   : > { %12242 = vst [vmem:[#allocation169_spill] sm:$0xff] %v7842_v40  ;;  %v7846_v3 = vpop.permute.xlu0 %1972 }
 0x648   : > { %12243 = vst [vmem:[#allocation170_spill] sm:$0xff] %v7844_v33 }
 0x649   : > { %12244 = vst [vmem:[#allocation171_spill] sm:$0xff] %v7846_v3 }
 0x64c   : > { %1657 = vrot.lane.b32.xlu1 %v7206_v15, %s5481_s30  ;;  %1551 = vrot.lane.b32.xlu2 %v7206_v15, %s5484_s28 }
 0x64d   : > { %1559 = vrot.lane.b32.xlu0 %v7226_v45, %s5484_s28 }
 0x64e   : > { %v7854_v47 = vpop.permute.xlu1 %1890  ;;  %v7856_v46 = vpop.permute.xlu2 %2102 }
 0x64f   : > { %12245 = vst [vmem:[#allocation172_spill] sm:$0xff] %v7854_v47  ;;  %v7858_v9 = vpop.permute.xlu0 %1996 }
 0x650   : > { %12246 = vst [vmem:[#allocation173_spill] sm:$0xff] %v7856_v46 }
 0x651   : > { %12247 = vst [vmem:[#allocation174_spill] sm:$0xff] %v7858_v9 }
 0x654   : > { %1681 = vrot.lane.b32.xlu1 %v7266_v49, %s5481_s30  ;;  %1575 = vrot.lane.b32.xlu2 %v7266_v49, %s5484_s28  ;;  %s5498_s28 = smov 106  }
 0x655   : > { %1673 = vrot.lane.b32.xlu0 %v7261_v56, %s5481_s30 }
 0x656   : > { %v7866_v33 = vpop.permute.xlu1 %1980  ;;  %v7868_v3 = vpop.permute.xlu2 %2192 }
 0x657   : > { %12248 = vst [vmem:[#allocation175_spill] sm:$0xff] %v7866_v33  ;;  %v7870_v40 = vpop.permute.xlu0 %2086 }
 0x658   : > { %12249 = vst [vmem:[#allocation176_spill] sm:$0xff] %v7868_v3 }
 0x659   : > { %12250 = vst [vmem:[#allocation177_spill] sm:$0xff] %v7870_v40 }
 0x65c   : > { %1770 = vrot.lane.b32.xlu1 %v7226_v45, %s5485_s19  ;;  %1665 = vrot.lane.b32.xlu2 %v7226_v45, %s5481_s30  ;;  %s5496_s30 = smov 108  }
 0x65d   : > { %1762 = vrot.lane.b32.xlu0 %v7206_v15, %s5485_s19 }
 0x65e   : > { %v7878_v46 = vpop.permute.xlu1 %2094  ;;  %v7880_v9 = vpop.permute.xlu2 %2306 }
 0x65f   : > { %12251 = vst [vmem:[#allocation178_spill] sm:$0xff] %v7878_v46  ;;  %v7882_v47 = vpop.permute.xlu0 %2200 }
 0x660   : > { %12252 = vst [vmem:[#allocation179_spill] sm:$0xff] %v7880_v9 }
 0x661   : > { %12253 = vst [vmem:[#allocation180_spill] sm:$0xff] %v7882_v47 }
 0x664   : > { %1884 = vrot.lane.b32.xlu1 %v7261_v56, %s5486_s3  ;;  %1778 = vrot.lane.b32.xlu2 %v7261_v56, %s5485_s19 }
 0x665   : > { %1786 = vrot.lane.b32.xlu0 %v7266_v49, %s5485_s19  ;;  %s5499_s19 = smov 90  }
 0x666   : > { %v7890_v3 = vpop.permute.xlu1 %2184  ;;  %v7892_v40 = vpop.permute.xlu2 %2396 }
 0x667   : > { %12254 = vst [vmem:[#allocation181_spill] sm:$0xff] %v7890_v3  ;;  %v7894_v33 = vpop.permute.xlu0 %2290 }
 0x668   : > { %12255 = vst [vmem:[#allocation182_spill] sm:$0xff] %v7892_v40 }
 0x669   : > { %12256 = vst [vmem:[#allocation183_spill] sm:$0xff] %v7894_v33 }
 0x66c   : > { %1974 = vrot.lane.b32.xlu1 %v7206_v15, %s5487_s5  ;;  %1868 = vrot.lane.b32.xlu2 %v7206_v15, %s5486_s3 }
 0x66d   : > { %1876 = vrot.lane.b32.xlu0 %v7226_v45, %s5486_s3 }
 0x66e   : > { %v7902_v9 = vpop.permute.xlu1 %2208  ;;  %v7904_v47 = vpop.permute.xlu2 %2420 }
 0x66f   : > { %12257 = vst [vmem:[#allocation184_spill] sm:$0xff] %v7902_v9  ;;  %v7906_v46 = vpop.permute.xlu0 %2314 }
 0x670   : > { %12258 = vst [vmem:[#allocation185_spill] sm:$0xff] %v7904_v47 }
 0x671   : > { %12259 = vst [vmem:[#allocation186_spill] sm:$0xff] %v7906_v46 }
 0x674   : > { %1998 = vrot.lane.b32.xlu1 %v7266_v49, %s5487_s5  ;;  %1892 = vrot.lane.b32.xlu2 %v7266_v49, %s5486_s3  ;;  %s5500_s3 = smov 89  }
 0x675   : > { %1990 = vrot.lane.b32.xlu0 %v7261_v56, %s5487_s5 }
 0x676   : > { %v7914_v40 = vpop.permute.xlu1 %2298  ;;  %v7916_v33 = vpop.permute.xlu2 %2510 }
 0x677   : > { %12260 = vst [vmem:[#allocation187_spill] sm:$0xff] %v7914_v40  ;;  %v7918_v3 = vpop.permute.xlu0 %2404 }
 0x678   : > { %12261 = vst [vmem:[#allocation188_spill] sm:$0xff] %v7916_v33 }
 0x679   : > { %12262 = vst [vmem:[#allocation189_spill] sm:$0xff] %v7918_v3 }
 0x67c   : > { %2088 = vrot.lane.b32.xlu1 %v7226_v45, %s5488_s6  ;;  %1982 = vrot.lane.b32.xlu2 %v7226_v45, %s5487_s5  ;;  %s5501_s5 = smov 87  }
 0x67d   : > { %2080 = vrot.lane.b32.xlu0 %v7206_v15, %s5488_s6 }
 0x67e   : > { %v7926_v47 = vpop.permute.xlu1 %2412  ;;  %v7928_v46 = vpop.permute.xlu2 %2623 }
 0x67f   : > { %12263 = vst [vmem:[#allocation190_spill] sm:$0xff] %v7926_v47  ;;  %v7930_v9 = vpop.permute.xlu0 %2518 }
 0x680   : > { %12264 = vst [vmem:[#allocation191_spill] sm:$0xff] %v7928_v46 }
 0x681   : > { %12265 = vst [vmem:[#allocation192_spill] sm:$0xff] %v7930_v9 }
 0x684   : > { %2202 = vrot.lane.b32.xlu1 %v7261_v56, %s5489_s29  ;;  %2096 = vrot.lane.b32.xlu2 %v7261_v56, %s5488_s6 }
 0x685   : > { %2104 = vrot.lane.b32.xlu0 %v7266_v49, %s5488_s6  ;;  %s5502_s6 = smov 86  }
 0x686   : > { %v7938_v33 = vpop.permute.xlu1 %2502  ;;  %v7940_v3 = vpop.permute.xlu2 %2786 }
 0x687   : > { %12266 = vst [vmem:[#allocation193_spill] sm:$0xff] %v7938_v33  ;;  %v7942_v40 = vpop.permute.xlu0 %2607 }
 0x688   : > { %12267 = vst [vmem:[#allocation194_spill] sm:$0xff] %v7940_v3 }
 0x689   : > { %12268 = vst [vmem:[#allocation195_spill] sm:$0xff] %v7942_v40 }
 0x68c   : > { %2292 = vrot.lane.b32.xlu1 %v7206_v15, %s5490_s14  ;;  %2186 = vrot.lane.b32.xlu2 %v7206_v15, %s5489_s29 }
 0x68d   : > { %2194 = vrot.lane.b32.xlu0 %v7226_v45, %s5489_s29 }
 0x68e   : > { %v7950_v46 = vpop.permute.xlu1 %2526  ;;  %v7952_v9 = vpop.permute.xlu2 %2876 }
 0x68f   : > { %12269 = vst [vmem:[#allocation196_spill] sm:$0xff] %v7950_v46  ;;  %v7954_v47 = vpop.permute.xlu0 %2631 }
 0x690   : > { %12270 = vst [vmem:[#allocation197_spill] sm:$0xff] %v7952_v9 }
 0x691   : > { %12271 = vst [vmem:[#allocation198_spill] sm:$0xff] %v7954_v47 }
 0x694   : > { %2316 = vrot.lane.b32.xlu1 %v7266_v49, %s5490_s14  ;;  %2210 = vrot.lane.b32.xlu2 %v7266_v49, %s5489_s29 }
 0x695   : > { %2308 = vrot.lane.b32.xlu0 %v7261_v56, %s5490_s14 }
 0x696   : > { %v7962_v3 = vpop.permute.xlu1 %2615  ;;  %v7964_v40 = vpop.permute.xlu2 %2900 }
 0x697   : > { %12272 = vst [vmem:[#allocation199_spill] sm:$0xff] %v7962_v3  ;;  %v7966_v33 = vpop.permute.xlu0 %2770 }
 0x698   : > { %12273 = vst [vmem:[#allocation200_spill] sm:$0xff] %v7964_v40 }
 0x699   : > { %12274 = vst [vmem:[#allocation201_spill] sm:$0xff] %v7966_v33 }
 0x69c   : > { %2406 = vrot.lane.b32.xlu1 %v7226_v45, %s5491_s15  ;;  %2300 = vrot.lane.b32.xlu2 %v7226_v45, %s5490_s14 }
 0x69d   : > { %2398 = vrot.lane.b32.xlu0 %v7206_v15, %s5491_s15 }
 0x69e   : > { %v7974_v9 = vpop.permute.xlu1 %2778  ;;  %v7976_v47 = vpop.permute.xlu2 %1462 }
 0x69f   : > { %12275 = vst [vmem:[#allocation202_spill] sm:$0xff] %v7974_v9  ;;  %v7978_v46 = vpop.permute.xlu0 %2794 }
 0x6a0   : > { %12276 = vst [vmem:[#allocation203_spill] sm:$0xff] %v7976_v47 }
 0x6a1   : > { %12277 = vst [vmem:[#allocation204_spill] sm:$0xff] %v7978_v46 }
 0x6a4   : > { %2520 = vrot.lane.b32.xlu1 %v7261_v56, %s5477_s27  ;;  %2414 = vrot.lane.b32.xlu2 %v7261_v56, %s5491_s15 }
 0x6a5   : > { %2422 = vrot.lane.b32.xlu0 %v7266_v49, %s5491_s15 }
 0x6a6   : > { %v7986_v40 = vpop.permute.xlu1 %2892  ;;  %v7988_v33 = vpop.permute.xlu2 %1551 }
 0x6a7   : > { %12278 = vst [vmem:[#allocation205_spill] sm:$0xff] %v7986_v40  ;;  %v7990_v3 = vpop.permute.xlu0 %2884 }
 0x6a8   : > { %12279 = vst [vmem:[#allocation206_spill] sm:$0xff] %v7988_v33 }
 0x6a9   : > { %12280 = vst [vmem:[#allocation207_spill] sm:$0xff] %v7990_v3 }
 0x6ac   : > { %2609 = vrot.lane.b32.xlu1 %v7206_v15, %s5492_s18  ;;  %2504 = vrot.lane.b32.xlu2 %v7206_v15, %s5477_s27 }
 0x6ad   : > { %2512 = vrot.lane.b32.xlu0 %v7226_v45, %s5477_s27 }
 0x6ae   : > { %v7998_v46 = vpop.permute.xlu1 %1454  ;;  %v8000_v47 = vpop.permute.xlu2 %1575 }
 0x6af   : > { %12281 = vst [vmem:[#allocation208_spill] sm:$0xff] %v7998_v46  ;;  %v8002_v9 = vpop.permute.xlu0 %1446 }
 0x6b0   : > { %12282 = vst [vmem:[#allocation209_spill] sm:$0xff] %v8000_v47 }
 0x6b1   : > { %12283 = vst [vmem:[#allocation210_spill] sm:$0xff] %v8002_v9 }
 0x6b4   : > { %2633 = vrot.lane.b32.xlu1 %v7266_v49, %s5492_s18  ;;  %2528 = vrot.lane.b32.xlu2 %v7266_v49, %s5477_s27  ;;  %s5494_s27 = smov 110  }
 0x6b5   : > { %2625 = vrot.lane.b32.xlu0 %v7261_v56, %s5492_s18 }
 0x6b6   : > { %v8010_v40 = vpop.permute.xlu1 %1567  ;;  %v8012_v3 = vpop.permute.xlu2 %1665 }
 0x6b7   : > { %12284 = vst [vmem:[#allocation211_spill] sm:$0xff] %v8010_v40  ;;  %v8014_v33 = vpop.permute.xlu0 %1470 }
 0x6b8   : > { %12285 = vst [vmem:[#allocation212_spill] sm:$0xff] %v8012_v3 }
 0x6b9   : > { %12286 = vst [vmem:[#allocation213_spill] sm:$0xff] %v8014_v33 }
 0x6bc   : > { %2772 = vrot.lane.b32.xlu1 %v7206_v15, %s5493_s25  ;;  %2617 = vrot.lane.b32.xlu2 %v7226_v45, %s5492_s18 }
 0x6bd   : > { %2788 = vrot.lane.b32.xlu0 %v7261_v56, %s5493_s25 }
 0x6be   : > { %v8022_v46 = vpop.permute.xlu1 %1657  ;;  %v8024_v47 = vpop.permute.xlu2 %1778 }
 0x6bf   : > { %12287 = vst [vmem:[#allocation214_spill] sm:$0xff] %v8022_v46  ;;  %v8026_v40 = vpop.permute.xlu0 %1559 }
 0x6c0   : > { %12288 = vst [vmem:[#allocation215_spill] sm:$0xff] %v8024_v47 }
 0x6c1   : > { %12289 = vst [vmem:[#allocation216_spill] sm:$0xff] %v8026_v40 }
 0x6c4   : > { %2796 = vrot.lane.b32.xlu1 %v7266_v49, %s5493_s25  ;;  %2780 = vrot.lane.b32.xlu2 %v7226_v45, %s5493_s25 }
 0x6c5   : > { %2878 = vrot.lane.b32.xlu0 %v7206_v15, %s5476_s21 }
 0x6c6   : > { %v8034_v3 = vpop.permute.xlu1 %1681  ;;  %v8036_v33 = vpop.permute.xlu2 %1868 }
 0x6c7   : > { %12290 = vst [vmem:[#allocation217_spill] sm:$0xff] %v8034_v3  ;;  %v8038_v9 = vpop.permute.xlu0 %1673  ;;  %v5211_v3 = vld [vmem:[%s5635_s20 + $0x1d8] sm:$0xff] }
 0x6c8   : > { %12291 = vst [vmem:[#allocation218_spill] sm:$0xff] %v8036_v33 }
 0x6c9   : > { %12292 = vst [vmem:[#allocation219_spill] sm:$0xff] %v8038_v9 }
 0x6cc   : > { %2886 = vrot.lane.b32.xlu1 %v7226_v45, %s5476_s21  ;;  %2894 = vrot.lane.b32.xlu2 %v7261_v56, %s5476_s21 }
 0x6cd   : > { %2902 = vrot.lane.b32.xlu0 %v7266_v49, %s5476_s21  ;;  %s5495_s21 = smov 109  }
 0x6ce   : > { %v8046_v47 = vpop.permute.xlu1 %1770  ;;  %v8048_v40 = vpop.permute.xlu2 %1892 }
 0x6cf   : > { %12293 = vst [vmem:[#allocation220_spill] sm:$0xff] %v8046_v47  ;;  %v8050_v46 = vpop.permute.xlu0 %1762 }
 0x6d0   : > { %12294 = vst [vmem:[#allocation221_spill] sm:$0xff] %v8048_v40 }
 0x6d1   : > { %12295 = vst [vmem:[#allocation222_spill] sm:$0xff] %v8050_v46 }
 0x6d4   : > { %2942 = vperm.xlu1 %5416, %v5211_v3   ;;  %2977 = vrot.lane.b32.xlu2 %v7115_v51, %s5494_s27 }
 0x6d5   : > { %2937 = vperm.xlu0 %5415, %v5210_v12  }
 0x6d6   : > { %v8056_v9 = vpop.permute.xlu1 %1884  ;;  %v8058_v33 = vpop.permute.xlu2 %1982 }
 0x6d7   : > { %12296 = vst [vmem:[#allocation223_spill] sm:$0xff] %v8056_v9  ;;  %v8060_v5 = vpop.permute.xlu0 %1786 }
 0x6d8   : > { %12297 = vst [vmem:[#allocation224_spill] sm:$0xff] %v8058_v33 }
 0x6d9   : > { %12298 = vst [vmem:[#allocation225_spill] sm:$0xff] %v8060_v5  ;;  %v5212_v5 = vld [vmem:[%s5635_s20 + $0x1e0] sm:$0xff] }
 0x6dc   : > { %2981 = vrot.lane.b32.xlu1 %v7241_v18, %s5494_s27  ;;  %2983 = vrot.lane.b32.xlu2 %v7206_v15, %s5494_s27 }
 0x6dd   : > { %2979 = vrot.lane.b32.xlu0 %v7181_v42, %s5494_s27 }
 0x6de   : > { %v8068_v3 = vpop.permute.xlu1 %1974  ;;  %v8070_v47 = vpop.permute.xlu2 %2096 }
 0x6df   : > { %12299 = vst [vmem:[#allocation226_spill] sm:$0xff] %v8068_v3  ;;  %v8072_v12 = vpop.permute.xlu0 %1876 }
 0x6e0   : > { %12300 = vst [vmem:[#allocation227_spill] sm:$0xff] %v8070_v47 }
 0x6e1   : > { %12301 = vst [vmem:[#allocation228_spill] sm:$0xff] %v8072_v12 }
 0x6e4   : > { %2987 = vrot.lane.b32.xlu1 %v7167_v48, %s5494_s27  ;;  %2989 = vrot.lane.b32.xlu2 %v7219_v54, %s5494_s27 }
 0x6e5   : > { %2985 = vrot.lane.b32.xlu0 %v7128_v25, %s5494_s27 }
 0x6e6   : > { %v8080_v9 = vpop.permute.xlu1 %1998  ;;  %v8082_v33 = vpop.permute.xlu2 %2186 }
 0x6e7   : > { %12302 = vst [vmem:[#allocation229_spill] sm:$0xff] %v8080_v9  ;;  %v8084_v40 = vpop.permute.xlu0 %1990 }
 0x6e8   : > { %12303 = vst [vmem:[#allocation230_spill] sm:$0xff] %v8082_v33 }
 0x6e9   : > { %12304 = vst [vmem:[#allocation231_spill] sm:$0xff] %v8084_v40 }
 0x6ec   : > { %2993 = vrot.lane.b32.xlu1 %v7147_v0, %s5494_s27  ;;  %2995 = vrot.lane.b32.xlu2 %v7172_v23, %s5494_s27 }
 0x6ed   : > { %2991 = vrot.lane.b32.xlu0 %v7226_v45, %s5494_s27 }
 0x6ee   : > { %v8092_v47 = vpop.permute.xlu1 %2088  ;;  %v8094_v12 = vpop.permute.xlu2 %2210 }
 0x6ef   : > { %12305 = vst [vmem:[#allocation232_spill] sm:$0xff] %v8092_v47  ;;  %v8096_v9 = vpop.permute.xlu0 %2080 }
 0x6f0   : > { %12306 = vst [vmem:[#allocation233_spill] sm:$0xff] %v8094_v12 }
 0x6f1   : > { %12307 = vst [vmem:[#allocation234_spill] sm:$0xff] %v8096_v9 }
 0x6f4   : > { %2999 = vrot.lane.b32.xlu1 %v7261_v56, %s5494_s27  ;;  %3001 = vrot.lane.b32.xlu2 %v7152_v26, %s5494_s27 }
 0x6f5   : > { %2997 = vrot.lane.b32.xlu0 %v7201_v19, %s5494_s27 }
 0x6f6   : > { %v8104_v40 = vpop.permute.xlu1 %2202  ;;  %v8106_v33 = vpop.permute.xlu2 %2300 }
 0x6f7   : > { %12308 = vst [vmem:[#allocation235_spill] sm:$0xff] %v8104_v40  ;;  %v8108_v47 = vpop.permute.xlu0 %2104  ;;  %v5213_v40 = vld [vmem:[%s5635_s20 + $0x1e8] sm:$0xff] }
 0x6f8   : > { %12309 = vst [vmem:[#allocation236_spill] sm:$0xff] %v8106_v33  ;;  %v5214_v33 = vld [vmem:[%s5635_s20 + $0x1f0] sm:$0xff] }
 0x6f9   : > { %12310 = vst [vmem:[#allocation237_spill] sm:$0xff] %v8108_v47 }
 0x6fc   : > { %3005 = vrot.lane.b32.xlu1 %v7246_v4, %s5494_s27  ;;  %3007 = vrot.lane.b32.xlu2 %v7266_v49, %s5494_s27 }
 0x6fd   : > { %3003 = vrot.lane.b32.xlu0 %v7186_v31, %s5494_s27 }
 0x6fe   : > { %v8116_v12 = vpop.permute.xlu1 %2292  ;;  %v8118_v9 = vpop.permute.xlu2 %2414 }
 0x6ff   : > { %12311 = vst [vmem:[#allocation238_spill] sm:$0xff] %v8116_v12  ;;  %v8120_v3 = vpop.permute.xlu0 %2194 }
 0x700   : > { %12312 = vst [vmem:[#allocation239_spill] sm:$0xff] %v8118_v9 }
 0x701   : > { %12313 = vst [vmem:[#allocation240_spill] sm:$0xff] %v8120_v3 }
 0x704   : > { %3038 = vperm.xlu1 %5416, %v5213_v40   ;;  %3043 = vperm.xlu2 %5417, %v5214_v33  }
 0x705   : > { %3033 = vperm.xlu0 %5415, %v5212_v5  }
 0x706   : > { %v8125_v47 = vpop.permute.xlu1 %2316  ;;  %v8127_v46 = vpop.permute.xlu2 %2504 }
 0x707   : > { %12314 = vst [vmem:[#allocation241_spill] sm:$0xff] %v8125_v47  ;;  %v8129_v32 = vpop.permute.xlu0 %2308 }
 0x708   : > { %12315 = vst [vmem:[#allocation242_spill] sm:$0xff] %v8127_v46 }
 0x709   : > { %12316 = vst [vmem:[#allocation243_spill] sm:$0xff] %v8129_v32 }
 0x70c   : > { %3083 = vrot.lane.b32.xlu1 %v7115_v51, %s5495_s21  ;;  %3085 = vrot.lane.b32.xlu2 %v7181_v42, %s5495_s21 }
 0x70d   : > { %3048 = vperm.xlu0 %5415, %v5215_v60  }
 0x70e   : > { %v8136_v9 = vpop.permute.xlu1 %2406  ;;  %v8138_v40 = vpop.permute.xlu2 %2528 }
 0x70f   : > { %12317 = vst [vmem:[#allocation244_spill] sm:$0xff] %v8136_v9  ;;  %v8140_v33 = vpop.permute.xlu0 %2398 }
 0x710   : > { %12318 = vst [vmem:[#allocation245_spill] sm:$0xff] %v8138_v40 }
 0x711   : > { %12319 = vst [vmem:[#allocation246_spill] sm:$0xff] %v8140_v33  ;;  %v1590_v33 = vsel %vm1577_vm11, %v7328_v22, %v7318_v58 }
 0x714   : > { %3089 = vrot.lane.b32.xlu1 %v7206_v15, %s5495_s21  ;;  %3091 = vrot.lane.b32.xlu2 %v7128_v25, %s5495_s21 }
 0x715   : > { %3087 = vrot.lane.b32.xlu0 %v7241_v18, %s5495_s21 }
 0x716   : > { %v8148_v5 = vpop.permute.xlu1 %2520  ;;  %v8150_v32 = vpop.permute.xlu2 %2617 }
 0x717   : > { %12320 = vst [vmem:[#allocation247_spill] sm:$0xff] %v8148_v5  ;;  %v8152_v60 = vpop.permute.xlu0 %2422 }
 0x718   : > { %12321 = vst [vmem:[#allocation248_spill] sm:$0xff] %v8150_v32 }
 0x719   : > { %12322 = vst [vmem:[#allocation249_spill] sm:$0xff] %v8152_v60  ;;  %v1481_v60 = vsel %vm1472_vm10, %v7330_v43, %v7326_v59 }
 0x71c   : > { %3095 = vrot.lane.b32.xlu1 %v7219_v54, %s5495_s21  ;;  %3097 = vrot.lane.b32.xlu2 %v7226_v45, %s5495_s21 }
 0x71d   : > { %3093 = vrot.lane.b32.xlu0 %v7167_v48, %s5495_s21 }
 0x71e   : > { %v8160_v9 = vpop.permute.xlu1 %2609  ;;  %v8162_v40 = vpop.permute.xlu2 %2780 }
 0x71f   : > { %12323 = vst [vmem:[#allocation250_spill] sm:$0xff] %v8160_v9  ;;  %v8164_v46 = vpop.permute.xlu0 %2512  ;;  %v1477_v9 = vsel %vm1472_vm10, %v7326_v59, %v7310_v61 }
 0x720   : > { %12324 = vst [vmem:[#allocation251_spill] sm:$0xff] %v8162_v40 }
 0x721   : > { %12325 = vst [vmem:[#allocation252_spill] sm:$0xff] %v8164_v46 }
 0x724   : > { %3101 = vrot.lane.b32.xlu1 %v7172_v23, %s5495_s21  ;;  %3103 = vrot.lane.b32.xlu2 %v7201_v19, %s5495_s21 }
 0x725   : > { %3099 = vrot.lane.b32.xlu0 %v7147_v0, %s5495_s21 }
 0x726   : > { %v8172_v5 = vpop.permute.xlu1 %2633  ;;  %v8174_v32 = vpop.permute.xlu2 %2894 }
 0x727   : > { %12326 = vst [vmem:[#allocation253_spill] sm:$0xff] %v8172_v5  ;;  %v8176_v3 = vpop.permute.xlu0 %2625  ;;  %v1586_v5 = vsel %vm1577_vm11, %v7318_v58, %v7354_v30  ;;  %v1695_v58 = vsel %vm1323_vm12, %v7362_v52, %v7350_v1 }
 0x728   : > { %12327 = vst [vmem:[#allocation254_spill] sm:$0xff] %v8174_v32  ;;  %v1620_v12 = vmul.f32 %v5775_v39, %v1586_v5 }
 0x729   : > { %12328 = vst [vmem:[#allocation255_spill] sm:$0xff] %v8176_v3  ;;  %v1578_v3 = vsel %vm1577_vm11, %v7338_v36, %v7328_v22  ;;  %v1514_v22 = vmul.f32 %v5757_v27, %v1481_v60 }
 0x72a   : > { %v1622_v47 = vmul.f32 %v5775_v39, %v1578_v3 }
 0x72c   : > { %3107 = vrot.lane.b32.xlu1 %v7152_v26, %s5495_s21  ;;  %3109 = vrot.lane.b32.xlu2 %v7186_v31, %s5495_s21 }
 0x72d   : > { %3105 = vrot.lane.b32.xlu0 %v7261_v56, %s5495_s21 }
 0x72e   : > { %v8184_v40 = vpop.permute.xlu1 %2772  ;;  %v8186_v46 = vpop.permute.xlu2 %2977 }
 0x72f   : > { %12329 = vst [vmem:[#allocation256_spill] sm:$0xff] %v8184_v40  ;;  %v8190_v32 = vpop.permute.xlu0 %2788  ;;  %v1473_v40 = vsel %vm1472_vm10, %v7310_v61, %v7342_v53 }
 0x730   : > { %12330 = vst [vmem:[#allocation257_spill] sm:$0xff] %v8186_v46  ;;  %v5216_v46 = vld [vmem:[%s5635_s20 + $0x200] sm:$0xff]  ;;  %v1516_v59 = vmul.f32 %v5757_v27, %v1473_v40 }
 0x731   : > { %12331 = vst [vmem:[#allocation258_spill] sm:$0xff] %v8190_v32  ;;  %v1485_v32 = vsel %vm1472_vm10, %v7342_v53, %v7330_v43  ;;  %v1582_v53 = vsel %vm1577_vm11, %v7354_v30, %v7338_v36  ;;  %v1515_v43 = vmul.f32 %v5757_v27, %v1477_v9  ;;  %v1619_v36 = vmul.f32 %v5775_v39, %v1590_v33 }
 0x732   : > { %v1513_v61 = vmul.f32 %v5757_v27, %v1485_v32  ;;  %v1687_v32 = vsel %vm1323_vm12, %v7340_v44, %v7366_v8  ;;  %v1691_v30 = vsel %vm1323_vm12, %v7350_v1, %v7340_v44  ;;  %v1683_v27 = vsel %vm1323_vm12, %v7366_v8, %v7362_v52 }
 0x733   : > { %v1801_v9 = vsel %vm1788_vm13, %v7390_v37, %v7378_v38  ;;  %v1636_v33 = vadd.f32 %v1620_v12, %v1514_v22  ;;  %v1724_v44 = vmul.f32 %v5749_v21, %v1695_v58  ;;  %v1797_v1 = vsel %vm1788_vm13, %v7378_v38, %v7374_v2  ;;  %v5218_v38 = vld [vmem:[%s5635_s20 + $0x210] sm:$0xff] }
 0x734   : > { %3113 = vrot.lane.b32.xlu1 %v7266_v49, %s5495_s21  ;;  %3139 = vperm.xlu2 %5417, %v5216_v46   ;;  %v1621_v46 = vmul.f32 %v5775_v39, %v1582_v53  ;;  %v1793_v39 = vsel %vm1788_vm13, %v7374_v2, %v7352_v35  ;;  %v1635_v8 = vadd.f32 %v1619_v36, %v1513_v61 }
 0x735   : > { %3111 = vrot.lane.b32.xlu0 %v7246_v4, %s5495_s21  ;;  %v1638_v5 = vadd.f32 %v1622_v47, %v1516_v59  ;;  %v1726_v60 = vmul.f32 %v5749_v21, %v1687_v32  ;;  %v1789_v12 = vsel %vm1788_vm13, %v7352_v35, %v7390_v37  ;;  %v1725_v53 = vmul.f32 %v5749_v21, %v1691_v30  ;;  %v5219_v47 = vld [vmem:[%s5635_s20 + $0x218] sm:$0xff] }
 0x736   : > { %v8259_v3 = vpop.permute.xlu1 %2796  ;;  %v8261_v40 = vpop.permute.xlu2 %2983  ;;  %v1727_v58 = vmul.f32 %v5749_v21, %v1683_v27  ;;  %v1830_v22 = vmul.f32 %v5824_v63, %v1801_v9  ;;  %v1903_v2 = vsel %vm1894_vm15, %v7364_v28, %v7402_v14  ;;  %v1637_v61 = vadd.f32 %v1621_v46, %v1515_v43  ;;  %v5217_v21 = vld [vmem:[%s5635_s20 + $0x208] sm:$0xff] }
 0x737   : > { %12332 = vst [vmem:[#allocation259_spill] sm:$0xff] %v8259_v3  ;;  %v8272_v52 = vpop.permute.xlu0 %2878  ;;  %v1832_v59 = vmul.f32 %v5824_v63, %v1793_v39  ;;  %v1831_v36 = vmul.f32 %v5824_v63, %v1797_v1  ;;  %v1907_v37 = vsel %vm1894_vm15, %v7376_v17, %v7364_v28  ;;  %v1740_v35 = vadd.f32 %v1724_v44, %v1635_v8 }
 0x738   : > { %12333 = vst [vmem:[#allocation260_spill] sm:$0xff] %v8261_v40  ;;  %v1741_v32 = vadd.f32 %v1725_v53, %v1636_v33  ;;  %v1833_v30 = vmul.f32 %v5824_v63, %v1789_v12  ;;  %v1742_v27 = vadd.f32 %v1726_v60, %v1637_v61  ;;  %v1899_v43 = vsel %vm1894_vm15, %v7402_v14, %v7386_v20 }
 0x739   : > { %12334 = vst [vmem:[#allocation261_spill] sm:$0xff] %v8272_v52  ;;  %v1937_v46 = vmul.f32 %v5849_v10, %v1903_v2  ;;  %v1743_v28 = vadd.f32 %v1727_v58, %v1638_v5  ;;  %v1936_v9 = vmul.f32 %v5849_v10, %v1907_v37  ;;  %v1846_v33 = vadd.f32 %v1830_v22, %v1740_v35 }
 0x73a   : > { %v1848_v63 = vadd.f32 %v1832_v59, %v1742_v27  ;;  %v1847_v44 = vadd.f32 %v1831_v36, %v1741_v32  ;;  %v1895_v14 = vsel %vm1894_vm15, %v7386_v20, %v7376_v17  ;;  %v2013_v39 = vsel %vm2000_vm1, %v7410_v7, %v7398_v13  ;;  %v12337_v32 = vld [vmem:[#allocation32_spill] sm:$0xff] }
 0x73b   : > { %v1849_v5 = vadd.f32 %v1833_v30, %v1743_v28  ;;  %v2009_v60 = vsel %vm2000_vm1, %v7398_v13, %v7388_v24  ;;  %v1938_v12 = vmul.f32 %v5849_v10, %v1899_v43  ;;  %v2115_v17 = vsel %vm2106_vm2, %v7426_v57, %v7422_v16  ;;  %v12338_v27 = vld [vmem:[#allocation68_spill] sm:$0xff] }
 0x73c   : > { %3149 = vperm.xlu1 %5416, %v5218_v38   ;;  %3154 = vperm.xlu2 %5417, %v5219_v47   ;;  %v1953_v53 = vadd.f32 %v1937_v46, %v1847_v44  ;;  %v2001_v58 = vsel %vm2000_vm1, %v7414_v29, %v7410_v7  ;;  %v2005_v13 = vsel %vm2000_vm1, %v7388_v24, %v7414_v29  ;;  %v12339_v46 = vld [vmem:[#allocation53_spill] sm:$0xff] }
 0x73d   : > { %3144 = vperm.xlu0 %5415, %v5217_v21   ;;  %v2119_v22 = vsel %vm2106_vm2, %v7438_v62, %v7426_v57  ;;  %v1939_v2 = vmul.f32 %v5849_v10, %v1895_v14  ;;  %v1952_v38 = vadd.f32 %v1936_v9, %v1846_v33  ;;  %v2042_v47 = vmul.f32 %v5807_v55, %v2013_v39  ;;  %v12342_v14 = vld [vmem:[#allocation70_spill] sm:$0xff]  ;;  %v12343_v39 = vld [vmem:[#allocation71_spill] sm:$0xff] }
 0x73e   : > { %v8313_v1 = vpop.permute.xlu1 %2886  ;;  %v8315_v8 = vpop.permute.xlu2 %2989  ;;  %v2221_v7 = vsel %vm2212_vm3, %v7412_v11, %v7450_v6  ;;  %v2043_v61 = vmul.f32 %v5807_v55, %v2009_v60  ;;  %v2111_v29 = vsel %vm2106_vm2, %v7422_v16, %v7400_v34  ;;  %v2149_v24 = vmul.f32 %v5880_v41, %v2115_v17 }
 0x73f   : > { %12335 = vst [vmem:[#allocation262_spill] sm:$0xff] %v8315_v8  ;;  %v8326_v20 = vpop.permute.xlu0 %2902  ;;  %v2107_v57 = vsel %vm2106_vm2, %v7400_v34, %v7438_v62  ;;  %v1955_v10 = vadd.f32 %v1939_v2, %v1849_v5  ;;  %v2044_v59 = vmul.f32 %v5807_v55, %v2005_v13  ;;  %v2045_v36 = vmul.f32 %v5807_v55, %v2001_v58  ;;  %v12347_v13 = vld [vmem:[#allocation76_spill] sm:$0xff]  ;;  %v12455_v8 = vld [vmem:[#allocation9_spill] sm:$0xff] }
 0x740   : > { %12336 = vst [vmem:[#allocation263_spill] sm:$0xff] %v8326_v20  ;;  %v2148_v37 = vmul.f32 %v5880_v41, %v2119_v22  ;;  %v1954_v21 = vadd.f32 %v1938_v12, %v1848_v63  ;;  %v2059_v35 = vadd.f32 %v2043_v61, %v1953_v53  ;;  %v2255_v16 = vmul.f32 %v12337_v32, %v2221_v7  ;;  %v12345_v12 = vld [vmem:[#allocation69_spill] sm:$0xff]  ;;  %v12348_v22 = vld [vmem:[#allocation78_spill] sm:$0xff]  ;;  %v12349_v61 = vld [vmem:[#allocation28_spill] sm:$0xff] }
 0x741   : > { %v2058_v34 = vadd.f32 %v2042_v47, %v1952_v38  ;;  %v2150_v62 = vmul.f32 %v5880_v41, %v2111_v29  ;;  %v2151_v55 = vmul.f32 %v5880_v41, %v2107_v57  ;;  %v2225_v43 = vsel %vm2212_vm3, %v12338_v27, %v7412_v11  ;;  %v12346_v53 = vld [vmem:[#allocation73_spill] sm:$0xff] }
 0x742   : > { %v2165_v30 = vadd.f32 %v2149_v24, %v2059_v35  ;;  %v8376_v28 = vmul.f32 %v12339_v46, %v7115_v51  ;;  %v2060_v41 = vadd.f32 %v2044_v59, %v1954_v21  ;;  %v2061_v63 = vadd.f32 %v2045_v36, %v1955_v10  ;;  %v12350_v24 = vld [vmem:[#allocation75_spill] sm:$0xff]  ;;  %v12351_v10 = vld [vmem:[#allocation81_spill] sm:$0xff]  ;;  %v12352_v36 = vld [vmem:[#allocation84_spill] sm:$0xff] }
 0x743   : > { %v2164_v44 = vadd.f32 %v2148_v37, %v2058_v34  ;;  %v2327_v5 = vsel %vm2318_vm5, %v12343_v39, %v12342_v14  ;;  %v2217_v11 = vsel %vm2212_vm3, %v7450_v6, %v12345_v12  ;;  %v2331_v58 = vsel %vm2318_vm5, %v12346_v53, %v12343_v39  ;;  %v12353_v37 = vld [vmem:[#allocation74_spill] sm:$0xff] }
 0x744   : > { %3191 = vrot.lane.b32.xlu1 %v7181_v42, %s5496_s30  ;;  %3193 = vrot.lane.b32.xlu2 %v7241_v18, %s5496_s30  ;;  %v2271_v17 = vadd.f32 %v2255_v16, %v2165_v30  ;;  %v2433_v2 = vsel %vm2424_vm6, %v12348_v22, %v12347_v13  ;;  %v2166_v38 = vadd.f32 %v2150_v62, %v2060_v41  ;;  %v12354_v62 = vld [vmem:[#allocation38_spill] sm:$0xff] }
 0x745   : > { %3189 = vrot.lane.b32.xlu0 %v7115_v51, %s5496_s30  ;;  %v2254_v47 = vmul.f32 %v12337_v32, %v2225_v43  ;;  %v2213_v7 = vsel %vm2212_vm3, %v12345_v12, %v12338_v27  ;;  %v2167_v6 = vadd.f32 %v2151_v55, %v2061_v63  ;;  %v2361_v29 = vmul.f32 %v12349_v61, %v2327_v5  ;;  %v12355_v63 = vld [vmem:[#allocation72_spill] sm:$0xff] }
 0x746   : > { %v8378_v9 = vpop.permute.xlu1 %2942  ;;  %v8380_v33 = vpop.permute.xlu2 %2995  ;;  %v2323_v57 = vsel %vm2318_vm5, %v12342_v14, %v12350_v24  ;;  %v2437_v59 = vsel %vm2424_vm6, %v12351_v10, %v12348_v22  ;;  %v2538_v21 = vsel %vm1023_vm14, %v12353_v37, %v12352_v36  ;;  %v2256_v35 = vmul.f32 %v12337_v32, %v2217_v11 }
 0x747   : > { %12340 = vst [vmem:[#allocation32_spill] sm:$0xff] %v8378_v9  ;;  %v8386_v60 = vpop.permute.xlu0 %2937  ;;  %v2360_v16 = vmul.f32 %v12349_v61, %v2331_v58  ;;  %v2319_v34 = vsel %vm2318_vm5, %v12350_v24, %v12346_v53  ;;  %v2467_v55 = vmul.f32 %v12354_v62, %v2433_v2  ;;  %v2257_v30 = vmul.f32 %v12337_v32, %v2213_v7  ;;  %v12356_v32 = vld [vmem:[#allocation41_spill] sm:$0xff]  ;;  %v12362_v24 = vld [vmem:[#allocation82_spill] sm:$0xff] }
 0x748   : > { %12341 = vst [vmem:[#allocation68_spill] sm:$0xff] %v8380_v33  ;;  %v2270_v27 = vadd.f32 %v2254_v47, %v2164_v44  ;;  %v2377_v43 = vadd.f32 %v2361_v29, %v2271_v17  ;;  %v2362_v41 = vmul.f32 %v12349_v61, %v2323_v57  ;;  %v2425_v14 = vsel %vm2424_vm6, %v12355_v63, %v12351_v10  ;;  %v12359_v7 = vld [vmem:[#allocation77_spill] sm:$0xff]  ;;  %v12363_v10 = vld [vmem:[#allocation79_spill] sm:$0xff] }
 0x749   : > { %12344 = vst [vmem:[#allocation53_spill] sm:$0xff] %v8386_v60  ;;  %v2466_v39 = vmul.f32 %v12354_v62, %v2437_v59  ;;  %v2572_v44 = vmul.f32 %v12356_v32, %v2538_v21  ;;  %v2273_v5 = vadd.f32 %v2257_v30, %v2167_v6  ;;  %v2363_v12 = vmul.f32 %v12349_v61, %v2319_v34  ;;  %v12364_v59 = vld [vmem:[#allocation85_spill] sm:$0xff]  ;;  %v5222_v60 = vld [vmem:[%s5635_s20 + $0x230] sm:$0xff] }
 0x74a   : > { %v2429_v11 = vsel %vm2424_vm6, %v12347_v13, %v12355_v63  ;;  %v2735_v17 = vmul.f32 %v12339_v46, %v7128_v25  ;;  %v2272_v22 = vadd.f32 %v2256_v35, %v2166_v38  ;;  %v2376_v2 = vadd.f32 %v2360_v16, %v2270_v27  ;;  %v12361_v13 = vld [vmem:[#allocation80_spill] sm:$0xff]  ;;  %v12366_v63 = vld [vmem:[#allocation43_spill] sm:$0xff] }
 0x74b   : > { %v2483_v47 = vadd.f32 %v2467_v55, %v2377_v43  ;;  %v2542_v6 = vsel %vm1023_vm14, %v12359_v7, %v12353_v37  ;;  %v2469_v29 = vmul.f32 %v12354_v62, %v2425_v14  ;;  %v2644_v57 = vsel %vm2635_vm7, %v12362_v24, %v12361_v13  ;;  %v12365_v43 = vld [vmem:[#allocation87_spill] sm:$0xff] }
 0x74c   : > { %3197 = vrot.lane.b32.xlu1 %v7128_v25, %s5496_s30  ;;  %3199 = vrot.lane.b32.xlu2 %v7167_v48, %s5496_s30  ;;  %v2534_v38 = vsel %vm1023_vm14, %v12352_v36, %v12363_v10  ;;  %v2648_v21 = vsel %vm2635_vm7, %v12364_v59, %v12362_v24  ;;  %v2378_v37 = vadd.f32 %v2362_v41, %v2272_v22  ;;  %v12382_v25 = vld [vmem:[#allocation98_spill] sm:$0xff] }
 0x74d   : > { %3195 = vrot.lane.b32.xlu0 %v7206_v15, %s5496_s30  ;;  %v2468_v35 = vmul.f32 %v12354_v62, %v2429_v11  ;;  %v2482_v16 = vadd.f32 %v2466_v39, %v2376_v2  ;;  %v2588_v34 = vadd.f32 %v2572_v44, %v2483_v47  ;;  %v2379_v55 = vadd.f32 %v2363_v12, %v2273_v5  ;;  %v12367_v12 = vld [vmem:[#allocation102_spill] sm:$0xff]  ;;  %v12368_v11 = vld [vmem:[#allocation105_spill] sm:$0xff] }
 0x74e   : > { %v8447_v53 = vpop.permute.xlu1 %2981  ;;  %v8449_v58 = vpop.permute.xlu2 %3001  ;;  %v2571_v30 = vmul.f32 %v12356_v32, %v2542_v6  ;;  %v2530_v27 = vsel %vm1023_vm14, %v12363_v10, %v12359_v7  ;;  %v2640_v36 = vsel %vm2635_vm7, %v12361_v13, %v12365_v43  ;;  %v2678_v14 = vmul.f32 %v12366_v63, %v2644_v57  ;;  %v12369_v57 = vld [vmem:[#allocation97_spill] sm:$0xff]  ;;  %v12370_v10 = vld [vmem:[#allocation100_spill] sm:$0xff] }
 0x74f   : > { %12357 = vst [vmem:[#allocation70_spill] sm:$0xff] %v8447_v53  ;;  %v8455_v61 = vpop.permute.xlu0 %2979  ;;  %v2573_v41 = vmul.f32 %v12356_v32, %v2534_v38  ;;  %v2677_v62 = vmul.f32 %v12366_v63, %v2648_v21  ;;  %v2636_v39 = vsel %vm2635_vm7, %v12365_v43, %v12364_v59  ;;  %v2485_v44 = vadd.f32 %v2469_v29, %v2379_v55  ;;  %v12377_v43 = vld [vmem:[#allocation88_spill] sm:$0xff] }
 0x750   : > { %12358 = vst [vmem:[#allocation71_spill] sm:$0xff] %v8449_v58  ;;  %v2736_v5 = vmul.f32 %v12339_v46, %v7147_v0  ;;  %v1591_v22 = vsel %vm1577_vm11, %v12368_v11, %v12367_v12  ;;  %v2484_v2 = vadd.f32 %v2468_v35, %v2378_v37  ;;  %v2694_v47 = vadd.f32 %v2678_v14, %v2588_v34  ;;  %v12379_v14 = vld [vmem:[#allocation56_spill] sm:$0xff] }
 0x751   : > { %12360 = vst [vmem:[#allocation69_spill] sm:$0xff] %v8455_v61  ;;  %v2587_v7 = vadd.f32 %v2571_v30, %v2482_v16  ;;  %v2679_v6 = vmul.f32 %v12366_v63, %v2640_v36  ;;  %v2574_v29 = vmul.f32 %v12356_v32, %v2530_v27  ;;  %v2680_v13 = vmul.f32 %v12366_v63, %v2636_v39  ;;  %v12373_v16 = vld [vmem:[#allocation15_spill] sm:$0xff]  ;;  %v12374_v32 = vld [vmem:[#allocation52_spill] sm:$0xff] }
 0x752   : > { %v2737_v24 = vmul.f32 %v12339_v46, %v7152_v26  ;;  %v1486_v38 = vsel %vm1472_vm10, %v12370_v10, %v12369_v57  ;;  %v2589_v37 = vadd.f32 %v2573_v41, %v2484_v2  ;;  %v1623_v34 = vmul.f32 %v12373_v16, %v1591_v22  ;;  %v12376_v27 = vld [vmem:[#allocation83_spill] sm:$0xff]  ;;  %v12380_v22 = vld [vmem:[#allocation8_spill] sm:$0xff] }
 0x753   : > { %v2693_v35 = vadd.f32 %v2677_v62, %v2587_v7  ;;  %v8516_v55 = vmul.f32 %v12374_v32, %v7167_v48  ;;  %v2590_v46 = vadd.f32 %v2574_v29, %v2485_v44  ;;  %v2807_v36 = vsel %vm2798_vm8, %v12377_v43, %v12376_v27  ;;  %v12381_v29 = vld [vmem:[#allocation95_spill] sm:$0xff] }
 0x754   : > { %3203 = vrot.lane.b32.xlu1 %v7226_v45, %s5496_s30  ;;  %3205 = vrot.lane.b32.xlu2 %v7147_v0, %s5496_s30  ;;  %v8526_v63 = vmul.f32 %v12374_v32, %v7181_v42  ;;  %v8530_v41 = vmul.f32 %v12379_v14, %v7206_v15  ;;  %v2695_v62 = vadd.f32 %v2679_v6, %v2589_v37  ;;  %v12384_v6 = vld [vmem:[#allocation109_spill] sm:$0xff]  ;;  %v12386_v37 = vld [vmem:[#allocation48_spill] sm:$0xff] }
 0x755   : > { %3201 = vrot.lane.b32.xlu0 %v7219_v54, %s5496_s30  ;;  %12375 = vst [vmem:[#allocation78_spill] sm:$0xff] %v8516_v55  ;;  %v8532_v39 = vadd.f32 %v2735_v17, %v2694_v47  ;;  %v1517_v2 = vmul.f32 %v12380_v22, %v1486_v38  ;;  %v8537_v44 = vmul.f32 %v12379_v14, %v7226_v45  ;;  %v12385_v17 = vld [vmem:[#allocation112_spill] sm:$0xff]  ;;  %v12388_v14 = vld [vmem:[#allocation89_spill] sm:$0xff] }
 0x756   : > { %v8509_v59 = vpop.permute.xlu1 %2987  ;;  %v8511_v21 = vpop.permute.xlu2 %3007  ;;  %12378 = vst [vmem:[#allocation28_spill] sm:$0xff] %v8526_v63  ;;  %v2696_v7 = vadd.f32 %v2680_v13, %v2590_v46  ;;  %v1696_v48 = vsel %vm1323_vm12, %v12382_v25, %v12381_v29  ;;  %v1802_v47 = vsel %vm1788_vm13, %v12385_v17, %v12384_v6  ;;  %v2750_v38 = vadd.f32 %v8376_v28, %v2693_v35  ;;  %v12387_v13 = vld [vmem:[#allocation90_spill] sm:$0xff]  ;;  %v12389_v32 = vld [vmem:[#allocation108_spill] sm:$0xff]  ;;  %v12391_v28 = vld [vmem:[#allocation117_spill] sm:$0xff] }
 0x757   : > { %12371 = vst [vmem:[#allocation73_spill] sm:$0xff] %v8509_v59  ;;  %v8518_v30 = vpop.permute.xlu0 %2985  ;;  %v2840_v45 = vmul.f32 %v12386_v37, %v2807_v36  ;;  %v2803_v46 = vsel %vm2798_vm8, %v12376_v27, %v12387_v13  ;;  %v1639_v3 = vadd.f32 %v1623_v34, %v1517_v2  ;;  %v1692_v17 = vsel %vm1323_vm12, %v12381_v29, %v12389_v32  ;;  %v12390_v25 = vld [vmem:[#allocation114_spill] sm:$0xff]  ;;  %v12392_v34 = vld [vmem:[#allocation91_spill] sm:$0xff]  ;;  %v12394_v29 = vld [vmem:[#allocation12_spill] sm:$0xff] }
 0x758   : > { %12372 = vst [vmem:[#allocation76_spill] sm:$0xff] %v8511_v21  ;;  %v12383_v21 = vld [vmem:[#allocation103_spill] sm:$0xff]  ;;  %v1908_v35 = vsel %vm1894_vm15, %v12391_v28, %v12390_v25  ;;  %v12393_v27 = vld [vmem:[#allocation18_spill] sm:$0xff]  ;;  %v1834_v32 = vmul.f32 %v12394_v29, %v1802_v47  ;;  %v2841_v28 = vmul.f32 %v12386_v37, %v2803_v46  ;;  %v2753_v10 = vadd.f32 %v2737_v24, %v2696_v7  ;;  %v12456_v54 = vld [vmem:[#allocation216_spill] sm:$0xff] }
 0x759   : > { %v1587_v20 = vsel %vm1577_vm11, %v12367_v12, %v12383_v21  ;;  %v1482_v12 = vsel %vm1472_vm10, %v12369_v57, %v12388_v14  ;;  %v2799_v57 = vsel %vm2798_vm8, %v12387_v13, %v12392_v34  ;;  %v1728_v36 = vmul.f32 %v12393_v27, %v1696_v48  ;;  %v12395_v21 = vld [vmem:[#allocation101_spill] sm:$0xff]  ;;  %v12398_v7 = vld [vmem:[#allocation115_spill] sm:$0xff]  ;;  %v12399_v46 = vld [vmem:[#allocation86_spill] sm:$0xff] }
 0x75a   : > { %v1624_v2 = vmul.f32 %v12373_v16, %v1587_v20  ;;  %v2752_v14 = vadd.f32 %v2736_v5, %v2695_v62  ;;  %v1798_v11 = vsel %vm1788_vm13, %v12384_v6, %v12395_v21  ;;  %v1518_v48 = vmul.f32 %v12380_v22, %v1482_v12  ;;  %v12397_v16 = vld [vmem:[#allocation23_spill] sm:$0xff]  ;;  %v12405_v21 = vld [vmem:[#allocation121_spill] sm:$0xff]  ;;  %v12454_v63 = vld [vmem:[#allocation46_spill] sm:$0xff] }
 0x75b   : > { %v1729_v20 = vmul.f32 %v12393_v27, %v1692_v17  ;;  %v1744_v47 = vadd.f32 %v1728_v36, %v1639_v3  ;;  %v1940_v51 = vmul.f32 %v12397_v16, %v1908_v35  ;;  %v2856_v5 = vadd.f32 %v2840_v45, %v2750_v38  ;;  %v12400_v17 = vld [vmem:[#allocation94_spill] sm:$0xff]  ;;  %v12401_v35 = vld [vmem:[#allocation93_spill] sm:$0xff] }
 0x75c   : > { %3209 = vrot.lane.b32.xlu1 %v7201_v19, %s5496_s30  ;;  %3211 = vrot.lane.b32.xlu2 %v7261_v56, %s5496_s30  ;;  %v2811_v24 = vsel %vm2798_vm8, %v12392_v34, %v12377_v43  ;;  %v2842_v62 = vmul.f32 %v12386_v37, %v2799_v57  ;;  %v1904_v6 = vsel %vm1894_vm15, %v12390_v25, %v12398_v7  ;;  %v12402_v34 = vld [vmem:[#allocation107_spill] sm:$0xff]  ;;  %v12403_v57 = vld [vmem:[#allocation110_spill] sm:$0xff]  ;;  %v12404_v25 = vld [vmem:[#allocation120_spill] sm:$0xff] }
 0x75d   : > { %3207 = vrot.lane.b32.xlu0 %v7172_v23, %s5496_s30  ;;  %v2908_v3 = vsel %vm948_vm9, %v12400_v17, %v12399_v46  ;;  %v1640_v12 = vadd.f32 %v1624_v2, %v1518_v48  ;;  %v1835_v45 = vmul.f32 %v12394_v29, %v1798_v11  ;;  %v1850_v38 = vadd.f32 %v1834_v32, %v1744_v47  ;;  %v12406_v2 = vld [vmem:[#allocation124_spill] sm:$0xff]  ;;  %v12410_v27 = vld [vmem:[#allocation129_spill] sm:$0xff] }
 0x75e   : > { %v8587_v0 = vpop.permute.xlu1 %2993  ;;  %v8589_v13 = vpop.permute.xlu2 %3043  ;;  %v2912_v43 = vsel %vm948_vm9, %v12401_v35, %v12400_v17  ;;  %v2014_v36 = vsel %vm2000_vm1, %v12403_v57, %v12402_v34  ;;  %v2010_v7 = vsel %vm2000_vm1, %v12402_v34, %v12404_v25  ;;  %v2120_v11 = vsel %vm2106_vm2, %v12406_v2, %v12405_v21  ;;  %v12407_v32 = vld [vmem:[#allocation96_spill] sm:$0xff]  ;;  %v12408_v34 = vld [vmem:[#allocation113_spill] sm:$0xff]  ;;  %v12409_v2 = vld [vmem:[#allocation126_spill] sm:$0xff] }
 0x75f   : > { %12396 = vst [vmem:[#allocation75_spill] sm:$0xff] %v8589_v13  ;;  %v8594_v61 = vpop.permute.xlu0 %2991  ;;  %v2904_v48 = vsel %vm948_vm9, %v12399_v46, %v12407_v32  ;;  %v1745_v47 = vadd.f32 %v1729_v20, %v1640_v12  ;;  %v1956_v17 = vadd.f32 %v1940_v51, %v1850_v38  ;;  %v1941_v29 = vmul.f32 %v12397_v16, %v1904_v6  ;;  %v12411_v20 = vld [vmem:[#allocation27_spill] sm:$0xff]  ;;  %v12412_v12 = vld [vmem:[#allocation22_spill] sm:$0xff]  ;;  %v12497_v23 = vld [vmem:[#allocation249_spill] sm:$0xff] }
 0x760   : > { %v2916_v57 = vsel %vm948_vm9, %v12407_v32, %v12401_v35  ;;  %v2116_v25 = vsel %vm2106_vm2, %v12405_v21, %v12408_v34  ;;  %v2226_v22 = vsel %vm2212_vm3, %v12410_v27, %v12409_v2  ;;  %v2046_v6 = vmul.f32 %v12411_v20, %v2014_v36  ;;  %v12413_v35 = vld [vmem:[#allocation57_spill] sm:$0xff]  ;;  %v12414_v34 = vld [vmem:[#allocation127_spill] sm:$0xff]  ;;  %v12453_v13 = vld [vmem:[#allocation10_spill] sm:$0xff] }
 0x761   : > { %v1851_v51 = vadd.f32 %v1835_v45, %v1745_v47  ;;  %v2047_v46 = vmul.f32 %v12411_v20, %v2010_v7  ;;  %v2152_v38 = vmul.f32 %v12412_v12, %v2120_v11  ;;  %v2843_v21 = vmul.f32 %v12386_v37, %v2811_v24  ;;  %v12417_v37 = vld [vmem:[#allocation34_spill] sm:$0xff] }
 0x762   : > { %v2945_v32 = vmul.f32 %v12413_v35, %v2912_v43  ;;  %v2946_v27 = vmul.f32 %v12413_v35, %v2908_v3  ;;  %v2222_v45 = vsel %vm2212_vm3, %v12409_v2, %v12414_v34  ;;  %v2153_v47 = vmul.f32 %v12412_v12, %v2116_v25  ;;  %v12450_v12 = vld [vmem:[#allocation149_spill] sm:$0xff] }
 0x763   : > { %v1957_v11 = vadd.f32 %v1941_v29, %v1851_v51  ;;  %v2062_v20 = vadd.f32 %v2046_v6, %v1956_v17  ;;  %v2258_v24 = vmul.f32 %v12417_v37, %v2226_v22  ;;  %v2857_v3 = vadd.f32 %v2841_v28, %v8532_v39  ;;  %v12420_v29 = vld [vmem:[#allocation119_spill] sm:$0xff]  ;;  %v5220_v17 = vld [vmem:[%s5635_s20 + $0x220] sm:$0xff]  ;;  %v5221_v22 = vld [vmem:[%s5635_s20 + $0x228] sm:$0xff] }
 0x764   : > { %3215 = vrot.lane.b32.xlu1 %v7186_v31, %s5496_s30  ;;  %3217 = vrot.lane.b32.xlu2 %v7246_v4, %s5496_s30  ;;  %v2858_v16 = vadd.f32 %v2842_v62, %v2752_v14  ;;  %v2948_v2 = vmul.f32 %v12413_v35, %v2916_v57  ;;  %v2259_v33 = vmul.f32 %v12417_v37, %v2222_v45  ;;  %v12421_v14 = vld [vmem:[#allocation122_spill] sm:$0xff]  ;;  %v12448_v37 = vld [vmem:[#allocation225_spill] sm:$0xff] }
 0x765   : > { %3213 = vrot.lane.b32.xlu0 %v7152_v26, %s5496_s30  ;;  %v2947_v26 = vmul.f32 %v12413_v35, %v2904_v48  ;;  %v2063_v34 = vadd.f32 %v2047_v46, %v1957_v11  ;;  %v2168_v59 = vadd.f32 %v2152_v38, %v2062_v20  ;;  %v2859_v51 = vadd.f32 %v2843_v21, %v2753_v10  ;;  %v12422_v48 = vld [vmem:[#allocation125_spill] sm:$0xff]  ;;  %v12424_v38 = vld [vmem:[#allocation136_spill] sm:$0xff]  ;;  %v12427_v35 = vld [vmem:[#allocation210_spill] sm:$0xff] }
 0x766   : > { %v8659_v36 = vpop.permute.xlu1 %2999  ;;  %v8661_v7 = vpop.permute.xlu2 %3085  ;;  %v8677_v6 = vadd.f32 %v2945_v32, %v2856_v5  ;;  %v8679_v39 = vadd.f32 %v2946_v27, %v2857_v3  ;;  %v2332_v28 = vsel %vm2318_vm5, %v12421_v14, %v12420_v29  ;;  %v12423_v20 = vld [vmem:[#allocation133_spill] sm:$0xff] }
 0x767   : > { %12415 = vst [vmem:[#allocation81_spill] sm:$0xff] %v8659_v36  ;;  %v8665_v43 = vpop.permute.xlu0 %2997  ;;  %v2169_v62 = vadd.f32 %v2153_v47, %v2063_v34  ;;  %v2274_v57 = vadd.f32 %v2258_v24, %v2168_v59  ;;  %v2434_v46 = vsel %vm2424_vm6, %v12423_v20, %v12422_v48  ;;  %v2438_v10 = vsel %vm2424_vm6, %v12424_v38, %v12423_v20  ;;  %v12426_v27 = vld [vmem:[#allocation37_spill] sm:$0xff]  ;;  %v12430_v47 = vld [vmem:[#allocation131_spill] sm:$0xff]  ;;  %v12431_v24 = vld [vmem:[#allocation134_spill] sm:$0xff] }
 0x768   : > { %12416 = vst [vmem:[#allocation84_spill] sm:$0xff] %v8661_v7  ;;  %v12419_v7 = vld [vmem:[#allocation132_spill] sm:$0xff]  ;;  %v8693_v5 = vadd.f32 %v2947_v26, %v2858_v16  ;;  %v12428_v32 = vld [vmem:[#allocation213_spill] sm:$0xff]  ;;  %v8700_v59 = vadd.f32 %v2948_v2, %v2859_v51  ;;  %v2364_v45 = vmul.f32 %v12426_v27, %v2332_v28  ;;  %v2649_v26 = vsel %vm2635_vm7, %v12431_v24, %v12430_v47 }
 0x769   : > { %12418 = vst [vmem:[#allocation74_spill] sm:$0xff] %v8665_v43  ;;  %v2328_v25 = vsel %vm2318_vm5, %v12420_v29, %v12419_v7  ;;  %v1488_v34 = vsel %vm1472_vm10, %v12428_v32, %v12427_v35  ;;  %v2275_v11 = vadd.f32 %v2259_v33, %v2169_v62  ;;  %v12432_v16 = vld [vmem:[#allocation33_spill] sm:$0xff]  ;;  %v12438_v32 = vld [vmem:[#allocation139_spill] sm:$0xff]  ;;  %v12505_v36 = vld [vmem:[#allocation240_spill] sm:$0xff] }
 0x76a   : > { %12425 = vst [vmem:[#allocation38_spill] sm:$0xff] %v8693_v5  ;;  %v2365_v21 = vmul.f32 %v12426_v27, %v2328_v25  ;;  %v2471_v3 = vmul.f32 %v12432_v16, %v2434_v46  ;;  %v2470_v29 = vmul.f32 %v12432_v16, %v2438_v10  ;;  %v12433_v25 = vld [vmem:[#allocation206_spill] sm:$0xff]  ;;  %v12436_v51 = vld [vmem:[#allocation217_spill] sm:$0xff]  ;;  %v2380_v20 = vadd.f32 %v2364_v45, %v2274_v57  ;;  %v12441_v16 = vld [vmem:[#allocation160_spill] sm:$0xff] }
 0x76b   : > { %12429 = vst [vmem:[#allocation72_spill] sm:$0xff] %v8700_v59  ;;  %v12439_v46 = vld [vmem:[#allocation138_spill] sm:$0xff]  ;;  %v12440_v24 = vld [vmem:[#allocation157_spill] sm:$0xff] }
 0x76c   : > { %3245 = vperm.xlu1 %5416, %v5220_v17   ;;  %3250 = vperm.xlu2 %5417, %v5221_v22   ;;  %v12434_v17 = vld [vmem:[#allocation209_spill] sm:$0xff]  ;;  %v12435_v22 = vld [vmem:[#allocation214_spill] sm:$0xff]  ;;  %v2539_v10 = vsel %vm1023_vm14, %v12439_v46, %v12438_v32  ;;  %v2381_v27 = vadd.f32 %v2365_v21, %v2275_v11  ;;  %v12452_v11 = vld [vmem:[#allocation16_spill] sm:$0xff]  ;;  %v8756_v55 = vadd.f32 %v2470_v29, %v2380_v20 }
 0x76d   : > { %3219 = vrot.lane.b32.xlu0 %v7266_v49, %s5496_s30  ;;  %v1593_v2 = vsel %vm1577_vm11, %v12434_v17, %v12433_v25  ;;  %v1698_v33 = vsel %vm1323_vm12, %v12436_v51, %v12435_v22  ;;  %v1592_v17 = vsel %vm1577_vm11, %v12441_v16, %v12440_v24  ;;  %v12442_v48 = vld [vmem:[#allocation13_spill] sm:$0xff]  ;;  %v12447_v32 = vld [vmem:[#allocation222_spill] sm:$0xff] }
 0x76e   : > { %v8719_v28 = vpop.permute.xlu1 %3005  ;;  %v8721_v62 = vpop.permute.xlu2 %3091  ;;  %v1525_v38 = vmul.f32 %v12442_v48, %v1488_v34  ;;  %v12446_v57 = vld [vmem:[#allocation141_spill] sm:$0xff]  ;;  %v1804_v14 = vsel %vm1788_vm13, %v12448_v37, %v12447_v32  ;;  %v12449_v16 = vld [vmem:[#allocation146_spill] sm:$0xff]  ;;  %v1736_v53 = vmul.f32 %v12453_v13, %v1698_v33  ;;  %v2576_v37 = vmul.f32 %v12454_v63, %v2539_v10 }
 0x76f   : > { %12437 = vst [vmem:[#allocation41_spill] sm:$0xff] %v8719_v28  ;;  %v8732_v51 = vpop.permute.xlu0 %3003  ;;  %v12444_v28 = vld [vmem:[#allocation50_spill] sm:$0xff]  ;;  %v2543_v45 = vsel %vm1023_vm14, %v12446_v57, %v12439_v46  ;;  %v1487_v34 = vsel %vm1472_vm10, %v12450_v12, %v12449_v16  ;;  %v5223_v46 = vld [vmem:[%s5635_s20 + $0x238] sm:$0xff]  ;;  %v2487_v57 = vadd.f32 %v2471_v3, %v2381_v27  ;;  %v1627_v43 = vmul.f32 %v12455_v8, %v1592_v17  ;;  %v12459_v3 = vld [vmem:[#allocation153_spill] sm:$0xff] }
 0x770   : > { %12443 = vst [vmem:[#allocation77_spill] sm:$0xff] %v8732_v51  ;;  %v8735_v7 = vmul.f32 %v12444_v28, %v2649_v26  ;;  %v12451_v51 = vld [vmem:[#allocation152_spill] sm:$0xff]  ;;  %v1631_v26 = vmul.f32 %v12452_v11, %v1593_v2  ;;  %v8762_v12 = vmul.f32 %v12454_v63, %v2543_v45  ;;  %v12457_v2 = vld [vmem:[#allocation21_spill] sm:$0xff]  ;;  %v1483_v29 = vsel %vm1472_vm10, %v12449_v16, %v12459_v3  ;;  %v12461_v20 = vld [vmem:[#allocation162_spill] sm:$0xff] }
 0x771   : > { %v1588_v21 = vsel %vm1577_vm11, %v12440_v24, %v12451_v51  ;;  %v1589_v24 = vsel %vm1577_vm11, %v12433_v25, %v12456_v54  ;;  %v1842_v33 = vmul.f32 %v12457_v2, %v1804_v14  ;;  %v12458_v51 = vld [vmem:[#allocation11_spill] sm:$0xff]  ;;  %v12463_v45 = vld [vmem:[#allocation208_spill] sm:$0xff]  ;;  %v12465_v54 = vld [vmem:[#allocation221_spill] sm:$0xff] }
 0x772   : > { %12445 = vst [vmem:[#allocation80_spill] sm:$0xff] %v8735_v7  ;;  %v1647_v7 = vadd.f32 %v1631_v26, %v1525_v38  ;;  %v1521_v27 = vmul.f32 %v12458_v51, %v1487_v34  ;;  %v1628_v17 = vmul.f32 %v12455_v8, %v1588_v21  ;;  %v12460_v38 = vld [vmem:[#allocation159_spill] sm:$0xff]  ;;  %v1484_v16 = vsel %vm1472_vm10, %v12427_v35, %v12463_v45  ;;  %v12466_v8 = vld [vmem:[#allocation226_spill] sm:$0xff]  ;;  %v12467_v63 = vld [vmem:[#allocation229_spill] sm:$0xff] }
 0x773   : > { %v1697_v25 = vsel %vm1323_vm12, %v12461_v20, %v12460_v38  ;;  %v12462_v14 = vld [vmem:[#allocation163_spill] sm:$0xff]  ;;  %v1632_v26 = vmul.f32 %v12452_v11, %v1589_v24  ;;  %v1526_v45 = vmul.f32 %v12442_v48, %v1484_v16  ;;  %v12472_v11 = vld [vmem:[#allocation234_spill] sm:$0xff]  ;;  %v12480_v5 = vld [vmem:[#allocation165_spill] sm:$0xff] }
 0x774   : > { %3260 = vperm.xlu1 %5416, %v5223_v46   ;;  %3301 = vrot.lane.b32.xlu2 %v7206_v15, %s5497_s2  ;;  %v1693_v10 = vsel %vm1323_vm12, %v12460_v38, %v12462_v14  ;;  %v1752_v34 = vadd.f32 %v1736_v53, %v1647_v7  ;;  %v1643_v21 = vadd.f32 %v1627_v43, %v1521_v27  ;;  %v12464_v46 = vld [vmem:[#allocation218_spill] sm:$0xff]  ;;  %v12471_v27 = vld [vmem:[#allocation17_spill] sm:$0xff]  ;;  %v5227_v16 = vld [vmem:[%s5635_s20 + $0x258] sm:$0xff] }
 0x775   : > { %3255 = vperm.xlu0 %5415, %v5222_v60   ;;  %v1910_v20 = vsel %vm1894_vm15, %v12465_v54, %v12464_v46  ;;  %v2016_v38 = vsel %vm2000_vm1, %v12467_v63, %v12466_v8  ;;  %v8802_v53 = vadd.f32 %v2576_v37, %v2487_v57  ;;  %v12470_v60 = vld [vmem:[#allocation144_spill] sm:$0xff]  ;;  %v1522_v43 = vmul.f32 %v12458_v51, %v1483_v29  ;;  %v12473_v37 = vld [vmem:[#allocation237_spill] sm:$0xff] }
 0x776   : > { %v8798_v14 = vpop.permute.xlu1 %3038  ;;  %v8800_v3 = vpop.permute.xlu2 %3097  ;;  %v8808_v7 = vsel %vm2635_vm7, %v12430_v47, %v12470_v60  ;;  %v1858_v35 = vadd.f32 %v1842_v33, %v1752_v34  ;;  %v1732_v63 = vmul.f32 %v12471_v27, %v1697_v25  ;;  %v1733_v54 = vmul.f32 %v12471_v27, %v1693_v10  ;;  %v12475_v29 = vld [vmem:[#allocation220_spill] sm:$0xff]  ;;  %v12478_v60 = vld [vmem:[#allocation158_spill] sm:$0xff] }
 0x777   : > { %12468 = vst [vmem:[#allocation82_spill] sm:$0xff] %v8798_v14  ;;  %v8811_v24 = vpop.permute.xlu0 %3033  ;;  %v2122_v57 = vsel %vm2106_vm2, %v12473_v37, %v12472_v11  ;;  %v12474_v14 = vld [vmem:[#allocation212_spill] sm:$0xff]  ;;  %v1800_v33 = vsel %vm1788_vm13, %v12447_v32, %v12475_v29  ;;  %v1644_v48 = vadd.f32 %v1628_v17, %v1522_v43  ;;  %v1648_v59 = vadd.f32 %v1632_v26, %v1526_v45 }
 0x778   : > { %12469 = vst [vmem:[#allocation79_spill] sm:$0xff] %v8802_v53  ;;  %v1694_v47 = vsel %vm1323_vm12, %v12435_v22, %v12474_v14  ;;  %v12476_v25 = vld [vmem:[#allocation24_spill] sm:$0xff]  ;;  %v1748_v51 = vadd.f32 %v1732_v63, %v1643_v21  ;;  %v12479_v53 = vld [vmem:[#allocation161_spill] sm:$0xff]  ;;  %v1799_v22 = vsel %vm1788_vm13, %v12478_v60, %v12480_v5  ;;  %v1843_v26 = vmul.f32 %v12457_v2, %v1800_v33  ;;  %v12487_v33 = vld [vmem:[#allocation230_spill] sm:$0xff] }
 0x779   : > { %v1948_v34 = vmul.f32 %v12476_v25, %v1910_v20  ;;  %v12477_v10 = vld [vmem:[#allocation20_spill] sm:$0xff]  ;;  %v1803_v37 = vsel %vm1788_vm13, %v12479_v53, %v12478_v60  ;;  %v12483_v63 = vld [vmem:[#allocation169_spill] sm:$0xff]  ;;  %v1737_v45 = vmul.f32 %v12453_v13, %v1694_v47  ;;  %v12485_v60 = vld [vmem:[#allocation19_spill] sm:$0xff]  ;;  %v1749_v5 = vadd.f32 %v1733_v54, %v1644_v48 }
 0x77a   : > { %v2054_v27 = vmul.f32 %v12477_v10, %v2016_v38  ;;  %v12481_v14 = vld [vmem:[#allocation228_spill] sm:$0xff]  ;;  %v12482_v38 = vld [vmem:[#allocation31_spill] sm:$0xff]  ;;  %v1838_v29 = vmul.f32 %v12485_v60, %v1803_v37  ;;  %v12489_v2 = vld [vmem:[#allocation238_spill] sm:$0xff] }
 0x77b   : > { %v1906_v32 = vsel %vm1894_vm15, %v12464_v46, %v12481_v14  ;;  %v1964_v20 = vadd.f32 %v1948_v34, %v1858_v35  ;;  %v2160_v17 = vmul.f32 %v12482_v38, %v2122_v57  ;;  %v12484_v21 = vld [vmem:[#allocation172_spill] sm:$0xff]  ;;  %v1753_v34 = vadd.f32 %v1737_v45, %v1648_v59  ;;  %v12488_v14 = vld [vmem:[#allocation233_spill] sm:$0xff]  ;;  %v12492_v59 = vld [vmem:[#allocation14_spill] sm:$0xff] }
 0x77c   : > { %v1909_v43 = vsel %vm1894_vm15, %v12484_v21, %v12483_v63  ;;  %3325 = vrot.lane.b32.xlu1 %v7266_v49, %s5497_s2  ;;  %3366 = vperm.xlu2 %5417, %v5227_v16   ;;  %v12486_v46 = vld [vmem:[#allocation164_spill] sm:$0xff]  ;;  %v1949_v47 = vmul.f32 %v12476_v25, %v1906_v32  ;;  %v2228_v16 = vsel %vm2212_vm3, %v12488_v14, %v12487_v33  ;;  %v12490_v37 = vld [vmem:[#allocation241_spill] sm:$0xff]  ;;  %v12494_v14 = vld [vmem:[#allocation175_spill] sm:$0xff] }
 0x77d   : > { %v1905_v35 = vsel %vm1894_vm15, %v12483_v63, %v12486_v46  ;;  %v2070_v57 = vadd.f32 %v2054_v27, %v1964_v20  ;;  %3317 = vrot.lane.b32.xlu0 %v7261_v56, %s5497_s2  ;;  %v2334_v54 = vsel %vm2318_vm5, %v12490_v37, %v12489_v2  ;;  %v1854_v27 = vadd.f32 %v1838_v29, %v1748_v51  ;;  %v12495_v46 = vld [vmem:[#allocation171_spill] sm:$0xff]  ;;  %v12496_v53 = vld [vmem:[#allocation246_spill] sm:$0xff]  ;;  %v12498_v29 = vld [vmem:[#allocation224_spill] sm:$0xff] }
 0x77e   : > { %v8868_v48 = vpop.permute.xlu1 %3083  ;;  %v8870_v63 = vpop.permute.xlu2 %3103  ;;  %v1839_v20 = vmul.f32 %v12485_v60, %v1799_v22  ;;  %v1944_v45 = vmul.f32 %v12492_v59, %v1909_v43  ;;  %v1945_v13 = vmul.f32 %v12492_v59, %v1905_v35  ;;  %v2011_v21 = vsel %vm2000_vm1, %v12495_v46, %v12494_v14  ;;  %v12500_v35 = vld [vmem:[#allocation35_spill] sm:$0xff]  ;;  %v12501_v59 = vld [vmem:[#allocation30_spill] sm:$0xff] }
 0x77f   : > { %12491 = vst [vmem:[#allocation85_spill] sm:$0xff] %v8870_v63  ;;  %v2176_v32 = vadd.f32 %v2160_v17, %v2070_v57  ;;  %v8874_v25 = vpop.permute.xlu0 %3048  ;;  %v1859_v37 = vadd.f32 %v1843_v26, %v1753_v34  ;;  %v2440_v51 = vsel %vm2424_vm6, %v12497_v23, %v12496_v53  ;;  %v2012_v22 = vsel %vm2000_vm1, %v12466_v8, %v12498_v29  ;;  %v12499_v17 = vld [vmem:[#allocation232_spill] sm:$0xff]  ;;  %v12502_v34 = vld [vmem:[#allocation174_spill] sm:$0xff]  ;;  %v12504_v63 = vld [vmem:[#allocation173_spill] sm:$0xff] }
 0x780   : > { %12493 = vst [vmem:[#allocation87_spill] sm:$0xff] %v8874_v25  ;;  %v2118_v43 = vsel %vm2106_vm2, %v12472_v11, %v12499_v17  ;;  %v2266_v57 = vmul.f32 %v12500_v35, %v2228_v16  ;;  %v2372_v14 = vmul.f32 %v12501_v59, %v2334_v54  ;;  %v1855_v26 = vadd.f32 %v1839_v20, %v1749_v5  ;;  %v12503_v60 = vld [vmem:[#allocation170_spill] sm:$0xff]  ;;  %v12506_v54 = vld [vmem:[#allocation40_spill] sm:$0xff] }
 0x781   : > { %v2015_v23 = vsel %vm2000_vm1, %v12502_v34, %v12495_v46  ;;  %v2121_v8 = vsel %vm2106_vm2, %v12504_v63, %v12503_v60  ;;  %v1965_v29 = vadd.f32 %v1949_v47, %v1859_v37  ;;  %v1960_v31 = vadd.f32 %v1944_v45, %v1854_v27  ;;  %v12507_v20 = vld [vmem:[#allocation26_spill] sm:$0xff]  ;;  %v12508_v27 = vld [vmem:[#allocation177_spill] sm:$0xff] }
 0x782   : > { %v2224_v11 = vsel %vm2212_vm3, %v12487_v33, %v12505_v36  ;;  %v2282_v16 = vadd.f32 %v2266_v57, %v2176_v32  ;;  %v2478_v5 = vmul.f32 %v12506_v54, %v2440_v51  ;;  %v2051_v17 = vmul.f32 %v12507_v20, %v2011_v21  ;;  %v12509_v51 = vld [vmem:[#allocation242_spill] sm:$0xff]  ;;  %v12512_v57 = vld [vmem:[#allocation253_spill] sm:$0xff] }
 0x783   : > { %v2055_v58 = vmul.f32 %v12477_v10, %v2012_v22  ;;  %v2161_v46 = vmul.f32 %v12482_v38, %v2118_v43  ;;  %v1961_v47 = vadd.f32 %v1945_v13, %v1855_v26  ;;  %v2050_v37 = vmul.f32 %v12507_v20, %v2015_v23  ;;  %v12510_v22 = vld [vmem:[#allocation245_spill] sm:$0xff]  ;;  %v12511_v13 = vld [vmem:[#allocation250_spill] sm:$0xff] }
 0x784   : > { %3315 = vrot.lane.b32.xlu1 %v7201_v19, %s5497_s2  ;;  %3323 = vrot.lane.b32.xlu2 %v7246_v4, %s5497_s2  ;;  %v2117_v33 = vsel %vm2106_vm2, %v12503_v60, %v12508_v27  ;;  %v2388_v45 = vadd.f32 %v2372_v14, %v2282_v16  ;;  %v2267_v32 = vmul.f32 %v12500_v35, %v2224_v11  ;;  %v12515_v16 = vld [vmem:[#allocation29_spill] sm:$0xff] }
 0x785   : > { %3299 = vrot.lane.b32.xlu0 %v7241_v18, %s5497_s2  ;;  %v2071_v21 = vadd.f32 %v2055_v58, %v1965_v29  ;;  %v2545_v43 = vsel %vm1023_vm14, %v12510_v22, %v12509_v51  ;;  %v2651_v23 = vsel %vm2635_vm7, %v12512_v57, %v12511_v13  ;;  %v2066_v14 = vadd.f32 %v2050_v37, %v1960_v31  ;;  %v12516_v58 = vld [vmem:[#allocation176_spill] sm:$0xff]  ;;  %v12517_v29 = vld [vmem:[#allocation181_spill] sm:$0xff]  ;;  %v12521_v37 = vld [vmem:[#allocation47_spill] sm:$0xff] }
 0x786   : > { %v8931_v26 = vpop.permute.xlu1 %3089  ;;  %v8933_v60 = vpop.permute.xlu2 %3109  ;;  %v2156_v36 = vmul.f32 %v12515_v16, %v2121_v8  ;;  %v2223_v11 = vsel %vm2212_vm3, %v12517_v29, %v12516_v58  ;;  %v2494_v35 = vadd.f32 %v2478_v5, %v2388_v45  ;;  %v2157_v22 = vmul.f32 %v12515_v16, %v2117_v33  ;;  %v12519_v57 = vld [vmem:[#allocation236_spill] sm:$0xff]  ;;  %v12523_v45 = vld [vmem:[#allocation25_spill] sm:$0xff] }
 0x787   : > { %12513 = vst [vmem:[#allocation43_spill] sm:$0xff] %v8931_v26  ;;  %v8940_v38 = vpop.permute.xlu0 %3087  ;;  %v2067_v10 = vadd.f32 %v2051_v17, %v1961_v47  ;;  %v2177_v63 = vadd.f32 %v2161_v46, %v2071_v21  ;;  %v12520_v31 = vld [vmem:[#allocation244_spill] sm:$0xff]  ;;  %v2583_v20 = vmul.f32 %v12521_v37, %v2545_v43  ;;  %v2263_v33 = vmul.f32 %v12523_v45, %v2223_v11 }
 0x788   : > { %12514 = vst [vmem:[#allocation102_spill] sm:$0xff] %v8933_v60  ;;  %v2330_v60 = vsel %vm2318_vm5, %v12489_v2, %v12519_v57  ;;  %v2436_v8 = vsel %vm2424_vm6, %v12496_v53, %v12520_v31  ;;  %v12522_v58 = vld [vmem:[#allocation44_spill] sm:$0xff]  ;;  %v12525_v2 = vld [vmem:[#allocation257_spill] sm:$0xff] }
 0x789   : > { %12518 = vst [vmem:[#allocation97_spill] sm:$0xff] %v8940_v38  ;;  %v2689_v5 = vmul.f32 %v12522_v58, %v2651_v23  ;;  %v12524_v17 = vld [vmem:[#allocation184_spill] sm:$0xff]  ;;  %v2283_v47 = vadd.f32 %v2267_v32, %v2177_v63  ;;  %v3018_v21 = vsel %vm3009_vm0, %v12525_v2, %v8518_v30  ;;  %v2599_v23 = vadd.f32 %v2583_v20, %v2494_v35  ;;  %v12527_v63 = vld [vmem:[#allocation251_spill] sm:$0xff] }
 0x78a   : > { %v2227_v46 = vsel %vm2212_vm3, %v12524_v17, %v12517_v29  ;;  %v12526_v53 = vld [vmem:[#allocation252_spill] sm:$0xff]  ;;  %v3051_v31 = vmul.f32 %v8811_v24, %v3018_v21  ;;  %v2373_v11 = vmul.f32 %v12501_v59, %v2330_v60  ;;  %v2479_v29 = vmul.f32 %v12506_v54, %v2436_v8  ;;  %v12535_v59 = vld [vmem:[#allocation185_spill] sm:$0xff] }
 0x78b   : > { %v2541_v43 = vsel %vm1023_vm14, %v12509_v51, %v12526_v53  ;;  %v12528_v32 = vld [vmem:[#allocation256_spill] sm:$0xff]  ;;  %v8981_v35 = vadd.f32 %v8762_v12, %v8756_v55  ;;  %v8985_v20 = vmul.f32 %v12444_v28, %v8808_v7  ;;  %v2172_v51 = vadd.f32 %v2156_v36, %v2066_v14  ;;  %v12529_v7 = vld [vmem:[#allocation51_spill] sm:$0xff]  ;;  %v12533_v53 = vld [vmem:[#allocation186_spill] sm:$0xff] }
 0x78c   : > { %v2810_v57 = vsel %vm2798_vm8, %v12528_v32, %v12527_v63  ;;  %3423 = vrot.lane.b32.xlu1 %v7261_v56, %s5498_s28  ;;  %3431 = vrot.lane.b32.xlu2 %v7266_v49, %s5498_s28  ;;  %v2705_v60 = vadd.f32 %v2689_v5, %v2599_v23  ;;  %v2173_v8 = vadd.f32 %v2157_v22, %v2067_v10  ;;  %v12531_v23 = vld [vmem:[#allocation183_spill] sm:$0xff] }
 0x78d   : > { %3407 = vrot.lane.b32.xlu0 %v7206_v15, %s5498_s28  ;;  %v2389_v21 = vadd.f32 %v2373_v11, %v2283_v47  ;;  %v2584_v32 = vmul.f32 %v12521_v37, %v2541_v43  ;;  %v3124_v55 = vsel %vm11863_vm4, %v8868_v48, %v8721_v62  ;;  %v2262_v36 = vmul.f32 %v12523_v45, %v2227_v46  ;;  %v12530_v43 = vld [vmem:[#allocation187_spill] sm:$0xff] }
 0x78e   : > { %v8994_v12 = vpop.permute.xlu1 %3095  ;;  %v8996_v54 = vpop.permute.xlu2 %3139  ;;  %v2852_v14 = vmul.f32 %v12529_v7, %v2810_v57  ;;  %v3067_v5 = vadd.f32 %v3051_v31, %v8677_v6  ;;  %v2279_v47 = vadd.f32 %v2263_v33, %v2173_v8  ;;  %v2329_v11 = vsel %vm2318_vm5, %v12531_v23, %v12530_v43  ;;  %v12532_v57 = vld [vmem:[#allocation248_spill] sm:$0xff]  ;;  %v5231_v8 = vld [vmem:[%s5635_s20 + $0x278] sm:$0xff] }
 0x78f   : > { %v9001_v10 = vpop.permute.xlu0 %3093  ;;  %v3157_v22 = vmul.f32 %v8996_v54, %v3124_v55  ;;  %v2495_v37 = vadd.f32 %v2479_v29, %v2389_v21  ;;  %v2915_v46 = vsel %vm948_vm9, %v8272_v52, %v8313_v1  ;;  %v2647_v6 = vsel %vm2635_vm7, %v12511_v13, %v12532_v57  ;;  %v12534_v21 = vld [vmem:[#allocation182_spill] sm:$0xff]  ;;  %v12537_v57 = vld [vmem:[#allocation36_spill] sm:$0xff]  ;;  %v12586_v45 = vld [vmem:[#allocation75_spill] sm:$0xff] }
 0x790   : > { %v2762_v31 = vadd.f32 %v8530_v41, %v2705_v60  ;;  %v2957_v33 = vmul.f32 %v8378_v9, %v2915_v46  ;;  %v2333_v29 = vsel %vm2318_vm5, %v12533_v53, %v12531_v23  ;;  %v2439_v52 = vsel %vm2424_vm6, %v12535_v59, %v12534_v21  ;;  %v5226_v13 = vld [vmem:[%s5635_s20 + $0x250] sm:$0xff] }
 0x791   : > { %v9019_v55 = vadd.f32 %v3157_v22, %v3067_v5  ;;  %v2600_v43 = vadd.f32 %v2584_v32, %v2495_v37  ;;  %v3021_v41 = vsel %vm3009_vm0, %v8261_v40, %v8594_v61  ;;  %v2278_v60 = vadd.f32 %v2262_v36, %v2172_v51  ;;  %v12536_v5 = vld [vmem:[#allocation189_spill] sm:$0xff]  ;;  %v12539_v36 = vld [vmem:[#allocation196_spill] sm:$0xff]  ;;  %v12541_v40 = vld [vmem:[#allocation258_spill] sm:$0xff] }
 0x792   : > { %v2435_v22 = vsel %vm2424_vm6, %v12534_v21, %v12536_v5  ;;  %v2868_v46 = vadd.f32 %v2852_v14, %v2762_v31  ;;  %v3063_v23 = vmul.f32 %v8874_v25, %v3021_v41  ;;  %v2369_v53 = vmul.f32 %v12537_v57, %v2329_v11  ;;  %v12538_v51 = vld [vmem:[#allocation193_spill] sm:$0xff] }
 0x793   : > { %v2690_v59 = vmul.f32 %v12522_v58, %v2647_v6  ;;  %v3014_v37 = vsel %vm3009_vm0, %v8518_v30, %v8587_v0  ;;  %v2368_v32 = vmul.f32 %v12537_v57, %v2333_v29  ;;  %v2544_v14 = vsel %vm1023_vm14, %v12539_v36, %v12538_v51  ;;  %v12540_v6 = vld [vmem:[#allocation39_spill] sm:$0xff] }
 0x794   : > { %3472 = vperm.xlu1 %5416, %v5231_v8   ;;  %3297 = vrot.lane.b32.xlu2 %v7181_v42, %s5497_s2  ;;  %v2973_v31 = vadd.f32 %v2957_v33, %v2868_v46  ;;  %v3052_v11 = vmul.f32 %v8811_v24, %v3014_v37  ;;  %v2474_v21 = vmul.f32 %v12540_v6, %v2439_v52  ;;  %v12544_v37 = vld [vmem:[#allocation188_spill] sm:$0xff] }
 0x795   : > { %3361 = vperm.xlu0 %5415, %v5226_v13   ;;  %v2706_v41 = vadd.f32 %v2690_v59, %v2600_v43  ;;  %v2806_v30 = vsel %vm2798_vm8, %v12527_v63, %v12541_v40  ;;  %v3127_v8 = vsel %vm11863_vm4, %v8931_v26, %v8800_v3  ;;  %v2384_v33 = vadd.f32 %v2368_v32, %v2278_v60  ;;  %v12545_v40 = vld [vmem:[#allocation42_spill] sm:$0xff] }
 0x796   : > { %v9062_v29 = vpop.permute.xlu1 %3101  ;;  %v9064_v58 = vpop.permute.xlu2 %3154  ;;  %v2475_v13 = vmul.f32 %v12540_v6, %v2435_v22  ;;  %v3079_v46 = vadd.f32 %v3063_v23, %v2973_v31  ;;  %v2385_v43 = vadd.f32 %v2369_v53, %v2279_v47  ;;  %v2540_v63 = vsel %vm1023_vm14, %v12538_v51, %v12544_v37  ;;  %v12546_v53 = vld [vmem:[#allocation199_spill] sm:$0xff] }
 0x797   : > { %12542 = vst [vmem:[#allocation83_spill] sm:$0xff] %v9062_v29  ;;  %v3100_v52 = vpop.permute.xlu0 %3099  ;;  %v3169_v59 = vmul.f32 %v9064_v58, %v3127_v8  ;;  %v2579_v5 = vmul.f32 %v12545_v40, %v2544_v14  ;;  %v2853_v60 = vmul.f32 %v12529_v7, %v2806_v30  ;;  %v3068_v22 = vadd.f32 %v3052_v11, %v8679_v39  ;;  %v12547_v47 = vld [vmem:[#allocation195_spill] sm:$0xff]  ;;  %v12548_v14 = vld [vmem:[#allocation254_spill] sm:$0xff] }
 0x798   : > { %12543 = vst [vmem:[#allocation88_spill] sm:$0xff] %v9064_v58  ;;  %v3120_v26 = vsel %vm11863_vm4, %v8721_v62, %v3100_v52  ;;  %v2646_v31 = vsel %vm2635_vm7, %v12547_v47, %v12546_v53  ;;  %v2763_v51 = vadd.f32 %v8537_v44, %v2706_v41  ;;  %v2911_v62 = vsel %vm948_vm9, %v8313_v1, %v12548_v14  ;;  %v12549_v8 = vld [vmem:[#allocation71_spill] sm:$0xff] }
 0x799   : > { %v3158_v23 = vmul.f32 %v8996_v54, %v3120_v26  ;;  %v9079_v32 = vadd.f32 %v3169_v59, %v3079_v46  ;;  %v3010_v39 = vsel %vm3009_vm0, %v8587_v0, %v12549_v8  ;;  %v2958_v26 = vmul.f32 %v8378_v9, %v2911_v62  ;;  %v12550_v46 = vld [vmem:[#allocation81_spill] sm:$0xff]  ;;  %v12552_v62 = vld [vmem:[#allocation147_spill] sm:$0xff] }
 0x79a   : > { %v3022_v11 = vsel %vm3009_vm0, %v12549_v8, %v12525_v2  ;;  %v3053_v30 = vmul.f32 %v8811_v24, %v3010_v39  ;;  %v2490_v41 = vadd.f32 %v2474_v21, %v2384_v33  ;;  %v3017_v1 = vsel %vm3009_vm0, %v8594_v61, %v12550_v46  ;;  %v12551_v0 = vld [vmem:[#allocation65_spill] sm:$0xff]  ;;  %v12554_v8 = vld [vmem:[#allocation64_spill] sm:$0xff] }
 0x79b   : > { %v9100_v44 = vadd.f32 %v3158_v23, %v3068_v22  ;;  %v3054_v59 = vmul.f32 %v8811_v24, %v3022_v11  ;;  %v12553_v2 = vld [vmem:[#allocation137_spill] sm:$0xff]  ;;  %v2491_v23 = vadd.f32 %v2475_v13, %v2385_v43  ;;  %v2869_v21 = vadd.f32 %v2853_v60, %v2763_v51  ;;  %v12555_v24 = vld [vmem:[#allocation198_spill] sm:$0xff] }
 0x79c   : > { %3321 = vrot.lane.b32.xlu1 %v12551_v0, %s5497_s2  ;;  %3405 = vrot.lane.b32.xlu2 %v7241_v18, %s5498_s28  ;;  %v2808_v22 = vsel %vm2798_vm8, %v12553_v2, %v12552_v62  ;;  %v3064_v33 = vmul.f32 %v8874_v25, %v3017_v1  ;;  %v2580_v61 = vmul.f32 %v12545_v40, %v2540_v63  ;;  %v12556_v46 = vld [vmem:[#allocation49_spill] sm:$0xff]  ;;  %v12558_v13 = vld [vmem:[#allocation38_spill] sm:$0xff]  ;;  %v12560_v25 = vld [vmem:[#allocation72_spill] sm:$0xff] }
 0x79d   : > { %3313 = vrot.lane.b32.xlu0 %v12554_v8, %s5497_s2  ;;  %v2650_v39 = vsel %vm2635_vm7, %v12555_v24, %v12547_v47  ;;  %v2595_v11 = vadd.f32 %v2579_v5, %v2490_v41  ;;  %v2686_v9 = vmul.f32 %v12556_v46, %v2646_v31  ;;  %v3069_v43 = vadd.f32 %v3053_v30, %v12558_v13  ;;  %v12561_v41 = vld [vmem:[#allocation145_spill] sm:$0xff] }
 0x79e   : > { %v3108_v14 = vpop.permute.xlu1 %3107  ;;  %v9124_v7 = vpop.permute.xlu2 %3193  ;;  %v2974_v1 = vadd.f32 %v2958_v26, %v2869_v21  ;;  %v3070_v47 = vadd.f32 %v3054_v59, %v12560_v25  ;;  %v2596_v25 = vadd.f32 %v2580_v61, %v2491_v23  ;;  %v12562_v59 = vld [vmem:[#allocation202_spill] sm:$0xff]  ;;  %v12563_v21 = vld [vmem:[#allocation201_spill] sm:$0xff]  ;;  %v12567_v23 = vld [vmem:[#allocation80_spill] sm:$0xff] }
 0x79f   : > { %12557 = vst [vmem:[#allocation95_spill] sm:$0xff] %v9124_v7  ;;  %v3116_v60 = vsel %vm11863_vm4, %v3100_v52, %v3108_v14  ;;  %v3128_v63 = vsel %vm11863_vm4, %v3108_v14, %v8868_v48  ;;  %v9132_v51 = vpop.permute.xlu0 %3105  ;;  %v2804_v52 = vsel %vm2798_vm8, %v12552_v62, %v12561_v41  ;;  %v2685_v48 = vmul.f32 %v12556_v46, %v2650_v39  ;;  %v12566_v62 = vld [vmem:[#allocation194_spill] sm:$0xff] }
 0x7a0   : > { %12559 = vst [vmem:[#allocation109_spill] sm:$0xff] %v9132_v51  ;;  %v3159_v5 = vmul.f32 %v8996_v54, %v3116_v60  ;;  %v3160_v31 = vmul.f32 %v8996_v54, %v3128_v63  ;;  %v3123_v30 = vsel %vm11863_vm4, %v8800_v3, %v9132_v51  ;;  %v3080_v14 = vadd.f32 %v3064_v33, %v2974_v1  ;;  %v12564_v63 = vld [vmem:[#allocation66_spill] sm:$0xff]  ;;  %v12565_v51 = vld [vmem:[#allocation45_spill] sm:$0xff]  ;;  %v12568_v1 = vld [vmem:[#allocation79_spill] sm:$0xff] }
 0x7a1   : > { %v3170_v26 = vmul.f32 %v9064_v58, %v3123_v30  ;;  %v2809_v54 = vsel %vm2798_vm8, %v12563_v21, %v12562_v59  ;;  %v2701_v3 = vadd.f32 %v2685_v48, %v2595_v11  ;;  %v2743_v53 = vmul.f32 %v12565_v51, %v12564_v63  ;;  %v12569_v11 = vld [vmem:[#allocation58_spill] sm:$0xff]  ;;  %v12570_v48 = vld [vmem:[#allocation55_spill] sm:$0xff]  ;;  %v12577_v58 = vld [vmem:[#allocation205_spill] sm:$0xff] }
 0x7a2   : > { %v9151_v13 = vadd.f32 %v3159_v5, %v3069_v43  ;;  %v9153_v60 = vadd.f32 %v3160_v31, %v3070_v47  ;;  %v2805_v33 = vsel %vm2798_vm8, %v12562_v59, %v12566_v62  ;;  %v2697_v61 = vadd.f32 %v12567_v23, %v8981_v35  ;;  %v12575_v59 = vld [vmem:[#allocation197_spill] sm:$0xff]  ;;  %v12579_v46 = vld [vmem:[#allocation74_spill] sm:$0xff] }
 0x7a3   : > { %v9161_v39 = vadd.f32 %v3170_v26, %v3080_v14  ;;  %v2698_v43 = vadd.f32 %v8985_v20, %v12568_v1  ;;  %v2702_v5 = vadd.f32 %v2686_v9, %v2596_v25  ;;  %v2844_v47 = vmul.f32 %v12569_v11, %v2808_v22  ;;  %v12571_v9 = vld [vmem:[#allocation150_spill] sm:$0xff]  ;;  %v12572_v20 = vld [vmem:[#allocation143_spill] sm:$0xff]  ;;  %v12573_v26 = vld [vmem:[#allocation148_spill] sm:$0xff] }
 0x7a4   : > { %3429 = vrot.lane.b32.xlu1 %v7246_v4, %s5498_s28  ;;  %3513 = vrot.lane.b32.xlu2 %v7206_v15, %s5499_s19  ;;  %v2845_v31 = vmul.f32 %v12569_v11, %v2804_v52  ;;  %v2742_v30 = vmul.f32 %v12565_v51, %v7241_v18  ;;  %v2848_v35 = vmul.f32 %v12570_v48, %v2809_v54  ;;  %v12574_v25 = vld [vmem:[#allocation207_spill] sm:$0xff]  ;;  %v12578_v62 = vld [vmem:[#allocation53_spill] sm:$0xff] }
 0x7a5   : > { %3421 = vrot.lane.b32.xlu0 %v7201_v19, %s5498_s28  ;;  %v2909_v14 = vsel %vm948_vm9, %v12572_v20, %v12571_v9  ;;  %v2913_v22 = vsel %vm948_vm9, %v12573_v26, %v12572_v20  ;;  %v2849_v52 = vmul.f32 %v12570_v48, %v2805_v33  ;;  %v2914_v54 = vsel %vm948_vm9, %v12575_v59, %v12574_v25  ;;  %v12580_v33 = vld [vmem:[#allocation262_spill] sm:$0xff]  ;;  %v12582_v59 = vld [vmem:[#allocation28_spill] sm:$0xff] }
 0x7a6   : > { %v9191_v23 = vpop.permute.xlu1 %3113  ;;  %v9193_v1 = vpop.permute.xlu2 %3199  ;;  %v2758_v63 = vadd.f32 %v2742_v30, %v2701_v3  ;;  %v2910_v21 = vsel %vm948_vm9, %v12574_v25, %v12577_v58  ;;  %v2953_v20 = vmul.f32 %v12578_v62, %v2914_v54  ;;  %v3016_v48 = vsel %vm3009_vm0, %v12580_v33, %v12579_v46  ;;  %v12584_v30 = vld [vmem:[#allocation54_spill] sm:$0xff]  ;;  %v5225_v46 = vld [vmem:[%s5635_s20 + $0x248] sm:$0xff] }
 0x7a7   : > { %12576 = vst [vmem:[#allocation48_spill] sm:$0xff] %v9191_v23  ;;  %v9204_v26 = vpop.permute.xlu0 %3111  ;;  %v2754_v24 = vadd.f32 %v12582_v59, %v2697_v61  ;;  %v12583_v23 = vld [vmem:[#allocation78_spill] sm:$0xff]  ;;  %v2759_v40 = vadd.f32 %v2743_v53, %v2702_v5  ;;  %v2954_v3 = vmul.f32 %v12578_v62, %v2910_v21  ;;  %v2950_v6 = vmul.f32 %v12584_v30, %v2909_v14  ;;  %v12587_v21 = vld [vmem:[#allocation68_spill] sm:$0xff]  ;;  %v12588_v59 = vld [vmem:[#allocation73_spill] sm:$0xff] }
 0x7a8   : > { %12581 = vst [vmem:[#allocation90_spill] sm:$0xff] %v9204_v26  ;;  %v2755_v37 = vadd.f32 %v12583_v23, %v2698_v43  ;;  %v2949_v25 = vmul.f32 %v12584_v30, %v2913_v22  ;;  %v2864_v58 = vadd.f32 %v2848_v35, %v2758_v63  ;;  %v12585_v54 = vld [vmem:[#allocation70_spill] sm:$0xff]  ;;  %v3060_v43 = vmul.f32 %v12586_v45, %v3016_v48  ;;  %v12589_v63 = vld [vmem:[#allocation69_spill] sm:$0xff] }
 0x7a9   : > { %v3020_v36 = vsel %vm3009_vm0, %v12585_v54, %v12580_v33  ;;  %v2860_v57 = vadd.f32 %v2844_v47, %v2754_v24  ;;  %v2865_v26 = vadd.f32 %v2849_v52, %v2759_v40  ;;  %v3015_v14 = vsel %vm3009_vm0, %v12588_v59, %v12587_v21  ;;  %v12590_v23 = vld [vmem:[#allocation82_spill] sm:$0xff] }
 0x7aa   : > { %v3059_v61 = vmul.f32 %v12586_v45, %v3020_v36  ;;  %v2861_v53 = vadd.f32 %v2845_v31, %v2755_v37  ;;  %v2969_v5 = vadd.f32 %v2953_v20, %v2864_v58  ;;  %v3019_v35 = vsel %vm3009_vm0, %v12589_v63, %v12588_v59  ;;  %v12591_v31 = vld [vmem:[#allocation85_spill] sm:$0xff]  ;;  %v12654_v63 = vld [vmem:[#allocation104_spill] sm:$0xff] }
 0x7ab   : > { %v2970_v22 = vadd.f32 %v2954_v3, %v2865_v26  ;;  %v3055_v24 = vmul.f32 %v12590_v23, %v3019_v35  ;;  %v3056_v40 = vmul.f32 %v12590_v23, %v3015_v14  ;;  %v2965_v36 = vadd.f32 %v2949_v25, %v2860_v57  ;;  %v5230_v35 = vld [vmem:[%s5635_s20 + $0x270] sm:$0xff]  ;;  %v12656_v23 = vld [vmem:[#allocation12_spill] sm:$0xff] }
 0x7ac   : > { %3537 = vrot.lane.b32.xlu1 %v7266_v49, %s5499_s19  ;;  %3356 = vperm.xlu2 %5417, %v5225_v46   ;;  %v2966_v58 = vadd.f32 %v2950_v6, %v2861_v53  ;;  %v3075_v37 = vadd.f32 %v3059_v61, %v2969_v5  ;;  %v3122_v48 = vsel %vm11863_vm4, %v8994_v12, %v12591_v31  ;;  %v12593_v6 = vld [vmem:[#allocation84_spill] sm:$0xff]  ;;  %v5235_v5 = vld [vmem:[%s5635_s20 + $0x298] sm:$0xff] }
 0x7ad   : > { %3529 = vrot.lane.b32.xlu0 %v7261_v56, %s5499_s19  ;;  %v3076_v47 = vadd.f32 %v3060_v43, %v2970_v22  ;;  %v3126_v26 = vsel %vm11863_vm4, %v8940_v38, %v8994_v12  ;;  %v3125_v52 = vsel %vm11863_vm4, %v12593_v6, %v9001_v10  ;;  %v3121_v20 = vsel %vm11863_vm4, %v9001_v10, %v9062_v29  ;;  %v5239_v6 = vld [vmem:[%s5635_s20 + $0x2b8] sm:$0xff] }
 0x7ae   : > { %v9240_v46 = vpop.permute.xlu1 %3149  ;;  %v9242_v57 = vpop.permute.xlu2 %3205  ;;  %v3071_v12 = vadd.f32 %v3055_v24, %v2965_v36  ;;  %v3072_v53 = vadd.f32 %v3056_v40, %v2966_v58  ;;  %v12598_v40 = vld [vmem:[#allocation62_spill] sm:$0xff]  ;;  %v12599_v58 = vld [vmem:[#allocation61_spill] sm:$0xff]  ;;  %vm11913_vm4 = vcmp.lt.s32.totalorder %v5914_v50, 108 }
 0x7af   : > { %12592 = vst [vmem:[#allocation114_spill] sm:$0xff] %v9240_v46  ;;  %v3165_v33 = vmul.f32 %v9240_v46, %v3126_v26  ;;  %v3166_v3 = vmul.f32 %v9240_v46, %v3122_v48  ;;  %v9254_v25 = vpop.permute.xlu0 %3144  ;;  %v12595_v26 = vld [vmem:[#allocation59_spill] sm:$0xff] }
 0x7b0   : > { %12594 = vst [vmem:[#allocation91_spill] sm:$0xff] %v9254_v25  ;;  %v3161_v61 = vmul.f32 %v9254_v25, %v3125_v52  ;;  %v3162_v43 = vmul.f32 %v9254_v25, %v3121_v20  ;;  %v12703_v46 = vld [vmem:[#allocation163_spill] sm:$0xff] }
 0x7b1   : > { %v9259_v59 = vadd.f32 %v3165_v33, %v3075_v37  ;;  %v9261_v14 = vadd.f32 %v3166_v3, %v3076_v47 }
 0x7b2   : > { %v3178_v22 = vadd.f32 %v3162_v43, %v3072_v53  ;;  %v3177_v10 = vadd.f32 %v3161_v61, %v3071_v12 }
 0x7b4   : > { %3578 = vperm.xlu1 %5416, %v5235_v5   ;;  %3295 = vrot.lane.b32.xlu2 %v12595_v26, %s5497_s2 }
 0x7b5   : > { %3467 = vperm.xlu0 %5415, %v5230_v35  }
 0x7b6   : > { %v9266_v48 = vpop.permute.xlu1 %3191  ;;  %v9268_v24 = vpop.permute.xlu2 %3211 }
 0x7b7   : > { %12596 = vst [vmem:[#allocation86_spill] sm:$0xff] %v9266_v48  ;;  %v3190_v36 = vpop.permute.xlu0 %3189  ;;  %v3231_v20 = vsel %vm11913_vm4, %v9266_v48, %v9193_v1  ;;  %v5234_v48 = vld [vmem:[%s5635_s20 + $0x290] sm:$0xff] }
 0x7b8   : > { %12597 = vst [vmem:[#allocation94_spill] sm:$0xff] %v9268_v24 }
 0x7bc   : > { %3319 = vrot.lane.b32.xlu1 %v12598_v40, %s5497_s2  ;;  %3403 = vrot.lane.b32.xlu2 %v7181_v42, %s5498_s28 }
 0x7bd   : > { %3311 = vrot.lane.b32.xlu0 %v12599_v58, %s5497_s2 }
 0x7be   : > { %v3198_v37 = vpop.permute.xlu1 %3197  ;;  %v9276_v47 = vpop.permute.xlu2 %3217 }
 0x7bf   : > { %12600 = vst [vmem:[#allocation93_spill] sm:$0xff] %v9276_v47  ;;  %v9278_v52 = vpop.permute.xlu0 %3195  ;;  %v12702_v47 = vld [vmem:[#allocation155_spill] sm:$0xff] }
 0x7c0   : > { %12601 = vst [vmem:[#allocation107_spill] sm:$0xff] %v9278_v52 }
 0x7c4   : > { %3427 = vrot.lane.b32.xlu1 %v12551_v0, %s5498_s28  ;;  %3511 = vrot.lane.b32.xlu2 %v7241_v18, %s5499_s19 }
 0x7c5   : > { %3419 = vrot.lane.b32.xlu0 %v12554_v8, %s5498_s28 }
 0x7c6   : > { %v3204_v33 = vpop.permute.xlu1 %3203  ;;  %v9291_v3 = vpop.permute.xlu2 %3250 }
 0x7c7   : > { %12602 = vst [vmem:[#allocation121_spill] sm:$0xff] %v9291_v3  ;;  %v3202_v12 = vpop.permute.xlu0 %3201  ;;  %v3267_v61 = vmul.f32 %v9291_v3, %v3231_v20 }
 0x7c9   : > { %v9294_v43 = vadd.f32 %v3267_v61, %v3177_v10  ;;  %v5224_v61 = vld [vmem:[%s5635_s20 + $0x240] sm:$0xff] }
 0x7cb   : > { %12603 = vst [vmem:[#allocation96_spill] sm:$0xff] %v9294_v43 }
 0x7cc   : > { %3535 = vrot.lane.b32.xlu1 %v7246_v4, %s5499_s19  ;;  %3619 = vrot.lane.b32.xlu2 %v7206_v15, %s5500_s3 }
 0x7cd   : > { %3527 = vrot.lane.b32.xlu0 %v7201_v19, %s5499_s19 }
 0x7ce   : > { %v9302_v53 = vpop.permute.xlu1 %3209  ;;  %v9304_v5 = vpop.permute.xlu2 %3301 }
 0x7cf   : > { %12604 = vst [vmem:[#allocation126_spill] sm:$0xff] %v9302_v53  ;;  %v9306_v35 = vpop.permute.xlu0 %3207 }
 0x7d0   : > { %12605 = vst [vmem:[#allocation57_spill] sm:$0xff] %v9304_v5  ;;  %v3227_v10 = vsel %vm11913_vm4, %v9193_v1, %v9306_v35  ;;  %v5229_v1 = vld [vmem:[%s5635_s20 + $0x268] sm:$0xff] }
 0x7d1   : > { %12606 = vst [vmem:[#allocation119_spill] sm:$0xff] %v9306_v35  ;;  %v3268_v20 = vmul.f32 %v9291_v3, %v3227_v10  ;;  %v3230_v10 = vsel %vm11913_vm4, %v3190_v36, %v3198_v37 }
 0x7d3   : > { %v9314_v43 = vadd.f32 %v3268_v20, %v3178_v22  ;;  %v3226_v22 = vsel %vm11913_vm4, %v3198_v37, %v9242_v57 }
 0x7d4   : > { %3643 = vrot.lane.b32.xlu1 %v7266_v49, %s5500_s3  ;;  %3351 = vperm.xlu2 %5417, %v5224_v61  }
 0x7d5   : > { %12607 = vst [vmem:[#allocation133_spill] sm:$0xff] %v9314_v43  ;;  %3635 = vrot.lane.b32.xlu0 %v7261_v56, %s5500_s3 }
 0x7d6   : > { %v9320_v5 = vpop.permute.xlu1 %3215  ;;  %v9322_v25 = vpop.permute.xlu2 %3366 }
 0x7d7   : > { %12608 = vst [vmem:[#allocation210_spill] sm:$0xff] %v9320_v5  ;;  %v3214_v29 = vpop.permute.xlu0 %3213 }
 0x7d8   : > { %12609 = vst [vmem:[#allocation131_spill] sm:$0xff] %v9322_v25  ;;  %v3222_v20 = vsel %vm11913_vm4, %v9242_v57, %v3214_v29  ;;  %v3234_v61 = vsel %vm11913_vm4, %v3214_v29, %v3190_v36  ;;  %v3232_v36 = vsel %vm11913_vm4, %v9124_v7, %v3202_v12 }
 0x7dc   : > { %3573 = vperm.xlu1 %5416, %v5234_v48   ;;  %3684 = vperm.xlu2 %5417, %v5239_v6  }
 0x7dd   : > { %3462 = vperm.xlu0 %5415, %v5229_v1  }
 0x7de   : > { %v3246_v43 = vpop.permute.xlu1 %3245  ;;  %v9337_v25 = vpop.permute.xlu2 %3323 }
 0x7df   : > { %12610 = vst [vmem:[#allocation206_spill] sm:$0xff] %v9337_v25  ;;  %v3263_v48 = vmul.f32 %v3246_v43, %v3230_v10  ;;  %v3264_v6 = vmul.f32 %v3246_v43, %v3226_v22  ;;  %v3265_v1 = vmul.f32 %v3246_v43, %v3222_v20  ;;  %v3266_v3 = vmul.f32 %v3246_v43, %v3234_v61  ;;  %v9339_v35 = vpop.permute.xlu0 %3219  ;;  %v12698_v25 = vld [vmem:[#allocation56_spill] sm:$0xff] }
 0x7e0   : > { %12611 = vst [vmem:[#allocation214_spill] sm:$0xff] %v9339_v35  ;;  %v12649_v35 = vld [vmem:[#allocation18_spill] sm:$0xff]  ;;  %v9632_v21 = vmul.f32 %v12698_v25, %v7261_v56 }
 0x7e1   : > { %v9342_v5 = vadd.f32 %v3265_v1, %v9151_v13  ;;  %v9345_v37 = vadd.f32 %v3266_v3, %v9153_v60  ;;  %v9348_v57 = vadd.f32 %v3263_v48, %v9019_v55  ;;  %v9351_v29 = vadd.f32 %v3264_v6, %v9100_v44 }
 0x7e2   : > { %v3229_v13 = vsel %vm11913_vm4, %v3204_v33, %v9268_v24  ;;  %v3233_v55 = vsel %vm11913_vm4, %v9278_v52, %v3204_v33  ;;  %v3228_v3 = vsel %vm11913_vm4, %v3202_v12, %v9302_v53  ;;  %v12645_v24 = vld [vmem:[#allocation108_spill] sm:$0xff]  ;;  %vm3327_vm4 = vcmp.lt.s32.totalorder %v5914_v50, 107 }
 0x7e3   : > { %12612 = vst [vmem:[#allocation138_spill] sm:$0xff] %v9348_v57 }
 0x7e4   : > { %12613 = vst [vmem:[#allocation157_spill] sm:$0xff] %v9351_v29  ;;  %3417 = vrot.lane.b32.xlu1 %v12599_v58, %s5498_s28  ;;  %3425 = vrot.lane.b32.xlu2 %v12598_v40, %s5498_s28 }
 0x7e5   : > { %3401 = vrot.lane.b32.xlu0 %v12595_v26, %s5498_s28 }
 0x7e6   : > { %v9365_v60 = vpop.permute.xlu1 %3260  ;;  %v9367_v44 = vpop.permute.xlu2 %3431 }
 0x7e7   : > { %12614 = vst [vmem:[#allocation50_spill] sm:$0xff] %v9365_v60  ;;  %v3275_v43 = vmul.f32 %v9365_v60, %v3233_v55  ;;  %v3276_v22 = vmul.f32 %v9365_v60, %v3229_v13  ;;  %v9377_v10 = vpop.permute.xlu0 %3255 }
 0x7e8   : > { %12615 = vst [vmem:[#allocation222_spill] sm:$0xff] %v9367_v44  ;;  %v3271_v33 = vmul.f32 %v9377_v10, %v3232_v36  ;;  %v3272_v20 = vmul.f32 %v9377_v10, %v3228_v3  ;;  %v12641_v44 = vld [vmem:[#allocation98_spill] sm:$0xff] }
 0x7e9   : > { %12616 = vst [vmem:[#allocation146_spill] sm:$0xff] %v9377_v10  ;;  %v9382_v61 = vadd.f32 %v3275_v43, %v9079_v32  ;;  %v9385_v48 = vadd.f32 %v3276_v22, %v9161_v39  ;;  %v5233_v43 = vld [vmem:[%s5635_s20 + $0x288] sm:$0xff]  ;;  %v5238_v22 = vld [vmem:[%s5635_s20 + $0x2b0] sm:$0xff]  ;;  %v12699_v10 = vld [vmem:[#allocation144_spill] sm:$0xff] }
 0x7ea   : > { %v9388_v6 = vadd.f32 %v3271_v33, %v9259_v59  ;;  %v9391_v12 = vadd.f32 %v3272_v20, %v9261_v14  ;;  %v5228_v33 = vld [vmem:[%s5635_s20 + $0x260] sm:$0xff] }
 0x7eb   : > { %12617 = vst [vmem:[#allocation159_spill] sm:$0xff] %v9382_v61 }
 0x7ec   : > { %12618 = vst [vmem:[#allocation218_spill] sm:$0xff] %v9385_v48  ;;  %3525 = vrot.lane.b32.xlu1 %v12554_v8, %s5499_s19  ;;  %3533 = vrot.lane.b32.xlu2 %v12551_v0, %s5499_s19 }
 0x7ed   : > { %12619 = vst [vmem:[#allocation226_spill] sm:$0xff] %v9388_v6  ;;  %3509 = vrot.lane.b32.xlu0 %v7181_v42, %s5499_s19 }
 0x7ee   : > { %12620 = vst [vmem:[#allocation234_spill] sm:$0xff] %v9391_v12  ;;  %v9399_v32 = vpop.permute.xlu1 %3325  ;;  %v9401_v39 = vpop.permute.xlu2 %3297  ;;  %v5243_v12 = vld [vmem:[%s5635_s20 + $0x2d8] sm:$0xff] }
 0x7ef   : > { %12621 = vst [vmem:[#allocation158_spill] sm:$0xff] %v9399_v32  ;;  %v9403_v59 = vpop.permute.xlu0 %3317  ;;  %v12644_v32 = vld [vmem:[#allocation15_spill] sm:$0xff] }
 0x7f0   : > { %12622 = vst [vmem:[#allocation169_spill] sm:$0xff] %v9401_v39  ;;  %v12653_v39 = vld [vmem:[#allocation117_spill] sm:$0xff] }
 0x7f1   : > { %12623 = vst [vmem:[#allocation230_spill] sm:$0xff] %v9403_v59  ;;  %v12643_v59 = vld [vmem:[#allocation89_spill] sm:$0xff] }
 0x7f4   : > { %3633 = vrot.lane.b32.xlu1 %v7201_v19, %s5500_s3  ;;  %3641 = vrot.lane.b32.xlu2 %v7246_v4, %s5500_s3 }
 0x7f5   : > { %3617 = vrot.lane.b32.xlu0 %v7241_v18, %s5500_s3 }
 0x7f6   : > { %v9411_v14 = vpop.permute.xlu1 %3315  ;;  %v9413_v1 = vpop.permute.xlu2 %3405 }
 0x7f7   : > { %12624 = vst [vmem:[#allocation238_spill] sm:$0xff] %v9411_v14  ;;  %v9415_v13 = vpop.permute.xlu0 %3299  ;;  %v12696_v14 = vld [vmem:[#allocation46_spill] sm:$0xff] }
 0x7f8   : > { %12625 = vst [vmem:[#allocation171_spill] sm:$0xff] %v9413_v1 }
 0x7f9   : > { %12626 = vst [vmem:[#allocation246_spill] sm:$0xff] %v9415_v13 }
 0x7fc   : > { %3741 = vrot.lane.b32.xlu1 %v7261_v56, %s5480_s23  ;;  %3749 = vrot.lane.b32.xlu2 %v7266_v49, %s5480_s23 }
 0x7fd   : > { %3725 = vrot.lane.b32.xlu0 %v7206_v15, %s5480_s23 }
 0x7fe   : > { %v9423_v55 = vpop.permute.xlu1 %3423  ;;  %v9425_v36 = vpop.permute.xlu2 %3513 }
 0x7ff   : > { %12627 = vst [vmem:[#allocation174_spill] sm:$0xff] %v9423_v55  ;;  %v9427_v3 = vpop.permute.xlu0 %3407  ;;  %v12640_v55 = vld [vmem:[#allocation99_spill] sm:$0xff] }
 0x800   : > { %12628 = vst [vmem:[#allocation170_spill] sm:$0xff] %v9425_v36  ;;  %v12638_v36 = vld [vmem:[#allocation103_spill] sm:$0xff] }
 0x801   : > { %12629 = vst [vmem:[#allocation177_spill] sm:$0xff] %v9427_v3  ;;  %v12639_v3 = vld [vmem:[#allocation100_spill] sm:$0xff] }
 0x804   : > { %3568 = vperm.xlu1 %5416, %v5233_v43   ;;  %3679 = vperm.xlu2 %5417, %v5238_v22   ;;  %v12636_v22 = vld [vmem:[#allocation105_spill] sm:$0xff] }
 0x805   : > { %3457 = vperm.xlu0 %5415, %v5228_v33   ;;  %v12637_v33 = vld [vmem:[#allocation92_spill] sm:$0xff] }
 0x806   : > { %v9432_v20 = vpop.permute.xlu1 %3472  ;;  %v9434_v29 = vpop.permute.xlu2 %3356  ;;  %v1579_v61 = vsel %vm1577_vm11, %v12637_v33, %v12636_v22  ;;  %v1478_v22 = vsel %vm1472_vm10, %v12643_v59, %v12640_v55 }
 0x807   : > { %12630 = vst [vmem:[#allocation242_spill] sm:$0xff] %v9432_v20  ;;  %v9436_v57 = vpop.permute.xlu0 %3361  ;;  %v1583_v20 = vsel %vm1577_vm11, %v12638_v36, %v12637_v33  ;;  %v1626_v52 = vmul.f32 %v12644_v32, %v1579_v61  ;;  %v12647_v33 = vld [vmem:[#allocation111_spill] sm:$0xff]  ;;  %v12648_v61 = vld [vmem:[#allocation8_spill] sm:$0xff] }
 0x808   : > { %12631 = vst [vmem:[#allocation250_spill] sm:$0xff] %v9434_v29  ;;  %v12642_v29 = vld [vmem:[#allocation106_spill] sm:$0xff] }
 0x809   : > { %12632 = vst [vmem:[#allocation29_spill] sm:$0xff] %v9436_v57  ;;  %v1684_v60 = vsel %vm1323_vm12, %v12642_v29, %v12641_v44  ;;  %v1688_v36 = vsel %vm1323_vm12, %v12645_v24, %v12642_v29  ;;  %v1625_v44 = vmul.f32 %v12644_v32, %v1583_v20  ;;  %v12650_v29 = vld [vmem:[#allocation101_spill] sm:$0xff]  ;;  %v1519_v20 = vmul.f32 %v12648_v61, %v1478_v22 }
 0x80a   : > { %v1731_v24 = vmul.f32 %v12649_v35, %v1684_v60 }
 0x80c   : > { %3507 = vrot.lane.b32.xlu1 %v12595_v26, %s5499_s19  ;;  %3523 = vrot.lane.b32.xlu2 %v12599_v58, %s5499_s19 }
 0x80d   : > { %3789 = vperm.xlu0 %5415, %v5243_v12   ;;  %v1474_v12 = vsel %vm1472_vm10, %v12640_v55, %v12639_v3  ;;  %v12646_v3 = vld [vmem:[#allocation112_spill] sm:$0xff] }
 0x80e   : > { %v9443_v6 = vpop.permute.xlu1 %3321  ;;  %v9445_v48 = vpop.permute.xlu2 %3295  ;;  %v1790_v59 = vsel %vm1788_vm13, %v12647_v33, %v12646_v3  ;;  %v1520_v55 = vmul.f32 %v12648_v61, %v1474_v12  ;;  %v1730_v3 = vmul.f32 %v12649_v35, %v1688_v36  ;;  %v1896_v12 = vsel %vm1894_vm15, %v12654_v63, %v12653_v39  ;;  %v12658_v61 = vld [vmem:[#allocation110_spill] sm:$0xff]  ;;  %v12660_v39 = vld [vmem:[#allocation23_spill] sm:$0xff] }
 0x80f   : > { %12633 = vst [vmem:[#allocation181_spill] sm:$0xff] %v9443_v6  ;;  %v9447_v43 = vpop.permute.xlu0 %3313  ;;  %v1837_v57 = vmul.f32 %v12656_v23, %v1790_v59  ;;  %v12659_v35 = vld [vmem:[#allocation118_spill] sm:$0xff]  ;;  %v1943_v13 = vmul.f32 %v12660_v39, %v1896_v12 }
 0x810   : > { %12634 = vst [vmem:[#allocation184_spill] sm:$0xff] %v9445_v48  ;;  %v1642_v60 = vadd.f32 %v1626_v52, %v1520_v55  ;;  %v2002_v36 = vsel %vm2000_vm1, %v12659_v35, %v12658_v61  ;;  %v12661_v52 = vld [vmem:[#allocation120_spill] sm:$0xff]  ;;  %v12668_v61 = vld [vmem:[#allocation22_spill] sm:$0xff] }
 0x811   : > { %12635 = vst [vmem:[#allocation257_spill] sm:$0xff] %v9447_v43  ;;  %v1794_v43 = vsel %vm1788_vm13, %v12650_v29, %v12647_v33  ;;  %v12657_v33 = vld [vmem:[#allocation115_spill] sm:$0xff]  ;;  %v2006_v59 = vsel %vm2000_vm1, %v12661_v52, %v12659_v35 }
 0x812   : > { %v1900_v29 = vsel %vm1894_vm15, %v12657_v33, %v12654_v63  ;;  %v1836_v22 = vmul.f32 %v12656_v23, %v1794_v43  ;;  %v12662_v63 = vld [vmem:[#allocation124_spill] sm:$0xff] }
 0x814   : > { %3615 = vrot.lane.b32.xlu1 %v7181_v42, %s5500_s3  ;;  %3631 = vrot.lane.b32.xlu2 %v12554_v8, %s5500_s3 }
 0x815   : > { %3531 = vrot.lane.b32.xlu0 %v12598_v40, %s5499_s19 }
 0x816   : > { %v9491_v6 = vpop.permute.xlu1 %3429  ;;  %v9493_v32 = vpop.permute.xlu2 %3403 }
 0x817   : > { %12651 = vst [vmem:[#allocation251_spill] sm:$0xff] %v9491_v6  ;;  %v9501_v1 = vpop.permute.xlu0 %3421  ;;  %v1747_v6 = vadd.f32 %v1731_v24, %v1642_v60  ;;  %v12665_v24 = vld [vmem:[#allocation113_spill] sm:$0xff] }
 0x818   : > { %12652 = vst [vmem:[#allocation183_spill] sm:$0xff] %v9493_v32  ;;  %v1641_v32 = vadd.f32 %v1625_v44, %v1519_v20  ;;  %v12663_v44 = vld [vmem:[#allocation123_spill] sm:$0xff]  ;;  %v12666_v60 = vld [vmem:[#allocation129_spill] sm:$0xff] }
 0x819   : > { %12655 = vst [vmem:[#allocation182_spill] sm:$0xff] %v9501_v1  ;;  %v1942_v1 = vmul.f32 %v12660_v39, %v1900_v29  ;;  %v2108_v23 = vsel %vm2106_vm2, %v12663_v44, %v12662_v63  ;;  %v1853_v43 = vadd.f32 %v1837_v57, %v1747_v6  ;;  %v12664_v20 = vld [vmem:[#allocation27_spill] sm:$0xff]  ;;  %v2112_v12 = vsel %vm2106_vm2, %v12665_v24, %v12663_v44  ;;  %v12667_v29 = vld [vmem:[#allocation116_spill] sm:$0xff]  ;;  %v12672_v63 = vld [vmem:[#allocation122_spill] sm:$0xff] }
 0x81a   : > { %v1746_v55 = vadd.f32 %v1730_v3, %v1641_v32  ;;  %v2049_v33 = vmul.f32 %v12664_v20, %v2002_v36  ;;  %v2048_v3 = vmul.f32 %v12664_v20, %v2006_v59  ;;  %v2214_v57 = vsel %vm2212_vm3, %v12667_v29, %v12666_v60  ;;  %v12671_v59 = vld [vmem:[#allocation127_spill] sm:$0xff]  ;;  %v12673_v44 = vld [vmem:[#allocation130_spill] sm:$0xff] }
 0x81b   : > { %v1959_v6 = vadd.f32 %v1943_v13, %v1853_v43  ;;  %v2155_v35 = vmul.f32 %v12668_v61, %v2108_v23  ;;  %v2320_v20 = vsel %vm2318_vm5, %v12673_v44, %v12672_v63  ;;  %v12675_v43 = vld [vmem:[#allocation34_spill] sm:$0xff] }
 0x81c   : > { %3723 = vrot.lane.b32.xlu1 %v7241_v18, %s5480_s23  ;;  %3739 = vrot.lane.b32.xlu2 %v7201_v19, %s5480_s23  ;;  %v1852_v32 = vadd.f32 %v1836_v22, %v1746_v55  ;;  %v2154_v22 = vmul.f32 %v12668_v61, %v2112_v12  ;;  %v2218_v55 = vsel %vm2212_vm3, %v12671_v59, %v12667_v29  ;;  %v12677_v29 = vld [vmem:[#allocation37_spill] sm:$0xff] }
 0x81d   : > { %3639 = vrot.lane.b32.xlu0 %v12551_v0, %s5500_s3  ;;  %v2065_v23 = vadd.f32 %v2049_v33, %v1959_v6  ;;  %v2261_v24 = vmul.f32 %v12675_v43, %v2214_v57  ;;  %v2260_v61 = vmul.f32 %v12675_v43, %v2218_v55  ;;  %v2367_v59 = vmul.f32 %v12677_v29, %v2320_v20  ;;  %v12680_v33 = vld [vmem:[#allocation52_spill] sm:$0xff] }
 0x81e   : > { %v9540_v36 = vpop.permute.xlu1 %3537  ;;  %v9542_v39 = vpop.permute.xlu2 %3511  ;;  %v1958_v52 = vadd.f32 %v1942_v1, %v1852_v32  ;;  %v12676_v1 = vld [vmem:[#allocation132_spill] sm:$0xff]  ;;  %v9568_v57 = vmul.f32 %v12680_v33, %v12551_v0  ;;  %v9590_v43 = vmul.f32 %v12565_v51, %v7246_v4 }
 0x81f   : > { %12669 = vst [vmem:[#allocation193_spill] sm:$0xff] %v9540_v36  ;;  %v9553_v13 = vpop.permute.xlu0 %3529  ;;  %v2324_v12 = vsel %vm2318_vm5, %v12676_v1, %v12673_v44  ;;  %v2171_v32 = vadd.f32 %v2155_v35, %v2065_v23  ;;  %v12678_v36 = vld [vmem:[#allocation136_spill] sm:$0xff]  ;;  %v12683_v44 = vld [vmem:[#allocation141_spill] sm:$0xff]  ;;  %v12685_v1 = vld [vmem:[#allocation139_spill] sm:$0xff] }
 0x820   : > { %12670 = vst [vmem:[#allocation195_spill] sm:$0xff] %v9542_v39  ;;  %v2064_v60 = vadd.f32 %v2048_v3, %v1958_v52  ;;  %v12679_v39 = vld [vmem:[#allocation135_spill] sm:$0xff]  ;;  %v9572_v3 = vmul.f32 %v12680_v33, %v12554_v8  ;;  %v2366_v35 = vmul.f32 %v12677_v29, %v2324_v12  ;;  %v12681_v52 = vld [vmem:[#allocation125_spill] sm:$0xff]  ;;  %v12684_v20 = vld [vmem:[#allocation128_spill] sm:$0xff] }
 0x821   : > { %12674 = vst [vmem:[#allocation71_spill] sm:$0xff] %v9553_v13  ;;  %v2426_v63 = vsel %vm2424_vm6, %v12679_v39, %v12678_v36  ;;  %v2277_v6 = vadd.f32 %v2261_v24, %v2171_v32  ;;  %v2430_v55 = vsel %vm2424_vm6, %v12681_v52, %v12679_v39  ;;  %v12682_v36 = vld [vmem:[#allocation33_spill] sm:$0xff]  ;;  %v2531_v23 = vsel %vm1023_vm14, %v12684_v20, %v12683_v44  ;;  %v12686_v32 = vld [vmem:[#allocation160_spill] sm:$0xff] }
 0x822   : > { %v2170_v13 = vadd.f32 %v2154_v22, %v2064_v60  ;;  %v2473_v22 = vmul.f32 %v12682_v36, %v2426_v63  ;;  %v9594_v39 = vmul.f32 %v12565_v51, %v7201_v19  ;;  %v2535_v12 = vsel %vm1023_vm14, %v12685_v1, %v12684_v20  ;;  %v12687_v29 = vld [vmem:[#allocation156_spill] sm:$0xff]  ;;  %v12693_v20 = vld [vmem:[#allocation154_spill] sm:$0xff]  ;;  %v12694_v1 = vld [vmem:[#allocation153_spill] sm:$0xff] }
 0x823   : > { %v2383_v60 = vadd.f32 %v2367_v59, %v2277_v6  ;;  %v1580_v63 = vsel %vm1577_vm11, %v12687_v29, %v12686_v32  ;;  %v2472_v52 = vmul.f32 %v12682_v36, %v2430_v55  ;;  %v12692_v6 = vld [vmem:[#allocation152_spill] sm:$0xff]  ;;  %v1479_v32 = vsel %vm1472_vm10, %v12694_v1, %v12693_v20  ;;  %v12697_v36 = vld [vmem:[#allocation149_spill] sm:$0xff] }
 0x824   : > { %3830 = vrot.lane.b32.xlu1 %v7206_v15, %s5501_s5  ;;  %3846 = vrot.lane.b32.xlu2 %v7261_v56, %s5501_s5  ;;  %v2276_v24 = vadd.f32 %v2260_v61, %v2170_v13  ;;  %v12690_v13 = vld [vmem:[#allocation134_spill] sm:$0xff]  ;;  %v1584_v44 = vsel %vm1577_vm11, %v12692_v6, %v12687_v29  ;;  %v2578_v55 = vmul.f32 %v12696_v14, %v2531_v23  ;;  %v5232_v23 = vld [vmem:[%s5635_s20 + $0x280] sm:$0xff] }
 0x825   : > { %3747 = vrot.lane.b32.xlu0 %v7246_v4, %s5480_s23  ;;  %v12691_v61 = vld [vmem:[#allocation142_spill] sm:$0xff]  ;;  %v2489_v29 = vadd.f32 %v2473_v22, %v2383_v60  ;;  %v2577_v6 = vmul.f32 %v12696_v14, %v2535_v12  ;;  %v1689_v14 = vsel %vm1323_vm12, %v12703_v46, %v12702_v47  ;;  %v12704_v60 = vld [vmem:[#allocation140_spill] sm:$0xff]  ;;  %v12708_v46 = vld [vmem:[#allocation165_spill] sm:$0xff] }
 0x826   : > { %v9606_v33 = vpop.permute.xlu1 %3578  ;;  %v9608_v51 = vpop.permute.xlu2 %3619  ;;  %v2637_v59 = vsel %vm2635_vm7, %v12691_v61, %v12690_v13  ;;  %v1475_v13 = vsel %vm1472_vm10, %v12693_v20, %v12697_v36  ;;  %v2641_v1 = vsel %vm2635_vm7, %v12699_v10, %v12691_v61  ;;  %v12701_v36 = vld [vmem:[#allocation11_spill] sm:$0xff]  ;;  %v2812_v10 = vsel %vm2798_vm8, %v12704_v60, %v12553_v2 }
 0x827   : > { %12688 = vst [vmem:[#allocation65_spill] sm:$0xff] %v9606_v33  ;;  %v9623_v33 = vpop.permute.xlu0 %3467  ;;  %v2684_v7 = vmul.f32 %v12444_v28, %v2637_v59  ;;  %v1523_v53 = vmul.f32 %v12701_v36, %v1479_v32  ;;  %v1524_v12 = vmul.f32 %v12701_v36, %v1475_v13  ;;  %v2594_v59 = vadd.f32 %v2578_v55, %v2489_v29  ;;  %v12707_v32 = vld [vmem:[#allocation166_spill] sm:$0xff]  ;;  %v12709_v36 = vld [vmem:[#allocation17_spill] sm:$0xff] }
 0x828   : > { %12689 = vst [vmem:[#allocation147_spill] sm:$0xff] %v9608_v51  ;;  %v2382_v51 = vadd.f32 %v2366_v35, %v2276_v24  ;;  %v12700_v35 = vld [vmem:[#allocation9_spill] sm:$0xff]  ;;  %v1734_v38 = vmul.f32 %v12709_v36, %v1689_v14  ;;  %v9690_v14 = vmul.f32 %v12698_v25, %v7266_v49  ;;  %v2800_v25 = vsel %vm2798_vm8, %v12561_v41, %v12704_v60 }
 0x829   : > { %12695 = vst [vmem:[#allocation137_spill] sm:$0xff] %v9623_v33  ;;  %v1630_v24 = vmul.f32 %v12700_v35, %v1580_v63  ;;  %v5237_v33 = vld [vmem:[%s5635_s20 + $0x2a8] sm:$0xff]  ;;  %v1629_v20 = vmul.f32 %v12700_v35, %v1584_v44  ;;  %v12705_v63 = vld [vmem:[#allocation162_spill] sm:$0xff] }
 0x82a   : > { %v2488_v22 = vadd.f32 %v2472_v52, %v2382_v51  ;;  %v1685_v61 = vsel %vm1323_vm12, %v12702_v47, %v12705_v63  ;;  %v12706_v44 = vld [vmem:[#allocation161_spill] sm:$0xff]  ;;  %v1795_v51 = vsel %vm1788_vm13, %v12708_v46, %v12707_v32  ;;  %v2683_v52 = vmul.f32 %v12444_v28, %v2641_v1  ;;  %v12712_v1 = vld [vmem:[#allocation172_spill] sm:$0xff]  ;;  %v5247_v46 = vld [vmem:[%s5635_s20 + $0x2f8] sm:$0xff] }
 0x82b   : > { %v1791_v35 = vsel %vm1788_vm13, %v12707_v32, %v12706_v44  ;;  %v1646_v13 = vadd.f32 %v1630_v24, %v1524_v12  ;;  %v2700_v47 = vadd.f32 %v2684_v7, %v2594_v59  ;;  %v1645_v55 = vadd.f32 %v1629_v20, %v1523_v53  ;;  %v12713_v24 = vld [vmem:[#allocation168_spill] sm:$0xff]  ;;  %v12721_v60 = vld [vmem:[#allocation209_spill] sm:$0xff] }
 0x82c   : > { %3563 = vperm.xlu1 %5416, %v5232_v23   ;;  %3674 = vperm.xlu2 %5417, %v5237_v33   ;;  %v2593_v2 = vadd.f32 %v2577_v6, %v2488_v22  ;;  %v1735_v29 = vmul.f32 %v12709_v36, %v1685_v61  ;;  %v12711_v33 = vld [vmem:[#allocation19_spill] sm:$0xff]  ;;  %v1897_v23 = vsel %vm1894_vm15, %v12713_v24, %v12712_v1  ;;  %v12723_v1 = vld [vmem:[#allocation213_spill] sm:$0xff] }
 0x82d   : > { %3854 = vrot.lane.b32.xlu0 %v7266_v49, %s5501_s5  ;;  %v1840_v6 = vmul.f32 %v12711_v33, %v1795_v51  ;;  %v1841_v28 = vmul.f32 %v12711_v33, %v1791_v35  ;;  %v9686_v20 = vmul.f32 %v12569_v11, %v2812_v10  ;;  %v1750_v59 = vadd.f32 %v1734_v38, %v1645_v55  ;;  %v12715_v10 = vld [vmem:[#allocation14_spill] sm:$0xff]  ;;  %v12717_v38 = vld [vmem:[#allocation164_spill] sm:$0xff]  ;;  %v12720_v55 = vld [vmem:[#allocation175_spill] sm:$0xff] }
 0x82e   : > { %v3320_v63 = vpop.permute.xlu1 %3319  ;;  %v9672_v44 = vpop.permute.xlu2 %3351  ;;  %v2699_v61 = vadd.f32 %v2683_v52, %v2593_v2  ;;  %v1751_v32 = vadd.f32 %v1735_v29, %v1646_v13  ;;  %v9699_v51 = vadd.f32 %v9568_v57, %v2700_v47  ;;  %v1947_v36 = vmul.f32 %v12715_v10, %v1897_v23  ;;  %v5242_v33 = vld [vmem:[%s5635_s20 + $0x2d0] sm:$0xff]  ;;  %v12719_v47 = vld [vmem:[#allocation167_spill] sm:$0xff] }
 0x82f   : > { %12710 = vst [vmem:[#allocation64_spill] sm:$0xff] %v9672_v44  ;;  %v3340_v7 = vsel %vm3327_vm4, %v3320_v63, %v9445_v48  ;;  %v9683_v53 = vpop.permute.xlu0 %3311  ;;  %v1901_v2 = vsel %vm1894_vm15, %v12717_v38, %v12713_v24  ;;  %v1856_v52 = vadd.f32 %v1840_v6, %v1750_v59  ;;  %v2007_v41 = vsel %vm2000_vm1, %v12720_v55, %v12719_v47  ;;  %v12722_v29 = vld [vmem:[#allocation211_spill] sm:$0xff] }
 0x830   : > { %12714 = vst [vmem:[#allocation38_spill] sm:$0xff] %v9683_v53  ;;  %v3328_v22 = vsel %vm3327_vm4, %v9683_v53, %v3320_v63  ;;  %v3372_v12 = vmul.f32 %v9672_v44, %v3340_v7  ;;  %v1857_v13 = vadd.f32 %v1841_v28, %v1751_v32  ;;  %v12724_v23 = vld [vmem:[#allocation203_spill] sm:$0xff]  ;;  %v9735_v6 = vmul.f32 %v12569_v11, %v2800_v25  ;;  %v12730_v25 = vld [vmem:[#allocation26_spill] sm:$0xff]  ;;  %v12741_v53 = vld [vmem:[#allocation212_spill] sm:$0xff] }
 0x831   : > { %v3371_v35 = vmul.f32 %v9672_v44, %v3328_v22  ;;  %v1476_v24 = vsel %vm1472_vm10, %v12724_v23, %v12723_v1  ;;  %v12725_v28 = vld [vmem:[#allocation151_spill] sm:$0xff]  ;;  %v2003_v22 = vsel %vm2000_vm1, %v12719_v47, %v12502_v34  ;;  %v2052_v34 = vmul.f32 %v12730_v25, %v2007_v41  ;;  %v12735_v41 = vld [vmem:[#allocation225_spill] sm:$0xff] }
 0x832   : > { %v9707_v63 = vadd.f32 %v3372_v12, %v9345_v37  ;;  %v1581_v37 = vsel %vm1577_vm11, %v12722_v29, %v12721_v60  ;;  %v9741_v7 = vsel %vm948_vm9, %v12571_v9, %v12725_v28  ;;  %v1946_v12 = vmul.f32 %v12715_v10, %v1901_v2  ;;  %v12728_v32 = vld [vmem:[#allocation219_spill] sm:$0xff]  ;;  %v12733_v2 = vld [vmem:[#allocation13_spill] sm:$0xff]  ;;  %v12734_v60 = vld [vmem:[#allocation216_spill] sm:$0xff] }
 0x833   : > { %v9715_v57 = vadd.f32 %v3371_v35, %v9342_v5  ;;  %v9732_v5 = vadd.f32 %v9572_v3, %v2699_v61  ;;  %v1963_v59 = vadd.f32 %v1947_v36, %v1857_v13  ;;  %v12726_v3 = vld [vmem:[#allocation178_spill] sm:$0xff]  ;;  %v12727_v61 = vld [vmem:[#allocation217_spill] sm:$0xff]  ;;  %v12732_v36 = vld [vmem:[#allocation16_spill] sm:$0xff]  ;;  %v2053_v47 = vmul.f32 %v12730_v25, %v2003_v22 }
 0x834   : > { %12716 = vst [vmem:[#allocation72_spill] sm:$0xff] %v9707_v63  ;;  %3895 = vperm.xlu1 %5416, %v5247_v46   ;;  %3613 = vrot.lane.b32.xlu2 %v12595_v26, %s5500_s3  ;;  %v2113_v11 = vsel %vm2106_vm2, %v12508_v27, %v12726_v3  ;;  %v1686_v9 = vsel %vm1323_vm12, %v12728_v32, %v12727_v61  ;;  %v12736_v61 = vld [vmem:[#allocation215_spill] sm:$0xff]  ;;  %v12739_v22 = vld [vmem:[#allocation10_spill] sm:$0xff] }
 0x835   : > { %12718 = vst [vmem:[#allocation145_spill] sm:$0xff] %v9715_v57  ;;  %3784 = vperm.xlu0 %5415, %v5242_v33   ;;  %v12731_v33 = vld [vmem:[#allocation173_spill] sm:$0xff]  ;;  %v1634_v38 = vmul.f32 %v12732_v36, %v1581_v37  ;;  %v1528_v27 = vmul.f32 %v12733_v2, %v1476_v24  ;;  %v1962_v55 = vadd.f32 %v1946_v12, %v1856_v52 }
 0x836   : > { %v9756_v35 = vpop.permute.xlu1 %3427  ;;  %v9758_v46 = vpop.permute.xlu2 %3684  ;;  %v2109_v10 = vsel %vm2106_vm2, %v12726_v3, %v12731_v33  ;;  %v1585_v1 = vsel %vm1577_vm11, %v12734_v60, %v12722_v29  ;;  %v1792_v44 = vsel %vm1788_vm13, %v12736_v61, %v12735_v41  ;;  %v12737_v3 = vld [vmem:[#allocation180_spill] sm:$0xff]  ;;  %v2158_v24 = vmul.f32 %v12515_v16, %v2113_v11 }
 0x837   : > { %12729 = vst [vmem:[#allocation202_spill] sm:$0xff] %v9758_v46  ;;  %v9767_v13 = vpop.permute.xlu0 %3419  ;;  %v12738_v33 = vld [vmem:[#allocation176_spill] sm:$0xff]  ;;  %v2215_v52 = vsel %vm2212_vm3, %v12737_v3, %v12524_v17  ;;  %v1739_v12 = vmul.f32 %v12739_v22, %v1686_v9  ;;  %v2069_v29 = vadd.f32 %v2053_v47, %v1963_v59  ;;  %v2159_v25 = vmul.f32 %v12515_v16, %v2109_v10  ;;  %v12742_v17 = vld [vmem:[#allocation21_spill] sm:$0xff] }
 0x838   : > { %v2219_v37 = vsel %vm2212_vm3, %v12738_v33, %v12737_v3  ;;  %v12740_v60 = vld [vmem:[#allocation208_spill] sm:$0xff]  ;;  %v1690_v11 = vsel %vm1323_vm12, %v12741_v53, %v12728_v32  ;;  %v2068_v33 = vadd.f32 %v2052_v34, %v1962_v55  ;;  %v1650_v48 = vadd.f32 %v1634_v38, %v1528_v27  ;;  %v12743_v9 = vld [vmem:[#allocation25_spill] sm:$0xff]  ;;  %v12746_v27 = vld [vmem:[#allocation223_spill] sm:$0xff] }
 0x839   : > { %v1480_v41 = vsel %vm1472_vm10, %v12740_v60, %v12724_v23  ;;  %v1633_v46 = vmul.f32 %v12732_v36, %v1585_v1  ;;  %v1845_v3 = vmul.f32 %v12742_v17, %v1792_v44  ;;  %v2264_v59 = vmul.f32 %v12743_v9, %v2219_v37  ;;  %v12744_v10 = vld [vmem:[#allocation220_spill] sm:$0xff]  ;;  %v12745_v38 = vld [vmem:[#allocation221_spill] sm:$0xff]  ;;  %v12749_v37 = vld [vmem:[#allocation231_spill] sm:$0xff] }
 0x83a   : > { %v2265_v16 = vmul.f32 %v12743_v9, %v2215_v52  ;;  %v1796_v23 = vsel %vm1788_vm13, %v12744_v10, %v12736_v61  ;;  %v2174_v53 = vadd.f32 %v2158_v24, %v2068_v33  ;;  %v1527_v32 = vmul.f32 %v12733_v2, %v1480_v41  ;;  %v12747_v55 = vld [vmem:[#allocation228_spill] sm:$0xff]  ;;  %v12748_v61 = vld [vmem:[#allocation229_spill] sm:$0xff]  ;;  %v12751_v52 = vld [vmem:[#allocation186_spill] sm:$0xff] }
 0x83b   : > { %v1738_v44 = vmul.f32 %v12739_v22, %v1690_v11  ;;  %v1755_v34 = vadd.f32 %v1739_v12, %v1650_v48  ;;  %v2175_v36 = vadd.f32 %v2159_v25, %v2069_v29  ;;  %v1898_v47 = vsel %vm1894_vm15, %v12746_v27, %v12745_v38  ;;  %v12752_v22 = vld [vmem:[#allocation179_spill] sm:$0xff]  ;;  %v12755_v10 = vld [vmem:[#allocation224_spill] sm:$0xff] }
 0x83c   : > { %3637 = vrot.lane.b32.xlu1 %v12598_v40, %s5500_s3  ;;  %3721 = vrot.lane.b32.xlu2 %v7181_v42, %s5480_s23  ;;  %v1902_v1 = vsel %vm1894_vm15, %v12747_v55, %v12746_v27  ;;  %v2004_v2 = vsel %vm2000_vm1, %v12749_v37, %v12748_v61  ;;  %v2321_v12 = vsel %vm2318_vm5, %v12752_v22, %v12751_v52  ;;  %v12754_v33 = vld [vmem:[#allocation187_spill] sm:$0xff]  ;;  %v12756_v27 = vld [vmem:[#allocation237_spill] sm:$0xff]  ;;  %vm12824_vm12 = vcmp.lt.s32.totalorder %v5914_v50, 108 }
 0x83d   : > { %3629 = vrot.lane.b32.xlu0 %v12599_v58, %s5500_s3  ;;  %v1649_v29 = vadd.f32 %v1633_v46, %v1527_v32  ;;  %v1844_v25 = vmul.f32 %v12742_v17, %v1796_v23  ;;  %v1861_v60 = vadd.f32 %v1845_v3, %v1755_v34  ;;  %v2281_v11 = vadd.f32 %v2265_v16, %v2175_v36  ;;  %v12757_v55 = vld [vmem:[#allocation227_spill] sm:$0xff]  ;;  %v12758_v3 = vld [vmem:[#allocation24_spill] sm:$0xff]  ;;  %vm12828_vm10 = vmmov %vm12824_vm12 }
 0x83e   : > { %v9825_v48 = vpop.permute.xlu1 %3535  ;;  %v9827_v24 = vpop.permute.xlu2 %3425  ;;  %v2325_v9 = vsel %vm2318_vm5, %v12754_v33, %v12752_v22  ;;  %v2008_v38 = vsel %vm2000_vm1, %v12755_v10, %v12749_v37  ;;  %v2110_v46 = vsel %vm2106_vm2, %v12757_v55, %v12756_v27  ;;  %v1951_v23 = vmul.f32 %v12758_v3, %v1898_v47  ;;  %v12759_v32 = vld [vmem:[#allocation20_spill] sm:$0xff]  ;;  %v12761_v22 = vld [vmem:[#allocation185_spill] sm:$0xff]  ;;  %v12762_v33 = vld [vmem:[#allocation190_spill] sm:$0xff] }
 0x83f   : > { %12750 = vst [vmem:[#allocation45_spill] sm:$0xff] %v9827_v24  ;;  %v9834_v41 = vpop.permute.xlu0 %3527  ;;  %v1754_v17 = vadd.f32 %v1738_v44, %v1649_v29  ;;  %v1950_v16 = vmul.f32 %v12758_v3, %v1902_v1  ;;  %v2057_v34 = vmul.f32 %v12759_v32, %v2004_v2  ;;  %v12760_v36 = vld [vmem:[#allocation36_spill] sm:$0xff]  ;;  %v2280_v52 = vadd.f32 %v2264_v59, %v2174_v53  ;;  %v12764_v1 = vld [vmem:[#allocation31_spill] sm:$0xff] }
 0x840   : > { %12753 = vst [vmem:[#allocation80_spill] sm:$0xff] %v9834_v41  ;;  %v2371_v61 = vmul.f32 %v12760_v36, %v2321_v12  ;;  %v2427_v37 = vsel %vm2424_vm6, %v12762_v33, %v12761_v22  ;;  %v12763_v10 = vld [vmem:[#allocation232_spill] sm:$0xff]  ;;  %v1967_v29 = vadd.f32 %v1951_v23, %v1861_v60  ;;  %v2056_v47 = vmul.f32 %v12759_v32, %v2008_v38  ;;  %v12765_v59 = vld [vmem:[#allocation235_spill] sm:$0xff]  ;;  %v12770_v23 = vld [vmem:[#allocation233_spill] sm:$0xff] }
 0x841   : > { %v2114_v27 = vsel %vm2106_vm2, %v12763_v10, %v12757_v55  ;;  %v1860_v44 = vadd.f32 %v1844_v25, %v1754_v17  ;;  %v2163_v3 = vmul.f32 %v12764_v1, %v2110_v46  ;;  %v2370_v2 = vmul.f32 %v12760_v36, %v2325_v9  ;;  %v12766_v53 = vld [vmem:[#allocation240_spill] sm:$0xff]  ;;  %v12769_v9 = vld [vmem:[#allocation39_spill] sm:$0xff]  ;;  %v12771_v36 = vld [vmem:[#allocation241_spill] sm:$0xff] }
 0x842   : > { %v2387_v12 = vadd.f32 %v2371_v61, %v2281_v11  ;;  %v2220_v63 = vsel %vm2212_vm3, %v12766_v53, %v12765_v59  ;;  %v12767_v25 = vld [vmem:[#allocation196_spill] sm:$0xff]  ;;  %v2073_v46 = vadd.f32 %v2057_v34, %v1967_v29  ;;  %v2162_v11 = vmul.f32 %v12764_v1, %v2114_v27  ;;  %v12772_v61 = vld [vmem:[#allocation243_spill] sm:$0xff] }
 0x843   : > { %v12768_v60 = vld [vmem:[#allocation192_spill] sm:$0xff]  ;;  %v1966_v55 = vadd.f32 %v1950_v16, %v1860_v44  ;;  %v2477_v17 = vmul.f32 %v12769_v9, %v2427_v37  ;;  %v2216_v32 = vsel %vm2212_vm3, %v12765_v59, %v12770_v23  ;;  %v2322_v22 = vsel %vm2318_vm5, %v12772_v61, %v12771_v36  ;;  %v12776_v37 = vld [vmem:[#allocation189_spill] sm:$0xff]  ;;  %v12777_v59 = vld [vmem:[#allocation35_spill] sm:$0xff] }
 0x844   : > { %3745 = vrot.lane.b32.xlu1 %v12551_v0, %s5480_s23  ;;  %3828 = vrot.lane.b32.xlu2 %v7241_v18, %s5501_s5  ;;  %v2532_v38 = vsel %vm1023_vm14, %v12768_v60, %v12767_v25  ;;  %v12773_v16 = vld [vmem:[#allocation236_spill] sm:$0xff]  ;;  %v2431_v44 = vsel %vm2424_vm6, %v12776_v37, %v12762_v33  ;;  %v2179_v1 = vadd.f32 %v2163_v3, %v2073_v46  ;;  %v12778_v36 = vld [vmem:[#allocation42_spill] sm:$0xff]  ;;  %v12779_v24 = vld [vmem:[#allocation239_spill] sm:$0xff]  ;;  %vm3433_vm11 = vcmp.lt.s32.totalorder %v5914_v50, 106 }
 0x845   : > { %3737 = vrot.lane.b32.xlu0 %v12554_v8, %s5480_s23  ;;  %v2326_v34 = vsel %vm2318_vm5, %v12773_v16, %v12772_v61  ;;  %v2072_v29 = vadd.f32 %v2056_v47, %v1966_v55  ;;  %v2268_v53 = vmul.f32 %v12777_v59, %v2220_v63  ;;  %v2386_v23 = vadd.f32 %v2370_v2, %v2280_v52  ;;  %v12780_v61 = vld [vmem:[#allocation244_spill] sm:$0xff]  ;;  %v12782_v3 = vld [vmem:[#allocation30_spill] sm:$0xff]  ;;  %v12784_v37 = vld [vmem:[#allocation247_spill] sm:$0xff] }
 0x846   : > { %v9891_v10 = vpop.permute.xlu1 %3643  ;;  %v9893_v27 = vpop.permute.xlu2 %3533  ;;  %v2582_v57 = vmul.f32 %v12778_v36, %v2532_v38  ;;  %v2432_v16 = vsel %vm2424_vm6, %v12780_v61, %v12779_v24  ;;  %v2269_v47 = vmul.f32 %v12777_v59, %v2216_v32  ;;  %v2374_v63 = vmul.f32 %v12782_v3, %v2326_v34  ;;  %v12783_v52 = vld [vmem:[#allocation188_spill] sm:$0xff]  ;;  %v12788_v59 = vld [vmem:[#allocation191_spill] sm:$0xff]  ;;  %vm12861_vm3 = vmmov %vm12828_vm10 }
 0x847   : > { %12774 = vst [vmem:[#allocation79_spill] sm:$0xff] %v9891_v10  ;;  %v9900_v25 = vpop.permute.xlu0 %3635  ;;  %v12781_v10 = vld [vmem:[#allocation249_spill] sm:$0xff]  ;;  %v2178_v33 = vadd.f32 %v2162_v11, %v2072_v29  ;;  %v2375_v55 = vmul.f32 %v12782_v3, %v2322_v22  ;;  %v2536_v2 = vsel %vm1023_vm14, %v12783_v52, %v12768_v60  ;;  %v2476_v38 = vmul.f32 %v12769_v9, %v2431_v44  ;;  %v12785_v61 = vld [vmem:[#allocation252_spill] sm:$0xff]  ;;  %v12787_v22 = vld [vmem:[#allocation198_spill] sm:$0xff] }
 0x848   : > { %12775 = vst [vmem:[#allocation58_spill] sm:$0xff] %v9893_v27  ;;  %v2428_v27 = vsel %vm2424_vm6, %v12779_v24, %v12781_v10  ;;  %v2493_v46 = vadd.f32 %v2477_v17, %v2387_v12  ;;  %v2537_v24 = vsel %vm1023_vm14, %v12785_v61, %v12784_v37  ;;  %v2285_v10 = vadd.f32 %v2269_v47, %v2179_v1  ;;  %v12786_v32 = vld [vmem:[#allocation40_spill] sm:$0xff]  ;;  %v12789_v52 = vld [vmem:[#allocation255_spill] sm:$0xff]  ;;  %v12795_v61 = vld [vmem:[#allocation253_spill] sm:$0xff] }
 0x849   : > { %v2284_v11 = vadd.f32 %v2268_v53, %v2178_v33  ;;  %v2480_v29 = vmul.f32 %v12786_v32, %v2432_v16  ;;  %v2481_v34 = vmul.f32 %v12786_v32, %v2428_v27  ;;  %v2638_v3 = vsel %vm2635_vm7, %v12788_v59, %v12787_v22  ;;  %v12790_v9 = vld [vmem:[#allocation248_spill] sm:$0xff]  ;;  %v12791_v17 = vld [vmem:[#allocation199_spill] sm:$0xff]  ;;  %vm12863_vm5 = vmmov %vm12861_vm3 }
 0x84a   : > { %v2598_v60 = vadd.f32 %v2582_v57, %v2493_v46  ;;  %v2643_v12 = vsel %vm2635_vm7, %v12790_v9, %v12789_v52  ;;  %v2642_v27 = vsel %vm2635_vm7, %v12791_v17, %v12788_v59  ;;  %v2391_v1 = vadd.f32 %v2375_v55, %v2285_v10  ;;  %v12792_v57 = vld [vmem:[#allocation47_spill] sm:$0xff]  ;;  %v12793_v16 = vld [vmem:[#allocation148_spill] sm:$0xff]  ;;  %v12794_v46 = vld [vmem:[#allocation245_spill] sm:$0xff] }
 0x84b   : > { %v2390_v44 = vadd.f32 %v2374_v63, %v2284_v11  ;;  %v2585_v53 = vmul.f32 %v12792_v57, %v2537_v24  ;;  %v2917_v33 = vsel %vm948_vm9, %v12725_v28, %v12793_v16  ;;  %v2492_v47 = vadd.f32 %v2476_v38, %v2386_v23  ;;  %v12797_v11 = vld [vmem:[#allocation49_spill] sm:$0xff]  ;;  %v12798_v23 = vld [vmem:[#allocation44_spill] sm:$0xff] }
 0x84c   : > { %3852 = vrot.lane.b32.xlu1 %v7246_v4, %s5501_s5  ;;  %3936 = vrot.lane.b32.xlu2 %v7206_v15, %s5502_s6  ;;  %v2533_v15 = vsel %vm1023_vm14, %v12784_v37, %v12794_v46  ;;  %v2639_v63 = vsel %vm2635_vm7, %v12789_v52, %v12795_v61  ;;  %v2688_v10 = vmul.f32 %v12797_v11, %v2638_v3  ;;  %v12806_v46 = vld [vmem:[#allocation197_spill] sm:$0xff]  ;;  %vm3539_vm13 = vcmp.lt.s32.totalorder %v5914_v50, 90  ;;  %vm12874_vm7 = vmmov %vm12861_vm3 }
 0x84d   : > { %3844 = vrot.lane.b32.xlu0 %v7201_v19, %s5501_s5  ;;  %v2496_v32 = vadd.f32 %v2480_v29, %v2390_v44  ;;  %v2497_v28 = vadd.f32 %v2481_v34, %v2391_v1  ;;  %v2691_v38 = vmul.f32 %v12798_v23, %v2643_v12  ;;  %v2863_v37 = vadd.f32 %v9686_v20, %v9699_v51  ;;  %v5236_v34 = vld [vmem:[%s5635_s20 + $0x2a0] sm:$0xff]  ;;  %v12800_v51 = vld [vmem:[#allocation259_spill] sm:$0xff]  ;;  %v12801_v1 = vld [vmem:[#allocation258_spill] sm:$0xff] }
 0x84e   : > { %v9956_v55 = vpop.permute.xlu1 %3573  ;;  %v9958_v24 = vpop.permute.xlu2 %3641  ;;  %v2951_v59 = vmul.f32 %v12584_v30, %v9741_v7  ;;  %v2581_v52 = vmul.f32 %v12778_v36, %v2536_v2  ;;  %v2687_v9 = vmul.f32 %v12797_v11, %v2642_v27  ;;  %v2704_v17 = vadd.f32 %v2688_v10, %v2598_v60  ;;  %v12802_v36 = vld [vmem:[#allocation204_spill] sm:$0xff]  ;;  %v12803_v2 = vld [vmem:[#allocation194_spill] sm:$0xff]  ;;  %v12804_v27 = vld [vmem:[#allocation201_spill] sm:$0xff] }
 0x84f   : > { %12796 = vst [vmem:[#allocation150_spill] sm:$0xff] %v9956_v55  ;;  %v9962_v22 = vpop.permute.xlu0 %3462  ;;  %v2586_v16 = vmul.f32 %v12792_v57, %v2533_v15  ;;  %v2601_v3 = vadd.f32 %v2585_v53, %v2496_v32  ;;  %v2692_v29 = vmul.f32 %v12798_v23, %v2639_v63  ;;  %v2862_v12 = vadd.f32 %v9735_v6, %v9732_v5  ;;  %v12807_v15 = vld [vmem:[#allocation200_spill] sm:$0xff]  ;;  %v12808_v10 = vld [vmem:[#allocation51_spill] sm:$0xff] }
 0x850   : > { %12799 = vst [vmem:[#allocation143_spill] sm:$0xff] %v9962_v22  ;;  %v2952_v44 = vmul.f32 %v12584_v30, %v2917_v33  ;;  %v2597_v20 = vadd.f32 %v2581_v52, %v2492_v47  ;;  %v2802_v7 = vsel %vm2798_vm8, %v12801_v1, %v12800_v51  ;;  %v2801_v60 = vsel %vm2798_vm8, %v12803_v2, %v12802_v36  ;;  %v12805_v33 = vld [vmem:[#allocation256_spill] sm:$0xff]  ;;  %v12811_v52 = vld [vmem:[#allocation263_spill] sm:$0xff] }
 0x851   : > { %v2813_v57 = vsel %vm2798_vm8, %v12802_v36, %v12804_v27  ;;  %v2602_v53 = vadd.f32 %v2586_v16, %v2497_v28  ;;  %v2707_v5 = vadd.f32 %v2691_v38, %v2601_v3  ;;  %v9988_v6 = vadd.f32 %v2951_v59, %v2862_v12  ;;  %v12809_v28 = vld [vmem:[#allocation55_spill] sm:$0xff]  ;;  %v12814_v12 = vld [vmem:[#allocation41_spill] sm:$0xff] }
 0x852   : > { %v2703_v30 = vadd.f32 %v2687_v9, %v2597_v20  ;;  %v2814_v47 = vsel %vm2798_vm8, %v12800_v51, %v12805_v33  ;;  %v2918_v61 = vsel %vm948_vm9, %v12807_v15, %v12806_v46  ;;  %v2761_v63 = vadd.f32 %v9590_v43, %v2704_v17  ;;  %v12812_v9 = vld [vmem:[#allocation254_spill] sm:$0xff]  ;;  %v12816_v36 = vld [vmem:[#allocation261_spill] sm:$0xff]  ;;  %vm12876_vm8 = vmmov %vm12861_vm3 }
 0x853   : > { %v2708_v11 = vadd.f32 %v2692_v29, %v2602_v53  ;;  %v2854_v32 = vmul.f32 %v12808_v10, %v2802_v7  ;;  %v2850_v23 = vmul.f32 %v12809_v28, %v2801_v60  ;;  %v2851_v38 = vmul.f32 %v12809_v28, %v2813_v57  ;;  %v12813_v29 = vld [vmem:[#allocation32_spill] sm:$0xff]  ;;  %v12815_v20 = vld [vmem:[#allocation74_spill] sm:$0xff] }
 0x854   : > { %3960 = vrot.lane.b32.xlu1 %v7266_v49, %s5502_s6  ;;  %3669 = vperm.xlu2 %5417, %v5236_v34   ;;  %v12810_v49 = vld [vmem:[#allocation205_spill] sm:$0xff]  ;;  %v2907_v43 = vsel %vm948_vm9, %v12812_v9, %v12811_v52  ;;  %v2855_v3 = vmul.f32 %v12808_v10, %v2814_v47  ;;  %v3012_v51 = vsel %vm3009_vm0, %v12815_v20, %v12814_v12  ;;  %vm3645_vm15 = vcmp.lt.s32.totalorder %v5914_v50, 89 }
 0x855   : > { %3952 = vrot.lane.b32.xlu0 %v7261_v56, %s5502_s6  ;;  %v2906_v59 = vsel %vm948_vm9, %v12810_v49, %v12807_v15  ;;  %v2764_v56 = vadd.f32 %v9632_v21, %v2707_v5  ;;  %v2959_v34 = vmul.f32 %v12813_v29, %v2907_v43  ;;  %v2760_v7 = vadd.f32 %v9594_v39, %v2703_v30  ;;  %v5246_v39 = vld [vmem:[%s5635_s20 + $0x2f0] sm:$0xff]  ;;  %v5251_v30 = vld [vmem:[%s5635_s20 + $0x318] sm:$0xff]  ;;  %v5241_v10 = vld [vmem:[%s5635_s20 + $0x2c8] sm:$0xff] }
 0x856   : > { %v10014_v17 = vpop.permute.xlu1 %3417  ;;  %v10016_v16 = vpop.permute.xlu2 %3749  ;;  %v2919_v2 = vsel %vm948_vm9, %v12811_v52, %v12816_v36  ;;  %v2955_v21 = vmul.f32 %v12578_v62, %v2906_v59  ;;  %v3024_v60 = vsel %vm3009_vm0, %v12814_v12, %v12585_v54  ;;  %v2765_v27 = vadd.f32 %v9690_v14, %v2708_v11  ;;  %v12817_v14 = vld [vmem:[#allocation90_spill] sm:$0xff]  ;;  %v12825_v52 = vld [vmem:[#allocation76_spill] sm:$0xff]  ;;  %v12826_v9 = vld [vmem:[#allocation81_spill] sm:$0xff] }
 0x857   : > { %v10025_v1 = vpop.permute.xlu0 %3401  ;;  %v2870_v57 = vadd.f32 %v2854_v32, %v2764_v56  ;;  %v2960_v53 = vmul.f32 %v12813_v29, %v2919_v2  ;;  %v2956_v5 = vmul.f32 %v12578_v62, %v2918_v61  ;;  %v10042_v33 = vadd.f32 %v2952_v44, %v2863_v37  ;;  %v12819_v61 = vld [vmem:[#allocation97_spill] sm:$0xff]  ;;  %v12821_v44 = vld [vmem:[#allocation114_spill] sm:$0xff]  ;;  %v12833_v2 = vld [vmem:[#allocation68_spill] sm:$0xff] }
 0x858   : > { %v2866_v47 = vadd.f32 %v2850_v23, %v2760_v7  ;;  %v2867_v46 = vadd.f32 %v2851_v38, %v2761_v63  ;;  %v3061_v15 = vmul.f32 %v12586_v45, %v3012_v51  ;;  %v2871_v28 = vadd.f32 %v2855_v3, %v2765_v27  ;;  %v12822_v38 = vld [vmem:[#allocation93_spill] sm:$0xff]  ;;  %v12823_v59 = vld [vmem:[#allocation126_spill] sm:$0xff]  ;;  %v12827_v3 = vld [vmem:[#allocation95_spill] sm:$0xff] }
 0x859   : > { %v3062_v49 = vmul.f32 %v12586_v45, %v3024_v60  ;;  %v10047_v54 = vadd.f32 %v2959_v34, %v2870_v57  ;;  %vm12818_vm9 = vcmp.lt.s32.totalorder %v5914_v50, 109  ;;  %v3013_v43 = vsel %vm3009_vm0, %v12826_v9, %v12825_v52  ;;  %v12829_v34 = vld [vmem:[#allocation146_spill] sm:$0xff]  ;;  %v12832_v36 = vld [vmem:[#allocation77_spill] sm:$0xff] }
 0x85a   : > { %v3118_v11 = vsel %vm12818_vm9, %v12591_v31, %v12817_v14  ;;  %v2971_v62 = vadd.f32 %v2955_v21, %v2866_v47  ;;  %vm12820_vm14 = vmmov %vm12818_vm9  ;;  %v2972_v32 = vadd.f32 %v2956_v5, %v2867_v46  ;;  %v10058_v23 = vadd.f32 %v2960_v53, %v2871_v28  ;;  %v12834_v27 = vld [vmem:[#allocation206_spill] sm:$0xff]  ;;  %v12838_v46 = vld [vmem:[#allocation29_spill] sm:$0xff] }
 0x85b   : > { %v3130_v37 = vsel %vm12820_vm14, %v12817_v14, %v12819_v61  ;;  %v3167_v63 = vmul.f32 %v12821_v44, %v3118_v11  ;;  %v3224_v31 = vsel %vm12824_vm12, %v12823_v59, %v12822_v38  ;;  %v3236_v29 = vsel %vm12828_vm10, %v12822_v38, %v12827_v3  ;;  %v12835_v57 = vld [vmem:[#allocation238_spill] sm:$0xff]  ;;  %v12840_v11 = vld [vmem:[#allocation251_spill] sm:$0xff]  ;;  %v12844_v59 = vld [vmem:[#allocation69_spill] sm:$0xff] }
 0x85c   : > { %3890 = vperm.xlu1 %5416, %v5246_v39   ;;  %4001 = vperm.xlu2 %5417, %v5251_v30   ;;  %v3168_v45 = vmul.f32 %v12821_v44, %v3130_v37  ;;  %v3077_v56 = vadd.f32 %v3061_v15, %v2971_v62  ;;  %v3273_v12 = vmul.f32 %v12829_v34, %v3224_v31  ;;  %v12837_v30 = vld [vmem:[#allocation246_spill] sm:$0xff]  ;;  %v12842_v44 = vld [vmem:[#allocation171_spill] sm:$0xff]  ;;  %vm12852_vm1 = vmmov %vm12818_vm9  ;;  %vm12903_vm9 = vcmp.lt.s32.totalorder %v5914_v50, 88 }
 0x85d   : > { %3779 = vperm.xlu0 %5415, %v5241_v10   ;;  %v3078_v7 = vadd.f32 %v3062_v49, %v2972_v32  ;;  %v3011_v21 = vsel %vm3009_vm0, %v12833_v2, %v12832_v36  ;;  %v3274_v60 = vmul.f32 %v12829_v34, %v3236_v29  ;;  %v3330_v53 = vsel %vm3327_vm4, %v12835_v57, %v12834_v27  ;;  %v12839_v10 = vld [vmem:[#allocation82_spill] sm:$0xff]  ;;  %v12843_v32 = vld [vmem:[#allocation137_spill] sm:$0xff]  ;;  %v12845_v29 = vld [vmem:[#allocation195_spill] sm:$0xff] }
 0x85e   : > { %v10074_v20 = vpop.permute.xlu1 %3525  ;;  %v10076_v51 = vpop.permute.xlu2 %3679  ;;  %v3183_v39 = vadd.f32 %v3167_v63, %v3077_v56  ;;  %v3342_v47 = vsel %vm3327_vm4, %v12834_v27, %v12837_v30  ;;  %v3379_v15 = vmul.f32 %v12838_v46, %v3330_v53  ;;  %v3057_v28 = vmul.f32 %v12839_v10, %v3011_v21  ;;  %v12841_v62 = vld [vmem:[#allocation182_spill] sm:$0xff]  ;;  %v12847_v27 = vld [vmem:[#allocation260_spill] sm:$0xff]  ;;  %vm12904_vm14 = vmmov %vm12903_vm9 }
 0x85f   : > { %12830 = vst [vmem:[#allocation207_spill] sm:$0xff] %v10074_v20  ;;  %v10087_v5 = vpop.permute.xlu0 %3509  ;;  %v3184_v49 = vadd.f32 %v3168_v45, %v3078_v7  ;;  %v3380_v14 = vmul.f32 %v12838_v46, %v3342_v47  ;;  %v3436_v61 = vsel %vm3433_vm11, %v12841_v62, %v12840_v11  ;;  %v3448_v63 = vsel %vm3433_vm11, %v12840_v11, %v12842_v44  ;;  %vm12914_vm10 = vmmov %vm12903_vm9 }
 0x860   : > { %12831 = vst [vmem:[#allocation53_spill] sm:$0xff] %v10076_v51  ;;  %v3289_v37 = vadd.f32 %v3273_v12, %v3183_v39  ;;  %v3485_v38 = vmul.f32 %v12843_v32, %v3436_v61  ;;  %v3023_v45 = vsel %vm3009_vm0, %v12832_v36, %v12844_v59  ;;  %v3486_v9 = vmul.f32 %v12843_v32, %v3448_v63  ;;  %v12846_v36 = vld [vmem:[#allocation87_spill] sm:$0xff] }
 0x861   : > { %12836 = vst [vmem:[#allocation262_spill] sm:$0xff] %v10087_v5  ;;  %v3290_v31 = vadd.f32 %v3274_v60, %v3184_v49  ;;  %v3542_v56 = vsel %vm3539_vm13, %v9834_v41, %v9825_v48  ;;  %v3554_v34 = vsel %vm3539_vm13, %v9825_v48, %v12845_v29  ;;  %v3058_v7 = vmul.f32 %v12839_v10, %v3023_v45  ;;  %v12850_v10 = vld [vmem:[#allocation48_spill] sm:$0xff]  ;;  %v12851_v49 = vld [vmem:[#allocation109_spill] sm:$0xff]  ;;  %v12883_v29 = vld [vmem:[#allocation131_spill] sm:$0xff] }
 0x862   : > { %v3395_v3 = vadd.f32 %v3379_v15, %v3289_v37  ;;  %v3591_v12 = vmul.f32 %v9956_v55, %v3542_v56  ;;  %v3065_v2 = vmul.f32 %v12846_v36, %v3013_v43  ;;  %v3592_v60 = vmul.f32 %v9956_v55, %v3554_v34  ;;  %v12856_v56 = vld [vmem:[#allocation84_spill] sm:$0xff]  ;;  %v12884_v32 = vld [vmem:[#allocation183_spill] sm:$0xff] }
 0x863   : > { %v3396_v21 = vadd.f32 %v3380_v14, %v3290_v31  ;;  %v3025_v48 = vsel %vm3009_vm0, %v12825_v52, %v12847_v27  ;;  %v3073_v53 = vadd.f32 %v3057_v28, %v9988_v6  ;;  %v3119_v14 = vsel %vm12852_vm1, %v12851_v49, %v12850_v10  ;;  %v12854_v28 = vld [vmem:[#allocation43_spill] sm:$0xff]  ;;  %vm12855_vm0 = vmmov %vm12852_vm1  ;;  %v12862_v27 = vld [vmem:[#allocation86_spill] sm:$0xff] }
 0x864   : > { %3735 = vrot.lane.b32.xlu1 %v12599_v58, %s5480_s23  ;;  %3743 = vrot.lane.b32.xlu2 %v12598_v40, %s5480_s23  ;;  %v3501_v39 = vadd.f32 %v3485_v38, %v3395_v3  ;;  %v3066_v43 = vmul.f32 %v12846_v36, %v3025_v48  ;;  %v3131_v61 = vsel %vm12855_vm0, %v12850_v10, %v12854_v28  ;;  %v12857_v3 = vld [vmem:[#allocation102_spill] sm:$0xff]  ;;  %vm12858_vm2 = vmmov %vm12855_vm0  ;;  %v12860_v36 = vld [vmem:[#allocation119_spill] sm:$0xff]  ;;  %vm3856_vm12 = vcmp.lt.s32.totalorder %v5914_v50, 87 }
 0x865   : > { %3719 = vrot.lane.b32.xlu0 %v12595_v26, %s5480_s23  ;;  %v3502_v11 = vadd.f32 %v3486_v9, %v3396_v21  ;;  %v3081_v59 = vadd.f32 %v3065_v2, %v10047_v54  ;;  %v3074_v45 = vadd.f32 %v3058_v7, %v10042_v33  ;;  %v3129_v34 = vsel %vm12858_vm2, %v12857_v3, %v12856_v56  ;;  %v12864_v33 = vld [vmem:[#allocation83_spill] sm:$0xff]  ;;  %vm12865_vm6 = vmmov %vm12855_vm0  ;;  %v12866_v2 = vld [vmem:[#allocation88_spill] sm:$0xff] }
 0x866   : > { %v10136_v47 = vpop.permute.xlu1 %3633  ;;  %v10138_v15 = vpop.permute.xlu2 %3523  ;;  %v3607_v37 = vadd.f32 %v3591_v12, %v3501_v39  ;;  %v12859_v12 = vld [vmem:[#allocation210_spill] sm:$0xff]  ;;  %v3117_v7 = vsel %vm12865_vm6, %v12864_v33, %v12857_v3  ;;  %v3172_v48 = vmul.f32 %v12866_v2, %v3131_v61  ;;  %v3082_v10 = vadd.f32 %v3066_v43, %v10058_v23  ;;  %v12867_v49 = vld [vmem:[#allocation91_spill] sm:$0xff]  ;;  %v12868_v28 = vld [vmem:[#allocation121_spill] sm:$0xff] }
 0x867   : > { %12848 = vst [vmem:[#allocation28_spill] sm:$0xff] %v10136_v47  ;;  %v3648_v6 = vsel %vm3645_vm15, %v10136_v47, %v9958_v24  ;;  %v10149_v52 = vpop.permute.xlu0 %3617  ;;  %v3608_v31 = vadd.f32 %v3592_v60, %v3502_v11  ;;  %v3223_v21 = vsel %vm12861_vm3, %v12860_v36, %v12859_v12  ;;  %v3171_v60 = vmul.f32 %v12866_v2, %v3119_v14  ;;  %v12870_v61 = vld [vmem:[#allocation181_spill] sm:$0xff]  ;;  %v12875_v3 = vld [vmem:[#allocation107_spill] sm:$0xff]  ;;  %v12878_v36 = vld [vmem:[#allocation158_spill] sm:$0xff] }
 0x868   : > { %12849 = vst [vmem:[#allocation78_spill] sm:$0xff] %v10138_v15  ;;  %v3697_v63 = vmul.f32 %v10076_v51, %v3648_v6  ;;  %v3660_v38 = vsel %vm3645_vm15, %v9958_v24, %v10149_v52  ;;  %v3235_v24 = vsel %vm12863_vm5, %v12859_v12, %v12862_v27  ;;  %v3163_v11 = vmul.f32 %v12867_v49, %v3117_v7  ;;  %v12871_v23 = vld [vmem:[#allocation257_spill] sm:$0xff]  ;;  %v12879_v27 = vld [vmem:[#allocation230_spill] sm:$0xff]  ;;  %vm12915_vm1 = vmmov %vm12903_vm9 }
 0x869   : > { %12853 = vst [vmem:[#allocation54_spill] sm:$0xff] %v10149_v52  ;;  %v3698_v9 = vmul.f32 %v10076_v51, %v3660_v38  ;;  %v3164_v6 = vmul.f32 %v12867_v49, %v3129_v34  ;;  %v3270_v14 = vmul.f32 %v12868_v28, %v3235_v24  ;;  %v3329_v43 = vsel %vm3327_vm4, %v12871_v23, %v12870_v61  ;;  %v12877_v12 = vld [vmem:[#allocation57_spill] sm:$0xff]  ;;  %v12882_v52 = vld [vmem:[#allocation250_spill] sm:$0xff]  ;;  %vm12924_vm0 = vmmov %vm12915_vm1 }
 0x86a   : > { %v10175_v54 = vadd.f32 %v3697_v63, %v3607_v37  ;;  %v3269_v37 = vmul.f32 %v12868_v28, %v3223_v21  ;;  %v12869_v63 = vld [vmem:[#allocation169_spill] sm:$0xff]  ;;  %v3343_v21 = vsel %vm3327_vm4, %v12878_v36, %v12877_v12  ;;  %v3331_v24 = vsel %vm3327_vm4, %v12879_v27, %v12878_v36  ;;  %v12881_v28 = vld [vmem:[#allocation50_spill] sm:$0xff]  ;;  %vm12925_vm2 = vmmov %vm12924_vm0 }
 0x86b   : > { %v10183_v39 = vadd.f32 %v3698_v9, %v3608_v31  ;;  %v3341_v38 = vsel %vm3327_vm4, %v12870_v61, %v12869_v63  ;;  %v12872_v31 = vld [vmem:[#allocation214_spill] sm:$0xff]  ;;  %v3187_v2 = vadd.f32 %v3171_v60, %v3081_v59  ;;  %v3188_v49 = vadd.f32 %v3172_v48, %v3082_v10  ;;  %vm12932_vm5 = vmmov %vm12924_vm0 }
 0x86c   : > { %3842 = vrot.lane.b32.xlu1 %v12554_v8, %s5501_s5  ;;  %3850 = vrot.lane.b32.xlu2 %v12551_v0, %s5501_s5  ;;  %v12873_v9 = vld [vmem:[#allocation94_spill] sm:$0xff]  ;;  %v3237_v34 = vsel %vm12876_vm8, %v12872_v31, %v12875_v3  ;;  %v3179_v3 = vadd.f32 %v3163_v11, %v3073_v53  ;;  %v3180_v51 = vadd.f32 %v3164_v6, %v3074_v45  ;;  %vm3962_vm3 = vcmp.lt.s32.totalorder %v5914_v50, 86  ;;  %vm12933_vm6 = vmmov %vm12924_vm0 }
 0x86d   : > { %3826 = vrot.lane.b32.xlu0 %v7181_v42, %s5501_s5  ;;  %v3225_v56 = vsel %vm12874_vm7, %v12873_v9, %v12872_v31  ;;  %v3278_v31 = vmul.f32 %v12881_v28, %v3237_v34  ;;  %v3376_v47 = vmul.f32 %v12882_v52, %v3341_v38  ;;  %v3375_v55 = vmul.f32 %v12882_v52, %v3329_v43  ;;  %v12885_v38 = vld [vmem:[#allocation222_spill] sm:$0xff]  ;;  %v12887_v34 = vld [vmem:[#allocation177_spill] sm:$0xff]  ;;  %v5240_v52 = vld [vmem:[%s5635_s20 + $0x2c0] sm:$0xff] }
 0x86e   : > { %v10220_v33 = vpop.permute.xlu1 %3741  ;;  %v10222_v7 = vpop.permute.xlu2 %3631  ;;  %v3277_v61 = vmul.f32 %v12881_v28, %v3225_v56  ;;  %v3384_v36 = vmul.f32 %v12883_v29, %v3343_v21  ;;  %v3383_v41 = vmul.f32 %v12883_v29, %v3331_v24  ;;  %v3447_v59 = vsel %vm3433_vm11, %v9756_v35, %v12884_v32  ;;  %v12886_v43 = vld [vmem:[#allocation174_spill] sm:$0xff] }
 0x86f   : > { %12880 = vst [vmem:[#allocation70_spill] sm:$0xff] %v10222_v7  ;;  %v10226_v9 = vpop.permute.xlu0 %3725  ;;  %v3435_v60 = vsel %vm3433_vm11, %v9767_v13, %v9756_v35  ;;  %v3285_v53 = vadd.f32 %v3269_v37, %v3179_v3  ;;  %v3286_v45 = vadd.f32 %v3270_v14, %v3180_v51  ;;  %v3482_v10 = vmul.f32 %v9962_v22, %v3447_v59  ;;  %v12888_v14 = vld [vmem:[#allocation242_spill] sm:$0xff] }
 0x870   : > { %v3481_v48 = vmul.f32 %v9962_v22, %v3435_v60  ;;  %v3294_v11 = vadd.f32 %v3278_v31, %v3188_v49  ;;  %v3293_v6 = vadd.f32 %v3277_v61, %v3187_v2  ;;  %v3437_v56 = vsel %vm3433_vm11, %v12886_v43, %v12885_v38  ;;  %v12889_v31 = vld [vmem:[#allocation58_spill] sm:$0xff] }
 0x871   : > { %v3449_v21 = vsel %vm3433_vm11, %v12885_v38, %v12887_v34  ;;  %v3392_v24 = vadd.f32 %v3376_v47, %v3286_v45  ;;  %v3391_v35 = vadd.f32 %v3375_v55, %v3285_v53  ;;  %v3489_v2 = vmul.f32 %v12888_v14, %v3437_v56  ;;  %v12891_v47 = vld [vmem:[#allocation45_spill] sm:$0xff]  ;;  %v12893_v53 = vld [vmem:[#allocation170_spill] sm:$0xff]  ;;  %v12896_v56 = vld [vmem:[#allocation147_spill] sm:$0xff] }
 0x872   : > { %v3400_v51 = vadd.f32 %v3384_v36, %v3294_v11  ;;  %v3399_v37 = vadd.f32 %v3383_v41, %v3293_v6  ;;  %v3490_v49 = vmul.f32 %v12888_v14, %v3449_v21  ;;  %v3446_v3 = vsel %vm3433_vm11, %v12891_v47, %v10025_v1  ;;  %v12894_v45 = vld [vmem:[#allocation193_spill] sm:$0xff]  ;;  %v12897_v21 = vld [vmem:[#allocation79_spill] sm:$0xff] }
 0x873   : > { %v3497_v28 = vadd.f32 %v3481_v48, %v3391_v35  ;;  %v3498_v61 = vadd.f32 %v3482_v10, %v3392_v24  ;;  %v3555_v48 = vsel %vm3539_vm13, %v12894_v45, %v12893_v53  ;;  %v12895_v10 = vld [vmem:[#allocation71_spill] sm:$0xff]  ;;  %v3661_v24 = vsel %vm3645_vm15, %v12897_v21, %v12896_v56  ;;  %v12901_v56 = vld [vmem:[#allocation202_spill] sm:$0xff] }
 0x874   : > { %3950 = vrot.lane.b32.xlu1 %v7201_v19, %s5502_s6  ;;  %3958 = vrot.lane.b32.xlu2 %v7246_v4, %s5502_s6  ;;  %v3541_v19 = vsel %vm3539_vm13, %v10074_v20, %v12889_v31  ;;  %v3553_v4 = vsel %vm3539_vm13, %v12889_v31, %v10087_v5  ;;  %v3543_v11 = vsel %vm3539_vm13, %v12895_v10, %v12894_v45  ;;  %v5245_v31 = vld [vmem:[%s5635_s20 + $0x2e8] sm:$0xff]  ;;  %v12900_v20 = vld [vmem:[#allocation72_spill] sm:$0xff]  ;;  %vm12942_vm7 = vcmask 261120  }
 0x875   : > { %3934 = vrot.lane.b32.xlu0 %v7241_v18, %s5502_s6  ;;  %v3434_v18 = vsel %vm3433_vm11, %v10014_v17, %v12891_v47  ;;  %v3649_v35 = vsel %vm3645_vm15, %v9900_v25, %v12897_v21  ;;  %v12899_v5 = vld [vmem:[#allocation145_spill] sm:$0xff]  ;;  %v3506_v44 = vadd.f32 %v3490_v49, %v3400_v51  ;;  %v3505_v22 = vadd.f32 %v3489_v2, %v3399_v37  ;;  %vm12943_vm8 = vmmov %vm12942_vm7 }
 0x876   : > { %v10266_v41 = vpop.permute.xlu1 %3568  ;;  %v10268_v55 = vpop.permute.xlu2 %3739  ;;  %v3701_v63 = vmul.f32 %v12901_v56, %v3649_v35  ;;  %v4039_v35 = vld [vmem:[%s5620_s22 + $0x18] sm:$0xff] }
 0x877   : > { %12890 = vst [vmem:[#allocation75_spill] sm:$0xff] %v10266_v41  ;;  %v3587_v36 = vmul.f32 %v10266_v41, %v3541_v19  ;;  %v3588_v59 = vmul.f32 %v10266_v41, %v3553_v4  ;;  %v10280_v60 = vpop.permute.xlu0 %3457  ;;  %v5250_v19 = vld [vmem:[%s5635_s20 + $0x310] sm:$0xff]  ;;  %v12898_v41 = vld [vmem:[#allocation65_spill] sm:$0xff] }
 0x878   : > { %12892 = vst [vmem:[#allocation73_spill] sm:$0xff] %v10280_v60  ;;  %v3477_v6 = vmul.f32 %v10280_v60, %v3434_v18  ;;  %v3478_v38 = vmul.f32 %v10280_v60, %v3446_v3  ;;  %v3595_v45 = vmul.f32 %v12898_v41, %v3543_v11  ;;  %v3596_v18 = vmul.f32 %v12898_v41, %v3555_v48 }
 0x879   : > { %v3603_v4 = vadd.f32 %v3587_v36, %v3497_v28  ;;  %v3604_v47 = vadd.f32 %v3588_v59, %v3498_v61  ;;  %v3702_v60 = vmul.f32 %v12901_v56, %v3661_v24  ;;  %v5249_v24 = vld [vmem:[%s5635_s20 + $0x308] sm:$0xff] }
 0x87a   : > { %v3493_v3 = vadd.f32 %v3477_v6, %v12899_v5  ;;  %v3494_v62 = vadd.f32 %v3478_v38, %v12900_v20  ;;  %v3612_v28 = vadd.f32 %v3596_v18, %v3506_v44  ;;  %v3611_v61 = vadd.f32 %v3595_v45, %v3505_v22 }
 0x87b   : > { %v3754_v20 = vsel %vm12903_vm9, %v10220_v33, %v10016_v16  ;;  %v3766_v5 = vsel %vm12904_vm14, %v10016_v16, %v10226_v9  ;;  %vm12944_vm9 = vmmov %vm12942_vm7 }
 0x87c   : > { %3885 = vperm.xlu1 %5416, %v5245_v31   ;;  %3996 = vperm.xlu2 %5417, %v5250_v19   ;;  %v3718_v37 = vadd.f32 %v3702_v60, %v3612_v28  ;;  %vm12945_vm14 = vmmov %vm12942_vm7 }
 0x87d   : > { %3774 = vperm.xlu0 %5415, %v5240_v52   ;;  %v3717_v52 = vadd.f32 %v3701_v63, %v3611_v61 }
 0x87e   : > { %v10309_v36 = vpop.permute.xlu1 %3507  ;;  %v10311_v59 = vpop.permute.xlu2 %3846 }
 0x87f   : > { %12902 = vst [vmem:[#allocation85_spill] sm:$0xff] %v10309_v36  ;;  %v10321_v51 = vpop.permute.xlu0 %3789 }
 0x880   : > { %v3806_v22 = vmul.f32 %v10321_v51, %v3754_v20  ;;  %v3807_v44 = vmul.f32 %v10321_v51, %v3766_v5 }
 0x882   : > { %v3822_v2 = vadd.f32 %v3806_v22, %v3717_v52  ;;  %v3823_v49 = vadd.f32 %v3807_v44, %v3718_v37  ;;  %v5248_v44 = vld [vmem:[%s5635_s20 + $0x300] sm:$0xff] }
 0x884   : > { %3840 = vrot.lane.b32.xlu1 %v12599_v58, %s5501_s5  ;;  %3848 = vrot.lane.b32.xlu2 %v12598_v40, %s5501_s5 }
 0x885   : > { %3824 = vrot.lane.b32.xlu0 %v12595_v26, %s5501_s5 }
 0x886   : > { %v10331_v16 = vpop.permute.xlu1 %3615  ;;  %v10333_v63 = vpop.permute.xlu2 %3674 }
 0x887   : > { %12905 = vst [vmem:[#allocation59_spill] sm:$0xff] %v10331_v16  ;;  %v3532_v60 = vpop.permute.xlu0 %3531 }
 0x888   : > { %12906 = vst [vmem:[#allocation62_spill] sm:$0xff] %v10333_v63  ;;  %v3552_v61 = vsel %vm3539_vm13, %v3532_v60, %v10309_v36 }
 0x88c   : > { %3948 = vrot.lane.b32.xlu1 %v12554_v8, %s5502_s6  ;;  %3956 = vrot.lane.b32.xlu2 %v12551_v0, %s5502_s6 }
 0x88d   : > { %3932 = vrot.lane.b32.xlu0 %v7181_v42, %s5502_s6  ;;  %v5244_v42 = vld [vmem:[%s5635_s20 + $0x2e0] sm:$0xff] }
 0x88e   : > { %v10341_v48 = vpop.permute.xlu1 %3723  ;;  %v10343_v11 = vpop.permute.xlu2 %3613 }
 0x88f   : > { %12907 = vst [vmem:[#allocation61_spill] sm:$0xff] %v10343_v11  ;;  %v3640_v6 = vpop.permute.xlu0 %3639 }
 0x890   : > { %v3647_v38 = vsel %vm3645_vm15, %v10222_v7, %v3640_v6  ;;  %v3659_v21 = vsel %vm3645_vm15, %v3640_v6, %v10331_v16  ;;  %v4038_v6 = vld [vmem:[%s5620_s22 + $0x10] sm:$0xff] }
 0x891   : > { %v3693_v8 = vmul.f32 %v10333_v63, %v3647_v38  ;;  %v3694_v0 = vmul.f32 %v10333_v63, %v3659_v21 }
 0x893   : > { %v10356_v31 = vadd.f32 %v3693_v8, %v3603_v4  ;;  %v10358_v19 = vadd.f32 %v3694_v0, %v3604_v47  ;;  %v12910_v4 = vld [vmem:[#allocation67_spill] sm:$0xff]  ;;  %v3540_v47 = vsel %vm3539_vm13, %v10138_v15, %v3532_v60 }
 0x894   : > { %3991 = vperm.xlu1 %5416, %v5249_v24   ;;  %4057 = vperm.xlu2 %5417, %v4039_v35  }
 0x895   : > { %3880 = vperm.xlu0 %5415, %v5244_v42  }
 0x896   : > { %v10360_v45 = vpop.permute.xlu1 %3830  ;;  %v10362_v18 = vpop.permute.xlu2 %3721 }
 0x897   : > { %12908 = vst [vmem:[#allocation105_spill] sm:$0xff] %v10360_v45  ;;  %v3748_v28 = vpop.permute.xlu0 %3747 }
 0x898   : > { %12909 = vst [vmem:[#allocation92_spill] sm:$0xff] %v10362_v18  ;;  %v3753_v21 = vsel %vm12914_vm10, %v10268_v55, %v3748_v28  ;;  %vm12950_vm10 = vmmov %vm12942_vm7 }
 0x89c   : > { %3930 = vrot.lane.b32.xlu1 %v12595_v26, %s5502_s6  ;;  %3946 = vrot.lane.b32.xlu2 %v12599_v58, %s5502_s6 }
 0x89d   : > { %3309 = vrot.lane.b32.xlu0 %v12910_v4, %s5497_s2 }
 0x89e   : > { %v10376_v20 = vpop.permute.xlu1 %3563  ;;  %v10378_v5 = vpop.permute.xlu2 %3828 }
 0x89f   : > { %12911 = vst [vmem:[#allocation103_spill] sm:$0xff] %v10376_v20  ;;  %v3583_v26 = vmul.f32 %v10376_v20, %v3540_v47  ;;  %v3584_v37 = vmul.f32 %v10376_v20, %v3552_v61  ;;  %v3855_v58 = vpop.permute.xlu0 %3854  ;;  %v4037_v47 = vld [vmem:[%s5620_s22 + $0x8] sm:$0xff] }
 0x8a0   : > { %v3860_v60 = vsel %vm3856_vm12, %v10311_v59, %v3855_v58  ;;  %v3872_v38 = vsel %vm3856_vm12, %v3855_v58, %v10360_v45  ;;  %v12916_v58 = vld [vmem:[#allocation66_spill] sm:$0xff] }
 0x8a1   : > { %v3599_v52 = vadd.f32 %v3583_v26, %v3493_v3  ;;  %v3600_v22 = vadd.f32 %v3584_v37, %v3494_v62 }
 0x8a4   : > { %3986 = vperm.xlu1 %5416, %v5248_v44   ;;  %4052 = vperm.xlu2 %5417, %v4038_v6  }
 0x8a5   : > { %3954 = vrot.lane.b32.xlu0 %v12598_v40, %s5502_s6  ;;  %v3765_v40 = vsel %vm12915_vm1, %v3748_v28, %v10341_v48  ;;  %vm12951_vm1 = vmmov %vm12942_vm7 }
 0x8a6   : > { %v10393_v3 = vpop.permute.xlu1 %3895  ;;  %v10395_v62 = vpop.permute.xlu2 %3936 }
 0x8a7   : > { %12912 = vst [vmem:[#allocation100_spill] sm:$0xff] %v10393_v3  ;;  %v3912_v8 = vmul.f32 %v10393_v3, %v3860_v60  ;;  %v3913_v0 = vmul.f32 %v10393_v3, %v3872_v38  ;;  %v10405_v24 = vpop.permute.xlu0 %3784 }
 0x8a8   : > { %12913 = vst [vmem:[#allocation99_spill] sm:$0xff] %v10395_v62  ;;  %v3802_v35 = vmul.f32 %v10405_v24, %v3753_v21  ;;  %v3803_v42 = vmul.f32 %v10405_v24, %v3765_v40  ;;  %v12919_v40 = vld [vmem:[#allocation63_spill] sm:$0xff] }
 0x8a9   : > { %v10410_v61 = vadd.f32 %v3912_v8, %v3822_v2  ;;  %v10412_v26 = vadd.f32 %v3913_v0, %v3823_v49 }
 0x8aa   : > { %v10415_v37 = vadd.f32 %v3802_v35, %v10175_v54  ;;  %v10418_v28 = vadd.f32 %v3803_v42, %v10183_v39  ;;  %v4036_v42 = vld [vmem:[%s5620_s22] sm:$0xff] }
 0x8ac   : > { %3415 = vrot.lane.b32.xlu1 %v12910_v4, %s5498_s28  ;;  %4047 = vperm.xlu2 %5417, %v4037_v47  }
 0x8ad   : > { %3307 = vrot.lane.b32.xlu0 %v12916_v58, %s5497_s2 }
 0x8ae   : > { %v3638_v44 = vpop.permute.xlu1 %3637  ;;  %v10424_v6 = vpop.permute.xlu2 %3669 }
 0x8af   : > { %12917 = vst [vmem:[#allocation98_spill] sm:$0xff] %v10424_v6  ;;  %v3658_v2 = vsel %vm3645_vm15, %v3638_v44, %v10343_v11  ;;  %v10429_v54 = vpop.permute.xlu0 %3629 }
 0x8b0   : > { %12918 = vst [vmem:[#allocation106_spill] sm:$0xff] %v10429_v54  ;;  %v3646_v39 = vsel %vm3645_vm15, %v10429_v54, %v3638_v44  ;;  %v3690_v49 = vmul.f32 %v10424_v6, %v3658_v2 }
 0x8b1   : > { %v3689_v60 = vmul.f32 %v10424_v6, %v3646_v39 }
 0x8b2   : > { %v10436_v38 = vadd.f32 %v3690_v49, %v3600_v22  ;;  %v12922_v22 = vld [vmem:[#allocation60_spill] sm:$0xff] }
 0x8b3   : > { %v10438_v21 = vadd.f32 %v3689_v60, %v3599_v52 }
 0x8b4   : > { %3413 = vrot.lane.b32.xlu1 %v12916_v58, %s5498_s28  ;;  %3521 = vrot.lane.b32.xlu2 %v12910_v4, %s5499_s19 }
 0x8b5   : > { %3305 = vrot.lane.b32.xlu0 %v12919_v40, %s5497_s2 }
 0x8b6   : > { %v3746_v8 = vpop.permute.xlu1 %3745  ;;  %v10446_v0 = vpop.permute.xlu2 %4001 }
 0x8b7   : > { %12920 = vst [vmem:[#allocation89_spill] sm:$0xff] %v10446_v0  ;;  %v10448_v35 = vpop.permute.xlu0 %3737  ;;  %v3764_v63 = vsel %vm12924_vm0, %v3746_v8, %v10362_v18 }
 0x8b8   : > { %12921 = vst [vmem:[#allocation15_spill] sm:$0xff] %v10448_v35  ;;  %v3752_v6 = vsel %vm12925_vm2, %v10448_v35, %v3746_v8  ;;  %vm12970_vm2 = vmmov %vm12951_vm1 }
 0x8bc   : > { %3303 = vrot.lane.b32.xlu1 %v12922_v22, %s5497_s2  ;;  %3411 = vrot.lane.b32.xlu2 %v12919_v40, %s5498_s28 }
 0x8bd   : > { %4042 = vperm.xlu0 %5415, %v4036_v42  }
 0x8be   : > { %v10455_v52 = vpop.permute.xlu1 %3852  ;;  %v3744_v47 = vpop.permute.xlu2 %3743 }
 0x8bf   : > { %v10457_v44 = vpop.permute.xlu0 %3844 }
 0x8c4   : > { %3627 = vrot.lane.b32.xlu1 %v12910_v4, %s5500_s3  ;;  %3409 = vrot.lane.b32.xlu2 %v12922_v22, %s5498_s28 }
 0x8c5   : > { %3519 = vrot.lane.b32.xlu0 %v12916_v58, %s5499_s19 }
 0x8c6   : > { %v3961_v2 = vpop.permute.xlu1 %3960  ;;  %v10465_v39 = vpop.permute.xlu2 %3850 }
 0x8c7   : > { %v10467_v49 = vpop.permute.xlu0 %3952 }
 0x8c8   : > { %12923 = vst [vmem:[#allocation108_spill] sm:$0xff] %v10467_v49 }
 0x8cc   : > { %3625 = vrot.lane.b32.xlu1 %v12916_v58, %s5500_s3  ;;  %3733 = vrot.lane.b32.xlu2 %v12910_v4, %s5480_s23 }
 0x8cd   : > { %3517 = vrot.lane.b32.xlu0 %v12919_v40, %s5499_s19 }
 0x8ce   : > { %v10475_v60 = vpop.permute.xlu1 %3890  ;;  %v3959_v42 = vpop.permute.xlu2 %3958 }
 0x8cf   : > { %v10483_v16 = vpop.permute.xlu0 %3779 }
 0x8d0   : > { %12926 = vst [vmem:[#allocation112_spill] sm:$0xff] %v10483_v16  ;;  %v3798_v7 = vmul.f32 %v10483_v16, %v3752_v6  ;;  %v3799_v20 = vmul.f32 %v10483_v16, %v3764_v63  ;;  %v3966_v16 = vsel %vm3962_vm3, %v10467_v49, %v3961_v2 }
 0x8d1   : > { %v4018_v18 = vmul.f32 %v10446_v0, %v3966_v16 }
 0x8d2   : > { %v10488_v11 = vadd.f32 %v3798_v7, %v10356_v31  ;;  %v10491_v54 = vadd.f32 %v3799_v20, %v10358_v19  ;;  %v3978_v20 = vsel %vm3962_vm3, %v3961_v2, %v10395_v62 }
 0x8d3   : > { %v4034_v2 = vadd.f32 %v4018_v18, %v10410_v61 }
 0x8d4   : > { %3623 = vrot.lane.b32.xlu1 %v12919_v40, %s5500_s3  ;;  %3731 = vrot.lane.b32.xlu2 %v12916_v58, %s5480_s23 }
 0x8d5   : > { %3515 = vrot.lane.b32.xlu0 %v12922_v22, %s5499_s19 }
 0x8d6   : > { %v10499_v8 = vpop.permute.xlu1 %3735  ;;  %v10501_v6 = vpop.permute.xlu2 %3996 }
 0x8d7   : > { %12927 = vst [vmem:[#allocation111_spill] sm:$0xff] %v10499_v8  ;;  %v10503_v63 = vpop.permute.xlu0 %3719  ;;  %v3751_v16 = vsel %vm12932_vm5, %v10499_v8, %v3744_v47  ;;  %vm12971_vm5 = vmmov %vm12951_vm1 }
 0x8d8   : > { %12928 = vst [vmem:[#allocation8_spill] sm:$0xff] %v10501_v6 }
 0x8dc   : > { %3621 = vrot.lane.b32.xlu1 %v12922_v22, %s5500_s3  ;;  %3729 = vrot.lane.b32.xlu2 %v12919_v40, %s5480_s23 }
 0x8dd   : > { %3838 = vrot.lane.b32.xlu0 %v12910_v4, %s5501_s5 }
 0x8de   : > { %v10511_v7 = vpop.permute.xlu1 %3842  ;;  %v10513_v31 = vpop.permute.xlu2 %3848 }
 0x8df   : > { %v10515_v19 = vpop.permute.xlu0 %3826 }
 0x8e0   : > { %12929 = vst [vmem:[#allocation18_spill] sm:$0xff] %v10515_v19 }
 0x8e4   : > { %3944 = vrot.lane.b32.xlu1 %v12910_v4, %s5502_s6  ;;  %3727 = vrot.lane.b32.xlu2 %v12922_v22, %s5480_s23  ;;  %v4019_v4 = vmul.f32 %v10446_v0, %v3978_v20 }
 0x8e5   : > { %3836 = vrot.lane.b32.xlu0 %v12916_v58, %s5501_s5 }
 0x8e6   : > { %v10530_v36 = vpop.permute.xlu1 %3950  ;;  %v10532_v15 = vpop.permute.xlu2 %3956  ;;  %v4035_v62 = vadd.f32 %v4019_v4, %v10412_v26  ;;  %v4083_v4 = vld [vmem:[%s5630_s17 + $0x18] sm:$0xff] }
 0x8e7   : > { %v10534_v3 = vpop.permute.xlu0 %3934 }
 0x8e8   : > { %12930 = vst [vmem:[#allocation101_spill] sm:$0xff] %v10534_v3 }
 0x8ec   : > { %3942 = vrot.lane.b32.xlu1 %v12916_v58, %s5502_s6  ;;  %3832 = vrot.lane.b32.xlu2 %v12922_v22, %s5501_s5  ;;  %v3763_v58 = vsel %vm12933_vm6, %v3744_v47, %v10503_v63  ;;  %vm12973_vm6 = vmmov %vm12924_vm0 }
 0x8ed   : > { %3834 = vrot.lane.b32.xlu0 %v12919_v40, %s5501_s5 }
 0x8ee   : > { %v10546_v49 = vpop.permute.xlu1 %3885  ;;  %v10548_v35 = vpop.permute.xlu2 %4057 }
 0x8ef   : > { %12931 = vst [vmem:[#allocation117_spill] sm:$0xff] %v10546_v49  ;;  %v10556_v20 = vpop.permute.xlu0 %3774  ;;  %v4074_v0 = vadd.f32 %v10548_v35, %v4034_v2  ;;  %v4075_v18 = vadd.f32 %v10548_v35, %v4035_v62  ;;  %v3871_v62 = vsel %vm3856_vm12, %v10455_v52, %v10378_v5 }
 0x8f0   : > { %v3794_v61 = vmul.f32 %v10556_v20, %v3751_v16  ;;  %v3795_v26 = vmul.f32 %v10556_v20, %v3763_v58  ;;  %v3909_v2 = vmul.f32 %v10475_v60, %v3871_v62 }
 0x8f1   : > { %4186 = vmatpush.msrb.mxu2 %v4074_v0  ;;  %4215 = vmatpush.msrb.mxu3 %v4075_v18  ;;  %v3977_v0 = vsel %vm3962_vm3, %v3959_v42, %v10534_v3  ;;  %v4081_v18 = vld [vmem:[%s5630_s17 + $0x8] sm:$0xff] }
 0x8f2   : > { %v3810_v45 = vadd.f32 %v3794_v61, %v10438_v21  ;;  %v3811_v8 = vadd.f32 %v3795_v26, %v10436_v38  ;;  %v3859_v21 = vsel %vm3856_vm12, %v10457_v44, %v10455_v52  ;;  %v3965_v38 = vsel %vm3962_vm3, %v10530_v36, %v3959_v42  ;;  %v4080_v61 = vld [vmem:[%s5630_s17] sm:$0xff]  ;;  %v4082_v26 = vld [vmem:[%s5630_s17 + $0x10] sm:$0xff] }
 0x8f3   : > { %v3908_v47 = vmul.f32 %v10475_v60, %v3859_v21  ;;  %v4014_v52 = vmul.f32 %v10501_v6, %v3965_v38  ;;  %v4015_v58 = vmul.f32 %v10501_v6, %v3977_v0  ;;  %v3925_v42 = vadd.f32 %v3909_v2, %v10418_v28  ;;  %v4278_v2 = vld [vmem:[%s5645_s13 + $0x70] sm:$0xff] }
 0x8f4   : > { %3938 = vrot.lane.b32.xlu1 %v12922_v22, %s5502_s6  ;;  %4101 = vperm.xlu2 %5417, %v4083_v4   ;;  %v3858_v28 = vsel %vm3856_vm12, %v10511_v7, %v10465_v39 }
 0x8f5   : > { %3940 = vrot.lane.b32.xlu0 %v12919_v40, %s5502_s6  ;;  %v3924_v4 = vadd.f32 %v3908_v47, %v10415_v37  ;;  %v4031_v21 = vadd.f32 %v4015_v58, %v3925_v42  ;;  %v3870_v47 = vsel %vm3856_vm12, %v10465_v39, %v10515_v19  ;;  %v3904_v58 = vmul.f32 %v10546_v49, %v3858_v28  ;;  %v4738_v19 = vld [vmem:[%s5655_s26 + $0x10] sm:$0xff] }
 0x8f6   : > { %v10583_v22 = vpop.permute.xlu1 %3840  ;;  %v10585_v40 = vpop.permute.xlu2 %3946 }
 0x8f7   : > { %12934 = vst [vmem:[#allocation104_spill] sm:$0xff] %v10585_v40  ;;  %v10589_v16 = vpop.permute.xlu0 %3824  ;;  %v4030_v62 = vadd.f32 %v4014_v52, %v3924_v4  ;;  %v4277_v52 = vld [vmem:[%s5645_s13 + $0x68] sm:$0xff]  ;;  %v3920_v4 = vadd.f32 %v3904_v58, %v10488_v11 }
 0x8fc   : > { %4091 = vperm.xlu1 %5416, %v4081_v18   ;;  %4086 = vperm.xlu2 %5417, %v4080_v61   ;;  %v3905_v18 = vmul.f32 %v10546_v49, %v3870_v47  ;;  %v4279_v61 = vld [vmem:[%s5645_s13 + $0x78] sm:$0xff] }
 0x8fd   : > { %4096 = vperm.xlu0 %5415, %v4082_v26  }
 0x8fe   : > { %v10598_v3 = vpop.permute.xlu1 %3948  ;;  %v10600_v38 = vpop.permute.xlu2 %4052  ;;  %v3921_v42 = vadd.f32 %v3905_v18, %v10491_v54 }
 0x8ff   : > { %12935 = vst [vmem:[#allocation12_spill] sm:$0xff] %v10598_v3  ;;  %v10602_v0 = vpop.permute.xlu0 %3932  ;;  %v4070_v6 = vadd.f32 %v10600_v38, %v4030_v62  ;;  %v4071_v37 = vadd.f32 %v10600_v38, %v4031_v21  ;;  %v3964_v26 = vsel %vm3962_vm3, %v10598_v3, %v10532_v15  ;;  %v3857_v62 = vsel %vm3856_vm12, %v10583_v22, %v10513_v31 }
 0x900   : > { %12936 = vst [vmem:[#allocation115_spill] sm:$0xff] %v10600_v38  ;;  %v3976_v39 = vsel %vm3962_vm3, %v10532_v15, %v10602_v0  ;;  %v3869_v21 = vsel %vm3856_vm12, %v10513_v31, %v10589_v16  ;;  %v4276_v31 = vld [vmem:[%s5645_s13 + $0x60] sm:$0xff] }
 0x901   : > { %12937 = vst [vmem:[#allocation110_spill] sm:$0xff] %v10602_v0  ;;  %4187 = vmatpush.msrb.mxu2 %v4070_v6  ;;  %4216 = vmatpush.msrb.mxu3 %v4071_v37  ;;  %v10689_v38 = vld [vmem:[%s5625_s0] sm:$0xff] }
 0x904   : > { %4352 = vperm.xlu1 %5416, %v4278_v2   ;;  %4347 = vperm.xlu2 %5417, %v4277_v52   ;;  %v4275_v2 = vld [vmem:[%s5645_s13 + $0x58] sm:$0xff]  ;;  %v4274_v52 = vld [vmem:[%s5645_s13 + $0x50] sm:$0xff] }
 0x905   : > { %4357 = vperm.xlu0 %5415, %v4279_v61  }
 0x906   : > { %v10627_v6 = vpop.permute.xlu1 %3991  ;;  %v10645_v47 = vpop.permute.xlu2 %4047 }
 0x907   : > { %12938 = vst [vmem:[#allocation118_spill] sm:$0xff] %v10627_v6  ;;  %v10639_v37 = vpop.permute.xlu0 %3880  ;;  %v4010_v15 = vmul.f32 %v10627_v6, %v3964_v26  ;;  %v4011_v28 = vmul.f32 %v10627_v6, %v3976_v39 }
 0x908   : > { %12939 = vst [vmem:[#allocation23_spill] sm:$0xff] %v10639_v37  ;;  %v3900_v11 = vmul.f32 %v10639_v37, %v3857_v62  ;;  %v3901_v54 = vmul.f32 %v10639_v37, %v3869_v21  ;;  %v4271_v21 = vld [vmem:[%s5645_s13 + $0x38] sm:$0xff] }
 0x909   : > { %12940 = vst [vmem:[#allocation120_spill] sm:$0xff] %v10645_v47  ;;  %v4026_v58 = vadd.f32 %v4010_v15, %v3920_v4  ;;  %v4027_v18 = vadd.f32 %v4011_v28, %v3921_v42  ;;  %v4272_v42 = vld [vmem:[%s5645_s13 + $0x40] sm:$0xff] }
 0x90a   : > { %v3916_v61 = vadd.f32 %v3900_v11, %v3810_v45  ;;  %v3917_v0 = vadd.f32 %v3901_v54, %v3811_v8  ;;  %v4273_v45 = vld [vmem:[%s5645_s13 + $0x48] sm:$0xff]  ;;  %v4268_v54 = vld [vmem:[%s5645_s13 + $0x20] sm:$0xff] }
 0x90b   : > { %v4066_v26 = vadd.f32 %v10645_v47, %v4026_v58  ;;  %v4067_v39 = vadd.f32 %v10645_v47, %v4027_v18  ;;  %v4269_v11 = vld [vmem:[%s5645_s13 + $0x28] sm:$0xff] }
 0x90c   : > { %4337 = vperm.xlu1 %5416, %v4275_v2   ;;  %4332 = vperm.xlu2 %5417, %v4274_v52   ;;  %v4270_v2 = vld [vmem:[%s5645_s13 + $0x30] sm:$0xff]  ;;  %v4737_v47 = vld [vmem:[%s5655_s26 + $0x8] sm:$0xff] }
 0x90d   : > { %4342 = vperm.xlu0 %5415, %v4276_v31   ;;  %4188 = vmatpush.msrb.mxu2 %v4066_v26  ;;  %v4266_v31 = vld [vmem:[%s5645_s13 + $0x10] sm:$0xff]  ;;  %v4265_v26 = vld [vmem:[%s5645_s13 + $0x8] sm:$0xff] }
 0x90e   : > { %4217 = vmatpush.msrb.mxu3 %v4067_v39  ;;  %v10652_v62 = vpop.permute.xlu1 %3930  ;;  %v10656_v15 = vpop.permute.xlu2 %3521  ;;  %v4267_v39 = vld [vmem:[%s5645_s13 + $0x18] sm:$0xff] }
 0x90f   : > { %12941 = vst [vmem:[#allocation124_spill] sm:$0xff] %v10652_v62  ;;  %v3310_v4 = vpop.permute.xlu0 %3309 }
 0x914   : > { %4322 = vperm.xlu1 %5416, %v4272_v42   ;;  %4317 = vperm.xlu2 %5417, %v4271_v21  }
 0x915   : > { %4327 = vperm.xlu0 %5415, %v4273_v45  }
 0x916   : > { %v10659_v8 = vpop.permute.xlu1 %3986  ;;  %v10664_v52 = vpop.permute.xlu2 %3411 }
 0x917   : > { %v3955_v28 = vpop.permute.xlu0 %3954 }
 0x91c   : > { %4307 = vperm.xlu1 %5416, %v4269_v11   ;;  %4302 = vperm.xlu2 %5417, %v4268_v54   ;;  %v3963_v11 = vsel %vm3962_vm3, %v10585_v40, %v3955_v28  ;;  %v3975_v54 = vsel %vm3962_vm3, %v3955_v28, %v10652_v62 }
 0x91d   : > { %4312 = vperm.xlu0 %5415, %v4270_v2   ;;  %v4736_v2 = vld [vmem:[%s5655_s26] sm:$0xff] }
 0x91e   : > { %v3416_v58 = vpop.permute.xlu1 %3415  ;;  %v3410_v42 = vpop.permute.xlu2 %3409 }
 0x91f   : > { %v3308_v18 = vpop.permute.xlu0 %3307 }
 0x924   : > { %4292 = vperm.xlu1 %5416, %v4266_v31   ;;  %4287 = vperm.xlu2 %5417, %v4265_v26   ;;  %v4264_v31 = vld [vmem:[%s5645_s13] sm:$0xff]  ;;  %v4006_v26 = vmul.f32 %v10659_v8, %v3963_v11  ;;  %v4739_v11 = vld [vmem:[%s5655_s26 + $0x18] sm:$0xff] }
 0x925   : > { %4297 = vperm.xlu0 %5415, %v4267_v39   ;;  %v4007_v39 = vmul.f32 %v10659_v8, %v3975_v54  ;;  %v3441_v54 = vsel %vm3433_vm11, %v3416_v58, %v12886_v43  ;;  %v3334_v43 = vsel %vm3327_vm4, %v3308_v18, %v12835_v57 }
 0x926   : > { %v10669_v21 = vpop.permute.xlu1 %3413  ;;  %v4022_v40 = vadd.f32 %v4006_v26, %v3916_v61  ;;  %v10684_v28 = vpop.permute.xlu2 %3733 }
 0x927   : > { %v3306_v45 = vpop.permute.xlu0 %3305  ;;  %v4023_v49 = vadd.f32 %v4007_v39, %v3917_v0 }
 0x92c   : > { %4742 = vperm.xlu1 %5416, %v4736_v2   ;;  %4747 = vperm.xlu2 %5417, %v4737_v47  }
 0x92d   : > { %4282 = vperm.xlu0 %5415, %v4264_v31  }
 0x92e   : > { %v3304_v6 = vpop.permute.xlu1 %3303  ;;  %v10705_v61 = vpop.permute.xlu2 %3731 }
 0x92f   : > { %v10682_v3 = vpop.permute.xlu0 %4042 }
 0x930   : > { %v4062_v62 = vadd.f32 %v10682_v3, %v4022_v40  ;;  %v4063_v37 = vadd.f32 %v10682_v3, %v4023_v49  ;;  %v10700_v40 = vld [vmem:[%s5625_s0 + $0x8] sm:$0xff]  ;;  %v3339_v49 = vsel %vm3327_vm4, %v12877_v12, %v3310_v4  ;;  %v3551_v12 = vsel %vm3539_vm13, %v12893_v53, %v10656_v15 }
 0x931   : > { %v3593_v53 = vmul.f32 %v12898_v41, %v3551_v12 }
 0x932   : > { %4189 = vmatpush.msrb.mxu2 %v4062_v62  ;;  %4218 = vmatpush.msrb.mxu3 %v4063_v37  ;;  %v3335_v37 = vsel %vm3327_vm4, %v3310_v4, %v12879_v27  ;;  %v3445_v62 = vsel %vm3433_vm11, %v12887_v34, %v3416_v58  ;;  %v3547_v4 = vsel %vm3539_vm13, %v10656_v15, %v12895_v10  ;;  %v12946_v34 = vld [vmem:[#allocation159_spill] sm:$0xff]  ;;  %v10746_v58 = vld [vmem:[%s5625_s0 + $0x10] sm:$0xff] }
 0x933   : > { %5260 = vmatmul.msk.f32.vlgmr.msrb.gmra.mxu2 %vm12942_vm7, %v10689_v38  ;;  %5264 = vmatmul.msk.f32.vlgmr.msrb.gmra.mxu3 %vm12943_vm8, %v10689_v38  ;;  %v3382_v27 = vmul.f32 %v12883_v29, %v3335_v37  ;;  %v3487_v26 = vmul.f32 %v12888_v14, %v3445_v62  ;;  %v3594_v10 = vmul.f32 %v12898_v41, %v3547_v4  ;;  %vm12977_vm7 = vmmov %vm12924_vm0 }
 0x934   : > { %4757 = vperm.xlu1 %5416, %v4739_v11   ;;  %v3488_v15 = vmul.f32 %v12888_v14, %v3441_v54  ;;  %v12947_v11 = vld [vmem:[#allocation218_spill] sm:$0xff]  ;;  %v3439_v37 = vsel %vm3433_vm11, %v10664_v52, %v9767_v13  ;;  %v3442_v14 = vsel %vm3433_vm11, %v10025_v1, %v3410_v42  ;;  %v3438_v41 = vsel %vm3433_vm11, %v3410_v42, %v10014_v17  ;;  %v12948_v13 = vld [vmem:[#allocation169_spill] sm:$0xff]  ;;  %v12952_v17 = vld [vmem:[#allocation143_spill] sm:$0xff] }
 0x935   : > { %4752 = vperm.xlu0 %5415, %v4738_v19   ;;  %v3381_v19 = vmul.f32 %v12883_v29, %v3339_v49  ;;  %v3338_v29 = vsel %vm3327_vm4, %v12837_v30, %v3308_v18  ;;  %v3398_v49 = vadd.f32 %v3382_v27, %v12947_v11  ;;  %v3443_v30 = vsel %vm3433_vm11, %v12884_v32, %v10664_v52  ;;  %v12949_v52 = vld [vmem:[#allocation184_spill] sm:$0xff]  ;;  %v12953_v27 = vld [vmem:[#allocation73_spill] sm:$0xff]  ;;  %vm12983_vm8 = vmmov %vm12924_vm0 }
 0x936   : > { %v3628_v0 = vpop.permute.xlu1 %3627  ;;  %v3377_v57 = vmul.f32 %v12838_v46, %v3338_v29  ;;  %v3333_v18 = vsel %vm3327_vm4, %v3306_v45, %v12871_v23  ;;  %v3378_v32 = vmul.f32 %v12838_v46, %v3334_v43  ;;  %v3336_v1 = vsel %vm3327_vm4, %v12949_v52, %v3304_v6  ;;  %v10774_v62 = vpop.permute.xlu2 %3729  ;;  %v12954_v46 = vld [vmem:[#allocation171_spill] sm:$0xff] }
 0x937   : > { %v10697_v47 = vpop.permute.xlu0 %3519  ;;  %v3397_v39 = vadd.f32 %v3381_v19, %v12946_v34  ;;  %v3337_v19 = vsel %vm3327_vm4, %v12948_v13, %v3306_v45  ;;  %v3479_v23 = vmul.f32 %v12952_v17, %v3443_v30  ;;  %v3480_v42 = vmul.f32 %v12952_v17, %v3439_v37  ;;  %v12957_v37 = vld [vmem:[#allocation226_spill] sm:$0xff]  ;;  %v12959_v13 = vld [vmem:[#allocation64_spill] sm:$0xff] }
 0x938   : > { %v3504_v45 = vadd.f32 %v3488_v15, %v3398_v49  ;;  %v3475_v4 = vmul.f32 %v12953_v27, %v3442_v14  ;;  %v3444_v54 = vsel %vm3433_vm11, %v12954_v46, %v10669_v21  ;;  %v3393_v15 = vadd.f32 %v3377_v57, %v12957_v37  ;;  %v12958_v30 = vld [vmem:[#allocation182_spill] sm:$0xff]  ;;  %v12962_v57 = vld [vmem:[#allocation147_spill] sm:$0xff] }
 0x939   : > { %v3503_v12 = vadd.f32 %v3487_v26, %v3397_v39  ;;  %v12955_v26 = vld [vmem:[#allocation250_spill] sm:$0xff]  ;;  %v3476_v49 = vmul.f32 %v12953_v27, %v3438_v41  ;;  %v3440_v14 = vsel %vm3433_vm11, %v10669_v21, %v12958_v30  ;;  %v3657_v41 = vsel %vm3645_vm15, %v12962_v57, %v3628_v0  ;;  %v12963_v27 = vld [vmem:[#allocation137_spill] sm:$0xff]  ;;  %v12964_v30 = vld [vmem:[#allocation96_spill] sm:$0xff] }
 0x93a   : > { %v3373_v29 = vmul.f32 %v12955_v26, %v3337_v19  ;;  %v3374_v34 = vmul.f32 %v12955_v26, %v3333_v18  ;;  %v12956_v39 = vld [vmem:[#allocation38_spill] sm:$0xff]  ;;  %v3369_v19 = vmul.f32 %v12959_v13, %v3336_v1  ;;  %v3483_v26 = vmul.f32 %v12963_v27, %v3444_v54  ;;  %vm12966_vm11 = vmmov %vm12924_vm0 }
 0x93b   : > { %5261 = vmatmul.msk.f32.gmra.mxu2 %vm12944_vm9, %v10700_v40  ;;  %5265 = vmatmul.msk.f32.gmra.mxu3 %vm12945_vm14, %v10700_v40  ;;  %v3332_v43 = vsel %vm3327_vm4, %v3304_v6, %v12956_v39  ;;  %v12960_v18 = vld [vmem:[#allocation234_spill] sm:$0xff]  ;;  %vm12961_vm4 = vmmov %vm12924_vm0  ;;  %v3609_v46 = vadd.f32 %v3593_v53, %v3503_v12  ;;  %v3610_v39 = vadd.f32 %v3594_v10, %v3504_v45  ;;  %v12965_v53 = vld [vmem:[#allocation133_spill] sm:$0xff] }
 0x93c   : > { %v3394_v17 = vadd.f32 %v3378_v32, %v12960_v18  ;;  %v3762_v6 = vsel %vm12961_vm4, %v10226_v9, %v10684_v28  ;;  %v3370_v21 = vmul.f32 %v12959_v13, %v3332_v43  ;;  %v3653_v1 = vsel %vm3645_vm15, %v3628_v0, %v9900_v25  ;;  %v10817_v32 = vld [vmem:[%s5625_s0 + $0x18] sm:$0xff]  ;;  %v12967_v10 = vld [vmem:[#allocation138_spill] sm:$0xff]  ;;  %vm12985_vm9 = vmmov %vm12924_vm0 }
 0x93d   : > { %v3484_v37 = vmul.f32 %v12963_v27, %v3440_v14  ;;  %v3389_v9 = vadd.f32 %v3373_v29, %v12964_v30  ;;  %v3390_v12 = vadd.f32 %v3374_v34, %v12965_v53  ;;  %v3758_v54 = vsel %vm12966_vm11, %v10684_v28, %v10220_v33  ;;  %v12968_v14 = vld [vmem:[#allocation80_spill] sm:$0xff]  ;;  %v12969_v33 = vld [vmem:[#allocation195_spill] sm:$0xff]  ;;  %v12974_v30 = vld [vmem:[#allocation150_spill] sm:$0xff] }
 0x93e   : > { %v10730_v2 = vpop.permute.xlu1 %3625  ;;  %v3804_v43 = vmul.f32 %v10321_v51, %v3762_v6  ;;  %v3385_v45 = vadd.f32 %v3369_v19, %v12967_v10  ;;  %v3761_v25 = vsel %vm12924_vm0, %v10341_v48, %v10705_v61  ;;  %v3699_v0 = vmul.f32 %v12901_v56, %v3657_v41  ;;  %v3728_v27 = vpop.permute.xlu2 %3727  ;;  %v12978_v10 = vld [vmem:[#allocation105_spill] sm:$0xff]  ;;  %vm12989_vm14 = vmmov %vm12924_vm0 }
 0x93f   : > { %v10732_v31 = vpop.permute.xlu0 %3517  ;;  %v3700_v29 = vmul.f32 %v12901_v56, %v3653_v1  ;;  %v3546_v34 = vsel %vm3539_vm13, %v10697_v47, %v12968_v14  ;;  %v3550_v28 = vsel %vm3539_vm13, %v12969_v33, %v10697_v47  ;;  %v3499_v48 = vadd.f32 %v3483_v26, %v3393_v15  ;;  %v12972_v56 = vld [vmem:[#allocation157_spill] sm:$0xff]  ;;  %v12975_v26 = vld [vmem:[#allocation28_spill] sm:$0xff]  ;;  %vm13020_vm4 = vmmov %vm12951_vm1 }
 0x940   : > { %v3805_v13 = vmul.f32 %v10321_v51, %v3758_v54  ;;  %v3386_v19 = vadd.f32 %v3370_v21, %v12972_v56  ;;  %v3757_v18 = vsel %vm12973_vm6, %v10705_v61, %v10268_v55  ;;  %v3500_v6 = vadd.f32 %v3484_v37, %v3394_v17  ;;  %v12976_v55 = vld [vmem:[#allocation54_spill] sm:$0xff]  ;;  %v12986_v56 = vld [vmem:[#allocation100_spill] sm:$0xff]  ;;  %vm13021_vm11 = vmmov %vm12951_vm1 }
 0x941   : > { %v10853_v57 = vmul.f32 %v10405_v24, %v3761_v25  ;;  %v3495_v47 = vadd.f32 %v3479_v23, %v3389_v9  ;;  %v10855_v41 = vadd.f32 %v3480_v42, %v3390_v12  ;;  %v3589_v15 = vmul.f32 %v12974_v30, %v3550_v28  ;;  %vm13030_vm0 = vmmov %vm12951_vm1 }
 0x942   : > { %v3590_v51 = vmul.f32 %v12974_v30, %v3546_v34  ;;  %v3652_v21 = vsel %vm3645_vm15, %v10730_v2, %v12975_v26  ;;  %v3656_v61 = vsel %vm3645_vm15, %v12976_v55, %v10730_v2  ;;  %v3801_v23 = vmul.f32 %v10405_v24, %v3757_v18  ;;  %v12979_v2 = vld [vmem:[#allocation53_spill] sm:$0xff]  ;;  %v12988_v30 = vld [vmem:[#allocation111_spill] sm:$0xff]  ;;  %vm13033_vm6 = vmmov %vm13030_vm0 }
 0x943   : > { %5262 = vmatmul.msk.f32.gmra.mxu2 %vm12950_vm10, %v10746_v58  ;;  %5266 = vmatmul.msk.f32.gmra.mxu3 %vm12951_vm1, %v10746_v58  ;;  %v3715_v42 = vadd.f32 %v3699_v0, %v3609_v46  ;;  %v3716_v37 = vadd.f32 %v3700_v29, %v3610_v39  ;;  %v3491_v9 = vadd.f32 %v3475_v4, %v3385_v45  ;;  %v12980_v46 = vld [vmem:[#allocation207_spill] sm:$0xff]  ;;  %v12984_v29 = vld [vmem:[#allocation92_spill] sm:$0xff]  ;;  %vm13019_vm10 = vmmov %vm12951_vm1 }
 0x944   : > { %v3759_v53 = vsel %vm12977_vm7, %v10503_v63, %v3728_v27  ;;  %v3492_v12 = vadd.f32 %v3476_v49, %v3386_v19  ;;  %v3695_v14 = vmul.f32 %v12979_v2, %v3656_v61  ;;  %v3696_v24 = vmul.f32 %v12979_v2, %v3652_v21  ;;  %v12981_v63 = vld [vmem:[#allocation262_spill] sm:$0xff]  ;;  %v12982_v45 = vld [vmem:[#allocation15_spill] sm:$0xff]  ;;  %vm13034_vm7 = vmmov %vm13030_vm0 }
 0x945   : > { %v3545_v4 = vsel %vm3539_vm13, %v10732_v31, %v12980_v46  ;;  %v3549_v49 = vsel %vm3539_vm13, %v12981_v63, %v10732_v31  ;;  %v3605_v39 = vadd.f32 %v3589_v15, %v3499_v48  ;;  %v10891_v0 = vsel %vm12983_vm8, %v10774_v62, %v12982_v45  ;;  %v12987_v48 = vld [vmem:[#allocation75_spill] sm:$0xff]  ;;  %v12998_v45 = vld [vmem:[#allocation70_spill] sm:$0xff]  ;;  %vm13035_vm8 = vmmov %vm13030_vm0 }
 0x946   : > { %v10792_v11 = vpop.permute.xlu1 %3623  ;;  %v10897_v34 = vsel %vm12985_vm9, %v12984_v29, %v10774_v62  ;;  %v3820_v33 = vadd.f32 %v3804_v43, %v3715_v42  ;;  %v3821_v28 = vadd.f32 %v3805_v13, %v3716_v37  ;;  %v3585_v18 = vmul.f32 %v12987_v48, %v3549_v49  ;;  %v12990_v62 = vld [vmem:[#allocation78_spill] sm:$0xff]  ;;  %v12991_v13 = vld [vmem:[#allocation85_spill] sm:$0xff]  ;;  %v12997_v63 = vld [vmem:[#allocation103_spill] sm:$0xff] }
 0x947   : > { %v10801_v52 = vpop.permute.xlu0 %3515  ;;  %v3755_v15 = vsel %vm12989_vm14, %v3728_v27, %v12988_v30  ;;  %v3711_v26 = vadd.f32 %v3695_v14, %v3605_v39  ;;  %v12993_v27 = vld [vmem:[#allocation61_spill] sm:$0xff]  ;;  %v3651_v29 = vsel %vm3645_vm15, %v10792_v11, %v12998_v45  ;;  %v13007_v45 = vld [vmem:[#allocation23_spill] sm:$0xff]  ;;  %vm13036_vm9 = vmmov %vm13030_vm0 }
 0x948   : > { %v3544_v43 = vsel %vm3539_vm13, %v10801_v52, %v12990_v62  ;;  %v3548_v55 = vsel %vm3539_vm13, %v12991_v13, %v10801_v52  ;;  %vm13015_vm13 = vmmov %vm12951_vm1 }
 0x949   : > { %v3581_v49 = vmul.f32 %v12997_v63, %v3548_v55  ;;  %v3582_v39 = vmul.f32 %v12997_v63, %v3544_v43  ;;  %vm13037_vm14 = vmmov %vm13030_vm0 }
 0x94b   : > { %5263 = vmatmul.msk.f32.gmra.mxu2 %vm12970_vm2, %v10817_v32  ;;  %5267 = vmatmul.msk.f32.gmra.mxu3 %vm12971_vm5, %v10817_v32  ;;  %vm13031_vm2 = vmmov %vm13030_vm0 }
 0x94c   : > { %vm13032_vm5 = vmmov %vm13030_vm0 }
 0x94e   : > { %v3622_v1 = vpop.permute.xlu1 %3621 }
 0x94f   : > { %v3839_v17 = vpop.permute.xlu0 %3838  ;;  %v3654_v37 = vsel %vm3645_vm15, %v12993_v27, %v3622_v1  ;;  %v3597_v27 = vadd.f32 %v3581_v49, %v3491_v9  ;;  %v13005_v49 = vld [vmem:[#allocation112_spill] sm:$0xff] }
 0x950   : > { %v3864_v54 = vsel %vm3856_vm12, %v3839_v17, %v10311_v59  ;;  %v3868_v25 = vsel %vm3856_vm12, %v12978_v10, %v3839_v17  ;;  %v3606_v59 = vadd.f32 %v3590_v51, %v3500_v6  ;;  %v3586_v6 = vmul.f32 %v12987_v48, %v3545_v4  ;;  %v12992_v17 = vld [vmem:[#allocation106_spill] sm:$0xff]  ;;  %v12995_v10 = vld [vmem:[#allocation99_spill] sm:$0xff] }
 0x951   : > { %v3910_v19 = vmul.f32 %v12986_v56, %v3868_v25  ;;  %v3911_v31 = vmul.f32 %v12986_v56, %v3864_v54  ;;  %v3792_v51 = vmul.f32 %v10556_v20, %v3759_v53  ;;  %v3650_v42 = vsel %vm3645_vm15, %v3622_v1, %v12992_v17  ;;  %v12994_v53 = vld [vmem:[#allocation108_spill] sm:$0xff] }
 0x952   : > { %v3712_v21 = vadd.f32 %v3696_v24, %v3606_v59  ;;  %v12996_v24 = vld [vmem:[#allocation89_spill] sm:$0xff]  ;;  %v3793_v48 = vmul.f32 %v10556_v20, %v3755_v15  ;;  %v3602_v20 = vadd.f32 %v3586_v6, %v10855_v41  ;;  %v3816_v15 = vadd.f32 %v10853_v57, %v3711_v26  ;;  %v13003_v6 = vld [vmem:[#allocation8_spill] sm:$0xff] }
 0x953   : > { %v3926_v14 = vadd.f32 %v3910_v19, %v3820_v33  ;;  %v3927_v52 = vadd.f32 %v3911_v31, %v3821_v28  ;;  %v12999_v33 = vld [vmem:[#allocation59_spill] sm:$0xff]  ;;  %v3601_v31 = vadd.f32 %v3585_v18, %v3495_v47  ;;  %v3598_v47 = vadd.f32 %v3582_v39, %v3492_v12  ;;  %v3833_v18 = vpop.permute.xlu2 %3832 }
 0x954   : > { %v3655_v28 = vsel %vm3645_vm15, %v12999_v33, %v10792_v11  ;;  %v3796_v39 = vmul.f32 %v13005_v49, %v10897_v34  ;;  %v13008_v33 = vld [vmem:[#allocation117_spill] sm:$0xff]  ;;  %v13009_v34 = vld [vmem:[#allocation104_spill] sm:$0xff]  ;;  %vm13016_vm15 = vmmov %vm12951_vm1 }
 0x956   : > { %v3945_v61 = vpop.permute.xlu1 %3944 }
 0x957   : > { %v3970_v54 = vsel %vm3962_vm3, %v3945_v61, %v12994_v53  ;;  %v3974_v25 = vsel %vm3962_vm3, %v12995_v10, %v3945_v61  ;;  %v3837_v2 = vpop.permute.xlu0 %3836  ;;  %v13001_v61 = vld [vmem:[#allocation62_spill] sm:$0xff] }
 0x958   : > { %v4016_v46 = vmul.f32 %v12996_v24, %v3974_v25  ;;  %v4017_v4 = vmul.f32 %v12996_v24, %v3970_v54  ;;  %v3863_v1 = vsel %vm3856_vm12, %v3837_v2, %v10457_v44  ;;  %v3867_v59 = vsel %vm3856_vm12, %v10378_v5, %v3837_v2  ;;  %v13000_v44 = vld [vmem:[#allocation98_spill] sm:$0xff]  ;;  %v13002_v54 = vld [vmem:[#allocation101_spill] sm:$0xff] }
 0x959   : > { %v3687_v30 = vmul.f32 %v13000_v44, %v3654_v37  ;;  %v3688_v62 = vmul.f32 %v13000_v44, %v3650_v42  ;;  %v3906_v5 = vmul.f32 %v10475_v60, %v3867_v59  ;;  %v3907_v43 = vmul.f32 %v10475_v60, %v3863_v1  ;;  %v13006_v1 = vld [vmem:[#allocation115_spill] sm:$0xff] }
 0x95a   : > { %v4032_v56 = vadd.f32 %v4016_v46, %v3926_v14  ;;  %v4033_v19 = vadd.f32 %v4017_v4, %v3927_v52  ;;  %v3691_v17 = vmul.f32 %v13001_v61, %v3655_v28  ;;  %v3692_v11 = vmul.f32 %v13001_v61, %v3651_v29  ;;  %v13004_v14 = vld [vmem:[#allocation18_spill] sm:$0xff] }
 0x95b   : > { %v3817_v42 = vadd.f32 %v3801_v23, %v3712_v21  ;;  %v3703_v60 = vadd.f32 %v3687_v30, %v3597_v27  ;;  %v3704_v53 = vadd.f32 %v3688_v62, %v3598_v47  ;;  %v3922_v10 = vadd.f32 %v3906_v5, %v3816_v15 }
 0x95c   : > { %v4072_v13 = vadd.f32 %v10548_v35, %v4032_v56  ;;  %v4073_v55 = vadd.f32 %v10548_v35, %v4033_v19  ;;  %v3707_v23 = vadd.f32 %v3691_v17, %v3601_v31  ;;  %v3708_v26 = vadd.f32 %v3692_v11, %v3602_v20  ;;  %v13012_v17 = vld [vmem:[#allocation110_spill] sm:$0xff] }
 0x95d   : > { %v3923_v41 = vadd.f32 %v3907_v43, %v3817_v42  ;;  %v3861_v21 = vsel %vm3856_vm12, %v3833_v18, %v10583_v22  ;;  %v3808_v4 = vadd.f32 %v3792_v51, %v3703_v60  ;;  %v3809_v63 = vadd.f32 %v3793_v48, %v3704_v53  ;;  %v13010_v48 = vld [vmem:[#allocation124_spill] sm:$0xff]  ;;  %v13013_v20 = vld [vmem:[#allocation118_spill] sm:$0xff] }
 0x95e   : > { %v3943_v37 = vpop.permute.xlu1 %3942  ;;  %4128 = vmatpush.msrb.mxu0 %v4072_v13  ;;  %4157 = vmatpush.msrb.mxu1 %v4073_v55  ;;  %v3797_v22 = vmul.f32 %v13005_v49, %v10891_v0  ;;  %v3899_v29 = vmul.f32 %v13007_v45, %v3861_v21  ;;  %v3812_v51 = vadd.f32 %v3796_v39, %v3707_v23  ;;  %v13011_v55 = vld [vmem:[#allocation12_spill] sm:$0xff] }
 0x95f   : > { %v3969_v35 = vsel %vm3962_vm3, %v3943_v37, %v10530_v36  ;;  %v3973_v9 = vsel %vm3962_vm3, %v13002_v54, %v3943_v37  ;;  %v3835_v12 = vpop.permute.xlu0 %3834  ;;  %v3865_v36 = vsel %vm3856_vm12, %v10589_v16, %v3833_v18 }
 0x960   : > { %v4012_v25 = vmul.f32 %v13003_v6, %v3973_v9  ;;  %v4013_v57 = vmul.f32 %v13003_v6, %v3969_v35  ;;  %v3862_v2 = vsel %vm3856_vm12, %v3835_v12, %v10511_v7  ;;  %v3866_v52 = vsel %vm3856_vm12, %v13004_v14, %v3835_v12  ;;  %v13014_v35 = vld [vmem:[#allocation120_spill] sm:$0xff]  ;;  %vm13017_vm12 = vmmov %vm12951_vm1 }
 0x961   : > { %v3898_v7 = vmul.f32 %v13007_v45, %v3865_v36  ;;  %v3902_v28 = vmul.f32 %v13008_v33, %v3866_v52  ;;  %v3903_v56 = vmul.f32 %v13008_v33, %v3862_v2  ;;  %v3813_v19 = vadd.f32 %v3797_v22, %v3708_v26  ;;  %v5420_v22 = vld [vmem:[#allocation2 + $0x10] sm:$0xff]  ;;  %v5422_v45 = vld [vmem:[#allocation2 + $0x8] sm:$0xff] }
 0x962   : > { %v4028_v24 = vadd.f32 %v4012_v25, %v3922_v10  ;;  %v4029_v46 = vadd.f32 %v4013_v57, %v3923_v41  ;;  %v3915_v5 = vadd.f32 %v3899_v29, %v3809_v63  ;;  %v11022_v25 = vpop.permute.xlu2 %4101  ;;  %v5423_v29 = vld [vmem:[#allocation2 + $0x48] sm:$0xff] }
 0x963   : > { %v3914_v62 = vadd.f32 %v3898_v7, %v3808_v4  ;;  %v3918_v27 = vadd.f32 %v3902_v28, %v3812_v51  ;;  %v3919_v47 = vadd.f32 %v3903_v56, %v3813_v19  ;;  %v5419_v4 = vld [vmem:[#allocation2 + $0x28] sm:$0xff]  ;;  %v5424_v28 = vld [vmem:[#allocation2 + $0x58] sm:$0xff] }
 0x964   : > { %v4068_v16 = vadd.f32 %v13006_v1, %v4028_v24  ;;  %v4069_v59 = vadd.f32 %v13006_v1, %v4029_v46  ;;  %v5418_v24 = vld [vmem:[#allocation2 + $0x78] sm:$0xff] }
 0x965   : > { %v5425_v51 = vld [vmem:[#allocation2 + $0x18] sm:$0xff] }
 0x966   : > { %v3939_v31 = vpop.permute.xlu1 %3938  ;;  %4129 = vmatpush.msrb.mxu0 %v4068_v16  ;;  %4158 = vmatpush.msrb.mxu1 %v4069_v59  ;;  %v5421_v16 = vld [vmem:[#allocation2 + $0x38] sm:$0xff] }
 0x967   : > { %v3967_v0 = vsel %vm3962_vm3, %v3939_v31, %v13009_v34  ;;  %v3971_v44 = vsel %vm3962_vm3, %v13010_v48, %v3939_v31  ;;  %v3941_v30 = vpop.permute.xlu0 %3940  ;;  %v11057_v31 = vld [vmem:[%s5640_s24] sm:$0xff]  ;;  %v11066_v34 = vld [vmem:[%s5640_s24 + $0x8] sm:$0xff] }
 0x968   : > { %v4004_v43 = vmul.f32 %v10659_v8, %v3971_v44  ;;  %v4005_v13 = vmul.f32 %v10659_v8, %v3967_v0  ;;  %v3968_v61 = vsel %vm3962_vm3, %v3941_v30, %v13011_v55  ;;  %v3972_v11 = vsel %vm3962_vm3, %v13012_v17, %v3941_v30  ;;  %vm13018_vm3 = vmmov %vm12951_vm1  ;;  %v11073_v0 = vld [vmem:[%s5640_s24 + $0x10] sm:$0xff]  ;;  %v11080_v30 = vld [vmem:[%s5640_s24 + $0x18] sm:$0xff] }
 0x969   : > { %v4008_v18 = vmul.f32 %v13013_v20, %v3972_v11  ;;  %v4009_v15 = vmul.f32 %v13013_v20, %v3968_v61  ;;  %v11094_v61 = vld [vmem:[%s5640_s24 + $0x28] sm:$0xff] }
 0x96a   : > { %v4020_v60 = vadd.f32 %v4004_v43, %v3914_v62  ;;  %v4021_v53 = vadd.f32 %v4005_v13, %v3915_v5  ;;  %v11030_v2 = vpop.permute.xlu2 %4086  ;;  %v11087_v43 = vld [vmem:[%s5640_s24 + $0x20] sm:$0xff] }
 0x96b   : > { %v4024_v42 = vadd.f32 %v4008_v18, %v3918_v27  ;;  %v4025_v37 = vadd.f32 %v4009_v15, %v3919_v47  ;;  %v11105_v15 = vld [vmem:[%s5640_s24 + $0x30] sm:$0xff] }
 0x96c   : > { %v4060_v9 = vadd.f32 %v10682_v3, %v4020_v60  ;;  %v4061_v50 = vadd.f32 %v10682_v3, %v4021_v53  ;;  %v5426_v60 = vld [vmem:[#allocation2 + $0x60] sm:$0xff] }
 0x96d   : > { %v4064_v8 = vadd.f32 %v13014_v35, %v4024_v42  ;;  %v4065_v54 = vadd.f32 %v13014_v35, %v4025_v37  ;;  %v5427_v35 = vld [vmem:[#allocation2 + $0x70] sm:$0xff] }
 0x96e   : > { %v4092_v36 = vpop.permute.xlu1 %4091 }
 0x96f   : > { %4130 = vmatpush.msrb.mxu0 %v4064_v8  ;;  %4159 = vmatpush.msrb.mxu1 %v4065_v54 }
 0x971   : > { %4131 = vmatpush.msrb.mxu0 %v4060_v9  ;;  %4160 = vmatpush.msrb.mxu1 %v4061_v50  ;;  %v5428_v50 = vld [vmem:[#allocation2 + $0x40] sm:$0xff] }
 0x972   : > { %5252 = vmatmul.msk.f32.vlgmr.msrb.gmra.mxu0 %vm13015_vm13, %v10689_v38  ;;  %5256 = vmatmul.msk.f32.vlgmr.msrb.gmra.mxu1 %vm13016_vm15, %v10689_v38  ;;  %vm13038_vm13 = vmmov %vm13030_vm0 }
 0x973   : > { %vm13039_vm15 = vmmov %vm13030_vm0 }
 0x97a   : > { %5253 = vmatmul.msk.f32.gmra.mxu0 %vm13017_vm12, %v10700_v40  ;;  %5257 = vmatmul.msk.f32.gmra.mxu1 %vm13018_vm3, %v10700_v40  ;;  %v11024_v40 = vpop.permute.xlu0 %4096  ;;  %vm13040_vm12 = vmmov %vm13030_vm0 }
 0x97b   : > { %vm13041_vm3 = vmmov %vm13030_vm0 }
 0x982   : > { %5254 = vmatmul.msk.f32.gmra.mxu0 %vm13019_vm10, %v10746_v58  ;;  %5258 = vmatmul.msk.f32.gmra.mxu1 %vm12951_vm1, %v10746_v58  ;;  %vm13044_vm10 = vmmov %vm13030_vm0 }
 0x983   : > { %vm13045_vm1 = vmmov %vm13030_vm0 }
 0x98a   : > { %5255 = vmatmul.msk.f32.gmra.mxu0 %vm13020_vm4, %v10817_v32  ;;  %5259 = vmatmul.msk.f32.gmra.mxu1 %vm13021_vm11, %v10817_v32  ;;  %vm13052_vm4 = vmmov %vm13030_vm0 }
 0x98b   : > { %vm13053_vm11 = vmmov %vm13030_vm0 }
 0x9b6   : > { %v4191_v3 = vpop.f32.mrf.mxu2  ;;  %v4220_v38 = vpop.f32.mrf.mxu3 }
 0x9b7   : > { %v4192_v49 = vadd.f32 %v4191_v3, %v11030_v2  ;;  %v4221_v39 = vadd.f32 %v4220_v38, %v11030_v2  ;;  %v5429_v38 = vld [vmem:[#allocation2 + $0x20] sm:$0xff] }
 0x9b9   : > { %v11050_v56 = vadd.f32 %v5424_v28, %v4192_v49  ;;  %v11052_v19 = vadd.f32 %v5425_v51, %v4221_v39 }
 0x9bb   : > { %13028 = vst [vmem:[#allocation127_spill] sm:$0xff] %v11050_v56 }
 0x9bc   : > { %13029 = vst [vmem:[#allocation122_spill] sm:$0xff] %v11052_v19 }
 0x9be   : > { %v4194_v12 = vpop.f32.mrf.mxu2  ;;  %v4223_v10 = vpop.f32.mrf.mxu3 }
 0x9bf   : > { %v4195_v14 = vadd.f32 %v4194_v12, %v4092_v36  ;;  %v4224_v52 = vadd.f32 %v4223_v10, %v4092_v36  ;;  %v5430_v10 = vld [vmem:[#allocation2 + $0x50] sm:$0xff] }
 0x9c1   : > { %v11044_v7 = vadd.f32 %v5422_v45, %v4195_v14  ;;  %v11046_v33 = vadd.f32 %v5423_v29, %v4224_v52  ;;  %v4260_v14 = vld [vmem:[%s5640_s24 + $0x60] sm:$0xff]  ;;  %v4261_v52 = vld [vmem:[%s5640_s24 + $0x68] sm:$0xff] }
 0x9c3   : > { %13026 = vst [vmem:[#allocation116_spill] sm:$0xff] %v11044_v7 }
 0x9c4   : > { %13027 = vst [vmem:[#allocation22_spill] sm:$0xff] %v11046_v33 }
 0x9c6   : > { %v4197_v41 = vpop.f32.mrf.mxu2  ;;  %v4226_v6 = vpop.f32.mrf.mxu3 }
 0x9c7   : > { %v4198_v58 = vadd.f32 %v4197_v41, %v11024_v40  ;;  %v4227_v26 = vadd.f32 %v4226_v6, %v11024_v40  ;;  %v5431_v6 = vld [vmem:[#allocation2 + $0x68] sm:$0xff] }
 0x9c9   : > { %v11038_v1 = vadd.f32 %v5420_v22, %v4198_v58  ;;  %v11040_v59 = vadd.f32 %v5421_v16, %v4227_v26  ;;  %v4255_v26 = vld [vmem:[%s5640_s24 + $0x38] sm:$0xff] }
 0x9cb   : > { %13024 = vst [vmem:[#allocation113_spill] sm:$0xff] %v11038_v1 }
 0x9cc   : > { %13025 = vst [vmem:[#allocation129_spill] sm:$0xff] %v11040_v59 }
 0x9ce   : > { %v4200_v57 = vpop.f32.mrf.mxu2  ;;  %v4229_v23 = vpop.f32.mrf.mxu3 }
 0x9cf   : > { %v4201_v21 = vadd.f32 %v4200_v57, %v11022_v25  ;;  %v4230_v32 = vadd.f32 %v4229_v23, %v11022_v25  ;;  %v5433_v23 = vld [vmem:[#allocation2] sm:$0xff] }
 0x9d1   : > { %v11032_v46 = vadd.f32 %v5418_v24, %v4201_v21  ;;  %v11034_v63 = vadd.f32 %v5419_v4, %v4230_v32  ;;  %v4256_v21 = vld [vmem:[%s5640_s24 + $0x40] sm:$0xff]  ;;  %v4257_v32 = vld [vmem:[%s5640_s24 + $0x48] sm:$0xff]  ;;  %v4262_v24 = vld [vmem:[%s5640_s24 + $0x70] sm:$0xff] }
 0x9d2   : > { %v4263_v4 = vld [vmem:[%s5640_s24 + $0x78] sm:$0xff] }
 0x9d3   : > { %13022 = vst [vmem:[#allocation123_spill] sm:$0xff] %v11032_v46  ;;  %4550 = vmatpush.msra.mxu2 %v11032_v46  ;;  %4615 = vmatpush.msra.mxu3 %v11034_v63 }
 0x9d4   : > { %13023 = vst [vmem:[#allocation27_spill] sm:$0xff] %v11034_v63 }
 0x9d5   : > { %4551 = vmatpush.msra.mxu2 %v11038_v1  ;;  %4616 = vmatpush.msra.mxu3 %v11040_v59 }
 0x9d7   : > { %4552 = vmatpush.msra.mxu2 %v11044_v7  ;;  %4617 = vmatpush.msra.mxu3 %v11046_v33 }
 0x9d9   : > { %4553 = vmatpush.msra.mxu2 %v11050_v56  ;;  %4618 = vmatpush.msra.mxu3 %v11052_v19 }
 0x9da   : > { %5300 = vmatmul.msk.f32.vlgmr.msra.gmra.mxu2 %vm13030_vm0, %v11057_v31  ;;  %5316 = vmatmul.msk.f32.vlgmr.msra.gmra.mxu3 %vm13031_vm2, %v11057_v31  ;;  %vm13054_vm2 = vmmov %vm13030_vm0 }
 0x9e2   : > { %5301 = vmatmul.msk.f32.gmra.mxu2 %vm13032_vm5, %v11066_v34  ;;  %5317 = vmatmul.msk.f32.gmra.mxu3 %vm13033_vm6, %v11066_v34  ;;  %vm13055_vm5 = vmmov %vm13030_vm0 }
 0x9e3   : > { %vm13056_vm6 = vmmov %vm13030_vm0 }
 0x9ea   : > { %5302 = vmatmul.msk.f32.gmra.mxu2 %vm13034_vm7, %v11073_v0  ;;  %5318 = vmatmul.msk.f32.gmra.mxu3 %vm13035_vm8, %v11073_v0  ;;  %vm13057_vm7 = vmmov %vm13030_vm0 }
 0x9eb   : > { %vm13058_vm8 = vmmov %vm13030_vm0 }
 0x9ef   : > { %v4133_v48 = vpop.f32.mrf.mxu0  ;;  %v4162_v44 = vpop.f32.mrf.mxu1 }
 0x9f0   : > { %v4134_v54 = vadd.f32 %v4133_v48, %v11030_v2  ;;  %v4163_v9 = vadd.f32 %v4162_v44, %v11030_v2  ;;  %v4259_v2 = vld [vmem:[%s5640_s24 + $0x58] sm:$0xff] }
 0x9f2   : > { %5303 = vmatmul.msk.f32.gmra.mxu2 %vm13036_vm9, %v11080_v30  ;;  %5319 = vmatmul.msk.f32.gmra.mxu3 %vm13037_vm14, %v11080_v30  ;;  %v11131_v58 = vadd.f32 %v5433_v23, %v4163_v9  ;;  %vm13059_vm9 = vmmov %vm13030_vm0  ;;  %v11274_v23 = vpop.permute.xlu0 %4357 }
 0x9f3   : > { %vm13060_vm14 = vmmov %vm13030_vm0 }
 0x9f4   : > { %13051 = vst [vmem:[#allocation125_spill] sm:$0xff] %v11131_v58 }
 0x9f7   : > { %v4136_v62 = vpop.f32.mrf.mxu0  ;;  %v4165_v5 = vpop.f32.mrf.mxu1 }
 0x9f8   : > { %v4137_v42 = vadd.f32 %v4136_v62, %v4092_v36  ;;  %v4166_v37 = vadd.f32 %v4165_v5, %v4092_v36  ;;  %v4258_v36 = vld [vmem:[%s5640_s24 + $0x50] sm:$0xff] }
 0x9fa   : > { %5304 = vmatmul.msk.f32.gmra.mxu2 %vm13038_vm13, %v11087_v43  ;;  %5320 = vmatmul.msk.f32.gmra.mxu3 %vm13039_vm15, %v11087_v43  ;;  %v11123_v41 = vadd.f32 %v5430_v10, %v4137_v42  ;;  %vm13061_vm13 = vmmov %vm13030_vm0 }
 0x9fb   : > { %vm13062_vm15 = vmmov %vm13030_vm0 }
 0x9fc   : > { %13048 = vst [vmem:[#allocation136_spill] sm:$0xff] %v11123_v41 }
 0x9ff   : > { %v4139_v13 = vpop.f32.mrf.mxu0  ;;  %v4168_v55 = vpop.f32.mrf.mxu1 }
 0xa00   : > { %v4140_v27 = vadd.f32 %v4139_v13, %v11024_v40  ;;  %v4169_v47 = vadd.f32 %v4168_v55, %v11024_v40  ;;  %v5432_v40 = vld [vmem:[#allocation2 + $0x30] sm:$0xff] }
 0xa01   : > { %v11129_v57 = vadd.f32 %v5432_v40, %v4134_v54 }
 0xa02   : > { %5305 = vmatmul.msk.f32.gmra.mxu2 %vm13040_vm12, %v11094_v61  ;;  %5321 = vmatmul.msk.f32.gmra.mxu3 %vm13041_vm3, %v11094_v61  ;;  %v11117_v3 = vadd.f32 %v5428_v50, %v4140_v27  ;;  %v11119_v12 = vadd.f32 %v5429_v38, %v4169_v47  ;;  %vm13063_vm12 = vmmov %vm13030_vm0 }
 0xa03   : > { %13050 = vst [vmem:[#allocation52_spill] sm:$0xff] %v11129_v57  ;;  %vm13064_vm3 = vmmov %vm13030_vm0 }
 0xa04   : > { %13046 = vst [vmem:[#allocation132_spill] sm:$0xff] %v11117_v3 }
 0xa05   : > { %13047 = vst [vmem:[#allocation37_spill] sm:$0xff] %v11119_v12 }
 0xa07   : > { %v4142_v17 = vpop.f32.mrf.mxu0  ;;  %v4171_v11 = vpop.f32.mrf.mxu1 }
 0xa08   : > { %v4143_v20 = vadd.f32 %v4142_v17, %v11022_v25  ;;  %v4172_v18 = vadd.f32 %v4171_v11, %v11022_v25  ;;  %v11125_v25 = vadd.f32 %v5431_v6, %v4166_v37 }
 0xa0a   : > { %v11107_v53 = vadd.f32 %v5426_v60, %v4143_v20  ;;  %v11109_v8 = vadd.f32 %v5427_v35, %v4172_v18  ;;  %5306 = vmatmul.msk.f32.gmra.mxu2 %vm13044_vm10, %v11105_v15  ;;  %5322 = vmatmul.msk.f32.gmra.mxu3 %vm13045_vm1, %v11105_v15  ;;  %13049 = vst [vmem:[#allocation135_spill] sm:$0xff] %v11125_v25  ;;  %vm13065_vm10 = vmmov %vm13030_vm0 }
 0xa0b   : > { %vm13066_vm1 = vmmov %vm13030_vm0 }
 0xa0c   : > { %13042 = vst [vmem:[#allocation130_spill] sm:$0xff] %v11107_v53  ;;  %4420 = vmatpush.msra.mxu0 %v11107_v53  ;;  %4485 = vmatpush.msra.mxu1 %v11109_v8 }
 0xa0d   : > { %13043 = vst [vmem:[#allocation34_spill] sm:$0xff] %v11109_v8 }
 0xa0e   : > { %4421 = vmatpush.msra.mxu0 %v11117_v3  ;;  %4486 = vmatpush.msra.mxu1 %v11119_v12 }
 0xa10   : > { %4422 = vmatpush.msra.mxu0 %v11123_v41  ;;  %4487 = vmatpush.msra.mxu1 %v11125_v25 }
 0xa12   : > { %4423 = vmatpush.msra.mxu0 %v11129_v57  ;;  %4488 = vmatpush.msra.mxu1 %v11131_v58 }
 0xa13   : > { %5307 = vmatmul.msk.f32.gmra.mxu2 %vm13052_vm4, %v4255_v26  ;;  %5323 = vmatmul.msk.f32.gmra.mxu3 %vm13053_vm11, %v4255_v26  ;;  %vm13067_vm4 = vmmov %vm13030_vm0 }
 0xa14   : > { %5268 = vmatmul.msk.f32.vlgmr.msra.gmra.mxu0 %vm13030_vm0, %v11057_v31  ;;  %5284 = vmatmul.msk.f32.vlgmr.msra.gmra.mxu1 %vm13054_vm2, %v11057_v31  ;;  %vm13068_vm11 = vmmov %vm13030_vm0 }
 0xa15   : > { %vm13069_vm2 = vmmov %vm13030_vm0 }
 0xa1b   : > { %5308 = vmatmul.msk.f32.gmra.mxu2 %vm13055_vm5, %v4256_v21  ;;  %5324 = vmatmul.msk.f32.gmra.mxu3 %vm13056_vm6, %v4256_v21  ;;  %vm13070_vm5 = vmmov %vm13030_vm0 }
 0xa1c   : > { %5269 = vmatmul.msk.f32.gmra.mxu0 %vm13057_vm7, %v11066_v34  ;;  %5285 = vmatmul.msk.f32.gmra.mxu1 %vm13058_vm8, %v11066_v34  ;;  %vm13071_vm6 = vmmov %vm13030_vm0 }
 0xa1d   : > { %vm13072_vm7 = vmmov %vm13030_vm0 }
 0xa1e   : > { %vm13073_vm8 = vmmov %vm13030_vm0 }
 0xa23   : > { %5309 = vmatmul.msk.f32.gmra.mxu2 %vm13059_vm9, %v4257_v32  ;;  %5325 = vmatmul.msk.f32.gmra.mxu3 %vm13060_vm14, %v4257_v32  ;;  %vm13074_vm9 = vmmov %vm13030_vm0 }
 0xa24   : > { %5270 = vmatmul.msk.f32.gmra.mxu0 %vm13061_vm13, %v11073_v0  ;;  %5286 = vmatmul.msk.f32.gmra.mxu1 %vm13062_vm15, %v11073_v0  ;;  %vm13075_vm14 = vmmov %vm13030_vm0 }
 0xa25   : > { %vm13076_vm13 = vmmov %vm13030_vm0 }
 0xa26   : > { %vm13077_vm15 = vmmov %vm13030_vm0 }
 0xa2b   : > { %5310 = vmatmul.msk.f32.gmra.mxu2 %vm13063_vm12, %v4258_v36  ;;  %5326 = vmatmul.msk.f32.gmra.mxu3 %vm13064_vm3, %v4258_v36  ;;  %vm13078_vm12 = vmmov %vm13030_vm0 }
 0xa2c   : > { %5271 = vmatmul.msk.f32.gmra.mxu0 %vm13065_vm10, %v11080_v30  ;;  %5287 = vmatmul.msk.f32.gmra.mxu1 %vm13066_vm1, %v11080_v30  ;;  %vm13079_vm3 = vmmov %vm13030_vm0 }
 0xa2d   : > { %vm13080_vm10 = vmmov %vm13030_vm0 }
 0xa2e   : > { %vm13081_vm1 = vmmov %vm13030_vm0 }
 0xa33   : > { %5311 = vmatmul.msk.f32.gmra.mxu2 %vm13067_vm4, %v4259_v2  ;;  %5327 = vmatmul.msk.f32.gmra.mxu3 %vm13068_vm11, %v4259_v2  ;;  %vm13082_vm4 = vmmov %vm13030_vm0 }
 0xa34   : > { %5272 = vmatmul.msk.f32.gmra.mxu0 %vm13030_vm0, %v11087_v43  ;;  %5288 = vmatmul.msk.f32.gmra.mxu1 %vm13069_vm2, %v11087_v43  ;;  %vm13083_vm11 = vmmov %vm13030_vm0 }
 0xa35   : > { %vm13084_vm2 = vmmov %vm13030_vm0 }
 0xa3b   : > { %5312 = vmatmul.msk.f32.gmra.mxu2 %vm13070_vm5, %v4260_v14  ;;  %5328 = vmatmul.msk.f32.gmra.mxu3 %vm13071_vm6, %v4260_v14  ;;  %vm13085_vm5 = vmmov %vm13030_vm0 }
 0xa3c   : > { %5273 = vmatmul.msk.f32.gmra.mxu0 %vm13072_vm7, %v11094_v61  ;;  %5289 = vmatmul.msk.f32.gmra.mxu1 %vm13073_vm8, %v11094_v61  ;;  %vm13086_vm6 = vmmov %vm13030_vm0 }
 0xa3d   : > { %vm13087_vm7 = vmmov %vm13030_vm0 }
 0xa3e   : > { %vm13088_vm8 = vmmov %vm13030_vm0 }
 0xa43   : > { %5313 = vmatmul.msk.f32.gmra.mxu2 %vm13074_vm9, %v4261_v52  ;;  %5329 = vmatmul.msk.f32.gmra.mxu3 %vm13075_vm14, %v4261_v52  ;;  %vm13089_vm9 = vmmov %vm13030_vm0 }
 0xa44   : > { %5274 = vmatmul.msk.f32.gmra.mxu0 %vm13076_vm13, %v11105_v15  ;;  %5290 = vmatmul.msk.f32.gmra.mxu1 %vm13077_vm15, %v11105_v15  ;;  %vm13090_vm14 = vmmov %vm13030_vm0 }
 0xa45   : > { %vm13091_vm13 = vmmov %vm13030_vm0 }
 0xa46   : > { %vm13092_vm15 = vmmov %vm13030_vm0 }
 0xa4b   : > { %5314 = vmatmul.msk.f32.gmra.mxu2 %vm13078_vm12, %v4262_v24  ;;  %5330 = vmatmul.msk.f32.gmra.mxu3 %vm13079_vm3, %v4262_v24  ;;  %vm13093_vm12 = vmmov %vm13030_vm0 }
 0xa4c   : > { %5275 = vmatmul.msk.f32.gmra.mxu0 %vm13080_vm10, %v4255_v26  ;;  %5291 = vmatmul.msk.f32.gmra.mxu1 %vm13081_vm1, %v4255_v26  ;;  %vm13094_vm3 = vmmov %vm13030_vm0 }
 0xa4d   : > { %vm13095_vm10 = vmmov %vm13030_vm0 }
 0xa4e   : > { %vm13096_vm1 = vmmov %vm13030_vm0 }
 0xa53   : > { %5315 = vmatmul.msk.f32.gmra.mxu2 %vm13082_vm4, %v4263_v4  ;;  %5331 = vmatmul.msk.f32.gmra.mxu3 %vm13083_vm11, %v4263_v4  ;;  %vm13097_vm4 = vmmov %vm13030_vm0 }
 0xa54   : > { %5276 = vmatmul.msk.f32.gmra.mxu0 %vm13030_vm0, %v4256_v21  ;;  %5292 = vmatmul.msk.f32.gmra.mxu1 %vm13084_vm2, %v4256_v21  ;;  %vm13098_vm11 = vmmov %vm13030_vm0 }
 0xa5c   : > { %5277 = vmatmul.msk.f32.gmra.mxu0 %vm13085_vm5, %v4257_v32  ;;  %5293 = vmatmul.msk.f32.gmra.mxu1 %vm13086_vm6, %v4257_v32  ;;  %v11280_v32 = vpop.permute.xlu1 %4352 }
 0xa5d   : > { %v11198_v49 = vpop.f32.mrf.mxu2  ;;  %v11200_v39 = vpop.f32.mrf.mxu3 }
 0xa64   : > { %5278 = vmatmul.msk.f32.gmra.mxu0 %vm13087_vm7, %v4258_v36  ;;  %5294 = vmatmul.msk.f32.gmra.mxu1 %vm13088_vm8, %v4258_v36  ;;  %v11290_v12 = vpop.permute.xlu1 %4337 }
 0xa65   : > { %v11204_v22 = vpop.f32.mrf.mxu2  ;;  %v11206_v16 = vpop.f32.mrf.mxu3 }
 0xa6c   : > { %5279 = vmatmul.msk.f32.gmra.mxu0 %vm13089_vm9, %v4259_v2  ;;  %5295 = vmatmul.msk.f32.gmra.mxu1 %vm13090_vm14, %v4259_v2 }
 0xa6d   : > { %v11210_v45 = vpop.f32.mrf.mxu2  ;;  %v11212_v29 = vpop.f32.mrf.mxu3 }
 0xa74   : > { %5280 = vmatmul.msk.f32.gmra.mxu0 %vm13091_vm13, %v4260_v14  ;;  %5296 = vmatmul.msk.f32.gmra.mxu1 %vm13092_vm15, %v4260_v14  ;;  %v11282_v14 = vpop.permute.xlu2 %4347 }
 0xa75   : > { %v11216_v28 = vpop.f32.mrf.mxu2  ;;  %v11218_v51 = vpop.f32.mrf.mxu3 }
 0xa7c   : > { %5281 = vmatmul.msk.f32.gmra.mxu0 %vm13093_vm12, %v4261_v52  ;;  %5297 = vmatmul.msk.f32.gmra.mxu1 %vm13094_vm3, %v4261_v52  ;;  %v11296_v41 = vpop.permute.xlu2 %4332 }
 0xa7d   : > { %v11222_v31 = vpop.f32.mrf.mxu2  ;;  %v11224_v34 = vpop.f32.mrf.mxu3 }
 0xa84   : > { %5282 = vmatmul.msk.f32.gmra.mxu0 %vm13095_vm10, %v4262_v24  ;;  %5298 = vmatmul.msk.f32.gmra.mxu1 %vm13096_vm1, %v4262_v24 }
 0xa85   : > { %v11228_v0 = vpop.f32.mrf.mxu2  ;;  %v11230_v48 = vpop.f32.mrf.mxu3 }
 0xa8c   : > { %5283 = vmatmul.msk.f32.gmra.mxu0 %vm13097_vm4, %v4263_v4  ;;  %5299 = vmatmul.msk.f32.gmra.mxu1 %vm13098_vm11, %v4263_v4  ;;  %v11288_v4 = vpop.permute.xlu0 %4342 }
 0xa8d   : > { %v11234_v44 = vpop.f32.mrf.mxu2  ;;  %v11236_v30 = vpop.f32.mrf.mxu3 }
 0xa91   : > { %v11238_v62 = vpop.f32.mrf.mxu0  ;;  %v11240_v5 = vpop.f32.mrf.mxu1 }
 0xa92   : > { %13099 = vst [vmem:[#allocation33_spill] sm:$0xff] %v11238_v62 }
 0xa93   : > { %13100 = vst [vmem:[#allocation141_spill] sm:$0xff] %v11240_v5 }
 0xa94   : > { %v11298_v58 = vpop.permute.xlu0 %4327 }
 0xa96   : > { %v11242_v43 = vpop.f32.mrf.mxu2  ;;  %v11244_v13 = vpop.f32.mrf.mxu3 }
 0xa99   : > { %v11246_v55 = vpop.f32.mrf.mxu0  ;;  %v11248_v61 = vpop.f32.mrf.mxu1 }
 0xa9a   : > { %13101 = vst [vmem:[#allocation128_spill] sm:$0xff] %v11246_v55  ;;  %v11310_v55 = vpop.permute.xlu1 %4322 }
 0xa9b   : > { %13102 = vst [vmem:[#allocation139_spill] sm:$0xff] %v11248_v61 }
 0xa9e   : > { %v11250_v17 = vpop.f32.mrf.mxu2  ;;  %v11252_v11 = vpop.f32.mrf.mxu3 }
 0xaa1   : > { %v11254_v27 = vpop.f32.mrf.mxu0  ;;  %v11256_v47 = vpop.f32.mrf.mxu1 }
 0xaa2   : > { %13103 = vst [vmem:[#allocation160_spill] sm:$0xff] %v11254_v27  ;;  %v11318_v27 = vpop.permute.xlu0 %4312 }
 0xaa3   : > { %13104 = vst [vmem:[#allocation156_spill] sm:$0xff] %v11256_v47 }
 0xaa6   : > { %v11258_v20 = vpop.f32.mrf.mxu2  ;;  %v11260_v18 = vpop.f32.mrf.mxu3 }
 0xaa9   : > { %v11262_v15 = vpop.f32.mrf.mxu0  ;;  %v11264_v42 = vpop.f32.mrf.mxu1 }
 0xaae   : > { %v4585_v37 = vpop.f32.mrf.mxu2  ;;  %v4650_v60 = vpop.f32.mrf.mxu3 }
 0xab1   : > { %v11266_v35 = vpop.f32.mrf.mxu0  ;;  %v11268_v54 = vpop.f32.mrf.mxu1 }
 0xab6   : > { %v4588_v9 = vpop.f32.mrf.mxu2  ;;  %v4653_v50 = vpop.f32.mrf.mxu3 }
 0xab9   : > { %v11270_v38 = vpop.f32.mrf.mxu0  ;;  %v11272_v10 = vpop.f32.mrf.mxu1 }
 0xabe   : > { %v4591_v6 = vpop.f32.mrf.mxu2  ;;  %v4656_v40 = vpop.f32.mrf.mxu3 }
 0xac1   : > { %v11276_v26 = vpop.f32.mrf.mxu0  ;;  %v11278_v21 = vpop.f32.mrf.mxu1 }
 0xac6   : > { %v4594_v36 = vpop.f32.mrf.mxu2  ;;  %v4659_v2 = vpop.f32.mrf.mxu3 }
 0xac7   : > { %v4595_v7 = vadd.f32 %v4594_v36, %v11282_v14  ;;  %v4660_v19 = vadd.f32 %v4659_v2, %v11282_v14  ;;  %v4589_v36 = vadd.f32 %v4588_v9, %v11290_v12 }
 0xac9   : > { %v11284_v52 = vpop.f32.mrf.mxu0  ;;  %v11286_v24 = vpop.f32.mrf.mxu1  ;;  %v4723_v2 = vmax.f32 %v4660_v19, 0.0 }
 0xace   : > { %v4597_v8 = vpop.f32.mrf.mxu2  ;;  %v4662_v53 = vpop.f32.mrf.mxu3 }
 0xacf   : > { %v4598_v46 = vadd.f32 %v4597_v8, %v11280_v32  ;;  %v4663_v59 = vadd.f32 %v4662_v53, %v11280_v32  ;;  %v4592_v8 = vadd.f32 %v4591_v6, %v11288_v4  ;;  %v4657_v53 = vadd.f32 %v4656_v40, %v11288_v4 }
 0xad0   : > { %v4586_v6 = vadd.f32 %v4585_v37, %v11296_v41  ;;  %v4651_v40 = vadd.f32 %v4650_v60, %v11296_v41  ;;  %v4580_v37 = vadd.f32 %v11250_v17, %v11310_v55  ;;  %v4645_v60 = vadd.f32 %v11252_v11, %v11310_v55 }
 0xad1   : > { %v11292_v3 = vpop.f32.mrf.mxu0  ;;  %v11294_v25 = vpop.f32.mrf.mxu1  ;;  %v4726_v47 = vmax.f32 %v4598_v46, 0.0  ;;  %v4718_v46 = vmax.f32 %v4592_v8, 0.0  ;;  %v4574_v11 = vadd.f32 %v11234_v44, %v11318_v27 }
 0xad2   : > { %v4711_v8 = vmax.f32 %v4651_v40, 0.0 }
 0xad6   : > { %v4600_v57 = vpop.f32.mrf.mxu2  ;;  %v4665_v63 = vpop.f32.mrf.mxu3 }
 0xad7   : > { %v4601_v1 = vadd.f32 %v4600_v57, %v11274_v23  ;;  %v4666_v33 = vadd.f32 %v4665_v63, %v11274_v23  ;;  %v4727_v57 = vmax.f32 %v4663_v59, 0.0  ;;  %v11314_v63 = vpop.permute.xlu2 %4317  ;;  %v4719_v59 = vmax.f32 %v4657_v53, 0.0 }
 0xad8   : > { %v4642_v53 = vadd.f32 %v11244_v13, %v11314_v63 }
 0xad9   : > { %v4730_v56 = vmax.f32 %v4601_v1, 0.0  ;;  %v4731_v5 = vmax.f32 %v4666_v33, 0.0  ;;  %v11306_v62 = vpop.f32.mrf.mxu0  ;;  %v11308_v61 = vpop.f32.mrf.mxu1  ;;  %v4654_v1 = vadd.f32 %v4653_v50, %v11290_v12  ;;  %v4722_v33 = vmax.f32 %v4595_v7, 0.0 }
 0xada   : > { %v4714_v7 = vmax.f32 %v4589_v36, 0.0  ;;  %v4710_v50 = vmax.f32 %v4586_v6, 0.0 }
 0xadb   : > { %4818 = vmatpush.msrb.mxu2 %v4730_v56  ;;  %4847 = vmatpush.msrb.mxu3 %v4731_v5  ;;  %v4583_v56 = vadd.f32 %v11258_v20, %v11298_v58  ;;  %v4648_v5 = vadd.f32 %v11260_v18, %v11298_v58  ;;  %v4715_v19 = vmax.f32 %v4654_v1, 0.0  ;;  %v11334_v20 = vpop.permute.xlu1 %4307  ;;  %v4577_v18 = vadd.f32 %v11242_v43, %v11314_v63  ;;  %v11346_v43 = vpop.permute.xlu0 %4297 }
 0xadc   : > { %v4639_v1 = vadd.f32 %v11236_v30, %v11318_v27  ;;  %v4571_v13 = vadd.f32 %v11228_v0, %v11334_v20  ;;  %v4636_v6 = vadd.f32 %v11230_v48, %v11334_v20  ;;  %v4565_v0 = vadd.f32 %v11216_v28, %v11346_v43 }
 0xadd   : > { %4819 = vmatpush.msrb.mxu2 %v4726_v47  ;;  %4848 = vmatpush.msrb.mxu3 %v4727_v57  ;;  %v4706_v57 = vmax.f32 %v4583_v56, 0.0  ;;  %v4707_v36 = vmax.f32 %v4648_v5, 0.0  ;;  %v4698_v40 = vmax.f32 %v4577_v18, 0.0  ;;  %v4694_v5 = vmax.f32 %v4574_v11, 0.0 }
 0xade   : > { %v4630_v48 = vadd.f32 %v11218_v51, %v11346_v43 }
 0xadf   : > { %4820 = vmatpush.msrb.mxu2 %v4722_v33  ;;  %4849 = vmatpush.msrb.mxu3 %v4723_v2  ;;  %v11340_v17 = vpop.permute.xlu2 %4302  ;;  %v4702_v33 = vmax.f32 %v4580_v37, 0.0  ;;  %v4703_v2 = vmax.f32 %v4645_v60, 0.0  ;;  %v4691_v37 = vmax.f32 %v4636_v6, 0.0 }
 0xae0   : > { %v4568_v30 = vadd.f32 %v11222_v31, %v11340_v17  ;;  %v4633_v56 = vadd.f32 %v11224_v34, %v11340_v17 }
 0xae1   : > { %v11326_v47 = vpop.f32.mrf.mxu0  ;;  %v11328_v9 = vpop.f32.mrf.mxu1  ;;  %4821 = vmatpush.msrb.mxu2 %v4718_v46  ;;  %4850 = vmatpush.msrb.mxu3 %v4719_v59  ;;  %v4699_v46 = vmax.f32 %v4642_v53, 0.0  ;;  %v4682_v53 = vmax.f32 %v4565_v0, 0.0 }
 0xae3   : > { %4822 = vmatpush.msrb.mxu2 %v4714_v7  ;;  %4851 = vmatpush.msrb.mxu3 %v4715_v19  ;;  %v4695_v7 = vmax.f32 %v4639_v1, 0.0  ;;  %v4690_v19 = vmax.f32 %v4571_v13, 0.0  ;;  %v11364_v60 = vpop.permute.xlu1 %4292 }
 0xae4   : > { %v4562_v31 = vadd.f32 %v11210_v45, %v11364_v60  ;;  %v4627_v34 = vadd.f32 %v11212_v29, %v11364_v60  ;;  %v11376_v45 = vpop.permute.xlu0 %4282 }
 0xae5   : > { %4823 = vmatpush.msrb.mxu2 %v4710_v50  ;;  %4852 = vmatpush.msrb.mxu3 %v4711_v8  ;;  %v4686_v50 = vmax.f32 %v4568_v30, 0.0  ;;  %v4687_v8 = vmax.f32 %v4633_v56, 0.0  ;;  %v4556_v29 = vadd.f32 %v11198_v49, %v11376_v45  ;;  %v4621_v1 = vadd.f32 %v11200_v39, %v11376_v45  ;;  %v11388_v39 = vld [vmem:[%s5650_s16 + $0x8] sm:$0xff] }
 0xae7   : > { %4824 = vmatpush.msrb.mxu2 %v4706_v57  ;;  %4853 = vmatpush.msrb.mxu3 %v4707_v36  ;;  %v11370_v28 = vpop.permute.xlu2 %4287  ;;  %v4683_v57 = vmax.f32 %v4630_v48, 0.0  ;;  %v4670_v13 = vmax.f32 %v4556_v29, 0.0  ;;  %v4671_v6 = vmax.f32 %v4621_v1, 0.0 }
 0xae8   : > { %v4559_v51 = vadd.f32 %v11204_v22, %v11370_v28  ;;  %v4624_v18 = vadd.f32 %v11206_v16, %v11370_v28  ;;  %v4679_v22 = vmax.f32 %v4627_v34, 0.0 }
 0xae9   : > { %v11352_v59 = vpop.f32.mrf.mxu0  ;;  %v11354_v44 = vpop.f32.mrf.mxu1  ;;  %4825 = vmatpush.msrb.mxu2 %v4702_v33  ;;  %4854 = vmatpush.msrb.mxu3 %v4703_v2  ;;  %v4678_v33 = vmax.f32 %v4562_v31, 0.0 }
 0xaea   : > { %v4674_v16 = vmax.f32 %v4559_v51, 0.0  ;;  %v4675_v2 = vmax.f32 %v4624_v18, 0.0  ;;  %v4524_v29 = vadd.f32 %v11354_v44, %v11290_v12 }
 0xaeb   : > { %4826 = vmatpush.msrb.mxu2 %v4698_v40  ;;  %4855 = vmatpush.msrb.mxu3 %v4699_v46  ;;  %v11383_v40 = vld [vmem:[%s5650_s16] sm:$0xff] }
 0xaed   : > { %4827 = vmatpush.msrb.mxu2 %v4694_v5  ;;  %4856 = vmatpush.msrb.mxu3 %v4695_v7  ;;  %v11393_v5 = vld [vmem:[%s5650_s16 + $0x10] sm:$0xff] }
 0xaef   : > { %4828 = vmatpush.msrb.mxu2 %v4690_v19  ;;  %4857 = vmatpush.msrb.mxu3 %v4691_v37 }
 0xaf1   : > { %v4461_v36 = vpop.f32.mrf.mxu0  ;;  %v4526_v11 = vpop.f32.mrf.mxu1  ;;  %4829 = vmatpush.msrb.mxu2 %v4686_v50  ;;  %4858 = vmatpush.msrb.mxu3 %v4687_v8 }
 0xaf2   : > { %v4462_v18 = vadd.f32 %v4461_v36, %v11288_v4  ;;  %v4456_v36 = vadd.f32 %v11326_v47, %v11296_v41  ;;  %v4515_v47 = vadd.f32 %v11294_v25, %v11310_v55  ;;  %v4509_v25 = vadd.f32 %v11278_v21, %v11318_v27 }
 0xaf3   : > { %4830 = vmatpush.msrb.mxu2 %v4682_v53  ;;  %4859 = vmatpush.msrb.mxu3 %v4683_v57  ;;  %v4527_v53 = vadd.f32 %v4526_v11, %v11288_v4  ;;  %v4521_v4 = vadd.f32 %v11328_v9, %v11296_v41  ;;  %v4450_v41 = vadd.f32 %v11292_v3, %v11310_v55 }
 0xaf4   : > { %v4716_v11 = vmax.f32 %v4462_v18, 0.0  ;;  %v4708_v9 = vmax.f32 %v4456_v36, 0.0  ;;  %v4444_v3 = vadd.f32 %v11276_v26, %v11318_v27  ;;  %v4438_v26 = vadd.f32 %v11266_v35, %v11340_v17  ;;  %v13112_v36 = vld [vmem:[#allocation122_spill] sm:$0xff] }
 0xaf5   : > { %4831 = vmatpush.msrb.mxu2 %v4678_v33  ;;  %4860 = vmatpush.msrb.mxu3 %v4679_v22  ;;  %v4717_v22 = vmax.f32 %v4527_v53, 0.0  ;;  %v4700_v55 = vmax.f32 %v4450_v41, 0.0  ;;  %v4503_v27 = vadd.f32 %v11268_v54, %v11340_v17  ;;  %v4753_v41 = vpop.permute.xlu0 %4752 }
 0xaf6   : > { %v4692_v21 = vmax.f32 %v4444_v3, 0.0  ;;  %v4684_v17 = vmax.f32 %v4438_v26, 0.0  ;;  %v13118_v26 = vld [vmem:[#allocation27_spill] sm:$0xff] }
 0xaf7   : > { %4832 = vmatpush.msrb.mxu2 %v4674_v16  ;;  %4861 = vmatpush.msrb.mxu3 %v4675_v2  ;;  %v4713_v16 = vmax.f32 %v4524_v29, 0.0  ;;  %v4709_v2 = vmax.f32 %v4521_v4, 0.0 }
 0xaf9   : > { %v4464_v49 = vpop.f32.mrf.mxu0  ;;  %v4529_v46 = vpop.f32.mrf.mxu1  ;;  %4833 = vmatpush.msrb.mxu2 %v4670_v13  ;;  %4862 = vmatpush.msrb.mxu3 %v4671_v6  ;;  %v4701_v6 = vmax.f32 %v4515_v47, 0.0 }
 0xafa   : > { %4834 = vmatmul.f32.vlgmr.msrb.gmra.mxu2 %v11383_v40  ;;  %4863 = vmatmul.f32.vlgmr.msrb.gmra.mxu3 %v11383_v40  ;;  %v4465_v34 = vadd.f32 %v4464_v49, %v11282_v14  ;;  %v4530_v50 = vadd.f32 %v4529_v46, %v11282_v14  ;;  %v11410_v14 = vld [vmem:[%s5650_s16 + $0x18] sm:$0xff]  ;;  %v4693_v46 = vmax.f32 %v4509_v25, 0.0 }
 0xafc   : > { %v4720_v1 = vmax.f32 %v4465_v34, 0.0  ;;  %v4721_v33 = vmax.f32 %v4530_v50, 0.0  ;;  %v13110_v50 = vld [vmem:[#allocation141_spill] sm:$0xff] }
 0xb01   : > { %v4467_v30 = vpop.f32.mrf.mxu0  ;;  %v4532_v56 = vpop.f32.mrf.mxu1 }
 0xb02   : > { %4837 = vmatmul.f32.gmra.mxu2 %v11388_v39  ;;  %4866 = vmatmul.f32.gmra.mxu3 %v11388_v39  ;;  %v4468_v7 = vadd.f32 %v4467_v30, %v11280_v32  ;;  %v4533_v19 = vadd.f32 %v4532_v56, %v11280_v32  ;;  %v13105_v56 = vld [vmem:[#allocation160_spill] sm:$0xff] }
 0xb03   : > { %v4432_v35 = vadd.f32 %v13105_v56, %v11364_v60  ;;  %v13120_v56 = vld [vmem:[#allocation125_spill] sm:$0xff] }
 0xb04   : > { %v4724_v32 = vmax.f32 %v4468_v7, 0.0  ;;  %v4725_v57 = vmax.f32 %v4533_v19, 0.0  ;;  %v13106_v7 = vld [vmem:[#allocation156_spill] sm:$0xff]  ;;  %v13108_v19 = vld [vmem:[#allocation139_spill] sm:$0xff] }
 0xb05   : > { %v4497_v54 = vadd.f32 %v13106_v7, %v11364_v60  ;;  %v4491_v60 = vadd.f32 %v13110_v50, %v11376_v45  ;;  %v13123_v50 = vld [vmem:[#allocation132_spill] sm:$0xff] }
 0xb09   : > { %v4470_v0 = vpop.f32.mrf.mxu0  ;;  %v4535_v48 = vpop.f32.mrf.mxu1 }
 0xb0a   : > { %v4471_v37 = vadd.f32 %v4470_v0, %v11274_v23  ;;  %v4536_v31 = vadd.f32 %v4535_v48, %v11274_v23  ;;  %4840 = vmatmul.f32.gmra.mxu2 %v11393_v5  ;;  %4869 = vmatmul.f32.gmra.mxu3 %v11393_v5  ;;  %v4459_v23 = vadd.f32 %v11352_v59, %v11290_v12  ;;  %v4685_v0 = vmax.f32 %v4503_v27, 0.0  ;;  %v13107_v48 = vld [vmem:[#allocation128_spill] sm:$0xff] }
 0xb0b   : > { %v4453_v12 = vadd.f32 %v11306_v62, %v11298_v58  ;;  %v4518_v59 = vadd.f32 %v11308_v61, %v11298_v58  ;;  %v4447_v62 = vadd.f32 %v11284_v52, %v11314_v63  ;;  %v4512_v58 = vadd.f32 %v11286_v24, %v11314_v63 }
 0xb0c   : > { %v4728_v8 = vmax.f32 %v4471_v37, 0.0  ;;  %v4729_v51 = vmax.f32 %v4536_v31, 0.0  ;;  %v4712_v44 = vmax.f32 %v4459_v23, 0.0  ;;  %v4441_v52 = vadd.f32 %v11270_v38, %v11334_v20  ;;  %v13109_v31 = vld [vmem:[#allocation33_spill] sm:$0xff] }
 0xb0d   : > { %v4704_v61 = vmax.f32 %v4453_v12, 0.0  ;;  %v4705_v13 = vmax.f32 %v4518_v59, 0.0  ;;  %v4506_v24 = vadd.f32 %v11272_v10, %v11334_v20  ;;  %v4696_v63 = vmax.f32 %v4447_v62, 0.0  ;;  %v13113_v12 = vld [vmem:[#allocation116_spill] sm:$0xff] }
 0xb0e   : > { %4760 = vmatpush.msrb.mxu0 %v4728_v8  ;;  %4789 = vmatpush.msrb.mxu1 %v4729_v51  ;;  %v4697_v49 = vmax.f32 %v4512_v58, 0.0  ;;  %v4435_v38 = vadd.f32 %v11262_v15, %v11346_v43  ;;  %v4500_v10 = vadd.f32 %v11264_v42, %v11346_v43  ;;  %v4688_v20 = vmax.f32 %v4441_v52, 0.0  ;;  %v13115_v58 = vld [vmem:[#allocation113_spill] sm:$0xff] }
 0xb0f   : > { %v4689_v30 = vmax.f32 %v4506_v24, 0.0  ;;  %v4429_v15 = vadd.f32 %v13107_v48, %v11370_v28  ;;  %v4494_v42 = vadd.f32 %v13108_v19, %v11370_v28  ;;  %v4426_v34 = vadd.f32 %v13109_v31, %v11376_v45  ;;  %v4743_v45 = vpop.permute.xlu1 %4742  ;;  %v13121_v48 = vld [vmem:[#allocation136_spill] sm:$0xff]  ;;  %v13122_v19 = vld [vmem:[#allocation135_spill] sm:$0xff] }
 0xb10   : > { %4761 = vmatpush.msrb.mxu0 %v4724_v32  ;;  %4790 = vmatpush.msrb.mxu1 %v4725_v57  ;;  %v4680_v43 = vmax.f32 %v4435_v38, 0.0  ;;  %v4681_v37 = vmax.f32 %v4500_v10, 0.0  ;;  %v4676_v8 = vmax.f32 %v4432_v35, 0.0  ;;  %v4677_v51 = vmax.f32 %v4497_v54, 0.0 }
 0xb11   : > { %v4672_v18 = vmax.f32 %v4429_v15, 0.0  ;;  %v4673_v53 = vmax.f32 %v4494_v42, 0.0  ;;  %v4668_v32 = vmax.f32 %v4426_v34, 0.0  ;;  %v4669_v28 = vmax.f32 %v4491_v60, 0.0 }
 0xb12   : > { %4762 = vmatpush.msrb.mxu0 %v4720_v1  ;;  %4791 = vmatpush.msrb.mxu1 %v4721_v33 }
 0xb13   : > { %4843 = vmatmul.f32.gmra.mxu2 %v11410_v14  ;;  %4872 = vmatmul.f32.gmra.mxu3 %v11410_v14 }
 0xb14   : > { %4763 = vmatpush.msrb.mxu0 %v4716_v11  ;;  %4792 = vmatpush.msrb.mxu1 %v4717_v22 }
 0xb16   : > { %4764 = vmatpush.msrb.mxu0 %v4712_v44  ;;  %4793 = vmatpush.msrb.mxu1 %v4713_v16  ;;  %v13114_v44 = vld [vmem:[#allocation22_spill] sm:$0xff] }
 0xb17   : > { %v4758_v25 = vpop.permute.xlu1 %4757 }
 0xb18   : > { %4765 = vmatpush.msrb.mxu0 %v4708_v9  ;;  %4794 = vmatpush.msrb.mxu1 %v4709_v2 }
 0xb1a   : > { %4766 = vmatpush.msrb.mxu0 %v4704_v61  ;;  %4795 = vmatpush.msrb.mxu1 %v4705_v13  ;;  %v13116_v13 = vld [vmem:[#allocation129_spill] sm:$0xff] }
 0xb1c   : > { %4767 = vmatpush.msrb.mxu0 %v4700_v55  ;;  %4796 = vmatpush.msrb.mxu1 %v4701_v6 }
 0xb1e   : > { %4768 = vmatpush.msrb.mxu0 %v4696_v63  ;;  %4797 = vmatpush.msrb.mxu1 %v4697_v49  ;;  %v13117_v63 = vld [vmem:[#allocation123_spill] sm:$0xff] }
 0xb20   : > { %4769 = vmatpush.msrb.mxu0 %v4692_v21  ;;  %4798 = vmatpush.msrb.mxu1 %v4693_v46 }
 0xb22   : > { %4770 = vmatpush.msrb.mxu0 %v4688_v20  ;;  %4799 = vmatpush.msrb.mxu1 %v4689_v30  ;;  %v13119_v20 = vld [vmem:[#allocation52_spill] sm:$0xff] }
 0xb24   : > { %4771 = vmatpush.msrb.mxu0 %v4684_v17  ;;  %4800 = vmatpush.msrb.mxu1 %v4685_v0 }
 0xb26   : > { %4772 = vmatpush.msrb.mxu0 %v4680_v43  ;;  %4801 = vmatpush.msrb.mxu1 %v4681_v37 }
 0xb28   : > { %4773 = vmatpush.msrb.mxu0 %v4676_v8  ;;  %4802 = vmatpush.msrb.mxu1 %v4677_v51  ;;  %v13124_v8 = vld [vmem:[#allocation37_spill] sm:$0xff] }
 0xb2a   : > { %4774 = vmatpush.msrb.mxu0 %v4672_v18  ;;  %4803 = vmatpush.msrb.mxu1 %v4673_v53 }
 0xb2c   : > { %4775 = vmatpush.msrb.mxu0 %v4668_v32  ;;  %4804 = vmatpush.msrb.mxu1 %v4669_v28 }
 0xb2d   : > { %4776 = vmatmul.f32.vlgmr.msrb.gmra.mxu0 %v11383_v40  ;;  %4805 = vmatmul.f32.vlgmr.msrb.gmra.mxu1 %v11383_v40  ;;  %v13111_v40 = vld [vmem:[#allocation127_spill] sm:$0xff] }
 0xb35   : > { %4779 = vmatmul.f32.gmra.mxu0 %v11388_v39  ;;  %4808 = vmatmul.f32.gmra.mxu1 %v11388_v39  ;;  %v4748_v39 = vpop.permute.xlu2 %4747 }
 0xb3d   : > { %4782 = vmatmul.f32.gmra.mxu0 %v11393_v5  ;;  %4811 = vmatmul.f32.gmra.mxu1 %v11393_v5 }
 0xb45   : > { %4785 = vmatmul.f32.gmra.mxu0 %v11410_v14  ;;  %4814 = vmatmul.f32.gmra.mxu1 %v11410_v14 }
 0xb7d   : > { %v4835_v57 = vpop.f32.mrf.mxu2  ;;  %v4864_v23 = vpop.f32.mrf.mxu3 }
 0xb7e   : > { %v4836_v29 = vadd.f32 %v4835_v57, %v4743_v45  ;;  %v4865_v1 = vadd.f32 %v4864_v23, %v4743_v45  ;;  %v13126_v23 = vld [vmem:[#allocation34_spill] sm:$0xff] }
 0xb80   : > { %v4878_v33 = vadd.f32 %v4836_v29, %v13111_v40  ;;  %v4879_v4 = vadd.f32 %v4865_v1, %v13112_v36 }
 0xb82   : > { %4894 = vst [vmem:[#allocation2 + $0x58] sm:$0xff] %v4878_v33 }
 0xb83   : > { %4910 = vst [vmem:[%s5660_s1 + $0x10] sm:$0xff] %v4878_v33 }
 0xb84   : > { %4895 = vst [vmem:[#allocation2 + $0x18] sm:$0xff] %v4879_v4 }
 0xb85   : > { %4911 = vst [vmem:[%s5660_s1 + $0x18] sm:$0xff] %v4879_v4  ;;  %v4838_v5 = vpop.f32.mrf.mxu2  ;;  %v4867_v11 = vpop.f32.mrf.mxu3 }
 0xb86   : > { %v4839_v22 = vadd.f32 %v4838_v5, %v4748_v39  ;;  %v4868_v14 = vadd.f32 %v4867_v11, %v4748_v39 }
 0xb88   : > { %v4882_v59 = vadd.f32 %v4839_v22, %v13113_v12  ;;  %v4883_v16 = vadd.f32 %v4868_v14, %v13114_v44 }
 0xb8a   : > { %4898 = vst [vmem:[#allocation2 + $0x8] sm:$0xff] %v4882_v59 }
 0xb8b   : > { %4914 = vst [vmem:[%s5660_s1 + $0x30] sm:$0xff] %v4882_v59 }
 0xb8c   : > { %4899 = vst [vmem:[#allocation2 + $0x48] sm:$0xff] %v4883_v16 }
 0xb8d   : > { %4915 = vst [vmem:[%s5660_s1 + $0x38] sm:$0xff] %v4883_v16  ;;  %v4841_v47 = vpop.f32.mrf.mxu2  ;;  %v4870_v9 = vpop.f32.mrf.mxu3 }
 0xb8e   : > { %v4842_v2 = vadd.f32 %v4841_v47, %v4753_v41  ;;  %v4871_v62 = vadd.f32 %v4870_v9, %v4753_v41 }
 0xb90   : > { %v4886_v61 = vadd.f32 %v4842_v2, %v13115_v58  ;;  %v4887_v3 = vadd.f32 %v4871_v62, %v13116_v13 }
 0xb92   : > { %4902 = vst [vmem:[#allocation2 + $0x10] sm:$0xff] %v4886_v61 }
 0xb93   : > { %4918 = vst [vmem:[%s5660_s1 + $0x50] sm:$0xff] %v4886_v61 }
 0xb94   : > { %4903 = vst [vmem:[#allocation2 + $0x38] sm:$0xff] %v4887_v3 }
 0xb95   : > { %4919 = vst [vmem:[%s5660_s1 + $0x58] sm:$0xff] %v4887_v3 }
 0xb96   : > { %v4844_v55 = vpop.f32.mrf.mxu2  ;;  %v4873_v6 = vpop.f32.mrf.mxu3 }
 0xb97   : > { %v4845_v52 = vadd.f32 %v4844_v55, %v4758_v25  ;;  %v4874_v24 = vadd.f32 %v4873_v6, %v4758_v25 }
 0xb99   : > { %v4890_v49 = vadd.f32 %v4845_v52, %v13117_v63  ;;  %v4891_v27 = vadd.f32 %v4874_v24, %v13118_v26 }
 0xb9b   : > { %4906 = vst [vmem:[#allocation2 + $0x78] sm:$0xff] %v4890_v49 }
 0xb9c   : > { %4922 = vst [vmem:[%s5660_s1 + $0x70] sm:$0xff] %v4890_v49 }
 0xb9d   : > { %4907 = vst [vmem:[#allocation2 + $0x28] sm:$0xff] %v4891_v27 }
 0xb9e   : > { %4923 = vst [vmem:[%s5660_s1 + $0x78] sm:$0xff] %v4891_v27 }
 0xbaa   : > { %v4777_v21 = vpop.f32.mrf.mxu0  ;;  %v4806_v46 = vpop.f32.mrf.mxu1 }
 0xbab   : > { %v4778_v38 = vadd.f32 %v4777_v21, %v4743_v45  ;;  %v4807_v10 = vadd.f32 %v4806_v46, %v4743_v45  ;;  %v13125_v45 = vld [vmem:[#allocation130_spill] sm:$0xff] }
 0xbad   : > { %v4876_v30 = vadd.f32 %v4778_v38, %v13119_v20  ;;  %v4877_v35 = vadd.f32 %v4807_v10, %v13120_v56 }
 0xbaf   : > { %4892 = vst [vmem:[#allocation2 + $0x30] sm:$0xff] %v4876_v30 }
 0xbb0   : > { %4908 = vst [vmem:[%s5660_s1] sm:$0xff] %v4876_v30 }
 0xbb1   : > { %4893 = vst [vmem:[#allocation2] sm:$0xff] %v4877_v35 }
 0xbb2   : > { %4909 = vst [vmem:[%s5660_s1 + $0x8] sm:$0xff] %v4877_v35  ;;  %v4780_v7 = vpop.f32.mrf.mxu0  ;;  %v4809_v54 = vpop.f32.mrf.mxu1 }
 0xbb3   : > { %v4781_v17 = vadd.f32 %v4780_v7, %v4748_v39  ;;  %v4810_v0 = vadd.f32 %v4809_v54, %v4748_v39 }
 0xbb5   : > { %v4880_v15 = vadd.f32 %v4781_v17, %v13121_v48  ;;  %v4881_v42 = vadd.f32 %v4810_v0, %v13122_v19 }
 0xbb7   : > { %4896 = vst [vmem:[#allocation2 + $0x50] sm:$0xff] %v4880_v15 }
 0xbb8   : > { %4912 = vst [vmem:[%s5660_s1 + $0x20] sm:$0xff] %v4880_v15 }
 0xbb9   : > { %4897 = vst [vmem:[#allocation2 + $0x68] sm:$0xff] %v4881_v42 }
 0xbba   : > { %4913 = vst [vmem:[%s5660_s1 + $0x28] sm:$0xff] %v4881_v42  ;;  %v4783_v43 = vpop.f32.mrf.mxu0  ;;  %v4812_v37 = vpop.f32.mrf.mxu1 }
 0xbbb   : > { %v4784_v31 = vadd.f32 %v4783_v43, %v4753_v41  ;;  %v4813_v34 = vadd.f32 %v4812_v37, %v4753_v41 }
 0xbbd   : > { %v4884_v60 = vadd.f32 %v4784_v31, %v13123_v50  ;;  %v4885_v51 = vadd.f32 %v4813_v34, %v13124_v8 }
 0xbbf   : > { %4900 = vst [vmem:[#allocation2 + $0x40] sm:$0xff] %v4884_v60 }
 0xbc0   : > { %4916 = vst [vmem:[%s5660_s1 + $0x40] sm:$0xff] %v4884_v60 }
 0xbc1   : > { %4901 = vst [vmem:[#allocation2 + $0x20] sm:$0xff] %v4885_v51 }
 0xbc2   : > { %4917 = vst [vmem:[%s5660_s1 + $0x48] sm:$0xff] %v4885_v51  ;;  %v4786_v18 = vpop.f32.mrf.mxu0  ;;  %v4815_v53 = vpop.f32.mrf.mxu1 }
 0xbc3   : > { %v4787_v32 = vadd.f32 %v4786_v18, %v4758_v25  ;;  %v4816_v28 = vadd.f32 %v4815_v53, %v4758_v25 }
 0xbc5   : > { %v4888_v57 = vadd.f32 %v4787_v32, %v13125_v45  ;;  %v4889_v29 = vadd.f32 %v4816_v28, %v13126_v23 }
 0xbc7   : > { %4904 = vst [vmem:[#allocation2 + $0x60] sm:$0xff] %v4888_v57 }
 0xbc8   : > { %4920 = vst [vmem:[%s5660_s1 + $0x60] sm:$0xff] %v4888_v57 }
 0xbc9   : > { %4905 = vst [vmem:[#allocation2 + $0x70] sm:$0xff] %v4889_v29 }
 0xbca   : > { %4921 = vst [vmem:[%s5660_s1 + $0x68] sm:$0xff] %v4889_v29 }
 0xbcb PF: > { %s13127_s0 = sld [smem:[#allocation5_spill]] }
 0xbcc   : > { %s13128_s21 = sld [smem:[#allocation3_spill]] }
 0xbcd   : > { %s13129_s22 = sld [smem:[#allocation4_spill]] }
 0xbce   : > { %s13130_s23 = sld [smem:[#allocation6_spill]] }
 0xbcf   : > { %s13131_s24 = sld [smem:[#allocation7_spill]] }
 0xbd1   : > { %s22_s25 = sadd.s32 1, %s13127_s0  }
 0xbd2   : > { %p19_p8 = scmp.ge.s32.totalorder %s22_s25, 6  }
 0xbd4   :  { %21 = sbr.rel (!%p19_p8) target bundleno = 8 (0x8), region = 157 }

</bundles_post_ra>
